<compile_context>
chip_gen: v5e
topology: v5e:2x2
jax: 0.10.0
libtpu: 0.0.40
codegen_flags: <defaults>
</compile_context>

<pallas_src>
import functools

import jax
import jax.numpy as jnp
from jax.experimental import pallas as pl
from jax.experimental.pallas import tpu as pltpu

_NEG_SLOPE = 0.2
_VMEM_LIMIT = 40 * 1024 * 1024      # leave headroom under v7x's 64 MiB physical VMEM
_COMPUTE_DTYPE = jnp.bfloat16       # activations/weights; matmuls accumulate in f32


def _round_up(x, m):
    return ((x + m - 1) // m) * m


def _pick_tile(m, bytes_per_row, budget=12 * 1024 * 1024, cap=256, align=16):
    """Row tile: largest 16-aligned tile whose estimated VMEM footprint fits `budget`,
    capped at 256 rows (keeps grids multi-step for 2-TC chips and bounds f32 temps)."""
    tm = min(cap, max(align, budget // max(int(bytes_per_row), 1)))
    tm = max(align, (tm // align) * align)
    return min(tm, _round_up(m, align))


def _compiler_params(semantics):
    return pltpu.CompilerParams(dimension_semantics=semantics,
                                vmem_limit_bytes=_VMEM_LIMIT)


# ----------------------------- fused edge conv (proj + MLP + neighbor max) -----------------------------

def _edgeconv_kernel(*refs, n_extra, negative_slope):
    """One row tile of DGCNN/DeltaConv scalar-stream edge conv, fully in VMEM:
         p_i  = x_i @ (W_top - W_bot) + b1                      (per point)
         q_j  = h_j @ W_bot   for all k neighbors, ONE long-M matmul
         h    = leaky(p_i + q_j) -> (mlp_depth-1) x [Linear + leaky]  (batched over k*tm rows)
         out  = max over k neighbors
    Elementwise chain in bf16; f32 only at MXU accumulate."""
    x_ref, hj_ref, wp_ref, b1_ref, wq_ref = refs[:5]
    o_ref = refs[5 + 2 * n_extra]
    k, tm, c_prev = hj_ref.shape
    c_out = wp_ref.shape[1]
    cdt = o_ref.dtype

    def lrelu(v):
        return jnp.where(v > 0, v, negative_slope * v)

    # Per-point projection (never round-trips HBM).
    p = jnp.dot(x_ref[...], wp_ref[...], preferred_element_type=jnp.float32)
    p = p.astype(cdt) + b1_ref[...]                                   # [tm, c_out]

    # All k neighbor projections as a single [k*tm, c_prev] @ [c_prev, c_out] matmul.
    hj = hj_ref[...].reshape(k * tm, c_prev)
    q = jnp.dot(hj, wq_ref[...], preferred_element_type=jnp.float32)  # [k*tm, c_out]
    h = lrelu(q.astype(cdt).reshape(k, tm, c_out) + p[None])          # bf16 elementwise

    for l in range(n_extra):
        w = refs[5 + 2 * l][...]
        b = refs[6 + 2 * l][...]
        c_next = w.shape[1]
        z = jnp.dot(h.reshape(k * tm, h.shape[-1]), w,
                    preferred_element_type=jnp.float32)               # one RHS push / layer
        h = lrelu(z.astype(cdt) + b).reshape(k, tm, c_next)

    o_ref[...] = jnp.max(h, axis=0).astype(o_ref.dtype)               # k-neighbor max


def edge_conv_layer(h, idx, layer_params, *, negative_slope=_NEG_SLOPE):
    """max_j MLP([x_i, x_j - x_i]); first linear refactored so only the narrow previous-layer
    features are gathered (neighbor-major [k, M, c_prev]) and the [.., k, 2C] edge tensor is
    never built."""
    bsz, npts, c_prev = h.shape
    k = idx.shape[-1]
    w1, b1 = layer_params[0]
    c_out = w1.shape[1]
    m = bsz * npts

    wp = (w1[:c_prev] - w1[c_prev:]).astype(h.dtype)     # acts on x_i
    wq = w1[c_prev:]                                     # acts on gathered x_j

    # Neighbor-major gather of previous-layer features: [k, M, c_prev] (narrowest possible).
    idx_kbn = jnp.transpose(idx, (2, 0, 1))              # [k, B, N] (tiny int array)
    hj = jax.vmap(lambda ik: jnp.take_along_axis(h, ik[:, :, None], axis=1))(idx_kbn)
    hj = hj.reshape(k, m, c_prev)

    extras = layer_params[1:]
    weight_args, weight_specs = [], []
    for w, b in extras:
        weight_args += [w, b.reshape(1, -1)]
        weight_specs += [pl.BlockSpec(w.shape, lambda i: (0, 0)),
                         pl.BlockSpec((1, w.shape[1]), lambda i: (0, 0))]

    # VMEM estimate per tile row (lane-padded, incl. double buffers + f32/bf16 edge slabs).
    cp_pad = _round_up(c_prev, 128)
    co_pad = _round_up(c_out, 128)
    bytes_per_row = (2 * k * cp_pad * 2            # hj bf16, double-buffered
                     + 2 * (cp_pad + co_pad) * 2   # x tile + output tile, double-buffered
                     + k * co_pad * 6)             # in-kernel f32 + bf16 edge slabs
    tm = _pick_tile(m, bytes_per_row)

    out = pl.pallas_call(
        functools.partial(_edgeconv_kernel, n_extra=len(extras),
                          negative_slope=negative_slope),
        out_shape=jax.ShapeDtypeStruct((m, c_out), h.dtype),
        grid=(pl.cdiv(m, tm),),
        in_specs=[pl.BlockSpec((tm, c_prev), lambda i: (i, 0)),        # x_i
                  pl.BlockSpec((k, tm, c_prev), lambda i: (0, i, 0)),  # neighbor-major h_j
                  pl.BlockSpec((c_prev, c_out), lambda i: (0, 0)),     # W_top - W_bot
                  pl.BlockSpec((1, c_out), lambda i: (0, 0)),          # b1
                  pl.BlockSpec((c_prev, c_out), lambda i: (0, 0))]     # W_bot
                 + weight_specs,
        out_specs=pl.BlockSpec((tm, c_out), lambda i: (i, 0)),
        compiler_params=_compiler_params(("parallel",)),
    )(h.reshape(m, c_prev), hj, wp, b1.reshape(1, c_out), wq, *weight_args)
    return out.reshape(bsz, npts, c_out)


# ----------------------------- fused lin_global + global max pool + head MLP1 (global part) ----------

def _lin_global_pool_head_kernel(*refs, n_in, n_points, negative_slope):
    """g = leaky(cat(conv_out) @ Wg + bg) per point tile, folded into an f32 per-cloud max
    scratch; at the last tile emit gm_head = max @ W1[:emb] + b1.  Neither the [B,N,1024]
    embedding nor the [B,1,1024] max ever reach HBM."""
    x_refs = refs[:n_in]
    wg_refs = refs[n_in:2 * n_in]
    bg_ref = refs[2 * n_in]
    w1g_ref = refs[2 * n_in + 1]
    b1_ref = refs[2 * n_in + 2]
    o_ref = refs[2 * n_in + 3]
    acc_ref = refs[2 * n_in + 4]                          # f32 [1, emb] scratch
    t = pl.program_id(1)
    tm = x_refs[0].shape[1]

    g = None
    for x_ref, w_ref in zip(x_refs, wg_refs):             # split Wg rows -> no concat in HBM
        d = jnp.dot(x_ref[0], w_ref[...], preferred_element_type=jnp.float32)
        g = d if g is None else g + d
    g = g + bg_ref[...].astype(jnp.float32)
    g = jnp.where(g > 0, g, negative_slope * g)

    rows = t * tm + jax.lax.broadcasted_iota(jnp.int32, g.shape, 0)
    g = jnp.where(rows < n_points, g, -jnp.inf)           # mask ragged last point tile
    tile_max = jnp.max(g, axis=0, keepdims=True)          # [1, emb] f32

    @pl.when(t == 0)
    def _():
        acc_ref[...] = tile_max

    @pl.when(t > 0)
    def _():
        acc_ref[...] = jnp.maximum(acc_ref[...], tile_max)

    @pl.when(t == pl.num_programs(1) - 1)
    def _():
        gm = jnp.dot(acc_ref[...].astype(w1g_ref.dtype), w1g_ref[...],
                     preferred_element_type=jnp.float32)
        o_ref[0] = (gm + b1_ref[...].astype(jnp.float32)).astype(o_ref.dtype)


def lin_global_pool_head(conv_out, lin_global_params, head_mlp1_params, *,
                         negative_slope=_NEG_SLOPE):
    """-> [B, 1, 256] = leakyless head-MLP1 contribution of the per-cloud global max (+ b1).
    Assumes equal-size clouds laid out as [B, Npts, C] (regular Batch.from_data_list)."""
    bsz, npts, _ = conv_out[0].shape
    wg, bg = lin_global_params
    emb = wg.shape[1]
    w1, b1 = head_mlp1_params
    w1g = w1[:emb]                                        # head-MLP1 rows acting on the max
    hdim = w1.shape[1]

    wg_splits, off = [], 0
    for xo in conv_out:
        c = xo.shape[-1]
        wg_splits.append(wg[off:off + c])
        off += c

    sum_c = sum(xo.shape[-1] for xo in conv_out)
    bytes_per_row = 2 * sum_c * 2 + emb * 6
    tm = _pick_tile(npts, bytes_per_row)
    n_in = len(conv_out)

    in_specs = [pl.BlockSpec((1, tm, xo.shape[-1]), lambda bb, t: (bb, t, 0))
                for xo in conv_out]
    in_specs += [pl.BlockSpec(ws.shape, lambda bb, t: (0, 0)) for ws in wg_splits]
    in_specs += [pl.BlockSpec((1, emb), lambda bb, t: (0, 0)),
                 pl.BlockSpec((emb, hdim), lambda bb, t: (0, 0)),
                 pl.BlockSpec((1, hdim), lambda bb, t: (0, 0))]

    return pl.pallas_call(
        functools.partial(_lin_global_pool_head_kernel, n_in=n_in, n_points=npts,
                          negative_slope=negative_slope),
        out_shape=jax.ShapeDtypeStruct((bsz, 1, hdim), jnp.float32),
        grid=(bsz, pl.cdiv(npts, tm)),
        in_specs=in_specs,
        out_specs=pl.BlockSpec((1, 1, hdim), lambda bb, t: (bb, 0, 0)),
        scratch_shapes=[pltpu.VMEM((1, emb), jnp.float32)],
        compiler_params=_compiler_params(("parallel", "arbitrary")),
    )(*conv_out, *wg_splits, bg.reshape(1, emb), w1g, b1.reshape(1, hdim))


# ----------------------------- fused segmentation head -----------------------------

def _seg_head_kernel(*refs, n_in, negative_slope):
    """Whole head on one point tile: weights resident in VMEM, the precomputed global row
    broadcast in-register (b1 already folded into it), no [B,N,1472] concat in HBM."""
    gm_ref = refs[0]
    x_refs = refs[1:1 + n_in]
    w1x_refs = refs[1 + n_in:1 + 2 * n_in]
    w2_ref, b2_ref, w3_ref, b3_ref, w4_ref, b4_ref = refs[1 + 2 * n_in:7 + 2 * n_in]
    o_ref = refs[7 + 2 * n_in]
    cdt = x_refs[0].dtype

    def lrelu(v):
        return jnp.where(v > 0, v, negative_slope * v)

    h = None
    for x_ref, w_ref in zip(x_refs, w1x_refs):            # split W1 rows -> no concat in HBM
        d = jnp.dot(x_ref[0], w_ref[...], preferred_element_type=jnp.float32)
        h = d if h is None else h + d
    h = lrelu(h + gm_ref[0]).astype(cdt)                  # + global row (b1 folded in)
    h = lrelu(jnp.dot(h, w2_ref[...], preferred_element_type=jnp.float32).astype(cdt)
              + b2_ref[...])
    h = lrelu(jnp.dot(h, w3_ref[...], preferred_element_type=jnp.float32).astype(cdt)
              + b3_ref[...])
    y = jnp.dot(h, w4_ref[...], preferred_element_type=jnp.float32) \
        + b4_ref[...].astype(jnp.float32)
    o_ref[0] = y.astype(o_ref.dtype)


def segmentation_head(gm_head, conv_out, params, *, negative_slope=_NEG_SLOPE,
                      out_dtype=jnp.float32):
    bsz, npts, _ = conv_out[0].shape
    n_in = len(conv_out)
    w1, _ = params["head_mlp1"]
    w2, b2 = params["head_mlp2"]
    w3, b3 = params["head_lin1"]
    w4, b4 = params["head_lin2"]
    nc = w4.shape[1]
    hdim = w1.shape[1]
    sum_c = sum(xo.shape[-1] for xo in conv_out)
    emb = w1.shape[0] - sum_c

    w1x, off = [], emb
    for xo in conv_out:
        c = xo.shape[-1]
        w1x.append(w1[off:off + c])
        off += c

    bytes_per_row = 2 * sum_c * 2 + hdim * 8 + 2 * nc * 4
    tm = _pick_tile(npts, bytes_per_row)

    in_specs = [pl.BlockSpec((1, 1, hdim), lambda bb, t: (bb, 0, 0))]
    in_specs += [pl.BlockSpec((1, tm, xo.shape[-1]), lambda bb, t: (bb, t, 0))
                 for xo in conv_out]
    in_specs += [pl.BlockSpec(ws.shape, lambda bb, t: (0, 0)) for ws in w1x]
    tail_args = []
    for w, b in ((w2, b2), (w3, b3), (w4, b4)):
        in_specs += [pl.BlockSpec(w.shape, lambda bb, t: (0, 0)),
                     pl.BlockSpec((1, w.shape[1]), lambda bb, t: (0, 0))]
        tail_args += [w, b.reshape(1, -1)]

    return pl.pallas_call(
        functools.partial(_seg_head_kernel, n_in=n_in, negative_slope=negative_slope),
        out_shape=jax.ShapeDtypeStruct((bsz, npts, nc), out_dtype),
        grid=(bsz, pl.cdiv(npts, tm)),
        in_specs=in_specs,
        out_specs=pl.BlockSpec((1, tm, nc), lambda bb, t: (bb, t, 0)),
        compiler_params=_compiler_params(("parallel", "parallel")),
    )(gm_head, *conv_out, *w1x, *tail_args)


# ----------------------------- JAX glue -----------------------------

def knn_indices(pos, k):
    """k nearest neighbors (self included, loop=True).  Gram form keeps the O(N^2) work on
    the MXU.  TODO(synk): blocked Pallas knn with in-VMEM running top-k for large N."""
    sq = jnp.sum(pos * pos, axis=-1)
    gram = jnp.einsum("bic,bjc->bij", pos, pos)
    d2 = sq[:, :, None] + sq[:, None, :] - 2.0 * gram
    _, idx = jax.lax.top_k(-d2, k)
    return idx


# ----------------------------- parameters -----------------------------

def init_linear(key, fan_in, fan_out, dtype=_COMPUTE_DTYPE):
    kw, kb = jax.random.split(key)
    scale = 1.0 / jnp.sqrt(jnp.float32(fan_in))
    w = jax.random.uniform(kw, (fan_in, fan_out), jnp.float32, -scale, scale).astype(dtype)
    b = jax.random.uniform(kb, (fan_out,), jnp.float32, -scale, scale).astype(dtype)
    return w, b


def init_params(key, in_channels=3, conv_channels=(64, 128, 256), mlp_depth=2,
                embedding_size=1024, num_classes=128, dtype=_COMPUTE_DTYPE):
    keys = iter(jax.random.split(key, 32))
    convs = []
    c_prev = in_channels
    for c_out in conv_channels:
        layers = []
        c_in_mlp = 2 * c_prev
        for _ in range(mlp_depth):
            layers.append(init_linear(next(keys), c_in_mlp, c_out, dtype))
            c_in_mlp = c_out
        convs.append(layers)
        c_prev = c_out
    sum_c = sum(conv_channels)
    return {
        "convs": convs,
        "lin_global": init_linear(next(keys), sum_c, embedding_size, dtype),
        "head_mlp1": init_linear(next(keys), embedding_size + sum_c, 256, dtype),
        "head_mlp2": init_linear(next(keys), 256, 256, dtype),
        "head_lin1": init_linear(next(keys), 256, 128, dtype),
        "head_lin2": init_linear(next(keys), 128, num_classes, dtype),
    }


# ----------------------------- forward -----------------------------

def deltaconv_forward(params, x, pos, norm, *, k):
    """surface.x [B,N,Cin], surface.verts [B,N,3], surface.norm [B,N,3]
       -> surface.y [B,N,num_classes]."""
    del norm  # TODO(synk): normals only feed the omitted grad/div operator estimation.
    idx = knn_indices(pos, k)

    # DeltaNetBase conv stack (scalar stream only, see module-level TODO).
    h = x.astype(_COMPUTE_DTYPE)
    conv_out = []
    for layer_params in params["convs"]:
        h = edge_conv_layer(h, idx, layer_params)
        conv_out.append(h)

    # Fused lin_global MLP + per-cloud max + head-MLP1 global projection -> [B, 1, 256].
    gm_head = lin_global_pool_head(conv_out, params["lin_global"], params["head_mlp1"])
    y = segmentation_head(gm_head, conv_out, params)      # [B, N, num_classes], f32
    return y


# ----------------------------- main -----------------------------

if __name__ == "__main__":
    key = jax.random.PRNGKey(0)
    k1, k2, k3, kp = jax.random.split(key, 4)

    B, Npts = 2, 16
    dim_in, dim_out = 3, 128
    num_neighbors = 4  # reduced from the default 20 because Npts is small

    x = jax.random.normal(k1, (B, Npts, dim_in), jnp.float32)      # surface.x
    pos = jax.random.normal(k2, (B, Npts, 3), jnp.float32)         # surface.verts
    norm = jax.random.normal(k3, (B, Npts, 3), jnp.float32)        # surface.norm

    params = init_params(kp, in_channels=dim_in, num_classes=dim_out)

    fwd = jax.jit(functools.partial(deltaconv_forward, k=num_neighbors))
    y = fwd(params, x, pos, norm)
    jax.block_until_ready(y)

    assert y.shape == (B, Npts, dim_out), y.shape
    assert jnp.all(jnp.isfinite(y))
    print("KERNEL_OK")
</pallas_src>

<mosaic_0001>
module attributes {stable_mosaic.version = 11 : i64} {
  func.func @_edgeconv_kernel(%arg0: i32, %arg1: memref<32x64xbf16, #tpu.memory_space<vmem>>, %arg2: memref<4x32x64xbf16, #tpu.memory_space<vmem>>, %arg3: memref<64x128xbf16, #tpu.memory_space<vmem>>, %arg4: memref<1x128xbf16, #tpu.memory_space<vmem>>, %arg5: memref<64x128xbf16, #tpu.memory_space<vmem>>, %arg6: memref<128x128xbf16, #tpu.memory_space<vmem>>, %arg7: memref<1x128xbf16, #tpu.memory_space<vmem>>, %arg8: memref<32x128xbf16, #tpu.memory_space<vmem>>) attributes {dimension_semantics = [#tpu.dimension_semantics<parallel>], iteration_bounds = array<i64: 1>, scalar_prefetch = 0 : i64, scratch_operands = 0 : i64, tpu.core_type = #tpu.core_type<tc>, window_params = [{transform_indices = @transform_0, window_bounds = array<i64: 32, 64>}, {transform_indices = @transform_1, window_bounds = array<i64: 4, 32, 64>}, {pipeline_mode = #tpu.pipeline_mode<synchronous>, transform_indices = @transform_2, window_bounds = array<i64: 64, 128>}, {pipeline_mode = #tpu.pipeline_mode<synchronous>, transform_indices = @transform_3, window_bounds = array<i64: 1, 128>}, {pipeline_mode = #tpu.pipeline_mode<synchronous>, transform_indices = @transform_4, window_bounds = array<i64: 64, 128>}, {pipeline_mode = #tpu.pipeline_mode<synchronous>, transform_indices = @transform_5, window_bounds = array<i64: 128, 128>}, {pipeline_mode = #tpu.pipeline_mode<synchronous>, transform_indices = @transform_6, window_bounds = array<i64: 1, 128>}, {transform_indices = @transform_7, window_bounds = array<i64: 32, 128>}]} {
    %c0 = arith.constant 0 : index
    %c0_0 = arith.constant 0 : index
    %0 = vector.load %arg1[%c0, %c0_0] : memref<32x64xbf16, #tpu.memory_space<vmem>>, vector<32x64xbf16>
    %c0_1 = arith.constant 0 : index
    %c0_2 = arith.constant 0 : index
    %1 = vector.load %arg3[%c0_1, %c0_2] : memref<64x128xbf16, #tpu.memory_space<vmem>>, vector<64x128xbf16>
    %cst = arith.constant dense<0.000000e+00> : vector<32x128xf32>
    %2 = tpu.matmul %0, %1, %cst {dimension_numbers = #tpu.dot_dimension_numbers<[1], [0], [0], [1], [0, 0, 1, 1], [], []>} : vector<32x64xbf16>, vector<64x128xbf16>, vector<32x128xf32> -> vector<32x128xf32>
    %3 = arith.truncf %2 : vector<32x128xf32> to vector<32x128xbf16>
    %c0_3 = arith.constant 0 : index
    %c0_4 = arith.constant 0 : index
    %4 = vector.load %arg4[%c0_3, %c0_4] : memref<1x128xbf16, #tpu.memory_space<vmem>>, vector<1x128xbf16>
    %5 = vector.broadcast %4 : vector<1x128xbf16> to vector<32x128xbf16>
    %6 = arith.addf %3, %5 : vector<32x128xbf16>
    %c0_5 = arith.constant 0 : index
    %c0_6 = arith.constant 0 : index
    %c0_7 = arith.constant 0 : index
    %7 = vector.load %arg2[%c0_5, %c0_6, %c0_7] : memref<4x32x64xbf16, #tpu.memory_space<vmem>>, vector<4x32x64xbf16>
    %8 = vector.shape_cast %7 : vector<4x32x64xbf16> to vector<128x64xbf16>
    %c0_8 = arith.constant 0 : index
    %c0_9 = arith.constant 0 : index
    %9 = vector.load %arg5[%c0_8, %c0_9] : memref<64x128xbf16, #tpu.memory_space<vmem>>, vector<64x128xbf16>
    %cst_10 = arith.constant dense<0.000000e+00> : vector<128x128xf32>
    %10 = tpu.matmul %8, %9, %cst_10 {dimension_numbers = #tpu.dot_dimension_numbers<[1], [0], [0], [1], [0, 0, 1, 1], [], []>} : vector<128x64xbf16>, vector<64x128xbf16>, vector<128x128xf32> -> vector<128x128xf32>
    %11 = arith.truncf %10 : vector<128x128xf32> to vector<128x128xbf16>
    %12 = vector.shape_cast %11 : vector<128x128xbf16> to vector<4x32x128xbf16>
    %13 = vector.shape_cast %6 : vector<32x128xbf16> to vector<1x32x128xbf16>
    %14 = vector.broadcast %13 : vector<1x32x128xbf16> to vector<4x32x128xbf16>
    %15 = arith.addf %12, %14 : vector<4x32x128xbf16>
    %cst_11 = arith.constant 0.000000e+00 : bf16
    %16 = vector.broadcast %cst_11 : bf16 to vector<4x32x128xbf16>
    %17 = arith.cmpf ogt, %15, %16 : vector<4x32x128xbf16>
    %cst_12 = arith.constant 2.001950e-01 : bf16
    %18 = vector.broadcast %cst_12 : bf16 to vector<4x32x128xbf16>
    %19 = arith.mulf %18, %15 : vector<4x32x128xbf16>
    %20 = arith.select %17, %15, %19 : vector<4x32x128xi1>, vector<4x32x128xbf16>
    %c0_13 = arith.constant 0 : index
    %c0_14 = arith.constant 0 : index
    %21 = vector.load %arg6[%c0_13, %c0_14] : memref<128x128xbf16, #tpu.memory_space<vmem>>, vector<128x128xbf16>
    %c0_15 = arith.constant 0 : index
    %c0_16 = arith.constant 0 : index
    %22 = vector.load %arg7[%c0_15, %c0_16] : memref<1x128xbf16, #tpu.memory_space<vmem>>, vector<1x128xbf16>
    %23 = vector.shape_cast %20 : vector<4x32x128xbf16> to vector<128x128xbf16>
    %cst_17 = arith.constant dense<0.000000e+00> : vector<128x128xf32>
    %24 = tpu.matmul %23, %21, %cst_17 {dimension_numbers = #tpu.dot_dimension_numbers<[1], [0], [0], [1], [0, 0, 1, 1], [], []>} : vector<128x128xbf16>, vector<128x128xbf16>, vector<128x128xf32> -> vector<128x128xf32>
    %25 = arith.truncf %24 : vector<128x128xf32> to vector<128x128xbf16>
    %26 = vector.broadcast %22 : vector<1x128xbf16> to vector<128x128xbf16>
    %27 = arith.addf %25, %26 : vector<128x128xbf16>
    %cst_18 = arith.constant 0.000000e+00 : bf16
    %28 = vector.broadcast %cst_18 : bf16 to vector<128x128xbf16>
    %29 = arith.cmpf ogt, %27, %28 : vector<128x128xbf16>
    %cst_19 = arith.constant 2.001950e-01 : bf16
    %30 = vector.broadcast %cst_19 : bf16 to vector<128x128xbf16>
    %31 = arith.mulf %30, %27 : vector<128x128xbf16>
    %32 = arith.select %29, %27, %31 : vector<128x128xi1>, vector<128x128xbf16>
    %33 = vector.shape_cast %32 : vector<128x128xbf16> to vector<4x32x128xbf16>
    %cst_20 = arith.constant dense<0xFF80> : vector<32x128xbf16>
    %34 = vector.multi_reduction <maximumf>, %33, %cst_20 [0] : vector<4x32x128xbf16> to vector<32x128xbf16>
    %c0_21 = arith.constant 0 : index
    %c0_22 = arith.constant 0 : index
    %35 = vector.load %arg8[%c0_21, %c0_22] : memref<32x128xbf16, #tpu.memory_space<vmem>>, vector<32x128xbf16>
    tpu.vector_store %arg8[%c0_21, %c0_22], %34 {strides = array<i32>} : memref<32x128xbf16, #tpu.memory_space<vmem>>, vector<32x128xbf16>,
    return
  }
  func.func @transform_0(%arg0: i32) -> (i32, i32) {
    %c0_i32 = arith.constant 0 : i32
    %c0_i32_0 = arith.constant 0 : i32
    return %arg0, %c0_i32 : i32, i32
  }
  func.func @transform_1(%arg0: i32) -> (i32, i32, i32) {
    %c0_i32 = arith.constant 0 : i32
    %c0_i32_0 = arith.constant 0 : i32
    %c0_i32_1 = arith.constant 0 : i32
    return %c0_i32, %arg0, %c0_i32_0 : i32, i32, i32
  }
  func.func @transform_2(%arg0: i32) -> (i32, i32) {
    %c0_i32 = arith.constant 0 : i32
    %c0_i32_0 = arith.constant 0 : i32
    %c0_i32_1 = arith.constant 0 : i32
    return %c0_i32, %c0_i32_0 : i32, i32
  }
  func.func @transform_3(%arg0: i32) -> (i32, i32) {
    %c0_i32 = arith.constant 0 : i32
    %c0_i32_0 = arith.constant 0 : i32
    %c0_i32_1 = arith.constant 0 : i32
    return %c0_i32, %c0_i32_0 : i32, i32
  }
  func.func @transform_4(%arg0: i32) -> (i32, i32) {
    %c0_i32 = arith.constant 0 : i32
    %c0_i32_0 = arith.constant 0 : i32
    %c0_i32_1 = arith.constant 0 : i32
    return %c0_i32, %c0_i32_0 : i32, i32
  }
  func.func @transform_5(%arg0: i32) -> (i32, i32) {
    %c0_i32 = arith.constant 0 : i32
    %c0_i32_0 = arith.constant 0 : i32
    %c0_i32_1 = arith.constant 0 : i32
    return %c0_i32, %c0_i32_0 : i32, i32
  }
  func.func @transform_6(%arg0: i32) -> (i32, i32) {
    %c0_i32 = arith.constant 0 : i32
    %c0_i32_0 = arith.constant 0 : i32
    %c0_i32_1 = arith.constant 0 : i32
    return %c0_i32, %c0_i32_0 : i32, i32
  }
  func.func @transform_7(%arg0: i32) -> (i32, i32) {
    %c0_i32 = arith.constant 0 : i32
    %c0_i32_0 = arith.constant 0 : i32
    return %arg0, %c0_i32 : i32, i32
  }
}

module attributes {stable_mosaic.version = 11 : i64} {
  func.func @_edgeconv_kernel(%arg0: i32, %arg1: memref<32x3xbf16, #tpu.memory_space<vmem>>, %arg2: memref<4x32x3xbf16, #tpu.memory_space<vmem>>, %arg3: memref<3x64xbf16, #tpu.memory_space<vmem>>, %arg4: memref<1x64xbf16, #tpu.memory_space<vmem>>, %arg5: memref<3x64xbf16, #tpu.memory_space<vmem>>, %arg6: memref<64x64xbf16, #tpu.memory_space<vmem>>, %arg7: memref<1x64xbf16, #tpu.memory_space<vmem>>, %arg8: memref<32x64xbf16, #tpu.memory_space<vmem>>) attributes {dimension_semantics = [#tpu.dimension_semantics<parallel>], iteration_bounds = array<i64: 1>, scalar_prefetch = 0 : i64, scratch_operands = 0 : i64, tpu.core_type = #tpu.core_type<tc>, window_params = [{transform_indices = @transform_0, window_bounds = array<i64: 32, 3>}, {transform_indices = @transform_1, window_bounds = array<i64: 4, 32, 3>}, {pipeline_mode = #tpu.pipeline_mode<synchronous>, transform_indices = @transform_2, window_bounds = array<i64: 3, 64>}, {pipeline_mode = #tpu.pipeline_mode<synchronous>, transform_indices = @transform_3, window_bounds = array<i64: 1, 64>}, {pipeline_mode = #tpu.pipeline_mode<synchronous>, transform_indices = @transform_4, window_bounds = array<i64: 3, 64>}, {pipeline_mode = #tpu.pipeline_mode<synchronous>, transform_indices = @transform_5, window_bounds = array<i64: 64, 64>}, {pipeline_mode = #tpu.pipeline_mode<synchronous>, transform_indices = @transform_6, window_bounds = array<i64: 1, 64>}, {transform_indices = @transform_7, window_bounds = array<i64: 32, 64>}]} {
    %c0 = arith.constant 0 : index
    %c0_0 = arith.constant 0 : index
    %0 = vector.load %arg1[%c0, %c0_0] : memref<32x3xbf16, #tpu.memory_space<vmem>>, vector<32x3xbf16>
    %c0_1 = arith.constant 0 : index
    %c0_2 = arith.constant 0 : index
    %1 = vector.load %arg3[%c0_1, %c0_2] : memref<3x64xbf16, #tpu.memory_space<vmem>>, vector<3x64xbf16>
    %cst = arith.constant dense<0.000000e+00> : vector<32x64xf32>
    %2 = tpu.matmul %0, %1, %cst {dimension_numbers = #tpu.dot_dimension_numbers<[1], [0], [0], [1], [0, 0, 1, 1], [], []>} : vector<32x3xbf16>, vector<3x64xbf16>, vector<32x64xf32> -> vector<32x64xf32>
    %3 = arith.truncf %2 : vector<32x64xf32> to vector<32x64xbf16>
    %c0_3 = arith.constant 0 : index
    %c0_4 = arith.constant 0 : index
    %4 = vector.load %arg4[%c0_3, %c0_4] : memref<1x64xbf16, #tpu.memory_space<vmem>>, vector<1x64xbf16>
    %5 = vector.broadcast %4 : vector<1x64xbf16> to vector<32x64xbf16>
    %6 = arith.addf %3, %5 : vector<32x64xbf16>
    %c0_5 = arith.constant 0 : index
    %c0_6 = arith.constant 0 : index
    %c0_7 = arith.constant 0 : index
    %7 = vector.load %arg2[%c0_5, %c0_6, %c0_7] : memref<4x32x3xbf16, #tpu.memory_space<vmem>>, vector<4x32x3xbf16>
    %8 = vector.shape_cast %7 : vector<4x32x3xbf16> to vector<128x3xbf16>
    %c0_8 = arith.constant 0 : index
    %c0_9 = arith.constant 0 : index
    %9 = vector.load %arg5[%c0_8, %c0_9] : memref<3x64xbf16, #tpu.memory_space<vmem>>, vector<3x64xbf16>
    %cst_10 = arith.constant dense<0.000000e+00> : vector<128x64xf32>
    %10 = tpu.matmul %8, %9, %cst_10 {dimension_numbers = #tpu.dot_dimension_numbers<[1], [0], [0], [1], [0, 0, 1, 1], [], []>} : vector<128x3xbf16>, vector<3x64xbf16>, vector<128x64xf32> -> vector<128x64xf32>
    %11 = arith.truncf %10 : vector<128x64xf32> to vector<128x64xbf16>
    %12 = vector.shape_cast %11 : vector<128x64xbf16> to vector<4x32x64xbf16>
    %13 = vector.shape_cast %6 : vector<32x64xbf16> to vector<1x32x64xbf16>
    %14 = vector.broadcast %13 : vector<1x32x64xbf16> to vector<4x32x64xbf16>
    %15 = arith.addf %12, %14 : vector<4x32x64xbf16>
    %cst_11 = arith.constant 0.000000e+00 : bf16
    %16 = vector.broadcast %cst_11 : bf16 to vector<4x32x64xbf16>
    %17 = arith.cmpf ogt, %15, %16 : vector<4x32x64xbf16>
    %cst_12 = arith.constant 2.001950e-01 : bf16
    %18 = vector.broadcast %cst_12 : bf16 to vector<4x32x64xbf16>
    %19 = arith.mulf %18, %15 : vector<4x32x64xbf16>
    %20 = arith.select %17, %15, %19 : vector<4x32x64xi1>, vector<4x32x64xbf16>
    %c0_13 = arith.constant 0 : index
    %c0_14 = arith.constant 0 : index
    %21 = vector.load %arg6[%c0_13, %c0_14] : memref<64x64xbf16, #tpu.memory_space<vmem>>, vector<64x64xbf16>
    %c0_15 = arith.constant 0 : index
    %c0_16 = arith.constant 0 : index
    %22 = vector.load %arg7[%c0_15, %c0_16] : memref<1x64xbf16, #tpu.memory_space<vmem>>, vector<1x64xbf16>
    %23 = vector.shape_cast %20 : vector<4x32x64xbf16> to vector<128x64xbf16>
    %cst_17 = arith.constant dense<0.000000e+00> : vector<128x64xf32>
    %24 = tpu.matmul %23, %21, %cst_17 {dimension_numbers = #tpu.dot_dimension_numbers<[1], [0], [0], [1], [0, 0, 1, 1], [], []>} : vector<128x64xbf16>, vector<64x64xbf16>, vector<128x64xf32> -> vector<128x64xf32>
    %25 = arith.truncf %24 : vector<128x64xf32> to vector<128x64xbf16>
    %26 = vector.broadcast %22 : vector<1x64xbf16> to vector<128x64xbf16>
    %27 = arith.addf %25, %26 : vector<128x64xbf16>
    %cst_18 = arith.constant 0.000000e+00 : bf16
    %28 = vector.broadcast %cst_18 : bf16 to vector<128x64xbf16>
    %29 = arith.cmpf ogt, %27, %28 : vector<128x64xbf16>
    %cst_19 = arith.constant 2.001950e-01 : bf16
    %30 = vector.broadcast %cst_19 : bf16 to vector<128x64xbf16>
    %31 = arith.mulf %30, %27 : vector<128x64xbf16>
    %32 = arith.select %29, %27, %31 : vector<128x64xi1>, vector<128x64xbf16>
    %33 = vector.shape_cast %32 : vector<128x64xbf16> to vector<4x32x64xbf16>
    %cst_20 = arith.constant dense<0xFF80> : vector<32x64xbf16>
    %34 = vector.multi_reduction <maximumf>, %33, %cst_20 [0] : vector<4x32x64xbf16> to vector<32x64xbf16>
    %c0_21 = arith.constant 0 : index
    %c0_22 = arith.constant 0 : index
    %35 = vector.load %arg8[%c0_21, %c0_22] : memref<32x64xbf16, #tpu.memory_space<vmem>>, vector<32x64xbf16>
    tpu.vector_store %arg8[%c0_21, %c0_22], %34 {strides = array<i32>} : memref<32x64xbf16, #tpu.memory_space<vmem>>, vector<32x64xbf16>,
    return
  }
  func.func @transform_0(%arg0: i32) -> (i32, i32) {
    %c0_i32 = arith.constant 0 : i32
    %c0_i32_0 = arith.constant 0 : i32
    return %arg0, %c0_i32 : i32, i32
  }
  func.func @transform_1(%arg0: i32) -> (i32, i32, i32) {
    %c0_i32 = arith.constant 0 : i32
    %c0_i32_0 = arith.constant 0 : i32
    %c0_i32_1 = arith.constant 0 : i32
    return %c0_i32, %arg0, %c0_i32_0 : i32, i32, i32
  }
  func.func @transform_2(%arg0: i32) -> (i32, i32) {
    %c0_i32 = arith.constant 0 : i32
    %c0_i32_0 = arith.constant 0 : i32
    %c0_i32_1 = arith.constant 0 : i32
    return %c0_i32, %c0_i32_0 : i32, i32
  }
  func.func @transform_3(%arg0: i32) -> (i32, i32) {
    %c0_i32 = arith.constant 0 : i32
    %c0_i32_0 = arith.constant 0 : i32
    %c0_i32_1 = arith.constant 0 : i32
    return %c0_i32, %c0_i32_0 : i32, i32
  }
  func.func @transform_4(%arg0: i32) -> (i32, i32) {
    %c0_i32 = arith.constant 0 : i32
    %c0_i32_0 = arith.constant 0 : i32
    %c0_i32_1 = arith.constant 0 : i32
    return %c0_i32, %c0_i32_0 : i32, i32
  }
  func.func @transform_5(%arg0: i32) -> (i32, i32) {
    %c0_i32 = arith.constant 0 : i32
    %c0_i32_0 = arith.constant 0 : i32
    %c0_i32_1 = arith.constant 0 : i32
    return %c0_i32, %c0_i32_0 : i32, i32
  }
  func.func @transform_6(%arg0: i32) -> (i32, i32) {
    %c0_i32 = arith.constant 0 : i32
    %c0_i32_0 = arith.constant 0 : i32
    %c0_i32_1 = arith.constant 0 : i32
    return %c0_i32, %c0_i32_0 : i32, i32
  }
  func.func @transform_7(%arg0: i32) -> (i32, i32) {
    %c0_i32 = arith.constant 0 : i32
    %c0_i32_0 = arith.constant 0 : i32
    return %arg0, %c0_i32 : i32, i32
  }
}

module attributes {stable_mosaic.version = 11 : i64} {
  func.func @_edgeconv_kernel(%arg0: i32, %arg1: memref<32x128xbf16, #tpu.memory_space<vmem>>, %arg2: memref<4x32x128xbf16, #tpu.memory_space<vmem>>, %arg3: memref<128x256xbf16, #tpu.memory_space<vmem>>, %arg4: memref<1x256xbf16, #tpu.memory_space<vmem>>, %arg5: memref<128x256xbf16, #tpu.memory_space<vmem>>, %arg6: memref<256x256xbf16, #tpu.memory_space<vmem>>, %arg7: memref<1x256xbf16, #tpu.memory_space<vmem>>, %arg8: memref<32x256xbf16, #tpu.memory_space<vmem>>) attributes {dimension_semantics = [#tpu.dimension_semantics<parallel>], iteration_bounds = array<i64: 1>, scalar_prefetch = 0 : i64, scratch_operands = 0 : i64, tpu.core_type = #tpu.core_type<tc>, window_params = [{transform_indices = @transform_0, window_bounds = array<i64: 32, 128>}, {transform_indices = @transform_1, window_bounds = array<i64: 4, 32, 128>}, {pipeline_mode = #tpu.pipeline_mode<synchronous>, transform_indices = @transform_2, window_bounds = array<i64: 128, 256>}, {pipeline_mode = #tpu.pipeline_mode<synchronous>, transform_indices = @transform_3, window_bounds = array<i64: 1, 256>}, {pipeline_mode = #tpu.pipeline_mode<synchronous>, transform_indices = @transform_4, window_bounds = array<i64: 128, 256>}, {pipeline_mode = #tpu.pipeline_mode<synchronous>, transform_indices = @transform_5, window_bounds = array<i64: 256, 256>}, {pipeline_mode = #tpu.pipeline_mode<synchronous>, transform_indices = @transform_6, window_bounds = array<i64: 1, 256>}, {transform_indices = @transform_7, window_bounds = array<i64: 32, 256>}]} {
    %c0 = arith.constant 0 : index
    %c0_0 = arith.constant 0 : index
    %0 = vector.load %arg1[%c0, %c0_0] : memref<32x128xbf16, #tpu.memory_space<vmem>>, vector<32x128xbf16>
    %c0_1 = arith.constant 0 : index
    %c0_2 = arith.constant 0 : index
    %1 = vector.load %arg3[%c0_1, %c0_2] : memref<128x256xbf16, #tpu.memory_space<vmem>>, vector<128x256xbf16>
    %cst = arith.constant dense<0.000000e+00> : vector<32x256xf32>
    %2 = tpu.matmul %0, %1, %cst {dimension_numbers = #tpu.dot_dimension_numbers<[1], [0], [0], [1], [0, 0, 1, 1], [], []>} : vector<32x128xbf16>, vector<128x256xbf16>, vector<32x256xf32> -> vector<32x256xf32>
    %3 = arith.truncf %2 : vector<32x256xf32> to vector<32x256xbf16>
    %c0_3 = arith.constant 0 : index
    %c0_4 = arith.constant 0 : index
    %4 = vector.load %arg4[%c0_3, %c0_4] : memref<1x256xbf16, #tpu.memory_space<vmem>>, vector<1x256xbf16>
    %5 = vector.broadcast %4 : vector<1x256xbf16> to vector<32x256xbf16>
    %6 = arith.addf %3, %5 : vector<32x256xbf16>
    %c0_5 = arith.constant 0 : index
    %c0_6 = arith.constant 0 : index
    %c0_7 = arith.constant 0 : index
    %7 = vector.load %arg2[%c0_5, %c0_6, %c0_7] : memref<4x32x128xbf16, #tpu.memory_space<vmem>>, vector<4x32x128xbf16>
    %8 = vector.shape_cast %7 : vector<4x32x128xbf16> to vector<128x128xbf16>
    %c0_8 = arith.constant 0 : index
    %c0_9 = arith.constant 0 : index
    %9 = vector.load %arg5[%c0_8, %c0_9] : memref<128x256xbf16, #tpu.memory_space<vmem>>, vector<128x256xbf16>
    %cst_10 = arith.constant dense<0.000000e+00> : vector<128x256xf32>
    %10 = tpu.matmul %8, %9, %cst_10 {dimension_numbers = #tpu.dot_dimension_numbers<[1], [0], [0], [1], [0, 0, 1, 1], [], []>} : vector<128x128xbf16>, vector<128x256xbf16>, vector<128x256xf32> -> vector<128x256xf32>
    %11 = arith.truncf %10 : vector<128x256xf32> to vector<128x256xbf16>
    %12 = vector.shape_cast %11 : vector<128x256xbf16> to vector<4x32x256xbf16>
    %13 = vector.shape_cast %6 : vector<32x256xbf16> to vector<1x32x256xbf16>
    %14 = vector.broadcast %13 : vector<1x32x256xbf16> to vector<4x32x256xbf16>
    %15 = arith.addf %12, %14 : vector<4x32x256xbf16>
    %cst_11 = arith.constant 0.000000e+00 : bf16
    %16 = vector.broadcast %cst_11 : bf16 to vector<4x32x256xbf16>
    %17 = arith.cmpf ogt, %15, %16 : vector<4x32x256xbf16>
    %cst_12 = arith.constant 2.001950e-01 : bf16
    %18 = vector.broadcast %cst_12 : bf16 to vector<4x32x256xbf16>
    %19 = arith.mulf %18, %15 : vector<4x32x256xbf16>
    %20 = arith.select %17, %15, %19 : vector<4x32x256xi1>, vector<4x32x256xbf16>
    %c0_13 = arith.constant 0 : index
    %c0_14 = arith.constant 0 : index
    %21 = vector.load %arg6[%c0_13, %c0_14] : memref<256x256xbf16, #tpu.memory_space<vmem>>, vector<256x256xbf16>
    %c0_15 = arith.constant 0 : index
    %c0_16 = arith.constant 0 : index
    %22 = vector.load %arg7[%c0_15, %c0_16] : memref<1x256xbf16, #tpu.memory_space<vmem>>, vector<1x256xbf16>
    %23 = vector.shape_cast %20 : vector<4x32x256xbf16> to vector<128x256xbf16>
    %cst_17 = arith.constant dense<0.000000e+00> : vector<128x256xf32>
    %24 = tpu.matmul %23, %21, %cst_17 {dimension_numbers = #tpu.dot_dimension_numbers<[1], [0], [0], [1], [0, 0, 1, 1], [], []>} : vector<128x256xbf16>, vector<256x256xbf16>, vector<128x256xf32> -> vector<128x256xf32>
    %25 = arith.truncf %24 : vector<128x256xf32> to vector<128x256xbf16>
    %26 = vector.broadcast %22 : vector<1x256xbf16> to vector<128x256xbf16>
    %27 = arith.addf %25, %26 : vector<128x256xbf16>
    %cst_18 = arith.constant 0.000000e+00 : bf16
    %28 = vector.broadcast %cst_18 : bf16 to vector<128x256xbf16>
    %29 = arith.cmpf ogt, %27, %28 : vector<128x256xbf16>
    %cst_19 = arith.constant 2.001950e-01 : bf16
    %30 = vector.broadcast %cst_19 : bf16 to vector<128x256xbf16>
    %31 = arith.mulf %30, %27 : vector<128x256xbf16>
    %32 = arith.select %29, %27, %31 : vector<128x256xi1>, vector<128x256xbf16>
    %33 = vector.shape_cast %32 : vector<128x256xbf16> to vector<4x32x256xbf16>
    %cst_20 = arith.constant dense<0xFF80> : vector<32x256xbf16>
    %34 = vector.multi_reduction <maximumf>, %33, %cst_20 [0] : vector<4x32x256xbf16> to vector<32x256xbf16>
    %c0_21 = arith.constant 0 : index
    %c0_22 = arith.constant 0 : index
    %35 = vector.load %arg8[%c0_21, %c0_22] : memref<32x256xbf16, #tpu.memory_space<vmem>>, vector<32x256xbf16>
    tpu.vector_store %arg8[%c0_21, %c0_22], %34 {strides = array<i32>} : memref<32x256xbf16, #tpu.memory_space<vmem>>, vector<32x256xbf16>,
    return
  }
  func.func @transform_0(%arg0: i32) -> (i32, i32) {
    %c0_i32 = arith.constant 0 : i32
    %c0_i32_0 = arith.constant 0 : i32
    return %arg0, %c0_i32 : i32, i32
  }
  func.func @transform_1(%arg0: i32) -> (i32, i32, i32) {
    %c0_i32 = arith.constant 0 : i32
    %c0_i32_0 = arith.constant 0 : i32
    %c0_i32_1 = arith.constant 0 : i32
    return %c0_i32, %arg0, %c0_i32_0 : i32, i32, i32
  }
  func.func @transform_2(%arg0: i32) -> (i32, i32) {
    %c0_i32 = arith.constant 0 : i32
    %c0_i32_0 = arith.constant 0 : i32
    %c0_i32_1 = arith.constant 0 : i32
    return %c0_i32, %c0_i32_0 : i32, i32
  }
  func.func @transform_3(%arg0: i32) -> (i32, i32) {
    %c0_i32 = arith.constant 0 : i32
    %c0_i32_0 = arith.constant 0 : i32
    %c0_i32_1 = arith.constant 0 : i32
    return %c0_i32, %c0_i32_0 : i32, i32
  }
  func.func @transform_4(%arg0: i32) -> (i32, i32) {
    %c0_i32 = arith.constant 0 : i32
    %c0_i32_0 = arith.constant 0 : i32
    %c0_i32_1 = arith.constant 0 : i32
    return %c0_i32, %c0_i32_0 : i32, i32
  }
  func.func @transform_5(%arg0: i32) -> (i32, i32) {
    %c0_i32 = arith.constant 0 : i32
    %c0_i32_0 = arith.constant 0 : i32
    %c0_i32_1 = arith.constant 0 : i32
    return %c0_i32, %c0_i32_0 : i32, i32
  }
  func.func @transform_6(%arg0: i32) -> (i32, i32) {
    %c0_i32 = arith.constant 0 : i32
    %c0_i32_0 = arith.constant 0 : i32
    %c0_i32_1 = arith.constant 0 : i32
    return %c0_i32, %c0_i32_0 : i32, i32
  }
  func.func @transform_7(%arg0: i32) -> (i32, i32) {
    %c0_i32 = arith.constant 0 : i32
    %c0_i32_0 = arith.constant 0 : i32
    return %arg0, %c0_i32 : i32, i32
  }
}

module attributes {stable_mosaic.version = 11 : i64} {
  func.func @_seg_head_kernel(%arg0: i32, %arg1: i32, %arg2: memref<1x1x256xf32, #tpu.memory_space<vmem>>, %arg3: memref<1x16x64xbf16, #tpu.memory_space<vmem>>, %arg4: memref<1x16x128xbf16, #tpu.memory_space<vmem>>, %arg5: memref<1x16x256xbf16, #tpu.memory_space<vmem>>, %arg6: memref<64x256xbf16, #tpu.memory_space<vmem>>, %arg7: memref<128x256xbf16, #tpu.memory_space<vmem>>, %arg8: memref<256x256xbf16, #tpu.memory_space<vmem>>, %arg9: memref<256x256xbf16, #tpu.memory_space<vmem>>, %arg10: memref<1x256xbf16, #tpu.memory_space<vmem>>, %arg11: memref<256x128xbf16, #tpu.memory_space<vmem>>, %arg12: memref<1x128xbf16, #tpu.memory_space<vmem>>, %arg13: memref<128x128xbf16, #tpu.memory_space<vmem>>, %arg14: memref<1x128xbf16, #tpu.memory_space<vmem>>, %arg15: memref<1x16x128xf32, #tpu.memory_space<vmem>>) attributes {dimension_semantics = [#tpu.dimension_semantics<parallel>, #tpu.dimension_semantics<parallel>], iteration_bounds = array<i64: 2, 1>, scalar_prefetch = 0 : i64, scratch_operands = 0 : i64, tpu.core_type = #tpu.core_type<tc>, window_params = [{transform_indices = @transform_0, window_bounds = array<i64: 1, 1, 256>}, {transform_indices = @transform_1, window_bounds = array<i64: 1, 16, 64>}, {transform_indices = @transform_2, window_bounds = array<i64: 1, 16, 128>}, {transform_indices = @transform_3, window_bounds = array<i64: 1, 16, 256>}, {pipeline_mode = #tpu.pipeline_mode<synchronous>, transform_indices = @transform_4, window_bounds = array<i64: 64, 256>}, {pipeline_mode = #tpu.pipeline_mode<synchronous>, transform_indices = @transform_5, window_bounds = array<i64: 128, 256>}, {pipeline_mode = #tpu.pipeline_mode<synchronous>, transform_indices = @transform_6, window_bounds = array<i64: 256, 256>}, {pipeline_mode = #tpu.pipeline_mode<synchronous>, transform_indices = @transform_7, window_bounds = array<i64: 256, 256>}, {pipeline_mode = #tpu.pipeline_mode<synchronous>, transform_indices = @transform_8, window_bounds = array<i64: 1, 256>}, {pipeline_mode = #tpu.pipeline_mode<synchronous>, transform_indices = @transform_9, window_bounds = array<i64: 256, 128>}, {pipeline_mode = #tpu.pipeline_mode<synchronous>, transform_indices = @transform_10, window_bounds = array<i64: 1, 128>}, {pipeline_mode = #tpu.pipeline_mode<synchronous>, transform_indices = @transform_11, window_bounds = array<i64: 128, 128>}, {pipeline_mode = #tpu.pipeline_mode<synchronous>, transform_indices = @transform_12, window_bounds = array<i64: 1, 128>}, {transform_indices = @transform_13, window_bounds = array<i64: 1, 16, 128>}]} {
    %c0 = arith.constant 0 : index
    %c0_0 = arith.constant 0 : index
    %c0_1 = arith.constant 0 : index
    %0 = vector.load %arg3[%c0, %c0_0, %c0_1] : memref<1x16x64xbf16, #tpu.memory_space<vmem>>, vector<1x16x64xbf16>
    %1 = vector.shape_cast %0 : vector<1x16x64xbf16> to vector<16x64xbf16>
    %c0_2 = arith.constant 0 : index
    %c0_3 = arith.constant 0 : index
    %2 = vector.load %arg6[%c0_2, %c0_3] : memref<64x256xbf16, #tpu.memory_space<vmem>>, vector<64x256xbf16>
    %cst = arith.constant dense<0.000000e+00> : vector<16x256xf32>
    %3 = tpu.matmul %1, %2, %cst {dimension_numbers = #tpu.dot_dimension_numbers<[1], [0], [0], [1], [0, 0, 1, 1], [], []>} : vector<16x64xbf16>, vector<64x256xbf16>, vector<16x256xf32> -> vector<16x256xf32>
    %c0_4 = arith.constant 0 : index
    %c0_5 = arith.constant 0 : index
    %c0_6 = arith.constant 0 : index
    %4 = vector.load %arg4[%c0_4, %c0_5, %c0_6] : memref<1x16x128xbf16, #tpu.memory_space<vmem>>, vector<1x16x128xbf16>
    %5 = vector.shape_cast %4 : vector<1x16x128xbf16> to vector<16x128xbf16>
    %c0_7 = arith.constant 0 : index
    %c0_8 = arith.constant 0 : index
    %6 = vector.load %arg7[%c0_7, %c0_8] : memref<128x256xbf16, #tpu.memory_space<vmem>>, vector<128x256xbf16>
    %cst_9 = arith.constant dense<0.000000e+00> : vector<16x256xf32>
    %7 = tpu.matmul %5, %6, %cst_9 {dimension_numbers = #tpu.dot_dimension_numbers<[1], [0], [0], [1], [0, 0, 1, 1], [], []>} : vector<16x128xbf16>, vector<128x256xbf16>, vector<16x256xf32> -> vector<16x256xf32>
    %8 = arith.addf %3, %7 : vector<16x256xf32>
    %c0_10 = arith.constant 0 : index
    %c0_11 = arith.constant 0 : index
    %c0_12 = arith.constant 0 : index
    %9 = vector.load %arg5[%c0_10, %c0_11, %c0_12] : memref<1x16x256xbf16, #tpu.memory_space<vmem>>, vector<1x16x256xbf16>
    %10 = vector.shape_cast %9 : vector<1x16x256xbf16> to vector<16x256xbf16>
    %c0_13 = arith.constant 0 : index
    %c0_14 = arith.constant 0 : index
    %11 = vector.load %arg8[%c0_13, %c0_14] : memref<256x256xbf16, #tpu.memory_space<vmem>>, vector<256x256xbf16>
    %cst_15 = arith.constant dense<0.000000e+00> : vector<16x256xf32>
    %12 = tpu.matmul %10, %11, %cst_15 {dimension_numbers = #tpu.dot_dimension_numbers<[1], [0], [0], [1], [0, 0, 1, 1], [], []>} : vector<16x256xbf16>, vector<256x256xbf16>, vector<16x256xf32> -> vector<16x256xf32>
    %13 = arith.addf %8, %12 : vector<16x256xf32>
    %c0_16 = arith.constant 0 : index
    %c0_17 = arith.constant 0 : index
    %c0_18 = arith.constant 0 : index
    %14 = vector.load %arg2[%c0_16, %c0_17, %c0_18] : memref<1x1x256xf32, #tpu.memory_space<vmem>>, vector<1x1x256xf32>
    %15 = vector.shape_cast %14 : vector<1x1x256xf32> to vector<1x256xf32>
    %16 = vector.broadcast %15 : vector<1x256xf32> to vector<16x256xf32>
    %17 = arith.addf %13, %16 : vector<16x256xf32>
    %cst_19 = arith.constant 0.000000e+00 : f32
    %18 = vector.broadcast %cst_19 : f32 to vector<16x256xf32>
    %19 = arith.cmpf ogt, %17, %18 : vector<16x256xf32>
    %cst_20 = arith.constant 2.000000e-01 : f32
    %20 = vector.broadcast %cst_20 : f32 to vector<16x256xf32>
    %21 = arith.mulf %20, %17 : vector<16x256xf32>
    %22 = arith.select %19, %17, %21 : vector<16x256xi1>, vector<16x256xf32>
    %23 = arith.truncf %22 : vector<16x256xf32> to vector<16x256xbf16>
    %c0_21 = arith.constant 0 : index
    %c0_22 = arith.constant 0 : index
    %24 = vector.load %arg9[%c0_21, %c0_22] : memref<256x256xbf16, #tpu.memory_space<vmem>>, vector<256x256xbf16>
    %cst_23 = arith.constant dense<0.000000e+00> : vector<16x256xf32>
    %25 = tpu.matmul %23, %24, %cst_23 {dimension_numbers = #tpu.dot_dimension_numbers<[1], [0], [0], [1], [0, 0, 1, 1], [], []>} : vector<16x256xbf16>, vector<256x256xbf16>, vector<16x256xf32> -> vector<16x256xf32>
    %26 = arith.truncf %25 : vector<16x256xf32> to vector<16x256xbf16>
    %c0_24 = arith.constant 0 : index
    %c0_25 = arith.constant 0 : index
    %27 = vector.load %arg10[%c0_24, %c0_25] : memref<1x256xbf16, #tpu.memory_space<vmem>>, vector<1x256xbf16>
    %28 = vector.broadcast %27 : vector<1x256xbf16> to vector<16x256xbf16>
    %29 = arith.addf %26, %28 : vector<16x256xbf16>
    %cst_26 = arith.constant 0.000000e+00 : bf16
    %30 = vector.broadcast %cst_26 : bf16 to vector<16x256xbf16>
    %31 = arith.cmpf ogt, %29, %30 : vector<16x256xbf16>
    %cst_27 = arith.constant 2.001950e-01 : bf16
    %32 = vector.broadcast %cst_27 : bf16 to vector<16x256xbf16>
    %33 = arith.mulf %32, %29 : vector<16x256xbf16>
    %34 = arith.select %31, %29, %33 : vector<16x256xi1>, vector<16x256xbf16>
    %c0_28 = arith.constant 0 : index
    %c0_29 = arith.constant 0 : index
    %35 = vector.load %arg11[%c0_28, %c0_29] : memref<256x128xbf16, #tpu.memory_space<vmem>>, vector<256x128xbf16>
    %cst_30 = arith.constant dense<0.000000e+00> : vector<16x128xf32>
    %36 = tpu.matmul %34, %35, %cst_30 {dimension_numbers = #tpu.dot_dimension_numbers<[1], [0], [0], [1], [0, 0, 1, 1], [], []>} : vector<16x256xbf16>, vector<256x128xbf16>, vector<16x128xf32> -> vector<16x128xf32>
    %37 = arith.truncf %36 : vector<16x128xf32> to vector<16x128xbf16>
    %c0_31 = arith.constant 0 : index
    %c0_32 = arith.constant 0 : index
    %38 = vector.load %arg12[%c0_31, %c0_32] : memref<1x128xbf16, #tpu.memory_space<vmem>>, vector<1x128xbf16>
    %39 = vector.broadcast %38 : vector<1x128xbf16> to vector<16x128xbf16>
    %40 = arith.addf %37, %39 : vector<16x128xbf16>
    %cst_33 = arith.constant 0.000000e+00 : bf16
    %41 = vector.broadcast %cst_33 : bf16 to vector<16x128xbf16>
    %42 = arith.cmpf ogt, %40, %41 : vector<16x128xbf16>
    %cst_34 = arith.constant 2.001950e-01 : bf16
    %43 = vector.broadcast %cst_34 : bf16 to vector<16x128xbf16>
    %44 = arith.mulf %43, %40 : vector<16x128xbf16>
    %45 = arith.select %42, %40, %44 : vector<16x128xi1>, vector<16x128xbf16>
    %c0_35 = arith.constant 0 : index
    %c0_36 = arith.constant 0 : index
    %46 = vector.load %arg13[%c0_35, %c0_36] : memref<128x128xbf16, #tpu.memory_space<vmem>>, vector<128x128xbf16>
    %cst_37 = arith.constant dense<0.000000e+00> : vector<16x128xf32>
    %47 = tpu.matmul %45, %46, %cst_37 {dimension_numbers = #tpu.dot_dimension_numbers<[1], [0], [0], [1], [0, 0, 1, 1], [], []>} : vector<16x128xbf16>, vector<128x128xbf16>, vector<16x128xf32> -> vector<16x128xf32>
    %c0_38 = arith.constant 0 : index
    %c0_39 = arith.constant 0 : index
    %48 = vector.load %arg14[%c0_38, %c0_39] : memref<1x128xbf16, #tpu.memory_space<vmem>>, vector<1x128xbf16>
    %49 = arith.extf %48 : vector<1x128xbf16> to vector<1x128xf32>
    %50 = vector.broadcast %49 : vector<1x128xf32> to vector<16x128xf32>
    %51 = arith.addf %47, %50 : vector<16x128xf32>
    %c0_40 = arith.constant 0 : index
    %c0_41 = arith.constant 0 : index
    %c0_42 = arith.constant 0 : index
    %52 = vector.load %arg15[%c0_40, %c0_41, %c0_42] : memref<1x16x128xf32, #tpu.memory_space<vmem>>, vector<1x16x128xf32>
    %53 = vector.shape_cast %52 : vector<1x16x128xf32> to vector<16x128xf32>
    %54 = vector.shape_cast %51 : vector<16x128xf32> to vector<1x16x128xf32>
    tpu.vector_store %arg15[%c0_40, %c0_41, %c0_42], %54 {strides = array<i32>} : memref<1x16x128xf32, #tpu.memory_space<vmem>>, vector<1x16x128xf32>,
    return
  }
  func.func @transform_0(%arg0: i32, %arg1: i32) -> (i32, i32, i32) {
    %c0_i32 = arith.constant 0 : i32
    %c0_i32_0 = arith.constant 0 : i32
    %c0_i32_1 = arith.constant 0 : i32
    return %arg0, %c0_i32, %c0_i32_0 : i32, i32, i32
  }
  func.func @transform_1(%arg0: i32, %arg1: i32) -> (i32, i32, i32) {
    %c0_i32 = arith.constant 0 : i32
    %c0_i32_0 = arith.constant 0 : i32
    return %arg0, %arg1, %c0_i32 : i32, i32, i32
  }
  func.func @transform_2(%arg0: i32, %arg1: i32) -> (i32, i32, i32) {
    %c0_i32 = arith.constant 0 : i32
    %c0_i32_0 = arith.constant 0 : i32
    return %arg0, %arg1, %c0_i32 : i32, i32, i32
  }
  func.func @transform_3(%arg0: i32, %arg1: i32) -> (i32, i32, i32) {
    %c0_i32 = arith.constant 0 : i32
    %c0_i32_0 = arith.constant 0 : i32
    return %arg0, %arg1, %c0_i32 : i32, i32, i32
  }
  func.func @transform_4(%arg0: i32, %arg1: i32) -> (i32, i32) {
    %c0_i32 = arith.constant 0 : i32
    %c0_i32_0 = arith.constant 0 : i32
    %c0_i32_1 = arith.constant 0 : i32
    return %c0_i32, %c0_i32_0 : i32, i32
  }
  func.func @transform_5(%arg0: i32, %arg1: i32) -> (i32, i32) {
    %c0_i32 = arith.constant 0 : i32
    %c0_i32_0 = arith.constant 0 : i32
    %c0_i32_1 = arith.constant 0 : i32
    return %c0_i32, %c0_i32_0 : i32, i32
  }
  func.func @transform_6(%arg0: i32, %arg1: i32) -> (i32, i32) {
    %c0_i32 = arith.constant 0 : i32
    %c0_i32_0 = arith.constant 0 : i32
    %c0_i32_1 = arith.constant 0 : i32
    return %c0_i32, %c0_i32_0 : i32, i32
  }
  func.func @transform_7(%arg0: i32, %arg1: i32) -> (i32, i32) {
    %c0_i32 = arith.constant 0 : i32
    %c0_i32_0 = arith.constant 0 : i32
    %c0_i32_1 = arith.constant 0 : i32
    return %c0_i32, %c0_i32_0 : i32, i32
  }
  func.func @transform_8(%arg0: i32, %arg1: i32) -> (i32, i32) {
    %c0_i32 = arith.constant 0 : i32
    %c0_i32_0 = arith.constant 0 : i32
    %c0_i32_1 = arith.constant 0 : i32
    return %c0_i32, %c0_i32_0 : i32, i32
  }
  func.func @transform_9(%arg0: i32, %arg1: i32) -> (i32, i32) {
    %c0_i32 = arith.constant 0 : i32
    %c0_i32_0 = arith.constant 0 : i32
    %c0_i32_1 = arith.constant 0 : i32
    return %c0_i32, %c0_i32_0 : i32, i32
  }
  func.func @transform_10(%arg0: i32, %arg1: i32) -> (i32, i32) {
    %c0_i32 = arith.constant 0 : i32
    %c0_i32_0 = arith.constant 0 : i32
    %c0_i32_1 = arith.constant 0 : i32
    return %c0_i32, %c0_i32_0 : i32, i32
  }
  func.func @transform_11(%arg0: i32, %arg1: i32) -> (i32, i32) {
    %c0_i32 = arith.constant 0 : i32
    %c0_i32_0 = arith.constant 0 : i32
    %c0_i32_1 = arith.constant 0 : i32
    return %c0_i32, %c0_i32_0 : i32, i32
  }
  func.func @transform_12(%arg0: i32, %arg1: i32) -> (i32, i32) {
    %c0_i32 = arith.constant 0 : i32
    %c0_i32_0 = arith.constant 0 : i32
    %c0_i32_1 = arith.constant 0 : i32
    return %c0_i32, %c0_i32_0 : i32, i32
  }
  func.func @transform_13(%arg0: i32, %arg1: i32) -> (i32, i32, i32) {
    %c0_i32 = arith.constant 0 : i32
    %c0_i32_0 = arith.constant 0 : i32
    return %arg0, %arg1, %c0_i32 : i32, i32, i32
  }
}

module attributes {stable_mosaic.version = 11 : i64} {
  func.func @_lin_global_pool_head_kernel(%arg0: i32, %arg1: i32, %arg2: memref<1x16x64xbf16, #tpu.memory_space<vmem>>, %arg3: memref<1x16x128xbf16, #tpu.memory_space<vmem>>, %arg4: memref<1x16x256xbf16, #tpu.memory_space<vmem>>, %arg5: memref<64x1024xbf16, #tpu.memory_space<vmem>>, %arg6: memref<128x1024xbf16, #tpu.memory_space<vmem>>, %arg7: memref<256x1024xbf16, #tpu.memory_space<vmem>>, %arg8: memref<1x1024xbf16, #tpu.memory_space<vmem>>, %arg9: memref<1024x256xbf16, #tpu.memory_space<vmem>>, %arg10: memref<1x256xbf16, #tpu.memory_space<vmem>>, %arg11: memref<1x1x256xf32, #tpu.memory_space<vmem>>, %arg12: memref<1x1024xf32, #tpu.memory_space<vmem>>) attributes {dimension_semantics = [#tpu.dimension_semantics<parallel>, #tpu.dimension_semantics<arbitrary>], iteration_bounds = array<i64: 2, 1>, scalar_prefetch = 0 : i64, scratch_operands = 1 : i64, tpu.core_type = #tpu.core_type<tc>, window_params = [{transform_indices = @transform_0, window_bounds = array<i64: 1, 16, 64>}, {transform_indices = @transform_1, window_bounds = array<i64: 1, 16, 128>}, {transform_indices = @transform_2, window_bounds = array<i64: 1, 16, 256>}, {pipeline_mode = #tpu.pipeline_mode<synchronous>, transform_indices = @transform_3, window_bounds = array<i64: 64, 1024>}, {pipeline_mode = #tpu.pipeline_mode<synchronous>, transform_indices = @transform_4, window_bounds = array<i64: 128, 1024>}, {pipeline_mode = #tpu.pipeline_mode<synchronous>, transform_indices = @transform_5, window_bounds = array<i64: 256, 1024>}, {pipeline_mode = #tpu.pipeline_mode<synchronous>, transform_indices = @transform_6, window_bounds = array<i64: 1, 1024>}, {pipeline_mode = #tpu.pipeline_mode<synchronous>, transform_indices = @transform_7, window_bounds = array<i64: 1024, 256>}, {pipeline_mode = #tpu.pipeline_mode<synchronous>, transform_indices = @transform_8, window_bounds = array<i64: 1, 256>}, {transform_indices = @transform_9, window_bounds = array<i64: 1, 1, 256>}]} {
    %c0 = arith.constant 0 : index
    %c0_0 = arith.constant 0 : index
    %c0_1 = arith.constant 0 : index
    %0 = vector.load %arg2[%c0, %c0_0, %c0_1] : memref<1x16x64xbf16, #tpu.memory_space<vmem>>, vector<1x16x64xbf16>
    %1 = vector.shape_cast %0 : vector<1x16x64xbf16> to vector<16x64xbf16>
    %c0_2 = arith.constant 0 : index
    %c0_3 = arith.constant 0 : index
    %2 = vector.load %arg5[%c0_2, %c0_3] : memref<64x1024xbf16, #tpu.memory_space<vmem>>, vector<64x1024xbf16>
    %cst = arith.constant dense<0.000000e+00> : vector<16x1024xf32>
    %3 = tpu.matmul %1, %2, %cst {dimension_numbers = #tpu.dot_dimension_numbers<[1], [0], [0], [1], [0, 0, 1, 1], [], []>} : vector<16x64xbf16>, vector<64x1024xbf16>, vector<16x1024xf32> -> vector<16x1024xf32>
    %c0_4 = arith.constant 0 : index
    %c0_5 = arith.constant 0 : index
    %c0_6 = arith.constant 0 : index
    %4 = vector.load %arg3[%c0_4, %c0_5, %c0_6] : memref<1x16x128xbf16, #tpu.memory_space<vmem>>, vector<1x16x128xbf16>
    %5 = vector.shape_cast %4 : vector<1x16x128xbf16> to vector<16x128xbf16>
    %c0_7 = arith.constant 0 : index
    %c0_8 = arith.constant 0 : index
    %6 = vector.load %arg6[%c0_7, %c0_8] : memref<128x1024xbf16, #tpu.memory_space<vmem>>, vector<128x1024xbf16>
    %cst_9 = arith.constant dense<0.000000e+00> : vector<16x1024xf32>
    %7 = tpu.matmul %5, %6, %cst_9 {dimension_numbers = #tpu.dot_dimension_numbers<[1], [0], [0], [1], [0, 0, 1, 1], [], []>} : vector<16x128xbf16>, vector<128x1024xbf16>, vector<16x1024xf32> -> vector<16x1024xf32>
    %8 = arith.addf %3, %7 : vector<16x1024xf32>
    %c0_10 = arith.constant 0 : index
    %c0_11 = arith.constant 0 : index
    %c0_12 = arith.constant 0 : index
    %9 = vector.load %arg4[%c0_10, %c0_11, %c0_12] : memref<1x16x256xbf16, #tpu.memory_space<vmem>>, vector<1x16x256xbf16>
    %10 = vector.shape_cast %9 : vector<1x16x256xbf16> to vector<16x256xbf16>
    %c0_13 = arith.constant 0 : index
    %c0_14 = arith.constant 0 : index
    %11 = vector.load %arg7[%c0_13, %c0_14] : memref<256x1024xbf16, #tpu.memory_space<vmem>>, vector<256x1024xbf16>
    %cst_15 = arith.constant dense<0.000000e+00> : vector<16x1024xf32>
    %12 = tpu.matmul %10, %11, %cst_15 {dimension_numbers = #tpu.dot_dimension_numbers<[1], [0], [0], [1], [0, 0, 1, 1], [], []>} : vector<16x256xbf16>, vector<256x1024xbf16>, vector<16x1024xf32> -> vector<16x1024xf32>
    %13 = arith.addf %8, %12 : vector<16x1024xf32>
    %c0_16 = arith.constant 0 : index
    %c0_17 = arith.constant 0 : index
    %14 = vector.load %arg8[%c0_16, %c0_17] : memref<1x1024xbf16, #tpu.memory_space<vmem>>, vector<1x1024xbf16>
    %15 = arith.extf %14 : vector<1x1024xbf16> to vector<1x1024xf32>
    %16 = vector.broadcast %15 : vector<1x1024xf32> to vector<16x1024xf32>
    %17 = arith.addf %13, %16 : vector<16x1024xf32>
    %cst_18 = arith.constant 0.000000e+00 : f32
    %18 = vector.broadcast %cst_18 : f32 to vector<16x1024xf32>
    %19 = arith.cmpf ogt, %17, %18 : vector<16x1024xf32>
    %cst_19 = arith.constant 2.000000e-01 : f32
    %20 = vector.broadcast %cst_19 : f32 to vector<16x1024xf32>
    %21 = arith.mulf %20, %17 : vector<16x1024xf32>
    %22 = arith.select %19, %17, %21 : vector<16x1024xi1>, vector<16x1024xf32>
    %c16_i32 = arith.constant 16 : i32
    %23 = arith.muli %arg1, %c16_i32 : i32
    %24 = tpu.iota {dimensions = array<i32: 0>} : vector<16x1024xi32>
    %25 = vector.broadcast %23 : i32 to vector<16x1024xi32>
    %26 = arith.addi %25, %24 : vector<16x1024xi32>
    %c16_i32_20 = arith.constant 16 : i32
    %27 = vector.broadcast %c16_i32_20 : i32 to vector<16x1024xi32>
    %28 = arith.cmpi slt, %26, %27 : vector<16x1024xi32>
    %cst_21 = arith.constant 0xFF800000 : f32
    %29 = vector.broadcast %cst_21 : f32 to vector<16x1024xf32>
    %30 = arith.select %28, %22, %29 : vector<16x1024xi1>, vector<16x1024xf32>
    %cst_22 = arith.constant dense<0xFF800000> : vector<1024xf32>
    %31 = vector.multi_reduction <maximumf>, %30, %cst_22 [0] : vector<16x1024xf32> to vector<1024xf32>
    %32 = vector.shape_cast %31 : vector<1024xf32> to vector<1x1024xf32>
    %c0_i32 = arith.constant 0 : i32
    %33 = arith.cmpi eq, %arg1, %c0_i32 : i32
    %34 = arith.extui %33 : i1 to i32
    %c0_i32_23 = arith.constant 0 : i32
    %35 = arith.cmpi ne, %34, %c0_i32_23 : i32
    scf.if %35 {
      %c0_28 = arith.constant 0 : index
      %c0_29 = arith.constant 0 : index
      %42 = vector.load %arg12[%c0_28, %c0_29] : memref<1x1024xf32, #tpu.memory_space<vmem>>, vector<1x1024xf32>
      tpu.vector_store %arg12[%c0_28, %c0_29], %32 {strides = array<i32>} : memref<1x1024xf32, #tpu.memory_space<vmem>>, vector<1x1024xf32>,
    } else {
    }
    %c0_i32_24 = arith.constant 0 : i32
    %36 = arith.cmpi sgt, %arg1, %c0_i32_24 : i32
    %37 = arith.extui %36 : i1 to i32
    %c0_i32_25 = arith.constant 0 : i32
    %38 = arith.cmpi ne, %37, %c0_i32_25 : i32
    scf.if %38 {
      %c0_28 = arith.constant 0 : index
      %c0_29 = arith.constant 0 : index
      %42 = vector.load %arg12[%c0_28, %c0_29] : memref<1x1024xf32, #tpu.memory_space<vmem>>, vector<1x1024xf32>
      %43 = arith.maximumf %42, %32 : vector<1x1024xf32>
      %c0_30 = arith.constant 0 : index
      %c0_31 = arith.constant 0 : index
      %44 = vector.load %arg12[%c0_30, %c0_31] : memref<1x1024xf32, #tpu.memory_space<vmem>>, vector<1x1024xf32>
      tpu.vector_store %arg12[%c0_30, %c0_31], %43 {strides = array<i32>} : memref<1x1024xf32, #tpu.memory_space<vmem>>, vector<1x1024xf32>,
    } else {
    }
    %c0_i32_26 = arith.constant 0 : i32
    %39 = arith.cmpi eq, %arg1, %c0_i32_26 : i32
    %40 = arith.extui %39 : i1 to i32
    %c0_i32_27 = arith.constant 0 : i32
    %41 = arith.cmpi ne, %40, %c0_i32_27 : i32
    scf.if %41 {
      %c0_28 = arith.constant 0 : index
      %c0_29 = arith.constant 0 : index
      %42 = vector.load %arg12[%c0_28, %c0_29] : memref<1x1024xf32, #tpu.memory_space<vmem>>, vector<1x1024xf32>
      %43 = arith.truncf %42 : vector<1x1024xf32> to vector<1x1024xbf16>
      %c0_30 = arith.constant 0 : index
      %c0_31 = arith.constant 0 : index
      %44 = vector.load %arg9[%c0_30, %c0_31] : memref<1024x256xbf16, #tpu.memory_space<vmem>>, vector<1024x256xbf16>
      %cst_32 = arith.constant dense<0.000000e+00> : vector<1x256xf32>
      %45 = tpu.matmul %43, %44, %cst_32 {dimension_numbers = #tpu.dot_dimension_numbers<[1], [0], [0], [1], [0, 0, 1, 1], [], []>} : vector<1x1024xbf16>, vector<1024x256xbf16>, vector<1x256xf32> -> vector<1x256xf32>
      %c0_33 = arith.constant 0 : index
      %c0_34 = arith.constant 0 : index
      %46 = vector.load %arg10[%c0_33, %c0_34] : memref<1x256xbf16, #tpu.memory_space<vmem>>, vector<1x256xbf16>
      %47 = arith.extf %46 : vector<1x256xbf16> to vector<1x256xf32>
      %48 = arith.addf %45, %47 : vector<1x256xf32>
      %c0_35 = arith.constant 0 : index
      %c0_36 = arith.constant 0 : index
      %c0_37 = arith.constant 0 : index
      %49 = vector.load %arg11[%c0_35, %c0_36, %c0_37] : memref<1x1x256xf32, #tpu.memory_space<vmem>>, vector<1x1x256xf32>
      %50 = vector.shape_cast %49 : vector<1x1x256xf32> to vector<1x256xf32>
      %51 = vector.shape_cast %48 : vector<1x256xf32> to vector<1x1x256xf32>
      tpu.vector_store %arg11[%c0_35, %c0_36, %c0_37], %51 {strides = array<i32>} : memref<1x1x256xf32, #tpu.memory_space<vmem>>, vector<1x1x256xf32>,
    } else {
    }
    return
  }
  func.func @transform_0(%arg0: i32, %arg1: i32) -> (i32, i32, i32) {
    %c0_i32 = arith.constant 0 : i32
    %c0_i32_0 = arith.constant 0 : i32
    return %arg0, %arg1, %c0_i32 : i32, i32, i32
  }
  func.func @transform_1(%arg0: i32, %arg1: i32) -> (i32, i32, i32) {
    %c0_i32 = arith.constant 0 : i32
    %c0_i32_0 = arith.constant 0 : i32
    return %arg0, %arg1, %c0_i32 : i32, i32, i32
  }
  func.func @transform_2(%arg0: i32, %arg1: i32) -> (i32, i32, i32) {
    %c0_i32 = arith.constant 0 : i32
    %c0_i32_0 = arith.constant 0 : i32
    return %arg0, %arg1, %c0_i32 : i32, i32, i32
  }
  func.func @transform_3(%arg0: i32, %arg1: i32) -> (i32, i32) {
    %c0_i32 = arith.constant 0 : i32
    %c0_i32_0 = arith.constant 0 : i32
    %c0_i32_1 = arith.constant 0 : i32
    return %c0_i32, %c0_i32_0 : i32, i32
  }
  func.func @transform_4(%arg0: i32, %arg1: i32) -> (i32, i32) {
    %c0_i32 = arith.constant 0 : i32
    %c0_i32_0 = arith.constant 0 : i32
    %c0_i32_1 = arith.constant 0 : i32
    return %c0_i32, %c0_i32_0 : i32, i32
  }
  func.func @transform_5(%arg0: i32, %arg1: i32) -> (i32, i32) {
    %c0_i32 = arith.constant 0 : i32
    %c0_i32_0 = arith.constant 0 : i32
    %c0_i32_1 = arith.constant 0 : i32
    return %c0_i32, %c0_i32_0 : i32, i32
  }
  func.func @transform_6(%arg0: i32, %arg1: i32) -> (i32, i32) {
    %c0_i32 = arith.constant 0 : i32
    %c0_i32_0 = arith.constant 0 : i32
    %c0_i32_1 = arith.constant 0 : i32
    return %c0_i32, %c0_i32_0 : i32, i32
  }
  func.func @transform_7(%arg0: i32, %arg1: i32) -> (i32, i32) {
    %c0_i32 = arith.constant 0 : i32
    %c0_i32_0 = arith.constant 0 : i32
    %c0_i32_1 = arith.constant 0 : i32
    return %c0_i32, %c0_i32_0 : i32, i32
  }
  func.func @transform_8(%arg0: i32, %arg1: i32) -> (i32, i32) {
    %c0_i32 = arith.constant 0 : i32
    %c0_i32_0 = arith.constant 0 : i32
    %c0_i32_1 = arith.constant 0 : i32
    return %c0_i32, %c0_i32_0 : i32, i32
  }
  func.func @transform_9(%arg0: i32, %arg1: i32) -> (i32, i32, i32) {
    %c0_i32 = arith.constant 0 : i32
    %c0_i32_0 = arith.constant 0 : i32
    %c0_i32_1 = arith.constant 0 : i32
    return %arg0, %c0_i32, %c0_i32_0 : i32, i32, i32
  }
}

</mosaic_0001>

<bundles_post_ra>
// kernel: deltaconv_forward.5
= control target key start
LH: loop header
LB: loop body
LE: loop exit
PB: predicated region body
PF: predicated region fallthrough
CT: control target
= control target key end

     0   :  { %vm49_vm0 = vcmask 1040384   ;;  %vm50_vm1 = vcmask 1041408   ;;  %v857_v1 = vmov 65535   ;;  %vm42_vm2 = vcmask 23552   ;;  %s1285_s2 = inlined_call_operand.vmem [shape: bf16[3,64], index: 2, kind: input, shape index: {}]   ;;  %s1286_s4 = inlined_call_operand.vmem [shape: bf16[3,64], index: 4, kind: input, shape index: {}]   ;;  %s1287_s0 = inlined_call_operand.vmem [shape: bf16[32,3], index: 0, kind: input, shape index: {}]   ;;  %s1288_s1 = inlined_call_operand.vmem [shape: bf16[4,32,3], index: 1, kind: input, shape index: {}]   ;;  %s1289_s3 = inlined_call_operand.vmem [shape: bf16[1,64], index: 3, kind: input, shape index: {}]   ;;  %s1290_s5 = inlined_call_operand.vmem [shape: bf16[64,64], index: 5, kind: input, shape index: {}]   ;;  %s1291_s6 = inlined_call_operand.vmem [shape: bf16[1,64], index: 6, kind: input, shape index: {}]   ;;  %s1292_s7 = inlined_call_operand.vmem [shape: bf16[32,64], index: 7, kind: output, shape index: {}]  }
   0x1   :  { %v31_v0 = vld [vmem:[%s1285_s2] sm:$0x3]  ;;  %v51_v2 = vsel %vm49_vm0, 4294967295, %v857_v1  ;;  %v842_v8 = vld [vmem:[%s1288_s1 + $0x18] sm:$0xff]  ;;  %v838_v9 = vld [vmem:[%s1287_s0 + $0x8] sm:$0xff] }
   0x2   :  { %v113_v3 = vld [vmem:[%s1286_s4] sm:$0x3]  ;;  %v52_v4 = vsel %vm50_vm1, %v51_v2, 0  ;;  %v844_v12 = vld [vmem:[%s1288_s1 + $0x28] sm:$0xff]  ;;  %v845_v14 = vld [vmem:[%s1288_s1 + $0x30] sm:$0xff] }
   0x3   :  { %v54_v5 = vand.u32 %v52_v4, %v31_v0  ;;  %v179_v6 = vand.u32 %v113_v3, %v52_v4  ;;  %v837_v7 = vld [vmem:[%s1287_s0] sm:$0xff]  ;;  %v840_v13 = vld [vmem:[%s1288_s1 + $0x8] sm:$0xff]  ;;  %v841_v15 = vld [vmem:[%s1288_s1 + $0x10] sm:$0xff] }
   0x4   :  { %v843_v10 = vld [vmem:[%s1288_s1 + $0x20] sm:$0xff]  ;;  %v846_v16 = vld [vmem:[%s1288_s1 + $0x38] sm:$0xff]  ;;  %v849_v36 = vld [vmem:[%s1290_s5 + $0x10] sm:$0xff] }
   0x5   :  { %63 = vmatpush.bf16.msra.mxu0 %v54_v5  ;;  %851 = vmatpush.bf16.msra.mxu1 %v179_v6  ;;  %v839_v11 = vld [vmem:[%s1288_s1] sm:$0xff]  ;;  %v850_v29 = vld [vmem:[%s1290_s5 + $0x18] sm:$0xff]  ;;  %v848_v44 = vld [vmem:[%s1290_s5 + $0x8] sm:$0xff] }
   0x6   :  { %v79_v17 = vld [vmem:[%s1289_s3] sm:$0x1]  ;;  %496 = vmatpush.bf16.msra.mxu2 %v850_v29  ;;  %852 = vmatpush.bf16.msra.mxu3 %v850_v29 }
   0x7   :  { %v81_v18 = vpack.i.b16 %v79_v17, %v79_v17  ;;  %v847_v55 = vld [vmem:[%s1290_s5] sm:$0xff] }
   0x8   :  { %771 = vmatmul.msk.bf16.vlgmr.msra.gmra.mxu0 %vm42_vm2, %v837_v7  ;;  %808 = vmatmul.msk.bf16.vlgmr.msra.gmra.mxu1 %vm42_vm2, %v842_v8 }
   0x9   :  { %188 = vmatpush.bf16.msrb.mxu0 %v179_v6  ;;  %v83_v22 = vperm.slane %v81_v18, 0 }
   0xa   :  { %497 = vmatpush.bf16.msra.mxu2 %v849_v36  ;;  %853 = vmatpush.bf16.msra.mxu3 %v849_v36 }
   0xb   :  { %v88_v24 = vunpack.c.l.bf16 %v83_v22 }
   0xe   :  { %498 = vmatpush.bf16.msra.mxu2 %v848_v44  ;;  %854 = vmatpush.bf16.msra.mxu3 %v848_v44 }
  0x12   :  { %499 = vmatpush.bf16.msra.mxu2 %v847_v55  ;;  %855 = vmatpush.bf16.msra.mxu3 %v847_v55 }
  0x18   :  { %772 = vmatmul.msk.bf16.gmra.mxu0 %vm42_vm2, %v838_v9  ;;  %809 = vmatmul.msk.bf16.gmra.mxu1 %vm42_vm2, %v843_v10 }
  0x28   :  { %805 = vmatmul.msk.bf16.vlgmr.msrb.gmra.mxu0 %vm42_vm2, %v839_v11  ;;  %810 = vmatmul.msk.bf16.gmra.mxu1 %vm42_vm2, %v844_v12 }
  0x38   :  { %806 = vmatmul.msk.bf16.gmra.mxu0 %vm42_vm2, %v840_v13  ;;  %811 = vmatmul.msk.bf16.gmra.mxu1 %vm42_vm2, %v845_v14 }
  0x48   :  { %807 = vmatmul.msk.bf16.gmra.mxu0 %vm42_vm2, %v841_v15  ;;  %812 = vmatmul.msk.bf16.gmra.mxu1 %vm42_vm2, %v846_v16 }
  0x85   :  { %v65_v19 = vpop.f32.mrf.mxu0  ;;  %v205_v20 = vpop.f32.mrf.mxu1 }
  0x86   :  { %v75_v21 = vpack.c.bf16 %v65_v19, %v65_v19  ;;  %v236_v41 = vpack.c.bf16 %v205_v20, %v205_v20 }
  0x88   :  { %v84_v23 = vunpack.c.l.bf16 %v75_v21  ;;  %v252_v48 = vunpack.c.l.bf16 %v236_v41 }
  0x8a   :  { %v89_v27 = vadd.f32 %v88_v24, %v84_v23 }
  0x8c   :  { %v93_v30 = vpack.c.bf16 %v89_v27, %v89_v27 }
  0x8d   :  { %v67_v25 = vpop.f32.mrf.mxu0  ;;  %v207_v26 = vpop.f32.mrf.mxu1 }
  0x8e   :  { %v76_v28 = vpack.c.bf16 %v67_v25, %v67_v25  ;;  %v953_v37 = vunpack.c.l.bf16 %v93_v30  ;;  %v237_v59 = vpack.c.bf16 %v207_v26, %v207_v26 }
  0x90   :  { %v85_v31 = vunpack.c.l.bf16 %v76_v28  ;;  %v253_v3 = vunpack.c.l.bf16 %v237_v59 }
  0x92   :  { %v90_v38 = vadd.f32 %v88_v24, %v85_v31 }
  0x94   :  { %v94_v45 = vpack.c.bf16 %v90_v38, %v90_v38 }
  0x95   :  { %v70_v32 = vpop.f32.mrf.mxu0  ;;  %v210_v33 = vpop.f32.mrf.mxu1 }
  0x96   :  { %v77_v34 = vpack.c.bf16 %v70_v32, %v70_v32  ;;  %v238_v35 = vpack.c.bf16 %v210_v33, %v210_v33  ;;  %v964_v56 = vunpack.c.l.bf16 %v94_v45 }
  0x98   :  { %v86_v39 = vunpack.c.l.bf16 %v77_v34  ;;  %v254_v40 = vunpack.c.l.bf16 %v238_v35 }
  0x9a   :  { %v91_v42 = vadd.f32 %v88_v24, %v86_v39  ;;  %v274_v43 = vadd.f32 %v953_v37, %v254_v40 }
  0x9c   :  { %v95_v46 = vpack.c.bf16 %v91_v42, %v91_v42  ;;  %v290_v47 = vpack.c.bf16 %v274_v43, %v274_v43 }
  0x9d   :  { %v72_v49 = vpop.f32.mrf.mxu0  ;;  %v212_v50 = vpop.f32.mrf.mxu1 }
  0x9e   :  { %v959_v51 = vunpack.c.l.bf16 %v95_v46  ;;  %v306_v52 = vunpack.c.l.bf16 %v290_v47  ;;  %v78_v53 = vpack.c.bf16 %v72_v49, %v72_v49  ;;  %v239_v54 = vpack.c.bf16 %v212_v50, %v212_v50 }
  0xa0   :  { %v87_v57 = vunpack.c.l.bf16 %v78_v53  ;;  %v255_v58 = vunpack.c.l.bf16 %v239_v54  ;;  %v338_v60 = vmul.f32 0.20019531, %v306_v52  ;;  %v272_v61 = vadd.f32 %v959_v51, %v252_v48 }
  0xa1   :  { %vm968_vm3 = vcmp.gt.f32.partialorder %v306_v52, 0.0 }
  0xa2   :  { %v92_v62 = vadd.f32 %v88_v24, %v87_v57  ;;  %v275_v63 = vadd.f32 %v964_v56, %v255_v58  ;;  %v288_v0 = vpack.c.bf16 %v272_v61, %v272_v61  ;;  %v354_v5 = vpack.c.bf16 %v338_v60, %v338_v60  ;;  %vm370_vm4 = vmpackc.low %vm968_vm3, %vm968_vm3 }
  0xa3   :  { %vm467_vm3 = vcmask 523264  }
  0xa4   :  { %v96_v1 = vpack.c.bf16 %v92_v62, %v92_v62  ;;  %v291_v2 = vpack.c.bf16 %v275_v63, %v275_v63  ;;  %v304_v8 = vunpack.c.l.bf16 %v288_v0  ;;  %v386_v18 = vsel %vm370_vm4, %v290_v47, %v354_v5 }
  0xa5   :  { %v190_v6 = vpop.f32.mrf.mxu0  ;;  %v215_v7 = vpop.f32.mrf.mxu1  ;;  %v427_v26 = vunpack.c.l.b16 %v386_v18 }
  0xa6   :  { %v972_v9 = vunpack.c.l.bf16 %v96_v1  ;;  %v307_v10 = vunpack.c.l.bf16 %v291_v2  ;;  %v230_v11 = vpack.c.bf16 %v190_v6, %v190_v6  ;;  %v240_v12 = vpack.c.bf16 %v215_v7, %v215_v7 }
  0xa7   :  { %v336_v17 = vmul.f32 0.20019531, %v304_v8  ;;  %vm320_vm7 = vcmp.gt.f32.partialorder %v304_v8, 0.0 }
  0xa8   :  { %vm323_vm5 = vcmp.gt.f32.partialorder %v307_v10, 0.0  ;;  %v339_v13 = vmul.f32 0.20019531, %v307_v10  ;;  %v246_v14 = vunpack.c.l.bf16 %v230_v11  ;;  %v256_v15 = vunpack.c.l.bf16 %v240_v12  ;;  %vm368_vm9 = vmpackc.low %vm320_vm7, %vm320_vm7 }
  0xa9   :  { %v273_v16 = vadd.f32 %v972_v9, %v253_v3  ;;  %vm371_vm6 = vmpackc.low %vm323_vm5, %vm323_vm5  ;;  %v352_v30 = vpack.c.bf16 %v336_v17, %v336_v17 }
  0xaa   :  { %v355_v19 = vpack.c.bf16 %v339_v13, %v339_v13  ;;  %v266_v20 = vadd.f32 %v953_v37, %v246_v14  ;;  %v276_v21 = vadd.f32 %v959_v51, %v256_v15 }
  0xab   :  { %v289_v22 = vpack.c.bf16 %v273_v16, %v273_v16  ;;  %v384_v42 = vsel %vm368_vm9, %v288_v0, %v352_v30 }
  0xac   :  { %v282_v23 = vpack.c.bf16 %v266_v20, %v266_v20  ;;  %v292_v24 = vpack.c.bf16 %v276_v21, %v276_v21  ;;  %v387_v25 = vsel %vm371_vm6, %v291_v2, %v355_v19  ;;  %v425_v48 = vunpack.c.l.b16 %v384_v42 }
  0xad   :  { %v192_v27 = vpop.f32.mrf.mxu0  ;;  %v217_v28 = vpop.f32.mrf.mxu1  ;;  %v305_v29 = vunpack.c.l.bf16 %v289_v22  ;;  %v428_v31 = vunpack.c.l.b16 %v387_v25 }
  0xae   :  { %v298_v32 = vunpack.c.l.bf16 %v282_v23  ;;  %v231_v33 = vpack.c.bf16 %v192_v27, %v192_v27  ;;  %v241_v34 = vpack.c.bf16 %v217_v28, %v217_v28  ;;  %v308_v35 = vunpack.c.l.bf16 %v292_v24 }
  0xaf   :  { %vm321_vm8 = vcmp.gt.f32.partialorder %v305_v29, 0.0  ;;  %v337_v36 = vmul.f32 0.20019531, %v305_v29  ;;  %v980_v38 = vpack.c.b16 %v428_v31, %v427_v26 }
  0xb0   :  { %v247_v39 = vunpack.c.l.bf16 %v231_v33  ;;  %v257_v40 = vunpack.c.l.bf16 %v241_v34  ;;  %v330_v43 = vmul.f32 0.20019531, %v298_v32  ;;  %vm369_vm10 = vmpackc.low %vm321_vm8, %vm321_vm8  ;;  %v340_v44 = vmul.f32 0.20019531, %v308_v35 }
  0xb1   :  { %v353_v41 = vpack.c.bf16 %v337_v36, %v337_v36  ;;  %vm984_vm11 = vcmp.gt.f32.partialorder %v298_v32, 0.0  ;;  %vm988_vm12 = vcmp.gt.f32.partialorder %v308_v35, 0.0 }
  0xb2   :  { %v267_v45 = vadd.f32 %v964_v56, %v247_v39  ;;  %v277_v46 = vadd.f32 %v972_v9, %v257_v40  ;;  %v346_v61 = vpack.c.bf16 %v330_v43, %v330_v43  ;;  %v356_v62 = vpack.c.bf16 %v340_v44, %v340_v44  ;;  %vm362_vm13 = vmpackc.low %vm984_vm11, %vm984_vm11 }
  0xb3   :  { %v385_v47 = vsel %vm369_vm10, %v289_v22, %v353_v41  ;;  %vm372_vm0 = vmpackc.low %vm988_vm12, %vm988_vm12 }
  0xb4   :  { %v426_v49 = vunpack.c.l.b16 %v385_v47  ;;  %v283_v52 = vpack.c.bf16 %v267_v45, %v267_v45  ;;  %v293_v53 = vpack.c.bf16 %v277_v46, %v277_v46  ;;  %v378_v12 = vsel %vm362_vm13, %v282_v23, %v346_v61 }
  0xb5   :  { %v195_v54 = vpop.f32.mrf.mxu0  ;;  %v220_v55 = vpop.f32.mrf.mxu1  ;;  %v388_v13 = vsel %vm372_vm0, %v292_v24, %v356_v62  ;;  %v419_v22 = vunpack.c.l.b16 %v378_v12 }
  0xb6   :  { %v232_v58 = vpack.c.bf16 %v195_v54, %v195_v54  ;;  %v242_v59 = vpack.c.bf16 %v220_v55, %v220_v55  ;;  %v992_v60 = vpack.c.b16 %v426_v49, %v425_v48  ;;  %v299_v63 = vunpack.c.l.bf16 %v283_v52 }
  0xb7   :  { %v309_v0 = vunpack.c.l.bf16 %v293_v53  ;;  %v429_v25 = vunpack.c.l.b16 %v388_v13 }
  0xb8   :  { %v248_v1 = vunpack.c.l.bf16 %v232_v58  ;;  %v258_v2 = vunpack.c.l.bf16 %v242_v59  ;;  %vm997_vm14 = vcmp.gt.f32.partialorder %v299_v63, 0.0  ;;  %v331_v4 = vmul.f32 0.20019531, %v299_v63 }
  0xb9   :  { %vm1001_vm15 = vcmp.gt.f32.partialorder %v309_v0, 0.0  ;;  %v341_v6 = vmul.f32 0.20019531, %v309_v0  ;;  %vm363_vm1 = vmpackc.low %vm997_vm14, %vm997_vm14 }
  0xba   :  { %v268_v7 = vadd.f32 %v959_v51, %v248_v1  ;;  %v278_v8 = vadd.f32 %v953_v37, %v258_v2  ;;  %v347_v10 = vpack.c.bf16 %v331_v4, %v331_v4  ;;  %vm373_vm2 = vmpackc.low %vm1001_vm15, %vm1001_vm15 }
  0xbb   :  { %v357_v11 = vpack.c.bf16 %v341_v6, %v341_v6 }
  0xbc   :  { %v284_v14 = vpack.c.bf16 %v268_v7, %v268_v7  ;;  %v294_v15 = vpack.c.bf16 %v278_v8, %v278_v8  ;;  %v379_v18 = vsel %vm363_vm1, %v283_v52, %v347_v10 }
  0xbd   :  { %v197_v16 = vpop.f32.mrf.mxu0  ;;  %v222_v17 = vpop.f32.mrf.mxu1  ;;  %v389_v19 = vsel %vm373_vm2, %v293_v53, %v357_v11  ;;  %v420_v28 = vunpack.c.l.b16 %v379_v18 }
  0xbe   :  { %v233_v20 = vpack.c.bf16 %v197_v16, %v197_v16  ;;  %v243_v21 = vpack.c.bf16 %v222_v17, %v222_v17  ;;  %v300_v26 = vunpack.c.l.bf16 %v284_v14  ;;  %v310_v27 = vunpack.c.l.bf16 %v294_v15 }
  0xbf   :  { %v430_v29 = vunpack.c.l.b16 %v389_v19  ;;  %v435_v30 = vpack.c.b16 %v420_v28, %v419_v22 }
  0xc0   :  { %v249_v23 = vunpack.c.l.bf16 %v233_v20  ;;  %v259_v24 = vunpack.c.l.bf16 %v243_v21  ;;  %v332_v32 = vmul.f32 0.20019531, %v300_v26  ;;  %v342_v33 = vmul.f32 0.20019531, %v310_v27 }
  0xc1   :  { %v440_v31 = vpack.c.b16 %v430_v29, %v429_v25  ;;  %829 = vmatmul.msk.bf16.vlgmr.msra.gmra.mxu2 %vm467_vm3, %v435_v30  ;;  %vm1020_vm4 = vcmp.gt.f32.partialorder %v300_v26, 0.0  ;;  %vm1024_vm5 = vcmp.gt.f32.partialorder %v310_v27, 0.0 }
  0xc2   :  { %v269_v34 = vadd.f32 %v972_v9, %v249_v23  ;;  %v279_v35 = vadd.f32 %v964_v56, %v259_v24  ;;  %v348_v46 = vpack.c.bf16 %v332_v32, %v332_v32  ;;  %v358_v47 = vpack.c.bf16 %v342_v33, %v342_v33  ;;  %vm364_vm6 = vmpackc.low %vm1020_vm4, %vm1020_vm4 }
  0xc3   :  { %834 = vmatmul.msk.bf16.vlgmr.msra.gmra.mxu3 %vm467_vm3, %v440_v31  ;;  %vm374_vm9 = vmpackc.low %vm1024_vm5, %vm1024_vm5 }
  0xc4   :  { %v285_v36 = vpack.c.bf16 %v269_v34, %v269_v34  ;;  %v295_v39 = vpack.c.bf16 %v279_v35, %v279_v35  ;;  %v380_v63 = vsel %vm364_vm6, %v284_v14, %v348_v46  ;;  %v390_v0 = vsel %vm374_vm9, %v294_v15, %v358_v47 }
  0xc5   :  { %v200_v40 = vpop.f32.mrf.mxu0  ;;  %v225_v41 = vpop.f32.mrf.mxu1  ;;  %v421_v7 = vunpack.c.l.b16 %v380_v63  ;;  %v431_v8 = vunpack.c.l.b16 %v390_v0 }
  0xc6   :  { %v234_v44 = vpack.c.bf16 %v200_v40, %v200_v40  ;;  %v244_v45 = vpack.c.bf16 %v225_v41, %v225_v41  ;;  %v301_v48 = vunpack.c.l.bf16 %v285_v36  ;;  %v311_v49 = vunpack.c.l.bf16 %v295_v39 }
  0xc8   :  { %v250_v50 = vunpack.c.l.bf16 %v234_v44  ;;  %v260_v52 = vunpack.c.l.bf16 %v244_v45  ;;  %vm1031_vm7 = vcmp.gt.f32.partialorder %v301_v48, 0.0  ;;  %v333_v54 = vmul.f32 0.20019531, %v301_v48  ;;  %v402_v48 = vld [vmem:[%s1291_s6] sm:$0x1] }
  0xc9   :  { %vm1035_vm8 = vcmp.gt.f32.partialorder %v311_v49, 0.0  ;;  %v343_v57 = vmul.f32 0.20019531, %v311_v49  ;;  %vm365_vm10 = vmpackc.low %vm1031_vm7, %vm1031_vm7 }
  0xca   :  { %v270_v58 = vadd.f32 %v953_v37, %v250_v50  ;;  %v280_v59 = vadd.f32 %v959_v51, %v260_v52  ;;  %v349_v61 = vpack.c.bf16 %v333_v54, %v333_v54  ;;  %vm375_vm11 = vmpackc.low %vm1035_vm8, %vm1035_vm8  ;;  %v558_v52 = vpack.i.b16 %v402_v48, %v402_v48 }
  0xcb   :  { %v359_v62 = vpack.c.bf16 %v343_v57, %v343_v57 }
  0xcc   :  { %v286_v1 = vpack.c.bf16 %v270_v58, %v270_v58  ;;  %v296_v2 = vpack.c.bf16 %v280_v59, %v280_v59  ;;  %v381_v5 = vsel %vm365_vm10, %v285_v36, %v349_v61  ;;  %v560_v54 = vperm.slane %v558_v52, 0 }
  0xcd   :  { %v202_v3 = vpop.f32.mrf.mxu0  ;;  %v227_v4 = vpop.f32.mrf.mxu1  ;;  %v391_v37 = vsel %vm375_vm11, %v295_v39, %v359_v62  ;;  %v422_v12 = vunpack.c.l.b16 %v381_v5 }
  0xce   :  { %v235_v6 = vpack.c.bf16 %v202_v3, %v202_v3  ;;  %v245_v51 = vpack.c.bf16 %v227_v4, %v227_v4  ;;  %v302_v10 = vunpack.c.l.bf16 %v286_v1  ;;  %v312_v11 = vunpack.c.l.bf16 %v296_v2 }
  0xcf   :  { %v432_v13 = vunpack.c.l.b16 %v391_v37  ;;  %v436_v16 = vpack.c.b16 %v422_v12, %v421_v7  ;;  %v1079_v59 = vunpack.c.l.bf16 %v560_v54 }
  0xd0   :  { %v251_v14 = vunpack.c.l.bf16 %v235_v6  ;;  %v261_v15 = vunpack.c.l.bf16 %v245_v51  ;;  %v334_v18 = vmul.f32 0.20019531, %v302_v10  ;;  %v344_v19 = vmul.f32 0.20019531, %v312_v11 }
  0xd1   :  { %v441_v17 = vpack.c.b16 %v432_v13, %v431_v8  ;;  %830 = vmatmul.msk.bf16.gmra.mxu2 %vm467_vm3, %v436_v16  ;;  %vm1054_vm12 = vcmp.gt.f32.partialorder %v302_v10, 0.0  ;;  %vm1058_vm13 = vcmp.gt.f32.partialorder %v312_v11, 0.0 }
  0xd2   :  { %v271_v20 = vadd.f32 %v964_v56, %v251_v14  ;;  %v281_v21 = vadd.f32 %v972_v9, %v261_v15  ;;  %v350_v28 = vpack.c.bf16 %v334_v18, %v334_v18  ;;  %v360_v29 = vpack.c.bf16 %v344_v19, %v344_v19  ;;  %vm366_vm14 = vmpackc.low %vm1054_vm12, %vm1054_vm12 }
  0xd3   :  { %835 = vmatmul.msk.bf16.gmra.mxu3 %vm467_vm3, %v441_v17  ;;  %vm376_vm1 = vmpackc.low %vm1058_vm13, %vm1058_vm13 }
  0xd4   :  { %v287_v22 = vpack.c.bf16 %v271_v20, %v271_v20  ;;  %v297_v25 = vpack.c.bf16 %v281_v21, %v281_v21  ;;  %v382_v32 = vsel %vm366_vm14, %v286_v1, %v350_v28  ;;  %v392_v33 = vsel %vm376_vm1, %v296_v2, %v360_v29 }
  0xd5   :  { %v423_v36 = vunpack.c.l.b16 %v382_v32  ;;  %v433_v40 = vunpack.c.l.b16 %v392_v33 }
  0xd6   :  { %v303_v23 = vunpack.c.l.bf16 %v287_v22  ;;  %v313_v56 = vunpack.c.l.bf16 %v297_v25 }
  0xd8   :  { %vm319_vm15 = vcmp.gt.f32.partialorder %v303_v23, 0.0  ;;  %v335_v9 = vmul.f32 0.20019531, %v303_v23  ;;  %vm329_vm0 = vcmp.gt.f32.partialorder %v313_v56, 0.0  ;;  %v345_v24 = vmul.f32 0.20019531, %v313_v56 }
  0xd9   :  { %vm367_vm2 = vmpackc.low %vm319_vm15, %vm319_vm15 }
  0xda   :  { %v351_v30 = vpack.c.bf16 %v335_v9, %v335_v9  ;;  %v361_v31 = vpack.c.bf16 %v345_v24, %v345_v24  ;;  %vm377_vm4 = vmpackc.low %vm329_vm0, %vm329_vm0 }
  0xdc   :  { %v383_v34 = vsel %vm367_vm2, %v287_v22, %v351_v30  ;;  %v393_v35 = vsel %vm377_vm4, %v297_v25, %v361_v31 }
  0xdd   :  { %v424_v39 = vunpack.c.l.b16 %v383_v34  ;;  %v434_v41 = vunpack.c.l.b16 %v393_v35 }
  0xdf   :  { %v437_v42 = vpack.c.b16 %v424_v39, %v423_v36  ;;  %v442_v43 = vpack.c.b16 %v434_v41, %v433_v40 }
  0xe1   :  { %831 = vmatmul.msk.bf16.gmra.mxu2 %vm467_vm3, %v437_v42 }
  0xe3   :  { %836 = vmatmul.msk.bf16.gmra.mxu3 %vm467_vm3, %v442_v43 }
  0xf1   :  { %832 = vmatmul.msk.bf16.gmra.mxu2 %vm467_vm3, %v992_v60 }
 0x101   :  { %833 = vmatmul.msk.bf16.gmra.mxu2 %vm467_vm3, %v980_v38 }
 0x144   :  { %v501_v44 = vpop.f32.mrf.mxu2 }
 0x145   :  { %v541_v53 = vpack.c.bf16 %v501_v44, %v501_v44 }
 0x146   :  { %v526_v45 = vpop.f32.mrf.mxu3 }
 0x147   :  { %v551_v55 = vpack.c.bf16 %v526_v45, %v526_v45  ;;  %v561_v60 = vunpack.c.l.bf16 %v541_v53 }
 0x149   :  { %v571_v38 = vunpack.c.l.bf16 %v551_v55  ;;  %v578_v62 = vadd.f32 %v1079_v59, %v561_v60 }
 0x14b   :  { %v588_v63 = vadd.f32 %v1079_v59, %v571_v38  ;;  %v594_v4 = vpack.c.bf16 %v578_v62, %v578_v62 }
 0x14c   :  { %v503_v46 = vpop.f32.mrf.mxu2 }
 0x14d   :  { %v604_v37 = vpack.c.bf16 %v588_v63, %v588_v63  ;;  %v610_v8 = vunpack.c.l.bf16 %v594_v4  ;;  %v542_v12 = vpack.c.bf16 %v503_v46, %v503_v46 }
 0x14e   :  { %v528_v47 = vpop.f32.mrf.mxu3 }
 0x14f   :  { %v552_v3 = vpack.c.bf16 %v528_v47, %v528_v47  ;;  %v620_v11 = vunpack.c.l.bf16 %v604_v37  ;;  %v642_v20 = vmul.f32 0.20019531, %v610_v8  ;;  %v562_v26 = vunpack.c.l.bf16 %v542_v12 }
 0x150   :  { %vm1089_vm5 = vcmp.gt.f32.partialorder %v610_v8, 0.0 }
 0x151   :  { %v572_v7 = vunpack.c.l.bf16 %v552_v3  ;;  %v652_v25 = vmul.f32 0.20019531, %v620_v11  ;;  %v658_v24 = vpack.c.bf16 %v642_v20, %v642_v20  ;;  %vm1095_vm6 = vcmp.gt.f32.partialorder %v620_v11, 0.0  ;;  %vm674_vm7 = vmpackc.low %vm1089_vm5, %vm1089_vm5 }
 0x152   :  { %v579_v34 = vadd.f32 %v1079_v59, %v562_v26  ;;  %vm684_vm8 = vmpackc.low %vm1095_vm6, %vm1095_vm6 }
 0x153   :  { %v589_v18 = vadd.f32 %v1079_v59, %v572_v7  ;;  %v668_v33 = vpack.c.bf16 %v652_v25, %v652_v25  ;;  %v1108_v45 = vsel %vm674_vm7, %v594_v4, %v658_v24 }
 0x154   :  { %v506_v49 = vpop.f32.mrf.mxu2  ;;  %v706_v60 = vunpack.c.l.bf16 %v1108_v45 }
 0x155   :  { %v543_v61 = vpack.c.bf16 %v506_v49, %v506_v49  ;;  %v1087_v23 = vpack.c.bf16 %v589_v18, %v589_v18  ;;  %v700_v49 = vsel %vm684_vm8, %v604_v37, %v668_v33 }
 0x156   :  { %v531_v50 = vpop.f32.mrf.mxu3  ;;  %v716_v63 = vunpack.c.l.bf16 %v700_v49 }
 0x157   :  { %v563_v0 = vunpack.c.l.bf16 %v543_v61  ;;  %v553_v19 = vpack.c.bf16 %v531_v50, %v531_v50  ;;  %v621_v42 = vunpack.c.l.bf16 %v1087_v23  ;;  %v1115_v50 = vpack.c.bf16 %v579_v34, %v579_v34 }
 0x158   :  { %v739_v18 = vsel %vm467_vm3, %v716_v63, -inf }
 0x159   :  { %v580_v6 = vadd.f32 %v1079_v59, %v563_v0  ;;  %v573_v56 = vunpack.c.l.bf16 %v553_v19  ;;  %v653_v38 = vmul.f32 0.20019531, %v621_v42  ;;  %v611_v3 = vunpack.c.l.bf16 %v1115_v50 }
 0x15a   :  { %vm1134_vm11 = vcmp.gt.f32.partialorder %v621_v42, 0.0 }
 0x15b   :  { %v596_v13 = vpack.c.bf16 %v580_v6, %v580_v6  ;;  %v590_v43 = vadd.f32 %v1079_v59, %v573_v56  ;;  %v669_v11 = vpack.c.bf16 %v653_v38, %v653_v38  ;;  %vm685_vm14 = vmpackc.low %vm1134_vm11, %vm1134_vm11  ;;  %vm754_vm11 = vcmask 519168  }
 0x15c   :  { %v508_v57 = vpop.f32.mrf.mxu2 }
 0x15d   :  { %v544_v51 = vpack.c.bf16 %v508_v57, %v508_v57  ;;  %v612_v27 = vunpack.c.l.bf16 %v596_v13  ;;  %v1126_v61 = vpack.c.bf16 %v590_v43, %v590_v43 }
 0x15e   :  { %v1077_v58 = vpop.f32.mrf.mxu3 }
 0x15f   :  { %v564_v16 = vunpack.c.l.bf16 %v544_v51  ;;  %v644_v35 = vmul.f32 0.20019531, %v612_v27  ;;  %vm1117_vm9 = vcmp.gt.f32.partialorder %v612_v27, 0.0  ;;  %v554_v37 = vpack.c.bf16 %v1077_v58, %v1077_v58 }
 0x160   :  { %vm676_vm10 = vmpackc.low %vm1117_vm9, %vm1117_vm9  ;;  %v622_v12 = vunpack.c.l.bf16 %v1126_v61 }
 0x161   :  { %v581_v28 = vadd.f32 %v1079_v59, %v564_v16  ;;  %v660_v53 = vpack.c.bf16 %v644_v35, %v644_v35  ;;  %v574_v20 = vunpack.c.l.bf16 %v554_v37 }
 0x162   :  { %v1176_v24 = vmul.f32 0.20019531, %v622_v12  ;;  %vm1202_vm7 = vcmp.gt.f32.partialorder %v622_v12, 0.0 }
 0x163   :  { %v1100_v39 = vpack.c.bf16 %v581_v28, %v581_v28  ;;  %v1165_v28 = vmul.f32 0.20019531, %v611_v3 }
 0x164   :  { %v511_v1 = vpop.f32.mrf.mxu2 }
 0x165   :  { %v545_v17 = vpack.c.bf16 %v511_v1, %v511_v1  ;;  %v613_v54 = vunpack.c.l.bf16 %v1100_v39 }
 0x166   :  { %v536_v2 = vpop.f32.mrf.mxu3 }
 0x167   :  { %v555_v5 = vpack.c.bf16 %v536_v2, %v536_v2  ;;  %v565_v29 = vunpack.c.l.bf16 %v545_v17  ;;  %v645_v51 = vmul.f32 0.20019531, %v613_v54  ;;  %vm1156_vm15 = vcmp.gt.f32.partialorder %v613_v54, 0.0 }
 0x168   :  { %vm677_vm2 = vmpackc.low %vm1156_vm15, %vm1156_vm15 }
 0x169   :  { %v575_v10 = vunpack.c.l.bf16 %v555_v5  ;;  %v582_v40 = vadd.f32 %v1079_v59, %v565_v29  ;;  %v692_v5 = vsel %vm676_vm10, %v596_v13, %v660_v53  ;;  %v661_v25 = vpack.c.bf16 %v645_v51, %v645_v51  ;;  %vm686_vm15 = vmpackc.low %vm1202_vm7, %vm1202_vm7 }
 0x16a   :  { %v708_v19 = vunpack.c.l.bf16 %v692_v5  ;;  %v1168_v29 = vsel %vm685_vm14, %v1087_v23, %v669_v11  ;;  %v591_v23 = vadd.f32 %v1079_v59, %v574_v20  ;;  %v670_v5 = vpack.c.bf16 %v1176_v24, %v1176_v24 }
 0x16b   :  { %v592_v21 = vadd.f32 %v1079_v59, %v575_v10  ;;  %v1122_v55 = vpack.c.bf16 %v582_v40, %v582_v40  ;;  %v717_v63 = vunpack.c.l.bf16 %v1168_v29  ;;  %vm1238_vm14 = vcmp.gt.f32.partialorder %v611_v3, 0.0 }
 0x16c   :  { %v513_v14 = vpop.f32.mrf.mxu2  ;;  %v736_v34 = vsel %vm467_vm3, %v708_v19, -inf  ;;  %v659_v29 = vpack.c.bf16 %v1165_v28, %v1165_v28  ;;  %v722_v28 = vsel %vm467_vm3, %v706_v60, -inf }
 0x16d   :  { %v1093_v30 = vpack.c.bf16 %v592_v21, %v592_v21  ;;  %v546_v44 = vpack.c.bf16 %v513_v14, %v513_v14  ;;  %v614_v7 = vunpack.c.l.bf16 %v1122_v55 }
 0x16e   :  { %v538_v15 = vpop.f32.mrf.mxu3 }
 0x16f   :  { %v556_v22 = vpack.c.bf16 %v538_v15, %v538_v15  ;;  %v624_v46 = vunpack.c.l.bf16 %v1093_v30  ;;  %v566_v62 = vunpack.c.l.bf16 %v546_v44  ;;  %v646_v26 = vmul.f32 0.20019531, %v614_v7 }
 0x170   :  { %vm1185_vm4 = vcmp.gt.f32.partialorder %v614_v7, 0.0 }
 0x171   :  { %v576_v31 = vunpack.c.l.bf16 %v556_v22  ;;  %v656_v0 = vmul.f32 0.20019531, %v624_v46  ;;  %vm1142_vm12 = vcmp.gt.f32.partialorder %v624_v46, 0.0  ;;  %v583_v15 = vadd.f32 %v1079_v59, %v566_v62  ;;  %vm678_vm8 = vmpackc.low %vm1185_vm4, %vm1185_vm4 }
 0x172   :  { %vm688_vm0 = vmpackc.low %vm1142_vm12, %vm1142_vm12 }
 0x173   :  { %v593_v47 = vadd.f32 %v1079_v59, %v576_v31  ;;  %v672_v16 = vpack.c.bf16 %v656_v0, %v656_v0  ;;  %v1170_v56 = vpack.c.bf16 %v583_v15, %v583_v15 }
 0x174   :  { %v516_v36 = vpop.f32.mrf.mxu2 }
 0x175   :  { %v547_v41 = vpack.c.bf16 %v516_v36, %v516_v36  ;;  %v1131_v1 = vpack.c.bf16 %v593_v47, %v593_v47  ;;  %v704_v31 = vsel %vm688_vm0, %v1093_v30, %v672_v16  ;;  %v662_v30 = vpack.c.bf16 %v646_v26, %v646_v26 }
 0x176   :  { %v720_v44 = vunpack.c.l.bf16 %v704_v31  ;;  %v615_v46 = vunpack.c.l.bf16 %v1170_v56  ;;  %v702_v31 = vsel %vm686_vm15, %v1126_v61, %v670_v5 }
 0x177   :  { %v567_v48 = vunpack.c.l.bf16 %v547_v41  ;;  %v625_v13 = vunpack.c.l.bf16 %v1131_v1  ;;  %v693_v41 = vsel %vm677_vm2, %v1100_v39, %v661_v25  ;;  %v694_v7 = vsel %vm678_vm8, %v1122_v55, %v662_v30  ;;  %vm675_vm2 = vmpackc.low %vm1238_vm14, %vm1238_vm14 }
 0x178   :  { %v709_v39 = vunpack.c.l.bf16 %v693_v41  ;;  %v741_v37 = vsel %vm467_vm3, %v720_v44, -inf  ;;  %v710_v55 = vunpack.c.l.bf16 %v694_v7  ;;  %vm1223_vm12 = vcmp.gt.f32.partialorder %v615_v46, 0.0 }
 0x179   :  { %v584_v57 = vadd.f32 %v1079_v59, %v567_v48  ;;  %v657_v32 = vmul.f32 0.20019531, %v625_v13  ;;  %vm1191_vm5 = vcmp.gt.f32.partialorder %v625_v13, 0.0  ;;  %vm679_vm0 = vmpackc.low %vm1223_vm12, %vm1223_vm12  ;;  %v691_v45 = vsel %vm675_vm2, %v1115_v50, %v659_v29 }
 0x17a   :  { %vm689_vm9 = vmpackc.low %vm1191_vm5, %vm1191_vm5  ;;  %v743_v12 = vsel %vm467_vm3, %v709_v39, -inf  ;;  %v718_v60 = vunpack.c.l.bf16 %v702_v31  ;;  %v707_v49 = vunpack.c.l.bf16 %v691_v45 }
 0x17b   :  { %v600_v2 = vpack.c.bf16 %v584_v57, %v584_v57  ;;  %v673_v52 = vpack.c.bf16 %v657_v32, %v657_v32  ;;  %v1195_v57 = vpack.c.bf16 %v591_v23, %v591_v23 }
 0x17c   :  { %v518_v6 = vpop.f32.mrf.mxu2 }
 0x17d   :  { %v616_v8 = vunpack.c.l.bf16 %v600_v2  ;;  %v548_v10 = vpack.c.bf16 %v518_v6, %v518_v6  ;;  %v647_v6 = vmul.f32 0.20019531, %v615_v46  ;;  %v623_v14 = vunpack.c.l.bf16 %v1195_v57 }
 0x17f   :  { %vm1148_vm13 = vcmp.gt.f32.partialorder %v616_v8, 0.0  ;;  %v648_v17 = vmul.f32 0.20019531, %v616_v8  ;;  %v568_v21 = vunpack.c.l.bf16 %v548_v10  ;;  %v705_v8 = vsel %vm689_vm9, %v1131_v1, %v673_v52 }
 0x180   :  { %vm680_vm1 = vmpackc.low %vm1148_vm13, %vm1148_vm13  ;;  %v663_v19 = vpack.c.bf16 %v647_v6, %v647_v6  ;;  %v721_v20 = vunpack.c.l.bf16 %v705_v8  ;;  %v655_v32 = vmul.f32 0.20019531, %v623_v14  ;;  %vm639_vm4 = vcmp.gt.f32.partialorder %v623_v14, 0.0 }
 0x181   :  { %v664_v27 = vpack.c.bf16 %v648_v17, %v648_v17  ;;  %v585_v9 = vadd.f32 %v1079_v59, %v568_v21  ;;  %v727_v52 = vsel %vm467_vm3, %v718_v60, -inf }
 0x182   :  { %v695_v61 = vsel %vm679_vm0, %v1170_v56, %v663_v19  ;;  %v671_v42 = vpack.c.bf16 %v655_v32, %v655_v32 }
 0x183   :  { %v696_v33 = vsel %vm680_vm1, %v600_v2, %v664_v27  ;;  %v601_v36 = vpack.c.bf16 %v585_v9, %v585_v9  ;;  %v746_v9 = vsel %vm467_vm3, %v717_v63, -inf  ;;  %v711_v44 = vunpack.c.l.bf16 %v695_v61 }
 0x184   :  { %v712_v35 = vunpack.c.l.bf16 %v696_v33  ;;  %v521_v40 = vpop.f32.mrf.mxu2  ;;  %v729_v63 = vsel %vm467_vm3, %v707_v49, -inf }
 0x185   :  { %v549_v43 = vpack.c.bf16 %v521_v40, %v521_v40  ;;  %v617_v48 = vunpack.c.l.bf16 %v601_v36  ;;  %v730_v39 = vsel %vm467_vm3, %v711_v44, -inf }
 0x186   :  { %v737_v47 = vsel %vm467_vm3, %v712_v35, -inf  ;;  %v748_v35 = vsel %vm467_vm3, %v721_v20, -inf }
 0x187   :  { %v738_v53 = vmax.f32 %v736_v34, %v737_v47  ;;  %v569_v54 = vunpack.c.l.bf16 %v549_v43  ;;  %vm1197_vm6 = vcmp.gt.f32.partialorder %v617_v48, 0.0  ;;  %v649_v62 = vmul.f32 0.20019531, %v617_v48 }
 0x188   :  { %vm681_vm10 = vmpackc.low %vm1197_vm6, %vm1197_vm6  ;;  %v723_v34 = vsel %vm467_vm3, %v710_v55, -inf }
 0x189   :  { %v740_v2 = vmax.f32 %v738_v53, %v739_v18  ;;  %v586_v4 = vadd.f32 %v1079_v59, %v569_v54  ;;  %v665_v51 = vpack.c.bf16 %v649_v62, %v649_v62  ;;  %v724_v30 = vmax.f32 %v722_v28, %v723_v34  ;;  %vm687_vm6 = vmpackc.low %vm639_vm4, %vm639_vm4 }
 0x18a   :  { %v703_v50 = vsel %vm687_vm6, %v1195_v57, %v671_v42 }
 0x18b   :  { %v742_v10 = vmax.f32 %v740_v2, %v741_v37  ;;  %v602_v11 = vpack.c.bf16 %v586_v4, %v586_v4  ;;  %v697_v15 = vsel %vm681_vm10, %v601_v36, %v665_v51  ;;  %v719_v0 = vunpack.c.l.bf16 %v703_v50 }
 0x18c   :  { %v523_v16 = vpop.f32.mrf.mxu2  ;;  %v713_v58 = vunpack.c.l.bf16 %v697_v15  ;;  %v731_v4 = vmax.f32 %v729_v63, %v730_v39 }
 0x18d   :  { %v752_v13 = vpack.c.bf16 %v742_v10, %v742_v10  ;;  %v618_v17 = vunpack.c.l.bf16 %v602_v11  ;;  %v550_v18 = vpack.c.bf16 %v523_v16, %v523_v16  ;;  %v734_v37 = vsel %vm467_vm3, %v719_v0, -inf }
 0x18e   :  { %v744_v21 = vsel %vm467_vm3, %v713_v58, -inf }
 0x18f   :  { %757 = vst.msk [vmem:[%s1292_s7 + $0x8] sm:$0xf] %vm754_vm11, %v752_v13  ;;  %vm1232_vm13 = vcmp.gt.f32.partialorder %v618_v17, 0.0  ;;  %v650_v25 = vmul.f32 0.20019531, %v618_v17  ;;  %v570_v26 = vunpack.c.l.bf16 %v550_v18  ;;  %v745_v24 = vmax.f32 %v743_v12, %v744_v21 }
 0x190   :  { %vm682_vm1 = vmpackc.low %vm1232_vm13, %vm1232_vm13 }
 0x191   :  { %v666_v3 = vpack.c.bf16 %v650_v25, %v650_v25  ;;  %v587_v33 = vadd.f32 %v1079_v59, %v570_v26  ;;  %v747_v23 = vmax.f32 %v745_v24, %v746_v9 }
 0x193   :  { %v698_v59 = vsel %vm682_vm1, %v602_v11, %v666_v3  ;;  %v603_v36 = vpack.c.bf16 %v587_v33, %v587_v33  ;;  %v749_v40 = vmax.f32 %v747_v23, %v748_v35 }
 0x194   :  { %v714_v41 = vunpack.c.l.bf16 %v698_v59 }
 0x195   :  { %v619_v43 = vunpack.c.l.bf16 %v603_v36  ;;  %v753_v46 = vpack.c.bf16 %v749_v40, %v749_v40 }
 0x196   :  { %v725_v47 = vsel %vm467_vm3, %v714_v41, -inf }
 0x197   :  { %v726_v48 = vmax.f32 %v724_v30, %v725_v47  ;;  %vm635_vm5 = vcmp.gt.f32.partialorder %v619_v43, 0.0  ;;  %v651_v56 = vmul.f32 0.20019531, %v619_v43  ;;  %758 = vst.msk [vmem:[%s1292_s7 + $0xc] sm:$0xf] %vm754_vm11, %v753_v46 }
 0x198   :  { %vm683_vm7 = vmpackc.low %vm635_vm5, %vm635_vm5 }
 0x199   :  { %v728_v53 = vmax.f32 %v726_v48, %v727_v52  ;;  %v667_v54 = vpack.c.bf16 %v651_v56, %v651_v56 }
 0x19b   :  { %v750_v38 = vpack.c.bf16 %v728_v53, %v728_v53  ;;  %v699_v62 = vsel %vm683_vm7, %v603_v36, %v667_v54 }
 0x19c   :  { %v715_v2 = vunpack.c.l.bf16 %v699_v62 }
 0x19d   :  { %755 = vst.msk [vmem:[%s1292_s7] sm:$0xf] %vm754_vm11, %v750_v38 }
 0x19e   :  { %v732_v5 = vsel %vm467_vm3, %v715_v2, -inf }
 0x19f   :  { %v733_v57 = vmax.f32 %v731_v4, %v732_v5 }
 0x1a1   :  { %v735_v6 = vmax.f32 %v733_v57, %v734_v37 }
 0x1a3   :  { %v751_v51 = vpack.c.bf16 %v735_v6, %v735_v6 }
 0x1a5   :  { %756 = vst.msk [vmem:[%s1292_s7 + $0x4] sm:$0xf] %vm754_vm11, %v751_v51 }

// kernel: deltaconv_forward.6
= control target key start
LH: loop header
LB: loop body
LE: loop exit
PB: predicated region body
PF: predicated region fallthrough
CT: control target
= control target key end

     0   :  { %vm73_vm0 = vcmask 523264   ;;  %s1351_s2 = inlined_call_operand.vmem [shape: bf16[64,128], index: 2, kind: input, shape index: {}]   ;;  %s1352_s4 = inlined_call_operand.vmem [shape: bf16[64,128], index: 4, kind: input, shape index: {}]   ;;  %s1353_s0 = inlined_call_operand.vmem [shape: bf16[32,64], index: 0, kind: input, shape index: {}]   ;;  %s1354_s1 = inlined_call_operand.vmem [shape: bf16[4,32,64], index: 1, kind: input, shape index: {}]   ;;  %s1355_s5 = inlined_call_operand.vmem [shape: bf16[128,128], index: 5, kind: input, shape index: {}]   ;;  %s1356_s3 = inlined_call_operand.vmem [shape: bf16[1,128], index: 3, kind: input, shape index: {}]   ;;  %s1357_s6 = inlined_call_operand.vmem [shape: bf16[1,128], index: 6, kind: input, shape index: {}]   ;;  %s1358_s7 = inlined_call_operand.vmem [shape: bf16[32,128], index: 7, kind: output, shape index: {}]  }
   0x1   :  { %v932_v0 = vld [vmem:[%s1351_s2 + $0x18] sm:$0xff]  ;;  %v931_v2 = vld [vmem:[%s1351_s2 + $0x10] sm:$0xff]  ;;  %v930_v4 = vld [vmem:[%s1351_s2 + $0x8] sm:$0xff] }
   0x2   :  { %v944_v1 = vld [vmem:[%s1352_s4 + $0x18] sm:$0xff]  ;;  %84 = vmatpush.bf16.msra.mxu0 %v932_v0  ;;  %v943_v3 = vld [vmem:[%s1352_s4 + $0x10] sm:$0xff]  ;;  %v942_v5 = vld [vmem:[%s1352_s4 + $0x8] sm:$0xff] }
   0x3   :  { %964 = vmatpush.bf16.msra.mxu1 %v944_v1  ;;  %v929_v6 = vld [vmem:[%s1351_s2] sm:$0xff]  ;;  %v936_v9 = vld [vmem:[%s1354_s1 + $0x18] sm:$0xff]  ;;  %v928_v10 = vld [vmem:[%s1353_s0 + $0x8] sm:$0xff] }
   0x4   :  { %v941_v7 = vld [vmem:[%s1352_s4] sm:$0xff]  ;;  %v938_v13 = vld [vmem:[%s1354_s1 + $0x28] sm:$0xff]  ;;  %v939_v15 = vld [vmem:[%s1354_s1 + $0x30] sm:$0xff] }
   0x5   :  { %v927_v8 = vld [vmem:[%s1353_s0] sm:$0xff]  ;;  %v934_v14 = vld [vmem:[%s1354_s1 + $0x8] sm:$0xff]  ;;  %v935_v16 = vld [vmem:[%s1354_s1 + $0x10] sm:$0xff] }
   0x6   :  { %85 = vmatpush.bf16.msra.mxu0 %v931_v2  ;;  %v937_v11 = vld [vmem:[%s1354_s1 + $0x20] sm:$0xff]  ;;  %v940_v17 = vld [vmem:[%s1354_s1 + $0x38] sm:$0xff]  ;;  %v951_v19 = vld [vmem:[%s1355_s5 + $0x30] sm:$0xff] }
   0x7   :  { %965 = vmatpush.bf16.msra.mxu1 %v943_v3  ;;  %v933_v12 = vld [vmem:[%s1354_s1] sm:$0xff]  ;;  %v952_v18 = vld [vmem:[%s1355_s5 + $0x38] sm:$0xff]  ;;  %v950_v20 = vld [vmem:[%s1355_s5 + $0x28] sm:$0xff] }
   0x8   :  { %968 = vmatpush.bf16.msra.mxu3 %v952_v18  ;;  %559 = vmatpush.bf16.msra.mxu2 %v952_v18  ;;  %v949_v21 = vld [vmem:[%s1355_s5 + $0x20] sm:$0xff]  ;;  %v948_v22 = vld [vmem:[%s1355_s5 + $0x18] sm:$0xff]  ;;  %v947_v25 = vld [vmem:[%s1355_s5 + $0x10] sm:$0xff] }
   0x9   :  { %v103_v23 = vld [vmem:[%s1356_s3] sm:$0x1]  ;;  %v946_v30 = vld [vmem:[%s1355_s5 + $0x8] sm:$0xff] }
   0xa   :  { %86 = vmatpush.bf16.msra.mxu0 %v930_v4  ;;  %v105_v24 = vpack.i.b16 %v103_v23, %v103_v23  ;;  %v945_v33 = vld [vmem:[%s1355_s5] sm:$0xff] }
   0xb   :  { %966 = vmatpush.bf16.msra.mxu1 %v942_v5 }
   0xc   :  { %969 = vmatpush.bf16.msra.mxu3 %v951_v19  ;;  %560 = vmatpush.bf16.msra.mxu2 %v951_v19  ;;  %v107_v29 = vperm.slane %v105_v24, 0 }
   0xe   :  { %87 = vmatpush.bf16.msra.mxu0 %v929_v6  ;;  %v112_v32 = vunpack.c.l.bf16 %v107_v29 }
   0xf   :  { %967 = vmatpush.bf16.msra.mxu1 %v941_v7 }
  0x10   :  { %970 = vmatpush.bf16.msra.mxu3 %v950_v20  ;;  %561 = vmatpush.bf16.msra.mxu2 %v950_v20 }
  0x11   :  { %837 = vmatmul.msk.bf16.vlgmr.msra.gmra.mxu0 %vm73_vm0, %v927_v8 }
  0x12   :  { %237 = vmatpush.bf16.msrb.mxu0 %v944_v1  ;;  %890 = vmatmul.msk.bf16.vlgmr.msra.gmra.mxu1 %vm73_vm0, %v936_v9 }
  0x14   :  { %971 = vmatpush.bf16.msra.mxu3 %v949_v21  ;;  %562 = vmatpush.bf16.msra.mxu2 %v949_v21 }
  0x16   :  { %238 = vmatpush.bf16.msrb.mxu0 %v943_v3 }
  0x18   :  { %972 = vmatpush.bf16.msra.mxu3 %v948_v22  ;;  %563 = vmatpush.bf16.msra.mxu2 %v948_v22 }
  0x1a   :  { %239 = vmatpush.bf16.msrb.mxu0 %v942_v5 }
  0x1c   :  { %973 = vmatpush.bf16.msra.mxu3 %v947_v25  ;;  %564 = vmatpush.bf16.msra.mxu2 %v947_v25 }
  0x1e   :  { %240 = vmatpush.bf16.msrb.mxu0 %v941_v7 }
  0x20   :  { %974 = vmatpush.bf16.msra.mxu3 %v946_v30  ;;  %565 = vmatpush.bf16.msra.mxu2 %v946_v30 }
  0x21   :  { %838 = vmatmul.msk.bf16.gmra.mxu0 %vm73_vm0, %v928_v10 }
  0x22   :  { %891 = vmatmul.msk.bf16.gmra.mxu1 %vm73_vm0, %v937_v11 }
  0x24   :  { %975 = vmatpush.bf16.msra.mxu3 %v945_v33  ;;  %566 = vmatpush.bf16.msra.mxu2 %v945_v33 }
  0x31   :  { %887 = vmatmul.msk.bf16.vlgmr.msrb.gmra.mxu0 %vm73_vm0, %v933_v12 }
  0x32   :  { %892 = vmatmul.msk.bf16.gmra.mxu1 %vm73_vm0, %v938_v13 }
  0x41   :  { %888 = vmatmul.msk.bf16.gmra.mxu0 %vm73_vm0, %v934_v14 }
  0x42   :  { %893 = vmatmul.msk.bf16.gmra.mxu1 %vm73_vm0, %v939_v15 }
  0x51   :  { %889 = vmatmul.msk.bf16.gmra.mxu0 %vm73_vm0, %v935_v16 }
  0x52   :  { %894 = vmatmul.msk.bf16.gmra.mxu1 %vm73_vm0, %v940_v17 }
  0x8e   :  { %v89_v26 = vpop.f32.mrf.mxu0 }
  0x8f   :  { %v257_v27 = vpop.f32.mrf.mxu1  ;;  %v99_v28 = vpack.c.bf16 %v89_v26, %v89_v26 }
  0x90   :  { %v288_v50 = vpack.c.bf16 %v257_v27, %v257_v27 }
  0x91   :  { %v108_v31 = vunpack.c.l.bf16 %v99_v28 }
  0x92   :  { %v304_v60 = vunpack.c.l.bf16 %v288_v50 }
  0x93   :  { %v113_v36 = vadd.f32 %v112_v32, %v108_v31 }
  0x95   :  { %v117_v38 = vpack.c.bf16 %v113_v36, %v113_v36 }
  0x96   :  { %v91_v34 = vpop.f32.mrf.mxu0 }
  0x97   :  { %v259_v35 = vpop.f32.mrf.mxu1  ;;  %v100_v37 = vpack.c.bf16 %v91_v34, %v91_v34  ;;  %v1107_v44 = vunpack.c.l.bf16 %v117_v38 }
  0x98   :  { %v289_v4 = vpack.c.bf16 %v259_v35, %v259_v35 }
  0x99   :  { %v109_v39 = vunpack.c.l.bf16 %v100_v37 }
  0x9a   :  { %v305_v16 = vunpack.c.l.bf16 %v289_v4 }
  0x9b   :  { %v114_v45 = vadd.f32 %v112_v32, %v109_v39 }
  0x9d   :  { %v118_v51 = vpack.c.bf16 %v114_v45, %v114_v45 }
  0x9e   :  { %v94_v40 = vpop.f32.mrf.mxu0 }
  0x9f   :  { %v262_v41 = vpop.f32.mrf.mxu1  ;;  %v101_v42 = vpack.c.bf16 %v94_v40, %v94_v40  ;;  %v1112_v61 = vunpack.c.l.bf16 %v118_v51 }
  0xa0   :  { %v290_v43 = vpack.c.bf16 %v262_v41, %v262_v41 }
  0xa1   :  { %v110_v46 = vunpack.c.l.bf16 %v101_v42 }
  0xa2   :  { %v306_v47 = vunpack.c.l.bf16 %v290_v43 }
  0xa3   :  { %v115_v48 = vadd.f32 %v112_v32, %v110_v46 }
  0xa4   :  { %v326_v49 = vadd.f32 %v1107_v44, %v306_v47 }
  0xa5   :  { %v119_v52 = vpack.c.bf16 %v115_v48, %v115_v48 }
  0xa6   :  { %v342_v53 = vpack.c.bf16 %v326_v49, %v326_v49  ;;  %v96_v54 = vpop.f32.mrf.mxu0 }
  0xa7   :  { %v264_v55 = vpop.f32.mrf.mxu1  ;;  %v1110_v56 = vunpack.c.l.bf16 %v119_v52  ;;  %v102_v58 = vpack.c.bf16 %v96_v54, %v96_v54 }
  0xa8   :  { %v358_v57 = vunpack.c.l.bf16 %v342_v53  ;;  %v291_v59 = vpack.c.bf16 %v264_v55, %v264_v55 }
  0xa9   :  { %v111_v62 = vunpack.c.l.bf16 %v102_v58  ;;  %v324_v1 = vadd.f32 %v1110_v56, %v304_v60 }
  0xaa   :  { %v307_v63 = vunpack.c.l.bf16 %v291_v59  ;;  %v390_v0 = vmul.f32 0.20019531, %v358_v57  ;;  %vm374_vm1 = vcmp.gt.f32.partialorder %v358_v57, 0.0 }
  0xab   :  { %v116_v2 = vadd.f32 %v112_v32, %v111_v62  ;;  %v340_v5 = vpack.c.bf16 %v324_v1, %v324_v1  ;;  %vm422_vm3 = vmpackc.low %vm374_vm1, %vm374_vm1 }
  0xac   :  { %v327_v3 = vadd.f32 %v1112_v61, %v307_v63  ;;  %v406_v8 = vpack.c.bf16 %v390_v0, %v390_v0 }
  0xad   :  { %v120_v6 = vpack.c.bf16 %v116_v2, %v116_v2  ;;  %v356_v11 = vunpack.c.l.bf16 %v340_v5 }
  0xae   :  { %v343_v7 = vpack.c.bf16 %v327_v3, %v327_v3  ;;  %v242_v9 = vpop.f32.mrf.mxu0  ;;  %v438_v20 = vsel %vm422_vm3, %v342_v53, %v406_v8 }
  0xaf   :  { %v267_v10 = vpop.f32.mrf.mxu1  ;;  %v1116_v12 = vunpack.c.l.bf16 %v120_v6  ;;  %v282_v14 = vpack.c.bf16 %v242_v9, %v242_v9  ;;  %v388_v22 = vmul.f32 0.20019531, %v356_v11  ;;  %v487_v30 = vunpack.c.l.b16 %v438_v20 }
  0xb0   :  { %v359_v13 = vunpack.c.l.bf16 %v343_v7  ;;  %v292_v15 = vpack.c.bf16 %v267_v10, %v267_v10  ;;  %vm1121_vm5 = vcmp.gt.f32.partialorder %v356_v11, 0.0 }
  0xb1   :  { %v298_v18 = vunpack.c.l.bf16 %v282_v14  ;;  %v325_v21 = vadd.f32 %v1116_v12, %v305_v16  ;;  %v404_v36 = vpack.c.bf16 %v388_v22, %v388_v22  ;;  %vm420_vm7 = vmpackc.low %vm1121_vm5, %vm1121_vm5 }
  0xb2   :  { %v391_v17 = vmul.f32 0.20019531, %v359_v13  ;;  %v308_v19 = vunpack.c.l.bf16 %v292_v15  ;;  %vm375_vm2 = vcmp.gt.f32.partialorder %v359_v13, 0.0 }
  0xb3   :  { %v318_v24 = vadd.f32 %v1107_v44, %v298_v18  ;;  %vm423_vm4 = vmpackc.low %vm375_vm2, %vm375_vm2  ;;  %v341_v26 = vpack.c.bf16 %v325_v21, %v325_v21  ;;  %v436_v49 = vsel %vm420_vm7, %v340_v5, %v404_v36 }
  0xb4   :  { %v407_v23 = vpack.c.bf16 %v391_v17, %v391_v17  ;;  %v328_v25 = vadd.f32 %v1110_v56, %v308_v19  ;;  %v485_v57 = vunpack.c.l.b16 %v436_v49 }
  0xb5   :  { %v334_v27 = vpack.c.bf16 %v318_v24, %v318_v24  ;;  %v357_v34 = vunpack.c.l.bf16 %v341_v26 }
  0xb6   :  { %v344_v28 = vpack.c.bf16 %v328_v25, %v328_v25  ;;  %v439_v29 = vsel %vm423_vm4, %v343_v7, %v407_v23  ;;  %v244_v31 = vpop.f32.mrf.mxu0 }
  0xb7   :  { %v269_v32 = vpop.f32.mrf.mxu1  ;;  %v488_v33 = vunpack.c.l.b16 %v439_v29  ;;  %v350_v37 = vunpack.c.l.bf16 %v334_v27  ;;  %v283_v39 = vpack.c.bf16 %v244_v31, %v244_v31  ;;  %vm373_vm6 = vcmp.gt.f32.partialorder %v357_v34, 0.0 }
  0xb8   :  { %v360_v38 = vunpack.c.l.bf16 %v344_v28  ;;  %v293_v40 = vpack.c.bf16 %v269_v32, %v269_v32  ;;  %v389_v42 = vmul.f32 0.20019531, %v357_v34  ;;  %vm421_vm8 = vmpackc.low %vm373_vm6, %vm373_vm6 }
  0xb9   :  { %v499_v41 = vpack.c.b16 %v488_v33, %v487_v30  ;;  %v299_v43 = vunpack.c.l.bf16 %v283_v39  ;;  %v382_v46 = vmul.f32 0.20019531, %v350_v37  ;;  %vm1130_vm9 = vcmp.gt.f32.partialorder %v350_v37, 0.0 }
  0xba   :  { %v309_v45 = vunpack.c.l.bf16 %v293_v40  ;;  %v392_v47 = vmul.f32 0.20019531, %v360_v38  ;;  %v405_v48 = vpack.c.bf16 %v389_v42, %v389_v42  ;;  %vm1134_vm10 = vcmp.gt.f32.partialorder %v360_v38, 0.0  ;;  %vm414_vm11 = vmpackc.low %vm1130_vm9, %vm1130_vm9 }
  0xbb   :  { %587 = vmatmul.bf16.vlgmr.msra.gmra.mxu3 %v499_v41  ;;  %v319_v50 = vadd.f32 %v1112_v61, %v299_v43  ;;  %v398_v58 = vpack.c.bf16 %v382_v46, %v382_v46  ;;  %vm424_vm12 = vmpackc.low %vm1134_vm10, %vm1134_vm10 }
  0xbc   :  { %v329_v51 = vadd.f32 %v1116_v12, %v309_v45  ;;  %v437_v52 = vsel %vm421_vm8, %v341_v26, %v405_v48  ;;  %v408_v59 = vpack.c.bf16 %v392_v47, %v392_v47 }
  0xbd   :  { %v335_v53 = vpack.c.bf16 %v319_v50, %v319_v50  ;;  %v486_v0 = vunpack.c.l.b16 %v437_v52  ;;  %v430_v10 = vsel %vm414_vm11, %v334_v27, %v398_v58 }
  0xbe   :  { %v345_v54 = vpack.c.bf16 %v329_v51, %v329_v51  ;;  %v247_v60 = vpop.f32.mrf.mxu0  ;;  %v440_v11 = vsel %vm424_vm12, %v344_v28, %v408_v59  ;;  %v479_v23 = vunpack.c.l.b16 %v430_v10 }
  0xbf   :  { %v272_v62 = vpop.f32.mrf.mxu1  ;;  %v351_v1 = vunpack.c.l.bf16 %v335_v53  ;;  %v284_v3 = vpack.c.bf16 %v247_v60, %v247_v60  ;;  %v1141_v5 = vpack.c.b16 %v486_v0, %v485_v57  ;;  %v489_v25 = vunpack.c.l.b16 %v440_v11 }
  0xc0   :  { %v361_v2 = vunpack.c.l.bf16 %v345_v54  ;;  %v294_v4 = vpack.c.bf16 %v272_v62, %v272_v62 }
  0xc1   :  { %v383_v6 = vmul.f32 0.20019531, %v351_v1  ;;  %v300_v8 = vunpack.c.l.bf16 %v284_v3  ;;  %vm367_vm13 = vcmp.gt.f32.partialorder %v351_v1, 0.0 }
  0xc2   :  { %v393_v7 = vmul.f32 0.20019531, %v361_v2  ;;  %v310_v9 = vunpack.c.l.bf16 %v294_v4  ;;  %vm377_vm14 = vcmp.gt.f32.partialorder %v361_v2, 0.0  ;;  %vm415_vm15 = vmpackc.low %vm367_vm13, %vm367_vm13 }
  0xc3   :  { %v399_v13 = vpack.c.bf16 %v383_v6, %v383_v6  ;;  %v320_v15 = vadd.f32 %v1110_v56, %v300_v8  ;;  %vm425_vm0 = vmpackc.low %vm377_vm14, %vm377_vm14 }
  0xc4   :  { %v409_v14 = vpack.c.bf16 %v393_v7, %v393_v7  ;;  %v330_v16 = vadd.f32 %v1107_v44, %v310_v9 }
  0xc5   :  { %v336_v17 = vpack.c.bf16 %v320_v15, %v320_v15  ;;  %v431_v19 = vsel %vm415_vm15, %v335_v53, %v399_v13 }
  0xc6   :  { %v346_v18 = vpack.c.bf16 %v330_v16, %v330_v16  ;;  %v441_v20 = vsel %vm425_vm0, %v345_v54, %v409_v14  ;;  %v249_v21 = vpop.f32.mrf.mxu0  ;;  %v480_v24 = vunpack.c.l.b16 %v431_v19 }
  0xc7   :  { %v274_v22 = vpop.f32.mrf.mxu1  ;;  %v490_v26 = vunpack.c.l.b16 %v441_v20  ;;  %v352_v27 = vunpack.c.l.bf16 %v336_v17  ;;  %v285_v29 = vpack.c.bf16 %v249_v21, %v249_v21 }
  0xc8   :  { %v362_v28 = vunpack.c.l.bf16 %v346_v18  ;;  %v295_v30 = vpack.c.bf16 %v274_v22, %v274_v22  ;;  %v495_v31 = vpack.c.b16 %v480_v24, %v479_v23 }
  0xc9   :  { %v500_v32 = vpack.c.b16 %v490_v26, %v489_v25  ;;  %v301_v33 = vunpack.c.l.bf16 %v285_v29  ;;  %v384_v35 = vmul.f32 0.20019531, %v352_v27  ;;  %vm1150_vm1 = vcmp.gt.f32.partialorder %v352_v27, 0.0 }
  0xca   :  { %v311_v34 = vunpack.c.l.bf16 %v295_v30  ;;  %v394_v36 = vmul.f32 0.20019531, %v362_v28  ;;  %567 = vmatmul.bf16.vlgmr.msra.gmra.mxu2 %v495_v31  ;;  %vm378_vm2 = vcmp.gt.f32.partialorder %v362_v28, 0.0  ;;  %vm416_vm3 = vmpackc.low %vm1150_vm1, %vm1150_vm1 }
  0xcb   :  { %592 = vmatmul.bf16.gmra.mxu3 %v500_v32  ;;  %v321_v37 = vadd.f32 %v1116_v12, %v301_v33  ;;  %v400_v42 = vpack.c.bf16 %v384_v35, %v384_v35  ;;  %vm426_vm4 = vmpackc.low %vm378_vm2, %vm378_vm2 }
  0xcc   :  { %v331_v38 = vadd.f32 %v1112_v61, %v311_v34  ;;  %v410_v43 = vpack.c.bf16 %v394_v36, %v394_v36 }
  0xcd   :  { %v337_v39 = vpack.c.bf16 %v321_v37, %v321_v37  ;;  %v432_v55 = vsel %vm416_vm3, %v336_v17, %v400_v42 }
  0xce   :  { %v347_v40 = vpack.c.bf16 %v331_v38, %v331_v38  ;;  %v252_v45 = vpop.f32.mrf.mxu0  ;;  %v442_v57 = vsel %vm426_vm4, %v346_v18, %v410_v43  ;;  %v481_v6 = vunpack.c.l.b16 %v432_v55 }
  0xcf   :  { %v277_v46 = vpop.f32.mrf.mxu1  ;;  %v353_v47 = vunpack.c.l.bf16 %v337_v39  ;;  %v286_v49 = vpack.c.bf16 %v252_v45, %v252_v45  ;;  %v491_v8 = vunpack.c.l.b16 %v442_v57 }
  0xd0   :  { %v363_v48 = vunpack.c.l.bf16 %v347_v40  ;;  %v296_v50 = vpack.c.bf16 %v277_v46, %v277_v46  ;;  %v462_v46 = vld [vmem:[%s1357_s6] sm:$0x1] }
  0xd1   :  { %v385_v51 = vmul.f32 0.20019531, %v353_v47  ;;  %v302_v53 = vunpack.c.l.bf16 %v286_v49  ;;  %vm369_vm5 = vcmp.gt.f32.partialorder %v353_v47, 0.0  ;;  %v625_v47 = vpack.i.b16 %v462_v46, %v462_v46 }
  0xd2   :  { %v395_v52 = vmul.f32 0.20019531, %v363_v48  ;;  %v312_v54 = vunpack.c.l.bf16 %v296_v50  ;;  %vm379_vm6 = vcmp.gt.f32.partialorder %v363_v48, 0.0  ;;  %vm417_vm7 = vmpackc.low %vm369_vm5, %vm369_vm5 }
  0xd3   :  { %v401_v58 = vpack.c.bf16 %v385_v51, %v385_v51  ;;  %v322_v60 = vadd.f32 %v1107_v44, %v302_v53  ;;  %vm427_vm8 = vmpackc.low %vm379_vm6, %vm379_vm6  ;;  %v627_v51 = vperm.slane %v625_v47, 0 }
  0xd4   :  { %v411_v59 = vpack.c.bf16 %v395_v52, %v395_v52  ;;  %v332_v62 = vadd.f32 %v1110_v56, %v312_v54 }
  0xd5   :  { %v338_v63 = vpack.c.bf16 %v322_v60, %v322_v60  ;;  %v433_v1 = vsel %vm417_vm7, %v337_v39, %v401_v58  ;;  %v1181_v53 = vunpack.c.l.bf16 %v627_v51 }
  0xd6   :  { %v348_v0 = vpack.c.bf16 %v332_v62, %v332_v62  ;;  %v443_v2 = vsel %vm427_vm8, %v347_v40, %v411_v59  ;;  %v254_v3 = vpop.f32.mrf.mxu0  ;;  %v482_v7 = vunpack.c.l.b16 %v433_v1 }
  0xd7   :  { %v279_v4 = vpop.f32.mrf.mxu1  ;;  %v492_v9 = vunpack.c.l.b16 %v443_v2  ;;  %v354_v10 = vunpack.c.l.bf16 %v338_v63  ;;  %v287_v13 = vpack.c.bf16 %v254_v3, %v254_v3 }
  0xd8   :  { %v364_v11 = vunpack.c.l.bf16 %v348_v0  ;;  %v297_v14 = vpack.c.bf16 %v279_v4, %v279_v4  ;;  %v496_v15 = vpack.c.b16 %v482_v7, %v481_v6 }
  0xd9   :  { %v501_v44 = vpack.c.b16 %v492_v9, %v491_v8  ;;  %v303_v16 = vunpack.c.l.bf16 %v287_v13  ;;  %v386_v17 = vmul.f32 0.20019531, %v354_v10  ;;  %vm1161_vm9 = vcmp.gt.f32.partialorder %v354_v10, 0.0 }
  0xda   :  { %v313_v56 = vunpack.c.l.bf16 %v297_v14  ;;  %572 = vmatmul.bf16.gmra.mxu2 %v496_v15  ;;  %v396_v18 = vmul.f32 0.20019531, %v364_v11  ;;  %vm1165_vm10 = vcmp.gt.f32.partialorder %v364_v11, 0.0  ;;  %vm418_vm12 = vmpackc.low %vm1161_vm9, %vm1161_vm9 }
  0xdb   :  { %597 = vmatmul.bf16.gmra.mxu3 %v501_v44  ;;  %v323_v19 = vadd.f32 %v1112_v61, %v303_v16  ;;  %v402_v25 = vpack.c.bf16 %v386_v17, %v386_v17  ;;  %vm428_vm14 = vmpackc.low %vm1165_vm10, %vm1165_vm10 }
  0xdc   :  { %v333_v20 = vadd.f32 %v1116_v12, %v313_v56  ;;  %v412_v26 = vpack.c.bf16 %v396_v18, %v396_v18 }
  0xdd   :  { %v339_v21 = vpack.c.bf16 %v323_v19, %v323_v19  ;;  %v434_v31 = vsel %vm418_vm12, %v338_v63, %v402_v25 }
  0xde   :  { %v349_v22 = vpack.c.bf16 %v333_v20, %v333_v20  ;;  %v444_v32 = vsel %vm428_vm14, %v348_v0, %v412_v26  ;;  %v483_v35 = vunpack.c.l.b16 %v434_v31 }
  0xdf   :  { %v355_v27 = vunpack.c.l.bf16 %v339_v21  ;;  %v493_v37 = vunpack.c.l.b16 %v444_v32 }
  0xe0   :  { %v365_v28 = vunpack.c.l.bf16 %v349_v22 }
  0xe1   :  { %v387_v29 = vmul.f32 0.20019531, %v355_v27  ;;  %vm371_vm11 = vcmp.gt.f32.partialorder %v355_v27, 0.0 }
  0xe2   :  { %v397_v30 = vmul.f32 0.20019531, %v365_v28  ;;  %vm381_vm13 = vcmp.gt.f32.partialorder %v365_v28, 0.0  ;;  %vm419_vm15 = vmpackc.low %vm371_vm11, %vm371_vm11 }
  0xe3   :  { %v403_v61 = vpack.c.bf16 %v387_v29, %v387_v29  ;;  %vm429_vm0 = vmpackc.low %vm381_vm13, %vm381_vm13 }
  0xe4   :  { %v413_v12 = vpack.c.bf16 %v397_v30, %v397_v30 }
  0xe5   :  { %v435_v33 = vsel %vm419_vm15, %v339_v21, %v403_v61 }
  0xe6   :  { %v445_v34 = vsel %vm429_vm0, %v349_v22, %v413_v12  ;;  %v484_v36 = vunpack.c.l.b16 %v435_v33 }
  0xe7   :  { %v494_v38 = vunpack.c.l.b16 %v445_v34 }
  0xe8   :  { %v497_v39 = vpack.c.b16 %v484_v36, %v483_v35 }
  0xe9   :  { %v502_v40 = vpack.c.b16 %v494_v38, %v493_v37 }
  0xea   :  { %577 = vmatmul.bf16.gmra.mxu2 %v497_v39 }
  0xeb   :  { %602 = vmatmul.bf16.gmra.mxu3 %v502_v40 }
  0xfa   :  { %582 = vmatmul.bf16.gmra.mxu2 %v1141_v5 }
 0x13e   :  { %v588_v41 = vpop.f32.mrf.mxu3 }
 0x13f   :  { %v616_v50 = vpack.c.bf16 %v588_v41, %v588_v41 }
 0x141   :  { %v636_v52 = vunpack.c.l.bf16 %v616_v50 }
 0x143   :  { %v653_v58 = vadd.f32 %v1181_v53, %v636_v52 }
 0x145   :  { %v669_v63 = vpack.c.bf16 %v653_v58, %v653_v58 }
 0x146   :  { %v590_v42 = vpop.f32.mrf.mxu3 }
 0x147   :  { %v617_v5 = vpack.c.bf16 %v590_v42, %v590_v42  ;;  %v685_v7 = vunpack.c.l.bf16 %v669_v63 }
 0x149   :  { %v637_v59 = vunpack.c.l.bf16 %v617_v5  ;;  %v717_v15 = vmul.f32 0.20019531, %v685_v7  ;;  %vm701_vm1 = vcmp.gt.f32.partialorder %v685_v7, 0.0 }
 0x14a   :  { %vm749_vm2 = vmpackc.low %vm701_vm1, %vm701_vm1 }
 0x14b   :  { %v654_v2 = vadd.f32 %v1181_v53, %v637_v59  ;;  %v733_v25 = vpack.c.bf16 %v717_v15, %v717_v15 }
 0x14d   :  { %v568_v43 = vpop.f32.mrf.mxu2  ;;  %v670_v9 = vpack.c.bf16 %v654_v2, %v654_v2  ;;  %v1196_v34 = vsel %vm749_vm2, %v669_v63, %v733_v25 }
 0x14e   :  { %v593_v45 = vpop.f32.mrf.mxu3  ;;  %v608_v57 = vpack.c.bf16 %v568_v43, %v568_v43 }
 0x14f   :  { %v618_v10 = vpack.c.bf16 %v593_v45, %v593_v45  ;;  %v686_v17 = vunpack.c.l.bf16 %v670_v9 }
 0x150   :  { %v628_v62 = vunpack.c.l.bf16 %v608_v57 }
 0x151   :  { %v638_v18 = vunpack.c.l.bf16 %v618_v10  ;;  %v718_v27 = vmul.f32 0.20019531, %v686_v17  ;;  %vm1198_vm3 = vcmp.gt.f32.partialorder %v686_v17, 0.0 }
 0x152   :  { %v645_v4 = vadd.f32 %v1181_v53, %v628_v62  ;;  %vm750_vm6 = vmpackc.low %vm1198_vm3, %vm1198_vm3 }
 0x153   :  { %v655_v28 = vadd.f32 %v1181_v53, %v638_v18  ;;  %v734_v39 = vpack.c.bf16 %v718_v27, %v718_v27 }
 0x154   :  { %v661_v13 = vpack.c.bf16 %v645_v4, %v645_v4 }
 0x155   :  { %v570_v48 = vpop.f32.mrf.mxu2  ;;  %v1206_v40 = vpack.c.bf16 %v655_v28, %v655_v28  ;;  %v1229_v63 = vsel %vm750_vm6, %v670_v9, %v734_v39  ;;  %v781_v28 = vunpack.c.l.bf16 %v1196_v34 }
 0x156   :  { %v1179_v49 = vpop.f32.mrf.mxu3  ;;  %v609_v60 = vpack.c.bf16 %v570_v48, %v570_v48  ;;  %v677_v21 = vunpack.c.l.bf16 %v661_v13 }
 0x157   :  { %v619_v36 = vpack.c.bf16 %v1179_v49, %v1179_v49 }
 0x158   :  { %v629_v3 = vunpack.c.l.bf16 %v609_v60  ;;  %v709_v61 = vmul.f32 0.20019531, %v677_v21  ;;  %vm1208_vm4 = vcmp.gt.f32.partialorder %v677_v21, 0.0 }
 0x159   :  { %vm741_vm7 = vmpackc.low %vm1208_vm4, %vm1208_vm4 }
 0x15a   :  { %v646_v11 = vadd.f32 %v1181_v53, %v629_v3  ;;  %v725_v45 = vpack.c.bf16 %v709_v61, %v709_v61  ;;  %v687_v3 = vunpack.c.l.bf16 %v1206_v40 }
 0x15c   :  { %v1187_v19 = vpack.c.bf16 %v646_v11, %v646_v11  ;;  %v719_v34 = vmul.f32 0.20019531, %v687_v3  ;;  %vm1298_vm3 = vcmp.gt.f32.partialorder %v687_v3, 0.0 }
 0x15d   :  { %v573_v54 = vpop.f32.mrf.mxu2 }
 0x15e   :  { %v598_v55 = vpop.f32.mrf.mxu3  ;;  %v610_v22 = vpack.c.bf16 %v573_v54, %v573_v54  ;;  %v678_v29 = vunpack.c.l.bf16 %v1187_v19  ;;  %v639_v54 = vunpack.c.l.bf16 %v619_v36 }
 0x15f   :  { %v620_v6 = vpack.c.bf16 %v598_v55, %v598_v55 }
 0x160   :  { %v630_v12 = vunpack.c.l.bf16 %v610_v22  ;;  %v710_v41 = vmul.f32 0.20019531, %v678_v29  ;;  %vm1225_vm8 = vcmp.gt.f32.partialorder %v678_v29, 0.0  ;;  %v782_v29 = vunpack.c.l.bf16 %v1229_v63 }
 0x161   :  { %v640_v14 = vunpack.c.l.bf16 %v620_v6  ;;  %vm742_vm10 = vmpackc.low %vm1225_vm8, %vm1225_vm8 }
 0x162   :  { %v647_v46 = vadd.f32 %v1181_v53, %v630_v12  ;;  %v726_v59 = vpack.c.bf16 %v710_v41, %v710_v41 }
 0x163   :  { %v657_v23 = vadd.f32 %v1181_v53, %v640_v14 }
 0x164   :  { %v758_v15 = vsel %vm742_vm10, %v1187_v19, %v726_v59 }
 0x165   :  { %v575_v0 = vpop.f32.mrf.mxu2  ;;  %v1194_v31 = vpack.c.bf16 %v657_v23, %v657_v23  ;;  %v774_v36 = vunpack.c.l.bf16 %v758_v15 }
 0x166   :  { %v600_v1 = vpop.f32.mrf.mxu3  ;;  %v611_v32 = vpack.c.bf16 %v575_v0, %v575_v0  ;;  %v757_v0 = vsel %vm741_vm7, %v661_v13, %v725_v45  ;;  %vm751_vm7 = vmpackc.low %vm1298_vm3, %vm1298_vm3 }
 0x167   :  { %v621_v8 = vpack.c.bf16 %v600_v1, %v600_v1  ;;  %v689_v50 = vunpack.c.l.bf16 %v1194_v31  ;;  %v1231_v1 = vpack.c.bf16 %v647_v46, %v647_v46  ;;  %v773_v14 = vunpack.c.l.bf16 %v757_v0 }
 0x168   :  { %v631_v49 = vunpack.c.l.bf16 %v611_v32 }
 0x169   :  { %v641_v44 = vunpack.c.l.bf16 %v621_v8  ;;  %v721_v4 = vmul.f32 0.20019531, %v689_v50  ;;  %v656_v8 = vadd.f32 %v1181_v53, %v639_v54  ;;  %vm1245_vm11 = vcmp.gt.f32.partialorder %v689_v50, 0.0 }
 0x16a   :  { %v648_v6 = vadd.f32 %v1181_v53, %v631_v49  ;;  %vm753_vm14 = vmpackc.low %vm1245_vm11, %vm1245_vm11 }
 0x16b   :  { %v658_v26 = vadd.f32 %v1181_v53, %v641_v44  ;;  %v737_v21 = vpack.c.bf16 %v721_v4, %v721_v4  ;;  %v1267_v12 = vpack.c.bf16 %v656_v8, %v656_v8 }
 0x16c   :  { %v1249_v22 = vpack.c.bf16 %v648_v6, %v648_v6 }
 0x16d   :  { %v578_v16 = vpop.f32.mrf.mxu2  ;;  %v1204_v37 = vpack.c.bf16 %v658_v26, %v658_v26 }
 0x16e   :  { %v603_v56 = vpop.f32.mrf.mxu3  ;;  %v612_v20 = vpack.c.bf16 %v578_v16, %v578_v16  ;;  %v680_v41 = vunpack.c.l.bf16 %v1249_v22 }
 0x16f   :  { %v690_v55 = vunpack.c.l.bf16 %v1204_v37  ;;  %v622_v5 = vpack.c.bf16 %v603_v56, %v603_v56  ;;  %v679_v56 = vunpack.c.l.bf16 %v1231_v1 }
 0x170   :  { %v632_v24 = vunpack.c.l.bf16 %v612_v20  ;;  %v712_v59 = vmul.f32 0.20019531, %v680_v41  ;;  %vm1309_vm6 = vcmp.gt.f32.partialorder %v680_v41, 0.0 }
 0x171   :  { %v722_v9 = vmul.f32 0.20019531, %v690_v55  ;;  %v642_v10 = vunpack.c.l.bf16 %v622_v5  ;;  %vm1251_vm12 = vcmp.gt.f32.partialorder %v690_v55, 0.0  ;;  %v711_v32 = vmul.f32 0.20019531, %v679_v56 }
 0x172   :  { %v649_v30 = vadd.f32 %v1181_v53, %v632_v24  ;;  %vm754_vm15 = vmpackc.low %vm1251_vm12, %vm1251_vm12  ;;  %vm1285_vm1 = vcmp.gt.f32.partialorder %v679_v56, 0.0 }
 0x173   :  { %v738_v25 = vpack.c.bf16 %v722_v9, %v722_v9  ;;  %v659_v19 = vadd.f32 %v1181_v53, %v642_v10 }
 0x174   :  { %v665_v33 = vpack.c.bf16 %v649_v30, %v649_v30 }
 0x175   :  { %v580_v38 = vpop.f32.mrf.mxu2  ;;  %v1280_v43 = vpack.c.bf16 %v659_v19, %v659_v19 }
 0x176   :  { %v681_v42 = vunpack.c.l.bf16 %v665_v33  ;;  %v613_v47 = vpack.c.bf16 %v580_v38, %v580_v38  ;;  %v605_v48 = vpop.f32.mrf.mxu3  ;;  %v769_v38 = vsel %vm753_vm14, %v1194_v31, %v737_v21  ;;  %v688_v31 = vunpack.c.l.bf16 %v1267_v12 }
 0x177   :  { %v623_v62 = vpack.c.bf16 %v605_v48, %v605_v48  ;;  %v785_v58 = vunpack.c.l.bf16 %v769_v38 }
 0x178   :  { %vm1214_vm5 = vcmp.gt.f32.partialorder %v681_v42, 0.0  ;;  %v713_v52 = vmul.f32 0.20019531, %v681_v42  ;;  %v633_v57 = vunpack.c.l.bf16 %v613_v47  ;;  %v770_v42 = vsel %vm754_vm15, %v1204_v37, %v738_v25 }
 0x179   :  { %vm745_vm9 = vmpackc.low %vm1214_vm5, %vm1214_vm5  ;;  %v643_v44 = vunpack.c.l.bf16 %v623_v62  ;;  %v691_v62 = vunpack.c.l.bf16 %v1280_v43  ;;  %vm1316_vm8 = vcmp.gt.f32.partialorder %v688_v31, 0.0 }
 0x17a   :  { %v729_v60 = vpack.c.bf16 %v713_v52, %v713_v52  ;;  %v650_v2 = vadd.f32 %v1181_v53, %v633_v57  ;;  %v727_v52 = vpack.c.bf16 %v711_v32, %v711_v32  ;;  %vm743_vm5 = vmpackc.low %vm1285_vm1, %vm1285_vm1 }
 0x17b   :  { %v660_v30 = vadd.f32 %v1181_v53, %v643_v44  ;;  %v723_v15 = vmul.f32 0.20019531, %v691_v62  ;;  %vm1332_vm11 = vcmp.gt.f32.partialorder %v691_v62, 0.0  ;;  %vm752_vm12 = vmpackc.low %vm1316_vm8, %vm1316_vm8 }
 0x17c   :  { %v761_v7 = vsel %vm745_vm9, %v665_v33, %v729_v60  ;;  %v666_v11 = vpack.c.bf16 %v650_v2, %v650_v2  ;;  %v786_v60 = vunpack.c.l.bf16 %v770_v42  ;;  %vm744_vm9 = vmpackc.low %vm1309_vm6, %vm1309_vm6 }
 0x17d   :  { %v583_v13 = vpop.f32.mrf.mxu2  ;;  %v777_v18 = vunpack.c.l.bf16 %v761_v7  ;;  %v1282_v48 = vpack.c.bf16 %v660_v30, %v660_v30  ;;  %v720_v7 = vmul.f32 0.20019531, %v688_v31  ;;  %v739_v26 = vpack.c.bf16 %v723_v15, %v723_v15  ;;  %vm755_vm15 = vmpackc.low %vm1332_vm11, %vm1332_vm11 }
 0x17e   :  { %v614_v16 = vpack.c.bf16 %v583_v13, %v583_v13  ;;  %v682_v20 = vunpack.c.l.bf16 %v666_v11  ;;  %v759_v13 = vsel %vm743_vm5, %v1231_v1, %v727_v52 }
 0x17f   :  { %v789_v33 = vmax.f32 %v773_v14, %v777_v18  ;;  %v692_v0 = vunpack.c.l.bf16 %v1282_v48  ;;  %v728_v14 = vpack.c.bf16 %v712_v59, %v712_v59 }
 0x180   :  { %v634_v24 = vunpack.c.l.bf16 %v614_v16  ;;  %vm1256_vm13 = vcmp.gt.f32.partialorder %v682_v20, 0.0  ;;  %v714_v27 = vmul.f32 0.20019531, %v682_v20  ;;  %v736_v20 = vpack.c.bf16 %v720_v7, %v720_v7 }
 0x181   :  { %vm746_vm0 = vmpackc.low %vm1256_vm13, %vm1256_vm13  ;;  %v790_v54 = vmax.f32 %v789_v33, %v781_v28  ;;  %v724_v16 = vmul.f32 0.20019531, %v692_v0  ;;  %v760_v25 = vsel %vm744_vm9, %v1249_v22, %v728_v14  ;;  %vm708_vm13 = vcmp.gt.f32.partialorder %v692_v0, 0.0 }
 0x182   :  { %v651_v61 = vadd.f32 %v1181_v53, %v634_v24  ;;  %v730_v35 = vpack.c.bf16 %v714_v27, %v714_v27  ;;  %v775_v24 = vunpack.c.l.bf16 %v759_v13  ;;  %v771_v33 = vsel %vm755_vm15, %v1280_v43, %v739_v26 }
 0x183   :  { %v791_v8 = vmax.f32 %v790_v54, %v785_v58  ;;  %v740_v27 = vpack.c.bf16 %v724_v16, %v724_v16 }
 0x184   :  { %v667_v39 = vpack.c.bf16 %v651_v61, %v651_v61  ;;  %v762_v45 = vsel %vm746_vm0, %v666_v11, %v730_v35  ;;  %v776_v61 = vunpack.c.l.bf16 %v760_v25  ;;  %vm756_vm0 = vmpackc.low %vm708_vm13, %vm708_vm13 }
 0x185   :  { %v585_v46 = vpop.f32.mrf.mxu2  ;;  %v778_v47 = vunpack.c.l.bf16 %v762_v45  ;;  %v772_v35 = vsel %vm756_vm0, %v1282_v48, %v740_v27 }
 0x186   :  { %v683_v50 = vunpack.c.l.bf16 %v667_v39  ;;  %v615_v49 = vpack.c.bf16 %v585_v46, %v585_v46  ;;  %v788_v41 = vunpack.c.l.bf16 %v772_v35 }
 0x187   :  { %v792_v55 = vmax.f32 %v774_v36, %v778_v47 }
 0x188   :  { %vm1289_vm2 = vcmp.gt.f32.partialorder %v683_v50, 0.0  ;;  %v715_v5 = vmul.f32 0.20019531, %v683_v50  ;;  %v635_v57 = vunpack.c.l.bf16 %v615_v49 }
 0x189   :  { %v793_v63 = vmax.f32 %v792_v55, %v782_v29  ;;  %vm747_vm4 = vmpackc.low %vm1289_vm2, %vm1289_vm2 }
 0x18a   :  { %v731_v2 = vpack.c.bf16 %v715_v5, %v715_v5  ;;  %v652_v4 = vadd.f32 %v1181_v53, %v635_v57  ;;  %v735_v53 = vpack.c.bf16 %v719_v34, %v719_v34 }
 0x18b   :  { %v794_v9 = vmax.f32 %v793_v63, %v786_v60 }
 0x18c   :  { %v763_v10 = vsel %vm747_vm4, %v667_v39, %v731_v2  ;;  %v668_v11 = vpack.c.bf16 %v652_v4, %v652_v4  ;;  %v767_v23 = vsel %vm751_vm7, %v1206_v40, %v735_v53  ;;  %v768_v40 = vsel %vm752_vm12, %v1267_v12, %v736_v20 }
 0x18d   :  { %v956_v44 = vpack.c.bf16 %v794_v9, %v791_v8  ;;  %v779_v18 = vunpack.c.l.bf16 %v763_v10  ;;  %v783_v30 = vunpack.c.l.bf16 %v767_v23  ;;  %v784_v34 = vunpack.c.l.bf16 %v768_v40 }
 0x18e   :  { %v684_v56 = vunpack.c.l.bf16 %v668_v11  ;;  %v787_v39 = vunpack.c.l.bf16 %v771_v33 }
 0x18f   :  { %957 = vst [vmem:[%s1358_s7] sm:$0xff] %v956_v44   ;;  %v795_v29 = vmax.f32 %v775_v24, %v779_v18 }
 0x190   :  { %vm1326_vm10 = vcmp.gt.f32.partialorder %v684_v56, 0.0  ;;  %v716_v21 = vmul.f32 0.20019531, %v684_v56 }
 0x191   :  { %vm748_vm14 = vmpackc.low %vm1326_vm10, %vm1326_vm10  ;;  %v796_v36 = vmax.f32 %v795_v29, %v783_v30 }
 0x192   :  { %v732_v28 = vpack.c.bf16 %v716_v21, %v716_v21 }
 0x193   :  { %v797_v12 = vmax.f32 %v796_v36, %v787_v39 }
 0x194   :  { %v764_v22 = vsel %vm748_vm14, %v668_v11, %v732_v28 }
 0x195   :  { %v780_v32 = vunpack.c.l.bf16 %v764_v22 }
 0x197   :  { %v798_v38 = vmax.f32 %v776_v61, %v780_v32 }
 0x199   :  { %v799_v42 = vmax.f32 %v798_v38, %v784_v34 }
 0x19b   :  { %v800_v45 = vmax.f32 %v799_v42, %v788_v41 }
 0x19d   :  { %v961_v46 = vpack.c.bf16 %v800_v45, %v797_v12 }
 0x19f   :  { %963 = vst [vmem:[%s1358_s7 + $0x8] sm:$0xff] %v961_v46  }

// kernel: deltaconv_forward.7
= control target key start
LH: loop header
LB: loop body
LE: loop exit
PB: predicated region body
PF: predicated region fallthrough
CT: control target
= control target key end

     0   :  { %s3133_s2 = inlined_call_operand.vmem [shape: bf16[128,256], index: 2, kind: input, shape index: {}]   ;;  %s3134_s4 = inlined_call_operand.vmem [shape: bf16[128,256], index: 4, kind: input, shape index: {}]   ;;  %s3135_s0 = inlined_call_operand.vmem [shape: bf16[32,128], index: 0, kind: input, shape index: {}]   ;;  %s3136_s1 = inlined_call_operand.vmem [shape: bf16[4,32,128], index: 1, kind: input, shape index: {}]   ;;  %s3137_s5 = inlined_call_operand.vmem [shape: bf16[256,256], index: 5, kind: input, shape index: {}]   ;;  %s3138_s3 = inlined_call_operand.vmem [shape: bf16[1,256], index: 3, kind: input, shape index: {}]   ;;  %s3139_s6 = inlined_call_operand.vmem [shape: bf16[1,256], index: 6, kind: input, shape index: {}]   ;;  %s3140_s7 = inlined_call_operand.vmem [shape: bf16[32,256], index: 7, kind: output, shape index: {}]  }
   0x1   :  { %v1574_v0 = vld [vmem:[%s3133_s2 + $0x70] sm:$0xf]  ;;  %v1821_v1 = vld [vmem:[%s3133_s2 + $0x74] sm:$0xf0]  ;;  %v1820_v2 = vld [vmem:[%s3133_s2 + $0x74] sm:$0xf] }
   0x2   :  { %v1575_v3 = vor.u32 %v1821_v1, %v1574_v0  ;;  %v1576_v4 = vld [vmem:[%s3133_s2 + $0x78] sm:$0xf0]  ;;  %v1670_v5 = vld [vmem:[%s3134_s4 + $0x70] sm:$0xf]  ;;  %v1845_v6 = vld [vmem:[%s3134_s4 + $0x74] sm:$0xf0] }
   0x3   :  { %v1579_v7 = vor.u32 %v1820_v2, %v1576_v4  ;;  %v1952_v8 = vor.u32 %v1845_v6, %v1670_v5  ;;  %v1844_v9 = vld [vmem:[%s3134_s4 + $0x74] sm:$0xf]  ;;  %v1672_v10 = vld [vmem:[%s3134_s4 + $0x78] sm:$0xf0]  ;;  %v1566_v11 = vld [vmem:[%s3133_s2 + $0x60] sm:$0xf] }
   0x4   :  { %138 = vmatpush.bf16.msra.mxu0 %v1575_v3  ;;  %v1963_v12 = vor.u32 %v1844_v9, %v1672_v10  ;;  %v1819_v13 = vld [vmem:[%s3133_s2 + $0x64] sm:$0xf0]  ;;  %v1818_v14 = vld [vmem:[%s3133_s2 + $0x64] sm:$0xf]  ;;  %v1568_v15 = vld [vmem:[%s3133_s2 + $0x68] sm:$0xf0] }
   0x5   :  { %157 = vmatpush.bf16.msra.mxu1 %v1579_v7  ;;  %1878 = vmatpush.bf16.msra.mxu2 %v1952_v8  ;;  %v1567_v16 = vor.u32 %v1819_v13, %v1566_v11  ;;  %v1571_v17 = vor.u32 %v1818_v14, %v1568_v15  ;;  %v1662_v18 = vld [vmem:[%s3134_s4 + $0x60] sm:$0xf]  ;;  %v1843_v19 = vld [vmem:[%s3134_s4 + $0x64] sm:$0xf0]  ;;  %v1842_v20 = vld [vmem:[%s3134_s4 + $0x64] sm:$0xf] }
   0x6   :  { %1886 = vmatpush.bf16.msra.mxu3 %v1963_v12  ;;  %v1985_v21 = vor.u32 %v1843_v19, %v1662_v18  ;;  %v1664_v22 = vld [vmem:[%s3134_s4 + $0x68] sm:$0xf0]  ;;  %v1558_v23 = vld [vmem:[%s3133_s2 + $0x50] sm:$0xf]  ;;  %v1817_v24 = vld [vmem:[%s3133_s2 + $0x54] sm:$0xf0] }
   0x7   :  { %v1996_v25 = vor.u32 %v1842_v20, %v1664_v22  ;;  %v1816_v26 = vld [vmem:[%s3133_s2 + $0x54] sm:$0xf]  ;;  %v1560_v27 = vld [vmem:[%s3133_s2 + $0x58] sm:$0xf0]  ;;  %v1654_v28 = vld [vmem:[%s3134_s4 + $0x50] sm:$0xf]  ;;  %v1559_v29 = vor.u32 %v1817_v24, %v1558_v23 }
   0x8   :  { %139 = vmatpush.bf16.msra.mxu0 %v1567_v16  ;;  %v1841_v30 = vld [vmem:[%s3134_s4 + $0x54] sm:$0xf0]  ;;  %v1840_v31 = vld [vmem:[%s3134_s4 + $0x54] sm:$0xf]  ;;  %v1656_v32 = vld [vmem:[%s3134_s4 + $0x58] sm:$0xf0]  ;;  %v1563_v33 = vor.u32 %v1816_v26, %v1560_v27 }
   0x9   :  { %158 = vmatpush.bf16.msra.mxu1 %v1571_v17  ;;  %1879 = vmatpush.bf16.msra.mxu2 %v1985_v21  ;;  %v2017_v34 = vor.u32 %v1841_v30, %v1654_v28  ;;  %v1550_v35 = vld [vmem:[%s3133_s2 + $0x40] sm:$0xf]  ;;  %v1815_v36 = vld [vmem:[%s3133_s2 + $0x44] sm:$0xf0]  ;;  %v1814_v37 = vld [vmem:[%s3133_s2 + $0x44] sm:$0xf]  ;;  %v2029_v38 = vor.u32 %v1840_v31, %v1656_v32 }
   0xa   :  { %1887 = vmatpush.bf16.msra.mxu3 %v1996_v25  ;;  %v1552_v39 = vld [vmem:[%s3133_s2 + $0x48] sm:$0xf0]  ;;  %v1646_v40 = vld [vmem:[%s3134_s4 + $0x40] sm:$0xf]  ;;  %v1839_v41 = vld [vmem:[%s3134_s4 + $0x44] sm:$0xf0]  ;;  %v1551_v44 = vor.u32 %v1815_v36, %v1550_v35 }
   0xb   :  { %v1838_v42 = vld [vmem:[%s3134_s4 + $0x44] sm:$0xf]  ;;  %v1648_v43 = vld [vmem:[%s3134_s4 + $0x48] sm:$0xf0]  ;;  %v1555_v45 = vor.u32 %v1814_v37, %v1552_v39  ;;  %v2047_v46 = vor.u32 %v1839_v41, %v1646_v40  ;;  %v1542_v47 = vld [vmem:[%s3133_s2 + $0x30] sm:$0xf] }
   0xc   :  { %140 = vmatpush.bf16.msra.mxu0 %v1559_v29  ;;  %v1813_v48 = vld [vmem:[%s3133_s2 + $0x34] sm:$0xf0]  ;;  %v1812_v49 = vld [vmem:[%s3133_s2 + $0x34] sm:$0xf]  ;;  %v2059_v50 = vor.u32 %v1838_v42, %v1648_v43  ;;  %v1544_v51 = vld [vmem:[%s3133_s2 + $0x38] sm:$0xf0] }
   0xd   :  { %159 = vmatpush.bf16.msra.mxu1 %v1563_v33  ;;  %1880 = vmatpush.bf16.msra.mxu2 %v2017_v34  ;;  %v1638_v52 = vld [vmem:[%s3134_s4 + $0x30] sm:$0xf]  ;;  %v1837_v53 = vld [vmem:[%s3134_s4 + $0x34] sm:$0xf0]  ;;  %v1836_v54 = vld [vmem:[%s3134_s4 + $0x34] sm:$0xf]  ;;  %v1543_v56 = vor.u32 %v1813_v48, %v1542_v47  ;;  %v1547_v57 = vor.u32 %v1812_v49, %v1544_v51 }
   0xe   :  { %1888 = vmatpush.bf16.msra.mxu3 %v2029_v38  ;;  %v1640_v55 = vld [vmem:[%s3134_s4 + $0x38] sm:$0xf0]  ;;  %v2077_v58 = vor.u32 %v1837_v53, %v1638_v52  ;;  %v1534_v59 = vld [vmem:[%s3133_s2 + $0x20] sm:$0xf]  ;;  %v1811_v60 = vld [vmem:[%s3133_s2 + $0x24] sm:$0xf0] }
   0xf   :  { %v1810_v61 = vld [vmem:[%s3133_s2 + $0x24] sm:$0xf]  ;;  %v2089_v62 = vor.u32 %v1836_v54, %v1640_v55  ;;  %v1536_v63 = vld [vmem:[%s3133_s2 + $0x28] sm:$0xf0]  ;;  %v1630_v0 = vld [vmem:[%s3134_s4 + $0x20] sm:$0xf]  ;;  %v1535_v4 = vor.u32 %v1811_v60, %v1534_v59 }
  0x10   :  { %141 = vmatpush.bf16.msra.mxu0 %v1551_v44  ;;  %v1835_v1 = vld [vmem:[%s3134_s4 + $0x24] sm:$0xf0]  ;;  %v1834_v2 = vld [vmem:[%s3134_s4 + $0x24] sm:$0xf]  ;;  %v1632_v3 = vld [vmem:[%s3134_s4 + $0x28] sm:$0xf0]  ;;  %v1539_v5 = vor.u32 %v1810_v61, %v1536_v63 }
  0x11   :  { %160 = vmatpush.bf16.msra.mxu1 %v1555_v45  ;;  %1881 = vmatpush.bf16.msra.mxu2 %v2047_v46  ;;  %v1631_v6 = vor.u32 %v1835_v1, %v1630_v0  ;;  %v1526_v7 = vld [vmem:[%s3133_s2 + $0x10] sm:$0xf]  ;;  %v1809_v9 = vld [vmem:[%s3133_s2 + $0x14] sm:$0xf0]  ;;  %v1808_v10 = vld [vmem:[%s3133_s2 + $0x14] sm:$0xf]  ;;  %v1635_v11 = vor.u32 %v1834_v2, %v1632_v3 }
  0x12   :  { %1889 = vmatpush.bf16.msra.mxu3 %v2059_v50  ;;  %v1528_v13 = vld [vmem:[%s3133_s2 + $0x18] sm:$0xf0]  ;;  %v1622_v14 = vld [vmem:[%s3134_s4 + $0x10] sm:$0xf]  ;;  %v1833_v15 = vld [vmem:[%s3134_s4 + $0x14] sm:$0xf0]  ;;  %v1527_v18 = vor.u32 %v1809_v9, %v1526_v7 }
  0x13   :  { %v1832_v16 = vld [vmem:[%s3134_s4 + $0x14] sm:$0xf]  ;;  %v1624_v17 = vld [vmem:[%s3134_s4 + $0x18] sm:$0xf0]  ;;  %v1531_v19 = vor.u32 %v1808_v10, %v1528_v13  ;;  %v1623_v20 = vor.u32 %v1833_v15, %v1622_v14  ;;  %v1518_v22 = vld [vmem:[%s3133_s2] sm:$0xf] }
  0x14   :  { %142 = vmatpush.bf16.msra.mxu0 %v1543_v56  ;;  %v1807_v23 = vld [vmem:[%s3133_s2 + $0x4] sm:$0xf0]  ;;  %v1806_v24 = vld [vmem:[%s3133_s2 + $0x4] sm:$0xf]  ;;  %v1627_v26 = vor.u32 %v1832_v16, %v1624_v17  ;;  %v1520_v27 = vld [vmem:[%s3133_s2 + $0x8] sm:$0xf0] }
  0x15   :  { %161 = vmatpush.bf16.msra.mxu1 %v1547_v57  ;;  %1882 = vmatpush.bf16.msra.mxu2 %v2077_v58  ;;  %v1614_v28 = vld [vmem:[%s3134_s4] sm:$0xf]  ;;  %v1831_v29 = vld [vmem:[%s3134_s4 + $0x4] sm:$0xf0]  ;;  %v1830_v30 = vld [vmem:[%s3134_s4 + $0x4] sm:$0xf]  ;;  %v1519_v32 = vor.u32 %v1807_v23, %v1518_v22  ;;  %v1523_v33 = vor.u32 %v1806_v24, %v1520_v27 }
  0x16   :  { %1890 = vmatpush.bf16.msra.mxu3 %v2089_v62  ;;  %v1616_v31 = vld [vmem:[%s3134_s4 + $0x8] sm:$0xf0]  ;;  %v1615_v35 = vor.u32 %v1831_v29, %v1614_v28  ;;  %v1804_v37 = vld [vmem:[%s3135_s0] sm:$0xff]  ;;  %v1825_v39 = vld [vmem:[%s3136_s1 + $0x18] sm:$0xff] }
  0x17   :  { %v1619_v36 = vor.u32 %v1830_v30, %v1616_v31  ;;  %v1876_v40 = vld [vmem:[%s3137_s5 + $0xf4] sm:$0xf]  ;;  %v1800_v42 = vld [vmem:[%s3137_s5 + $0xf8] sm:$0xf0]  ;;  %v1858_v43 = vld [vmem:[%s3137_s5 + $0x64] sm:$0xf] }
  0x18   :  { %143 = vmatpush.bf16.msra.mxu0 %v1535_v4  ;;  %v1728_v44 = vld [vmem:[%s3137_s5 + $0x68] sm:$0xf0]  ;;  %v1803_v45 = vor.u32 %v1876_v40, %v1800_v42  ;;  %v1828_v51 = vld [vmem:[%s3136_s1 + $0x30] sm:$0xff]  ;;  %v1829_v53 = vld [vmem:[%s3136_s1 + $0x38] sm:$0xff] }
  0x19   :  { %162 = vmatpush.bf16.msra.mxu1 %v1539_v5  ;;  %1883 = vmatpush.bf16.msra.mxu2 %v1631_v6  ;;  %v1792_v47 = vld [vmem:[%s3137_s5 + $0xe8] sm:$0xf0]  ;;  %v1731_v48 = vor.u32 %v1858_v43, %v1728_v44  ;;  %v1824_v52 = vld [vmem:[%s3136_s1 + $0x10] sm:$0xff]  ;;  %v180_v54 = vld [vmem:[%s3138_s3] sm:$0x3] }
  0x1a   :  { %1891 = vmatpush.bf16.msra.mxu3 %v1635_v11  ;;  %182 = vst [vmem:[#allocation1] ss:$9 sm:$0xff] %v180_v54  ;;  %v751_v57 = vld [vmem:[%s3139_s6] sm:$0x3]  ;;  %v1720_v59 = vld [vmem:[%s3137_s5 + $0x58] sm:$0xf0] }
  0x1b   :  { %v1872_v61 = vld [vmem:[%s3137_s5 + $0xd4] sm:$0xf]  ;;  %v1854_v0 = vld [vmem:[%s3137_s5 + $0x44] sm:$0xf]  ;;  %v1712_v1 = vld [vmem:[%s3137_s5 + $0x48] sm:$0xf0] }
  0x1c   :  { %144 = vmatpush.bf16.msra.mxu0 %v1527_v18  ;;  %v1870_v2 = vld [vmem:[%s3137_s5 + $0xc4] sm:$0xf]  ;;  %v1715_v3 = vor.u32 %v1854_v0, %v1712_v1  ;;  %v1776_v4 = vld [vmem:[%s3137_s5 + $0xc8] sm:$0xf0]  ;;  %v1861_v7 = vld [vmem:[%s3137_s5 + $0x74] sm:$0xf0] }
  0x1d   :  { %163 = vmatpush.bf16.msra.mxu1 %v1531_v19  ;;  %1884 = vmatpush.bf16.msra.mxu2 %v1623_v20  ;;  %v1779_v5 = vor.u32 %v1870_v2, %v1776_v4  ;;  %v1798_v9 = vld [vmem:[%s3137_s5 + $0xf0] sm:$0xf]  ;;  %v1852_v13 = vld [vmem:[%s3137_s5 + $0x34] sm:$0xf]  ;;  %v1704_v14 = vld [vmem:[%s3137_s5 + $0x38] sm:$0xf0] }
  0x1e   :  { %1892 = vmatpush.bf16.msra.mxu3 %v1627_v26  ;;  %v1707_v16 = vor.u32 %v1852_v13, %v1704_v14  ;;  %v1868_v17 = vld [vmem:[%s3137_s5 + $0xb4] sm:$0xf]  ;;  %v1768_v18 = vld [vmem:[%s3137_s5 + $0xb8] sm:$0xf0]  ;;  %v1726_v22 = vld [vmem:[%s3137_s5 + $0x60] sm:$0xf] }
  0x1f   :  { %v1771_v19 = vor.u32 %v1868_v17, %v1768_v18  ;;  %v1859_v23 = vld [vmem:[%s3137_s5 + $0x64] sm:$0xf0]  ;;  %v1790_v24 = vld [vmem:[%s3137_s5 + $0xe0] sm:$0xf]  ;;  %v1760_v44 = vld [vmem:[%s3137_s5 + $0xa8] sm:$0xf0] }
  0x20   :  { %145 = vmatpush.bf16.msra.mxu0 %v1519_v32  ;;  %v1727_v27 = vor.u32 %v1859_v23, %v1726_v22  ;;  %v1875_v28 = vld [vmem:[%s3137_s5 + $0xe4] sm:$0xf0]  ;;  %v1718_v32 = vld [vmem:[%s3137_s5 + $0x50] sm:$0xf]  ;;  %v1848_v18 = vld [vmem:[%s3137_s5 + $0x14] sm:$0xf] }
  0x21   :  { %164 = vmatpush.bf16.msra.mxu1 %v1523_v33  ;;  %1885 = vmatpush.bf16.msra.mxu2 %v1615_v35  ;;  %v183_v55 = vld [vmem:[#allocation1] sm:$0xff]  ;;  %v184_v56 = vld [vmem:[#allocation1 + $0x9] sm:$0xff]  ;;  %v1791_v31 = vor.u32 %v1875_v28, %v1790_v24  ;;  %v1857_v33 = vld [vmem:[%s3137_s5 + $0x54] sm:$0xf0] }
  0x22   :  { %1893 = vmatpush.bf16.msra.mxu3 %v1619_v36  ;;  %1205 = vst [vmem:[#allocation1] ss:$9 sm:$0xff] %v751_v57  ;;  %v185_v29 = vpack.i.b16 %v183_v55, %v183_v55  ;;  %v188_v30 = vpack.i.b16 %v184_v56, %v184_v56  ;;  %v1702_v57 = vld [vmem:[%s3137_s5 + $0x30] sm:$0xf]  ;;  %v1867_v13 = vld [vmem:[%s3137_s5 + $0xa4] sm:$0xf0] }
  0x23   :  { %146 = vmatmul.bf16.vlgmr.msra.gmra.mxu0 %v1804_v37  ;;  %v1686_v28 = vld [vmem:[%s3137_s5 + $0x10] sm:$0xf] }
  0x24   :  { %373 = vmatpush.bf16.msrb.mxu0 %v1952_v8  ;;  %165 = vmatmul.bf16.vlgmr.msra.gmra.mxu1 %v1804_v37  ;;  %v1805_v8 = vld [vmem:[%s3135_s0 + $0x8] sm:$0xff]  ;;  %v1873_v37 = vld [vmem:[%s3137_s5 + $0xd4] sm:$0xf0] }
  0x25   :  { %422 = vmatpush.bf16.msrb.mxu1 %v1963_v12  ;;  %396 = vmatmul.bf16.vlgmr.msra.gmra.mxu2 %v1825_v39  ;;  %v1826_v12 = vld [vmem:[%s3136_s1 + $0x20] sm:$0xff] }
  0x26   :  { %445 = vmatmul.bf16.vlgmr.msra.gmra.mxu3 %v1825_v39  ;;  %v187_v39 = vperm.slane %v185_v29, 0  ;;  %v1849_v29 = vld [vmem:[%s3137_s5 + $0x14] sm:$0xf0] }
  0x27   :  { %1139 = vmatpush.bf16.msrb.mxu3 %v1803_v45  ;;  %v1710_v45 = vld [vmem:[%s3137_s5 + $0x40] sm:$0xf] }
  0x28   :  { %374 = vmatpush.bf16.msrb.mxu0 %v1985_v21  ;;  %v1822_v21 = vld [vmem:[%s3136_s1] sm:$0xff]  ;;  %v2322_v55 = vunpack.c.l.bf16 %v187_v39 }
  0x29   :  { %423 = vmatpush.bf16.msrb.mxu1 %v1996_v25  ;;  %v1827_v25 = vld [vmem:[%s3136_s1 + $0x28] sm:$0xff] }
  0x2c   :  { %375 = vmatpush.bf16.msrb.mxu0 %v2017_v34  ;;  %v1860_v34 = vld [vmem:[%s3137_s5 + $0x74] sm:$0xf] }
  0x2d   :  { %424 = vmatpush.bf16.msrb.mxu1 %v2029_v38  ;;  %v1736_v38 = vld [vmem:[%s3137_s5 + $0x78] sm:$0xf0] }
  0x2e   :  { %v1739_v41 = vor.u32 %v1860_v34, %v1736_v38  ;;  %v1696_v34 = vld [vmem:[%s3137_s5 + $0x28] sm:$0xf0]  ;;  %v1866_v38 = vld [vmem:[%s3137_s5 + $0xa4] sm:$0xf] }
  0x30   :  { %376 = vmatpush.bf16.msrb.mxu0 %v2047_v46  ;;  %v1874_v46 = vld [vmem:[%s3137_s5 + $0xe4] sm:$0xf]  ;;  %1090 = vmatpush.bf16.msrb.mxu2 %v1739_v41 }
  0x31   :  { %425 = vmatpush.bf16.msrb.mxu1 %v2059_v50  ;;  %v1795_v49 = vor.u32 %v1874_v46, %v1792_v47  ;;  %v1823_v50 = vld [vmem:[%s3136_s1 + $0x8] sm:$0xff] }
  0x32   :  { %v1855_v46 = vld [vmem:[%s3137_s5 + $0x44] sm:$0xf0] }
  0x33   :  { %151 = vmatmul.bf16.gmra.mxu0 %v1805_v8  ;;  %1140 = vmatpush.bf16.msrb.mxu3 %v1795_v49  ;;  %v1711_v49 = vor.u32 %v1855_v46, %v1710_v45  ;;  %v1744_v46 = vld [vmem:[%s3137_s5 + $0x88] sm:$0xf0] }
  0x34   :  { %377 = vmatpush.bf16.msrb.mxu0 %v2077_v58  ;;  %170 = vmatmul.bf16.gmra.mxu1 %v1805_v8  ;;  %v1856_v58 = vld [vmem:[%s3137_s5 + $0x54] sm:$0xf]  ;;  %v190_v8 = vperm.slane %v188_v30, 0 }
  0x35   :  { %426 = vmatpush.bf16.msrb.mxu1 %v2089_v62  ;;  %401 = vmatmul.bf16.gmra.mxu2 %v1826_v12  ;;  %v1723_v60 = vor.u32 %v1856_v58, %v1720_v59  ;;  %v1784_v62 = vld [vmem:[%s3137_s5 + $0xd8] sm:$0xf0]  ;;  %v1853_v58 = vld [vmem:[%s3137_s5 + $0x34] sm:$0xf0]  ;;  %v1766_v59 = vld [vmem:[%s3137_s5 + $0xb0] sm:$0xf] }
  0x36   :  { %450 = vmatmul.bf16.gmra.mxu3 %v1826_v12  ;;  %1091 = vmatpush.bf16.msrb.mxu2 %v1731_v48  ;;  %v1787_v63 = vor.u32 %v1872_v61, %v1784_v62  ;;  %v1763_v48 = vor.u32 %v1866_v38, %v1760_v44  ;;  %v2324_v56 = vunpack.c.l.bf16 %v190_v8  ;;  %v1869_v61 = vld [vmem:[%s3137_s5 + $0xb4] sm:$0xf0]  ;;  %v1680_v38 = vld [vmem:[%s3137_s5 + $0x8] sm:$0xf0] }
  0x37   :  { %v1767_v62 = vor.u32 %v1869_v61, %v1766_v59 }
  0x38   :  { %378 = vmatpush.bf16.msrb.mxu0 %v1631_v6  ;;  %1141 = vmatpush.bf16.msrb.mxu3 %v1787_v63  ;;  %v1734_v6 = vld [vmem:[%s3137_s5 + $0x70] sm:$0xf] }
  0x39   :  { %427 = vmatpush.bf16.msrb.mxu1 %v1635_v11  ;;  %v1735_v10 = vor.u32 %v1861_v7, %v1734_v6  ;;  %v1877_v11 = vld [vmem:[%s3137_s5 + $0xf4] sm:$0xf0]  ;;  %v1694_v6 = vld [vmem:[%s3137_s5 + $0x20] sm:$0xf]  ;;  %v1851_v7 = vld [vmem:[%s3137_s5 + $0x24] sm:$0xf0] }
  0x3a   :  { %1092 = vmatpush.bf16.msrb.mxu2 %v1723_v60  ;;  %v1799_v15 = vor.u32 %v1877_v11, %v1798_v9  ;;  %v1703_v60 = vor.u32 %v1853_v58, %v1702_v57  ;;  %v1758_v9 = vld [vmem:[%s3137_s5 + $0xa0] sm:$0xf]  ;;  %v1695_v11 = vor.u32 %v1851_v7, %v1694_v6 }
  0x3b   :  { %v1759_v14 = vor.u32 %v1867_v13, %v1758_v9 }
  0x3c   :  { %379 = vmatpush.bf16.msrb.mxu0 %v1623_v20  ;;  %1142 = vmatpush.bf16.msrb.mxu3 %v1779_v5 }
  0x3d   :  { %428 = vmatpush.bf16.msrb.mxu1 %v1627_v26 }
  0x3e   :  { %1093 = vmatpush.bf16.msrb.mxu2 %v1715_v3 }
  0x40   :  { %380 = vmatpush.bf16.msrb.mxu0 %v1615_v35  ;;  %1143 = vmatpush.bf16.msrb.mxu3 %v1771_v19  ;;  %v1782_v35 = vld [vmem:[%s3137_s5 + $0xd0] sm:$0xf]  ;;  %v1688_v19 = vld [vmem:[%s3137_s5 + $0x18] sm:$0xf0] }
  0x41   :  { %429 = vmatpush.bf16.msrb.mxu1 %v1619_v36  ;;  %v1719_v36 = vor.u32 %v1857_v33, %v1718_v32  ;;  %v1783_v12 = vor.u32 %v1873_v37, %v1782_v35  ;;  %v1687_v33 = vor.u32 %v1849_v29, %v1686_v28  ;;  %v1750_v35 = vld [vmem:[%s3137_s5 + $0x90] sm:$0xf] }
  0x42   :  { %1094 = vmatpush.bf16.msrb.mxu2 %v1707_v16 }
  0x43   :  { %381 = vmatmul.bf16.vlgmr.msrb.gmra.mxu0 %v1822_v21 }
  0x44   :  { %430 = vmatmul.bf16.vlgmr.msrb.gmra.mxu1 %v1822_v21  ;;  %992 = vmatpush.bf16.msra.mxu0 %v1735_v10 }
  0x45   :  { %406 = vmatmul.bf16.gmra.mxu2 %v1827_v25  ;;  %1041 = vmatpush.bf16.msra.mxu1 %v1799_v15 }
  0x46   :  { %455 = vmatmul.bf16.gmra.mxu3 %v1827_v25  ;;  %v1850_v25 = vld [vmem:[%s3137_s5 + $0x24] sm:$0xf] }
  0x47   :  { %v1699_v43 = vor.u32 %v1850_v25, %v1696_v34  ;;  %1144 = vmatpush.bf16.msrb.mxu3 %v1763_v48  ;;  %v1846_v34 = vld [vmem:[%s3137_s5 + $0x4] sm:$0xf]  ;;  %v1847_v48 = vld [vmem:[%s3137_s5 + $0x4] sm:$0xf0] }
  0x48   :  { %993 = vmatpush.bf16.msra.mxu0 %v1727_v27  ;;  %v1752_v27 = vld [vmem:[%s3137_s5 + $0x98] sm:$0xf0]  ;;  %v1683_v45 = vor.u32 %v1846_v34, %v1680_v38 }
  0x49   :  { %1042 = vmatpush.bf16.msra.mxu1 %v1791_v31  ;;  %1095 = vmatpush.bf16.msrb.mxu2 %v1699_v43 }
  0x4c   :  { %994 = vmatpush.bf16.msra.mxu0 %v1719_v36  ;;  %v1865_v36 = vld [vmem:[%s3137_s5 + $0x94] sm:$0xf0] }
  0x4d   :  { %1043 = vmatpush.bf16.msra.mxu1 %v1783_v12  ;;  %v1751_v39 = vor.u32 %v1865_v36, %v1750_v35 }
  0x50   :  { %995 = vmatpush.bf16.msra.mxu0 %v1711_v49 }
  0x53   :  { %386 = vmatmul.bf16.gmra.mxu0 %v1823_v50 }
  0x54   :  { %435 = vmatmul.bf16.gmra.mxu1 %v1823_v50  ;;  %v1774_v50 = vld [vmem:[%s3137_s5 + $0xc0] sm:$0xf]  ;;  %996 = vmatpush.bf16.msra.mxu0 %v1703_v60 }
  0x55   :  { %411 = vmatmul.bf16.gmra.mxu2 %v1828_v51 }
  0x56   :  { %460 = vmatmul.bf16.gmra.mxu3 %v1828_v51  ;;  %v1871_v51 = vld [vmem:[%s3137_s5 + $0xc4] sm:$0xf0] }
  0x58   :  { %997 = vmatpush.bf16.msra.mxu0 %v1695_v11 }
  0x5c   :  { %998 = vmatpush.bf16.msra.mxu0 %v1687_v33 }
  0x63   :  { %391 = vmatmul.bf16.gmra.mxu0 %v1824_v52 }
  0x64   :  { %440 = vmatmul.bf16.gmra.mxu1 %v1824_v52  ;;  %v1775_v52 = vor.u32 %v1871_v51, %v1774_v50 }
  0x65   :  { %416 = vmatmul.bf16.gmra.mxu2 %v1829_v53 }
  0x66   :  { %465 = vmatmul.bf16.gmra.mxu3 %v1829_v53  ;;  %1044 = vmatpush.bf16.msra.mxu1 %v1775_v52 }
  0x6a   :  { %1045 = vmatpush.bf16.msra.mxu1 %v1767_v62 }
  0x6e   :  { %1046 = vmatpush.bf16.msra.mxu1 %v1759_v14 }
  0x72   :  { %1047 = vmatpush.bf16.msra.mxu1 %v1751_v39 }
  0xa0   :  { %v147_v20 = vpop.f32.mrf.mxu0 }
  0xa1   :  { %v166_v26 = vpop.f32.mrf.mxu1 }
  0xa2   :  { %v176_v40 = vpack.c.bf16 %v166_v26, %v147_v20  ;;  %v1864_v20 = vld [vmem:[%s3137_s5 + $0x94] sm:$0xf]  ;;  %v1691_v26 = vor.u32 %v1848_v18, %v1688_v19 }
  0xa3   :  { %v1755_v32 = vor.u32 %v1864_v20, %v1752_v27 }
  0xa4   :  { %v191_v53 = vunpack.c.l.bf16 %v176_v40  ;;  %v192_v54 = vunpack.c.h.bf16 %v176_v40  ;;  %1096 = vmatpush.bf16.msrb.mxu2 %v1691_v26  ;;  %v1862_v40 = vld [vmem:[%s3137_s5 + $0x84] sm:$0xf] }
  0xa5   :  { %1145 = vmatpush.bf16.msrb.mxu3 %v1755_v32  ;;  %v1747_v52 = vor.u32 %v1862_v40, %v1744_v46 }
  0xa6   :  { %v201_v0 = vadd.f32 %v2322_v55, %v191_v53  ;;  %v202_v1 = vadd.f32 %v2324_v56, %v192_v54  ;;  %v1742_v53 = vld [vmem:[%s3137_s5 + $0x80] sm:$0xf]  ;;  %v1863_v54 = vld [vmem:[%s3137_s5 + $0x84] sm:$0xf0] }
  0xa7   :  { %v1743_v60 = vor.u32 %v1863_v54, %v1742_v53 }
  0xa8   :  { %v397_v21 = vpop.f32.mrf.mxu2  ;;  %v149_v42 = vpop.f32.mrf.mxu0  ;;  %v209_v15 = vpack.c.bf16 %v202_v1, %v201_v0  ;;  %1097 = vmatpush.bf16.msrb.mxu2 %v1683_v45 }
  0xa9   :  { %v446_v41 = vpop.f32.mrf.mxu3  ;;  %v168_v47 = vpop.f32.mrf.mxu1  ;;  %1146 = vmatpush.bf16.msrb.mxu3 %v1747_v52  ;;  %1048 = vmatpush.bf16.msra.mxu1 %v1743_v60 }
  0xaa   :  { %v177_v4 = vpack.c.bf16 %v168_v47, %v149_v42  ;;  %v2365_v22 = vpack.c.bf16 %v446_v41, %v397_v21  ;;  %v2384_v8 = vunpack.c.l.bf16 %v209_v15  ;;  %v2386_v12 = vunpack.c.h.bf16 %v209_v15  ;;  %v1678_v47 = vld [vmem:[%s3137_s5] sm:$0xf] }
  0xab   :  { %v1679_v59 = vor.u32 %v1847_v48, %v1678_v47 }
  0xac   :  { %v193_v23 = vunpack.c.l.bf16 %v177_v4  ;;  %v194_v24 = vunpack.c.h.bf16 %v177_v4  ;;  %v499_v41 = vunpack.c.l.bf16 %v2365_v22  ;;  %v500_v61 = vunpack.c.h.bf16 %v2365_v22 }
  0xad   :  { %999 = vmatpush.bf16.msra.mxu0 %v1679_v59 }
  0xae   :  { %v203_v49 = vadd.f32 %v2322_v55, %v193_v23  ;;  %v204_v50 = vadd.f32 %v2324_v56, %v194_v24 }
  0xb0   :  { %v2338_v63 = vpop.f32.mrf.mxu2  ;;  %v152_v3 = vpop.f32.mrf.mxu0 }
  0xb1   :  { %v2342_v2 = vpop.f32.mrf.mxu3  ;;  %v171_v5 = vpop.f32.mrf.mxu1 }
  0xb2   :  { %v178_v10 = vpack.c.bf16 %v171_v5, %v152_v3  ;;  %v478_v62 = vpack.c.bf16 %v2342_v2, %v2338_v63 }
  0xb4   :  { %v195_v16 = vunpack.c.l.bf16 %v178_v10  ;;  %v196_v17 = vunpack.c.h.bf16 %v178_v10  ;;  %v210_v10 = vpack.c.bf16 %v204_v50, %v203_v49  ;;  %v501_v2 = vunpack.c.l.bf16 %v478_v62 }
  0xb5   :  { %v502_v13 = vunpack.c.h.bf16 %v478_v62 }
  0xb6   :  { %v205_v30 = vadd.f32 %v2322_v55, %v195_v16  ;;  %v206_v31 = vadd.f32 %v2324_v56, %v196_v17  ;;  %v2434_v23 = vunpack.c.l.bf16 %v210_v10  ;;  %v2436_v24 = vunpack.c.h.bf16 %v210_v10 }
  0xb8   :  { %v402_v37 = vpop.f32.mrf.mxu2  ;;  %v154_v25 = vpop.f32.mrf.mxu0  ;;  %v211_v42 = vpack.c.bf16 %v206_v31, %v205_v30 }
  0xb9   :  { %v451_v21 = vpop.f32.mrf.mxu3  ;;  %v173_v44 = vpop.f32.mrf.mxu1 }
  0xba   :  { %v479_v43 = vpack.c.bf16 %v451_v21, %v402_v37  ;;  %v179_v51 = vpack.c.bf16 %v173_v44, %v154_v25  ;;  %v2418_v3 = vunpack.c.l.bf16 %v211_v42  ;;  %v2420_v4 = vunpack.c.h.bf16 %v211_v42 }
  0xbc   :  { %v503_v57 = vunpack.c.l.bf16 %v479_v43  ;;  %v504_v58 = vunpack.c.h.bf16 %v479_v43  ;;  %v197_v0 = vunpack.c.l.bf16 %v179_v51  ;;  %v198_v1 = vunpack.c.h.bf16 %v179_v51 }
  0xbd   :  { %v539_v19 = vadd.f32 %v2418_v3, %v499_v41  ;;  %v540_v20 = vadd.f32 %v2420_v4, %v500_v61 }
  0xbe   :  { %v543_v5 = vadd.f32 %v2384_v8, %v503_v57  ;;  %v544_v6 = vadd.f32 %v2386_v12, %v504_v58  ;;  %v207_v7 = vadd.f32 %v2322_v55, %v197_v0  ;;  %v208_v9 = vadd.f32 %v2324_v56, %v198_v1 }
  0xbf   :  { %v2442_v35 = vpack.c.bf16 %v540_v20, %v539_v19 }
  0xc0   :  { %v2426_v11 = vpack.c.bf16 %v544_v6, %v543_v5  ;;  %v404_v63 = vpop.f32.mrf.mxu2  ;;  %v212_v14 = vpack.c.bf16 %v208_v9, %v207_v7  ;;  %v382_v16 = vpop.f32.mrf.mxu0 }
  0xc1   :  { %v453_v15 = vpop.f32.mrf.mxu3  ;;  %v431_v18 = vpop.f32.mrf.mxu1  ;;  %v587_v43 = vunpack.c.l.bf16 %v2442_v35  ;;  %v588_v47 = vunpack.c.h.bf16 %v2442_v35 }
  0xc2   :  { %v480_v17 = vpack.c.bf16 %v453_v15, %v404_v63  ;;  %v2430_v22 = vunpack.c.l.bf16 %v212_v14  ;;  %v2432_v55 = vunpack.c.h.bf16 %v212_v14  ;;  %v471_v56 = vpack.c.bf16 %v431_v18, %v382_v16 }
  0xc3   :  { %v591_v50 = vunpack.c.l.bf16 %v2426_v11  ;;  %v592_v51 = vunpack.c.h.bf16 %v2426_v11 }
  0xc4   :  { %v505_v26 = vunpack.c.l.bf16 %v480_v17  ;;  %v506_v27 = vunpack.c.h.bf16 %v480_v17  ;;  %v487_v28 = vunpack.c.l.bf16 %v471_v56  ;;  %v488_v29 = vunpack.c.h.bf16 %v471_v56 }
  0xc5   :  { %v541_v30 = vadd.f32 %v2430_v22, %v501_v2  ;;  %v542_v31 = vadd.f32 %v2432_v55, %v502_v13  ;;  %vm2471_vm2 = vcmp.gt.f32.partialorder %v591_v50, 0.0  ;;  %vm2476_vm3 = vcmp.gt.f32.partialorder %v592_v51, 0.0 }
  0xc6   :  { %v545_v32 = vadd.f32 %v2434_v23, %v505_v26  ;;  %v546_v33 = vadd.f32 %v2436_v24, %v506_v27  ;;  %v527_v36 = vadd.f32 %v2384_v8, %v487_v28  ;;  %v528_v37 = vadd.f32 %v2386_v12, %v488_v29  ;;  %vm695_vm9 = vmpackc.low %vm2476_vm3, %vm2471_vm2 }
  0xc7   :  { %v2448_v40 = vpack.c.bf16 %v542_v31, %v541_v30  ;;  %v655_v16 = vmul.f32 0.20019531, %v591_v50  ;;  %v656_v17 = vmul.f32 0.20019531, %v592_v51 }
  0xc8   :  { %v2446_v39 = vpack.c.bf16 %v546_v33, %v545_v32  ;;  %v407_v21 = vpop.f32.mrf.mxu2  ;;  %v559_v25 = vpack.c.bf16 %v528_v37, %v527_v36  ;;  %v384_v38 = vpop.f32.mrf.mxu0 }
  0xc9   :  { %v456_v34 = vpop.f32.mrf.mxu3  ;;  %v433_v42 = vpop.f32.mrf.mxu1  ;;  %v589_v54 = vunpack.c.l.bf16 %v2448_v40  ;;  %v590_v14 = vunpack.c.h.bf16 %v2448_v40 }
  0xca   :  { %v481_v41 = vpack.c.bf16 %v456_v34, %v407_v21  ;;  %v575_v44 = vunpack.c.l.bf16 %v559_v25  ;;  %v576_v45 = vunpack.c.h.bf16 %v559_v25  ;;  %v472_v46 = vpack.c.bf16 %v433_v42, %v384_v38 }
  0xcb   :  { %v593_v57 = vunpack.c.l.bf16 %v2446_v39  ;;  %v594_v5 = vunpack.c.h.bf16 %v2446_v39  ;;  %v2486_v56 = vmul.f32 0.20019531, %v589_v54  ;;  %v679_v38 = vpack.c.bf16 %v656_v17, %v655_v16 }
  0xcc   :  { %v507_v48 = vunpack.c.l.bf16 %v481_v41  ;;  %v508_v49 = vunpack.c.h.bf16 %v481_v41  ;;  %v639_v52 = vmul.f32 0.20019531, %v575_v44  ;;  %v640_v53 = vmul.f32 0.20019531, %v576_v45 }
  0xcd   :  { %v489_v60 = vunpack.c.l.bf16 %v472_v46  ;;  %v490_v61 = vunpack.c.h.bf16 %v472_v46  ;;  %vm2458_vm0 = vcmp.gt.f32.partialorder %v575_v44, 0.0  ;;  %vm2462_vm1 = vcmp.gt.f32.partialorder %v576_v45, 0.0 }
  0xce   :  { %v547_v58 = vadd.f32 %v2418_v3, %v507_v48  ;;  %v548_v59 = vadd.f32 %v2420_v4, %v508_v49  ;;  %v671_v1 = vpack.c.bf16 %v640_v53, %v639_v52  ;;  %vm687_vm4 = vmpackc.low %vm2462_vm1, %vm2458_vm0  ;;  %vm2488_vm5 = vcmp.gt.f32.partialorder %v593_v57, 0.0 }
  0xcf   :  { %v529_v7 = vadd.f32 %v2434_v23, %v489_v60  ;;  %v530_v9 = vadd.f32 %v2436_v24, %v490_v61  ;;  %v657_v29 = vmul.f32 0.20019531, %v593_v57  ;;  %v658_v30 = vmul.f32 0.20019531, %v594_v5 }
  0xd0   :  { %v2467_v6 = vpack.c.bf16 %v548_v59, %v547_v58  ;;  %v409_v10 = vpop.f32.mrf.mxu2  ;;  %v387_v13 = vpop.f32.mrf.mxu0  ;;  %v703_v28 = vsel %vm687_vm4, %v559_v25, %v671_v1  ;;  %vm2492_vm6 = vcmp.gt.f32.partialorder %v594_v5, 0.0  ;;  %v711_v62 = vsel %vm695_vm9, %v2426_v11, %v679_v38 }
  0xd1   :  { %v458_v2 = vpop.f32.mrf.mxu3  ;;  %v560_v18 = vpack.c.bf16 %v530_v9, %v529_v7  ;;  %v436_v20 = vpop.f32.mrf.mxu1  ;;  %v768_v52 = vunpack.c.l.b16 %v703_v28  ;;  %v769_v53 = vunpack.c.h.b16 %v703_v28  ;;  %v680_v57 = vpack.c.bf16 %v658_v30, %v657_v29  ;;  %vm696_vm10 = vmpackc.low %vm2492_vm6, %vm2488_vm5 }
  0xd2   :  { %v482_v19 = vpack.c.bf16 %v458_v2, %v409_v10  ;;  %v473_v27 = vpack.c.bf16 %v436_v20, %v387_v13  ;;  %v595_v0 = vunpack.c.l.bf16 %v2467_v6  ;;  %v784_v10 = vunpack.c.l.b16 %v711_v62 }
  0xd3   :  { %v577_v31 = vunpack.c.l.bf16 %v560_v18  ;;  %v578_v32 = vunpack.c.h.bf16 %v560_v18  ;;  %v712_v9 = vsel %vm696_vm10, %v2446_v39, %v680_v57  ;;  %v785_v38 = vunpack.c.h.b16 %v711_v62 }
  0xd4   :  { %v509_v33 = vunpack.c.l.bf16 %v482_v19  ;;  %v510_v36 = vunpack.c.h.bf16 %v482_v19  ;;  %v491_v37 = vunpack.c.l.bf16 %v473_v27  ;;  %v492_v21 = vunpack.c.h.bf16 %v473_v27 }
  0xd5   :  { %vm2496_vm7 = vcmp.gt.f32.partialorder %v577_v31, 0.0  ;;  %vm2500_vm8 = vcmp.gt.f32.partialorder %v578_v32, 0.0  ;;  %v641_v25 = vmul.f32 0.20019531, %v577_v31  ;;  %v642_v44 = vmul.f32 0.20019531, %v578_v32 }
  0xd6   :  { %v549_v45 = vadd.f32 %v2430_v22, %v509_v33  ;;  %v550_v46 = vadd.f32 %v2432_v55, %v510_v36  ;;  %v531_v48 = vadd.f32 %v2418_v3, %v491_v37  ;;  %v532_v49 = vadd.f32 %v2420_v4, %v492_v21  ;;  %vm688_vm11 = vmpackc.low %vm2500_vm8, %vm2496_vm7 }
  0xd7   :  { %v672_v51 = vpack.c.bf16 %v642_v44, %v641_v25  ;;  %v786_v20 = vunpack.c.l.b16 %v712_v9  ;;  %v787_v41 = vunpack.c.h.b16 %v712_v9  ;;  %vm2556_vm15 = vcmp.gt.f32.partialorder %v595_v0, 0.0 }
  0xd8   :  { %v412_v50 = vpop.f32.mrf.mxu2  ;;  %v2516_v58 = vpack.c.bf16 %v550_v46, %v549_v45  ;;  %v561_v59 = vpack.c.bf16 %v532_v49, %v531_v48  ;;  %v389_v61 = vpop.f32.mrf.mxu0  ;;  %v2543_v46 = vmul.f32 0.20019531, %v590_v14  ;;  %v596_v48 = vunpack.c.h.bf16 %v2467_v6 }
  0xd9   :  { %v461_v60 = vpop.f32.mrf.mxu3  ;;  %v438_v5 = vpop.f32.mrf.mxu1  ;;  %v704_v7 = vsel %vm688_vm11, %v560_v18, %v672_v51  ;;  %v2539_v34 = vpack.c.b16 %v786_v20, %v784_v10  ;;  %v2550_v51 = vpack.c.b16 %v787_v41, %v785_v38 }
  0xda   :  { %v483_v1 = vpack.c.bf16 %v461_v60, %v412_v50  ;;  %v474_v63 = vpack.c.bf16 %v438_v5, %v389_v61  ;;  %v770_v2 = vunpack.c.l.b16 %v704_v7  ;;  %v771_v13 = vunpack.c.h.b16 %v704_v7 }
  0xdb   :  { %v579_v15 = vunpack.c.l.bf16 %v561_v59  ;;  %v580_v19 = vunpack.c.h.bf16 %v561_v59  ;;  %vm2572_vm2 = vcmp.gt.f32.partialorder %v596_v48, 0.0 }
  0xdc   :  { %v511_v16 = vunpack.c.l.bf16 %v483_v1  ;;  %v512_v17 = vunpack.c.h.bf16 %v483_v1  ;;  %v493_v26 = vunpack.c.l.bf16 %v474_v63  ;;  %v494_v27 = vunpack.c.h.bf16 %v474_v63  ;;  %vm697_vm8 = vmpackc.low %vm2572_vm2, %vm2556_vm15 }
  0xdd   :  { %v800_v28 = vpack.c.b16 %v770_v2, %v768_v52  ;;  %v801_v11 = vpack.c.b16 %v771_v13, %v769_v53  ;;  %vm2527_vm12 = vcmp.gt.f32.partialorder %v579_v15, 0.0  ;;  %vm2531_vm13 = vcmp.gt.f32.partialorder %v580_v19, 0.0 }
  0xde   :  { %v551_v29 = vadd.f32 %v2384_v8, %v511_v16  ;;  %v552_v30 = vadd.f32 %v2386_v12, %v512_v17  ;;  %v533_v31 = vadd.f32 %v2430_v22, %v493_v26  ;;  %v534_v32 = vadd.f32 %v2432_v55, %v494_v27  ;;  %vm689_vm14 = vmpackc.low %vm2531_vm13, %vm2527_vm12 }
  0xdf   :  { %1000 = vmatmul.bf16.vlgmr.msra.gmra.mxu0 %v800_v28  ;;  %1049 = vmatmul.bf16.vlgmr.msra.gmra.mxu1 %v801_v11  ;;  %v643_v33 = vmul.f32 0.20019531, %v579_v15  ;;  %v644_v36 = vmul.f32 0.20019531, %v580_v19  ;;  %v597_v52 = vunpack.c.l.bf16 %v2516_v58  ;;  %v598_v53 = vunpack.c.h.bf16 %v2516_v58 }
  0xe0   :  { %v2537_v37 = vpack.c.bf16 %v552_v30, %v551_v29  ;;  %1098 = vmatmul.bf16.vlgmr.msrb.gmra.mxu2 %v800_v28  ;;  %1147 = vmatmul.bf16.vlgmr.msrb.gmra.mxu3 %v801_v11  ;;  %v414_v21 = vpop.f32.mrf.mxu2  ;;  %v562_v42 = vpack.c.bf16 %v534_v32, %v533_v31  ;;  %v392_v44 = vpop.f32.mrf.mxu0  ;;  %v660_v32 = vmul.f32 0.20019531, %v596_v48 }
  0xe1   :  { %v463_v25 = vpop.f32.mrf.mxu3  ;;  %v673_v45 = vpack.c.bf16 %v644_v36, %v643_v33  ;;  %v441_v50 = vpop.f32.mrf.mxu1  ;;  %vm2576_vm3 = vcmp.gt.f32.partialorder %v597_v52, 0.0  ;;  %vm2582_vm4 = vcmp.gt.f32.partialorder %v598_v53, 0.0  ;;  %v661_v33 = vmul.f32 0.20019531, %v597_v52 }
  0xe2   :  { %v484_v49 = vpack.c.bf16 %v463_v25, %v414_v21  ;;  %v475_v57 = vpack.c.bf16 %v441_v50, %v392_v44  ;;  %v581_v60 = vunpack.c.l.bf16 %v562_v42  ;;  %v582_v61 = vunpack.c.h.bf16 %v562_v42  ;;  %vm698_vm9 = vmpackc.low %vm2582_vm4, %vm2576_vm3 }
  0xe3   :  { %v705_v62 = vsel %vm689_vm14, %v561_v59, %v673_v45  ;;  %v662_v36 = vmul.f32 0.20019531, %v598_v53  ;;  %v599_v25 = vunpack.c.l.bf16 %v2537_v37  ;;  %v600_v44 = vunpack.c.h.bf16 %v2537_v37 }
  0xe4   :  { %v513_v1 = vunpack.c.l.bf16 %v484_v49  ;;  %v514_v5 = vunpack.c.h.bf16 %v484_v49  ;;  %v772_v7 = vunpack.c.l.b16 %v705_v62  ;;  %v773_v9 = vunpack.c.h.b16 %v705_v62 }
  0xe5   :  { %v495_v63 = vunpack.c.l.bf16 %v475_v57  ;;  %v496_v2 = vunpack.c.h.bf16 %v475_v57  ;;  %vm2560_vm0 = vcmp.gt.f32.partialorder %v581_v60, 0.0  ;;  %vm2564_vm1 = vcmp.gt.f32.partialorder %v582_v61, 0.0 }
  0xe6   :  { %v553_v59 = vadd.f32 %v2434_v23, %v513_v1  ;;  %v554_v16 = vadd.f32 %v2436_v24, %v514_v5  ;;  %v645_v17 = vmul.f32 0.20019531, %v581_v60  ;;  %v646_v19 = vmul.f32 0.20019531, %v582_v61  ;;  %vm690_vm5 = vmpackc.low %vm2564_vm1, %vm2560_vm0 }
  0xe7   :  { %v535_v20 = vadd.f32 %v2384_v8, %v495_v63  ;;  %v536_v26 = vadd.f32 %v2386_v12, %v496_v2  ;;  %v659_v8 = vmul.f32 0.20019531, %v595_v0  ;;  %vm2648_vm14 = vcmp.gt.f32.partialorder %v599_v25, 0.0 }
  0xe8   :  { %v2580_v11 = vpack.c.bf16 %v554_v16, %v553_v59  ;;  %v417_v29 = vpop.f32.mrf.mxu2  ;;  %v674_v30 = vpack.c.bf16 %v646_v19, %v645_v17  ;;  %v394_v31 = vpop.f32.mrf.mxu0  ;;  %v682_v59 = vpack.c.bf16 %v662_v36, %v661_v33  ;;  %vm2654_vm15 = vcmp.gt.f32.partialorder %v600_v44, 0.0 }
  0xe9   :  { %v563_v12 = vpack.c.bf16 %v536_v26, %v535_v20  ;;  %v466_v39 = vpop.f32.mrf.mxu3  ;;  %v443_v38 = vpop.f32.mrf.mxu1  ;;  %v681_v62 = vpack.c.bf16 %v660_v32, %v659_v8  ;;  %vm699_vm3 = vmpackc.low %vm2654_vm15, %vm2648_vm14 }
  0xea   :  { %v485_v21 = vpack.c.bf16 %v466_v39, %v417_v29  ;;  %v706_v41 = vsel %vm690_vm5, %v562_v42, %v674_v30  ;;  %v476_v45 = vpack.c.bf16 %v443_v38, %v394_v31 }
  0xeb   :  { %v774_v0 = vunpack.c.l.b16 %v706_v41  ;;  %v775_v49 = vunpack.c.h.b16 %v706_v41  ;;  %v583_v50 = vunpack.c.l.bf16 %v563_v12  ;;  %v584_v61 = vunpack.c.h.bf16 %v563_v12 }
  0xec   :  { %v515_v57 = vunpack.c.l.bf16 %v485_v21  ;;  %v516_v60 = vunpack.c.h.bf16 %v485_v21  ;;  %v497_v1 = vunpack.c.l.bf16 %v476_v45  ;;  %v498_v5 = vunpack.c.h.bf16 %v476_v45 }
  0xed   :  { %v802_v48 = vpack.c.b16 %v774_v0, %v772_v7  ;;  %v803_v52 = vpack.c.b16 %v775_v49, %v773_v9  ;;  %vm2596_vm6 = vcmp.gt.f32.partialorder %v583_v50, 0.0  ;;  %vm2600_vm7 = vcmp.gt.f32.partialorder %v584_v61, 0.0 }
  0xee   :  { %v555_v53 = vadd.f32 %v2418_v3, %v515_v57  ;;  %v556_v42 = vadd.f32 %v2420_v4, %v516_v60  ;;  %v537_v13 = vadd.f32 %v2434_v23, %v497_v1  ;;  %v538_v15 = vadd.f32 %v2436_v24, %v498_v5  ;;  %vm691_vm10 = vmpackc.low %vm2600_vm7, %vm2596_vm6 }
  0xef   :  { %1005 = vmatmul.bf16.gmra.mxu0 %v802_v48  ;;  %1054 = vmatmul.bf16.gmra.mxu1 %v803_v52  ;;  %v647_v7 = vmul.f32 0.20019531, %v583_v50  ;;  %v648_v9 = vmul.f32 0.20019531, %v584_v61  ;;  %v713_v16 = vsel %vm697_vm8, %v2467_v6, %v681_v62  ;;  %v601_v23 = vunpack.c.l.bf16 %v2580_v11 }
  0xf0   :  { %v2610_v3 = vpack.c.bf16 %v556_v42, %v555_v53  ;;  %1103 = vmatmul.bf16.gmra.mxu2 %v802_v48  ;;  %1152 = vmatmul.bf16.gmra.mxu3 %v803_v52  ;;  %v419_v4 = vpop.f32.mrf.mxu2  ;;  %v564_v24 = vpack.c.bf16 %v538_v15, %v537_v13  ;;  %v788_v10 = vunpack.c.l.b16 %v713_v16  ;;  %v789_v20 = vunpack.c.h.b16 %v713_v16 }
  0xf1   :  { %v468_v17 = vpop.f32.mrf.mxu3  ;;  %v675_v19 = vpack.c.bf16 %v648_v9, %v647_v7  ;;  %v714_v6 = vsel %vm698_vm9, %v2516_v58, %v682_v59  ;;  %v602_v60 = vunpack.c.h.bf16 %v2580_v11  ;;  %vm2658_vm0 = vcmp.gt.f32.partialorder %v601_v23, 0.0 }
  0xf2   :  { %v603_v26 = vunpack.c.l.bf16 %v2610_v3  ;;  %v604_v27 = vunpack.c.h.bf16 %v2610_v3  ;;  %v486_v29 = vpack.c.bf16 %v468_v17, %v419_v4  ;;  %v585_v30 = vunpack.c.l.bf16 %v564_v24 }
  0xf3   :  { %v586_v8 = vunpack.c.h.bf16 %v564_v24  ;;  %v707_v28 = vsel %vm691_vm10, %v563_v12, %v675_v19  ;;  %v790_v39 = vunpack.c.l.b16 %v714_v6  ;;  %v791_v57 = vunpack.c.h.b16 %v714_v6 }
  0xf4   :  { %v2625_v18 = vmul.f32 0.20019531, %v603_v26  ;;  %v2627_v31 = vmul.f32 0.20019531, %v604_v27  ;;  %v517_v32 = vunpack.c.l.bf16 %v486_v29  ;;  %v518_v33 = vunpack.c.h.bf16 %v486_v29 }
  0xf5   :  { %vm2629_vm11 = vcmp.gt.f32.partialorder %v585_v30, 0.0  ;;  %vm2633_vm12 = vcmp.gt.f32.partialorder %v586_v8, 0.0  ;;  %v649_v38 = vmul.f32 0.20019531, %v585_v30  ;;  %v650_v58 = vmul.f32 0.20019531, %v586_v8 }
  0xf6   :  { %v557_v41 = vadd.f32 %v2430_v22, %v517_v32  ;;  %v558_v12 = vadd.f32 %v2432_v55, %v518_v33  ;;  %v776_v45 = vunpack.c.l.b16 %v707_v28  ;;  %v777_v0 = vunpack.c.h.b16 %v707_v28  ;;  %vm692_vm13 = vmpackc.low %vm2633_vm12, %vm2629_vm11 }
  0xf7   :  { %v676_v49 = vpack.c.bf16 %v650_v58, %v649_v38  ;;  %v2639_v50 = vpack.c.b16 %v790_v39, %v788_v10  ;;  %v2662_v5 = vpack.c.b16 %v791_v57, %v789_v20  ;;  %vm2664_vm1 = vcmp.gt.f32.partialorder %v602_v60, 0.0 }
  0xf8   :  { %v574_v61 = vpack.c.bf16 %v558_v12, %v557_v41  ;;  %v663_v52 = vmul.f32 0.20019531, %v599_v25  ;;  %v664_v13 = vmul.f32 0.20019531, %v600_v44  ;;  %v665_v15 = vmul.f32 0.20019531, %v601_v23  ;;  %vm700_vm6 = vmpackc.low %vm2664_vm1, %vm2658_vm0 }
  0xf9   :  { %v708_v1 = vsel %vm692_vm13, %v564_v24, %v676_v49  ;;  %v666_v7 = vmul.f32 0.20019531, %v602_v60  ;;  %vm2672_vm2 = vcmp.gt.f32.partialorder %v603_v26, 0.0  ;;  %vm2680_vm4 = vcmp.gt.f32.partialorder %v604_v27, 0.0  ;;  %v1207_v27 = vld [vmem:[#allocation1 + $0x9] sm:$0xff] }
  0xfa   :  { %v605_v53 = vunpack.c.l.bf16 %v574_v61  ;;  %v606_v42 = vunpack.c.h.bf16 %v574_v61  ;;  %v778_v63 = vunpack.c.l.b16 %v708_v1  ;;  %v779_v2 = vunpack.c.h.b16 %v708_v1  ;;  %vm701_vm9 = vmpackc.low %vm2680_vm4, %vm2672_vm2 }
  0xfb   :  { %v683_v17 = vpack.c.bf16 %v664_v13, %v663_v52  ;;  %v684_v19 = vpack.c.bf16 %v666_v7, %v665_v15  ;;  %v651_v23 = vmul.f32 0.20019531, %v587_v43  ;;  %v685_v20 = vpack.c.bf16 %v2627_v31, %v2625_v18 }
  0xfc   :  { %v669_v4 = vmul.f32 0.20019531, %v605_v53  ;;  %v670_v59 = vmul.f32 0.20019531, %v606_v42  ;;  %v804_v16 = vpack.c.b16 %v778_v63, %v776_v45  ;;  %v805_v24 = vpack.c.b16 %v779_v2, %v777_v0 }
  0xfd   :  { %vm2684_vm5 = vcmp.gt.f32.partialorder %v605_v53, 0.0  ;;  %vm2694_vm7 = vcmp.gt.f32.partialorder %v606_v42, 0.0  ;;  %vm2702_vm8 = vcmp.gt.f32.partialorder %v589_v54, 0.0  ;;  %v652_v29 = vmul.f32 0.20019531, %v588_v47 }
  0xfe   :  { %v686_v26 = vpack.c.bf16 %v670_v59, %v669_v4  ;;  %v715_v6 = vsel %vm699_vm3, %v2537_v37, %v683_v17  ;;  %v716_v30 = vsel %vm700_vm6, %v2580_v11, %v684_v19  ;;  %vm702_vm10 = vmpackc.low %vm2694_vm7, %vm2684_vm5  ;;  %vm2720_vm11 = vcmp.gt.f32.partialorder %v590_v14, 0.0 }
  0xff   :  { %1010 = vmatmul.bf16.gmra.mxu0 %v804_v16  ;;  %1059 = vmatmul.bf16.gmra.mxu1 %v805_v24  ;;  %v792_v8 = vunpack.c.l.b16 %v715_v6  ;;  %v794_v28 = vunpack.c.l.b16 %v716_v30  ;;  %v793_v54 = vunpack.c.h.b16 %v715_v6  ;;  %v795_v39 = vunpack.c.h.b16 %v716_v30  ;;  %vm694_vm14 = vmpackc.low %vm2720_vm11, %vm2702_vm8 }
 0x100   :  { %1108 = vmatmul.bf16.gmra.mxu2 %v804_v16  ;;  %1157 = vmatmul.bf16.gmra.mxu3 %v805_v24  ;;  %v678_v11 = vpack.c.bf16 %v2543_v46, %v2486_v56  ;;  %v717_v18 = vsel %vm701_vm9, %v2610_v3, %v685_v20  ;;  %v718_v31 = vsel %vm702_vm10, %v574_v61, %v686_v26  ;;  %vm619_vm12 = vcmp.gt.f32.partialorder %v587_v43, 0.0  ;;  %v1206_v26 = vld [vmem:[#allocation1] sm:$0xff] }
 0x101   :  { %v812_v32 = vpack.c.b16 %v794_v28, %v792_v8  ;;  %v813_v33 = vpack.c.b16 %v795_v39, %v793_v54  ;;  %v796_v36 = vunpack.c.l.b16 %v717_v18  ;;  %v798_v21 = vunpack.c.l.b16 %v718_v31 }
 0x102   :  { %v797_v38 = vunpack.c.h.b16 %v717_v18  ;;  %v799_v58 = vunpack.c.h.b16 %v718_v31  ;;  %vm620_vm13 = vcmp.gt.f32.partialorder %v588_v47, 0.0  ;;  %v677_v14 = vpack.c.bf16 %v652_v29, %v651_v23 }
 0x103   :  { %v814_v41 = vpack.c.b16 %v798_v21, %v796_v36  ;;  %v710_v46 = vsel %vm694_vm14, %v2448_v40, %v678_v11  ;;  %vm693_vm15 = vmpackc.low %vm620_vm13, %vm619_vm12  ;;  %v1208_v28 = vpack.i.b16 %v1206_v26, %v1206_v26  ;;  %v1211_v54 = vpack.i.b16 %v1207_v27, %v1207_v27 }
 0x104   :  { %v815_v56 = vpack.c.b16 %v799_v58, %v797_v38  ;;  %v709_v3 = vsel %vm693_vm15, %v2442_v35, %v677_v14  ;;  %v782_v12 = vunpack.c.l.b16 %v710_v46  ;;  %v783_v45 = vunpack.c.h.b16 %v710_v46 }
 0x105   :  { %v780_v0 = vunpack.c.l.b16 %v709_v3  ;;  %v781_v43 = vunpack.c.h.b16 %v709_v3  ;;  %v1210_v39 = vperm.slane %v1208_v28, 0  ;;  %v1213_v37 = vperm.slane %v1211_v54, 0 }
 0x107   :  { %v806_v49 = vpack.c.b16 %v782_v12, %v780_v0  ;;  %v807_v57 = vpack.c.b16 %v783_v45, %v781_v43  ;;  %v2751_v21 = vunpack.c.l.bf16 %v1210_v39  ;;  %v2753_v38 = vunpack.c.l.bf16 %v1213_v37 }
 0x10f   :  { %1015 = vmatmul.bf16.gmra.mxu0 %v806_v49  ;;  %1064 = vmatmul.bf16.gmra.mxu1 %v807_v57 }
 0x110   :  { %1113 = vmatmul.bf16.gmra.mxu2 %v806_v49  ;;  %1162 = vmatmul.bf16.gmra.mxu3 %v807_v57 }
 0x11f   :  { %1020 = vmatmul.bf16.gmra.mxu0 %v2539_v34  ;;  %1069 = vmatmul.bf16.gmra.mxu1 %v2550_v51 }
 0x120   :  { %1118 = vmatmul.bf16.gmra.mxu2 %v2539_v34  ;;  %1167 = vmatmul.bf16.gmra.mxu3 %v2550_v51 }
 0x12f   :  { %1025 = vmatmul.bf16.gmra.mxu0 %v2639_v50  ;;  %1074 = vmatmul.bf16.gmra.mxu1 %v2662_v5 }
 0x130   :  { %1123 = vmatmul.bf16.gmra.mxu2 %v2639_v50  ;;  %1172 = vmatmul.bf16.gmra.mxu3 %v2662_v5 }
 0x13f   :  { %1030 = vmatmul.bf16.gmra.mxu0 %v812_v32  ;;  %1079 = vmatmul.bf16.gmra.mxu1 %v813_v33 }
 0x140   :  { %1128 = vmatmul.bf16.gmra.mxu2 %v812_v32  ;;  %1177 = vmatmul.bf16.gmra.mxu3 %v813_v33 }
 0x14f   :  { %1035 = vmatmul.bf16.gmra.mxu0 %v814_v41  ;;  %1084 = vmatmul.bf16.gmra.mxu1 %v815_v56 }
 0x150   :  { %1133 = vmatmul.bf16.gmra.mxu2 %v814_v41  ;;  %1182 = vmatmul.bf16.gmra.mxu3 %v815_v56 }
 0x15c   :  { %v1001_v35 = vpop.f32.mrf.mxu0  ;;  %v1050_v40 = vpop.f32.mrf.mxu1 }
 0x15d   :  { %v1051_v47 = vadd.f32 %v1050_v40, %v1001_v35 }
 0x163   :  { %v1099_v34 = vpop.f32.mrf.mxu2  ;;  %v1148_v51 = vpop.f32.mrf.mxu3 }
 0x164   :  { %v1149_v60 = vadd.f32 %v1148_v51, %v1099_v34  ;;  %v1003_v61 = vpop.f32.mrf.mxu0  ;;  %v1052_v22 = vpop.f32.mrf.mxu1 }
 0x165   :  { %v1053_v55 = vadd.f32 %v1052_v22, %v1003_v61 }
 0x166   :  { %v1188_v50 = vpack.c.bf16 %v1149_v60, %v1051_v47 }
 0x168   :  { %v1214_v33 = vunpack.c.l.bf16 %v1188_v50  ;;  %v1215_v36 = vunpack.c.h.bf16 %v1188_v50 }
 0x16a   :  { %v1248_v58 = vadd.f32 %v2751_v21, %v1214_v33  ;;  %v1249_v14 = vadd.f32 %v2753_v38, %v1215_v36 }
 0x16b   :  { %v1101_v62 = vpop.f32.mrf.mxu2  ;;  %v1150_v1 = vpop.f32.mrf.mxu3 }
 0x16c   :  { %v1151_v5 = vadd.f32 %v1150_v1, %v1101_v62  ;;  %v1006_v48 = vpop.f32.mrf.mxu0  ;;  %v1055_v52 = vpop.f32.mrf.mxu1  ;;  %v1280_v49 = vpack.c.bf16 %v1249_v14, %v1248_v58 }
 0x16d   :  { %v1056_v53 = vadd.f32 %v1055_v52, %v1006_v48 }
 0x16e   :  { %v1189_v42 = vpack.c.bf16 %v1151_v5, %v1053_v55  ;;  %v1296_v22 = vunpack.c.l.bf16 %v1280_v49  ;;  %v1297_v55 = vunpack.c.h.bf16 %v1280_v49 }
 0x170   :  { %v1216_v41 = vunpack.c.l.bf16 %v1189_v42  ;;  %v1217_v3 = vunpack.c.h.bf16 %v1189_v42  ;;  %vm2775_vm0 = vcmp.gt.f32.partialorder %v1296_v22, 0.0  ;;  %vm2779_vm1 = vcmp.gt.f32.partialorder %v1297_v55, 0.0 }
 0x171   :  { %vm1408_vm2 = vmpackc.low %vm2779_vm1, %vm2775_vm0 }
 0x172   :  { %v1250_v35 = vadd.f32 %v2751_v21, %v1216_v41  ;;  %v1251_v47 = vadd.f32 %v2753_v38, %v1217_v3 }
 0x173   :  { %v1104_v63 = vpop.f32.mrf.mxu2  ;;  %v1153_v2 = vpop.f32.mrf.mxu3 }
 0x174   :  { %v1154_v13 = vadd.f32 %v1153_v2, %v1104_v63  ;;  %v1008_v15 = vpop.f32.mrf.mxu0  ;;  %v1057_v7 = vpop.f32.mrf.mxu1  ;;  %v2763_v1 = vpack.c.bf16 %v1251_v47, %v1250_v35 }
 0x175   :  { %v1058_v9 = vadd.f32 %v1057_v7, %v1008_v15  ;;  %v1360_v15 = vmul.f32 0.20019531, %v1296_v22  ;;  %v1361_v7 = vmul.f32 0.20019531, %v1297_v55 }
 0x176   :  { %v1190_v4 = vpack.c.bf16 %v1154_v13, %v1056_v53 }
 0x177   :  { %v1392_v26 = vpack.c.bf16 %v1361_v7, %v1360_v15 }
 0x178   :  { %v1218_v34 = vunpack.c.l.bf16 %v1190_v4  ;;  %v1219_v51 = vunpack.c.h.bf16 %v1190_v4  ;;  %v1298_v4 = vunpack.c.l.bf16 %v2763_v1 }
 0x179   :  { %v2798_v58 = vsel %vm1408_vm2, %v1280_v49, %v1392_v26 }
 0x17a   :  { %v1252_v5 = vadd.f32 %v2751_v21, %v1218_v34  ;;  %v1253_v48 = vadd.f32 %v2753_v38, %v1219_v51  ;;  %v1362_v37 = vmul.f32 0.20019531, %v1298_v4  ;;  %vm2803_vm3 = vcmp.gt.f32.partialorder %v1298_v4, 0.0 }
 0x17b   :  { %v1106_v59 = vpop.f32.mrf.mxu2  ;;  %v1155_v16 = vpop.f32.mrf.mxu3 }
 0x17c   :  { %v1156_v24 = vadd.f32 %v1155_v16, %v1106_v59  ;;  %v1011_v17 = vpop.f32.mrf.mxu0  ;;  %v1060_v19 = vpop.f32.mrf.mxu1  ;;  %v1299_v59 = vunpack.c.h.bf16 %v2763_v1  ;;  %v2769_v16 = vpack.c.bf16 %v1253_v48, %v1252_v5 }
 0x17d   :  { %v1061_v57 = vadd.f32 %v1060_v19, %v1011_v17 }
 0x17e   :  { %v2745_v25 = vpack.c.bf16 %v1156_v24, %v1058_v9  ;;  %v1300_v33 = vunpack.c.l.bf16 %v2769_v16  ;;  %v1301_v14 = vunpack.c.h.bf16 %v2769_v16  ;;  %vm2807_vm4 = vcmp.gt.f32.partialorder %v1299_v59, 0.0 }
 0x17f   :  { %vm1409_vm5 = vmpackc.low %vm2807_vm4, %vm2803_vm3 }
 0x180   :  { %vm2834_vm6 = vcmp.gt.f32.partialorder %v1300_v33, 0.0  ;;  %vm2838_vm7 = vcmp.gt.f32.partialorder %v1301_v14, 0.0 }
 0x181   :  { %vm1410_vm12 = vmpackc.low %vm2838_vm7, %vm2834_vm6 }
 0x183   :  { %v1109_v44 = vpop.f32.mrf.mxu2  ;;  %v1158_v23 = vpop.f32.mrf.mxu3 }
 0x184   :  { %v1013_v10 = vpop.f32.mrf.mxu0  ;;  %v1062_v20 = vpop.f32.mrf.mxu1  ;;  %v1159_v12 = vadd.f32 %v1158_v23, %v1109_v44 }
 0x185   :  { %v1063_v40 = vadd.f32 %v1062_v20, %v1013_v10 }
 0x186   :  { %v1192_v60 = vpack.c.bf16 %v1159_v12, %v1061_v57 }
 0x188   :  { %v1222_v52 = vunpack.c.l.bf16 %v1192_v60  ;;  %v1223_v63 = vunpack.c.h.bf16 %v1192_v60 }
 0x18a   :  { %v1256_v24 = vadd.f32 %v2751_v21, %v1222_v52  ;;  %v1257_v17 = vadd.f32 %v2753_v38, %v1223_v63 }
 0x18b   :  { %v1111_v29 = vpop.f32.mrf.mxu2  ;;  %v1160_v6 = vpop.f32.mrf.mxu3 }
 0x18c   :  { %v1016_v30 = vpop.f32.mrf.mxu0  ;;  %v1065_v8 = vpop.f32.mrf.mxu1  ;;  %v1161_v43 = vadd.f32 %v1160_v6, %v1111_v29  ;;  %v1220_v29 = vunpack.c.l.bf16 %v2745_v25  ;;  %v1221_v6 = vunpack.c.h.bf16 %v2745_v25  ;;  %v2794_v36 = vpack.c.bf16 %v1257_v17, %v1256_v24 }
 0x18d   :  { %v1066_v23 = vadd.f32 %v1065_v8, %v1016_v30 }
 0x18e   :  { %v1193_v61 = vpack.c.bf16 %v1161_v43, %v1063_v40  ;;  %v1254_v3 = vadd.f32 %v2751_v21, %v1220_v29  ;;  %v1255_v12 = vadd.f32 %v2753_v38, %v1221_v6  ;;  %v2811_v40 = vmul.f32 0.20019531, %v1300_v33 }
 0x18f   :  { %v1304_v47 = vunpack.c.l.bf16 %v2794_v36  ;;  %v1305_v34 = vunpack.c.h.bf16 %v2794_v36 }
 0x190   :  { %v1224_v2 = vunpack.c.l.bf16 %v1193_v61  ;;  %v1225_v13 = vunpack.c.h.bf16 %v1193_v61 }
 0x191   :  { %v1369_v24 = vmul.f32 0.20019531, %v1305_v34  ;;  %vm2851_vm8 = vcmp.gt.f32.partialorder %v1304_v47, 0.0  ;;  %vm2855_vm9 = vcmp.gt.f32.partialorder %v1305_v34, 0.0 }
 0x192   :  { %v1258_v19 = vadd.f32 %v2751_v21, %v1224_v2  ;;  %v1259_v44 = vadd.f32 %v2753_v38, %v1225_v13  ;;  %v1440_v2 = vunpack.c.l.bf16 %v2798_v58  ;;  %v1441_v13 = vunpack.c.h.bf16 %v2798_v58  ;;  %vm1412_vm13 = vmpackc.low %vm2855_vm9, %vm2851_vm8 }
 0x193   :  { %v1114_v11 = vpop.f32.mrf.mxu2  ;;  %v1163_v18 = vpop.f32.mrf.mxu3 }
 0x194   :  { %v2747_v31 = vpop.f32.mrf.mxu0  ;;  %v2749_v32 = vpop.f32.mrf.mxu1  ;;  %v1164_v9 = vadd.f32 %v1163_v18, %v1114_v11  ;;  %v1363_v11 = vmul.f32 0.20019531, %v1299_v59  ;;  %v2796_v25 = vpack.c.bf16 %v1259_v44, %v1258_v19  ;;  %v1368_v59 = vmul.f32 0.20019531, %v1304_v47 }
 0x196   :  { %v1194_v28 = vpack.c.bf16 %v1164_v9, %v1066_v23  ;;  %v1393_v35 = vpack.c.bf16 %v1363_v11, %v1362_v37  ;;  %v1306_v51 = vunpack.c.l.bf16 %v2796_v25  ;;  %v1307_v60 = vunpack.c.h.bf16 %v2796_v25 }
 0x197   :  { %v1068_v37 = vadd.f32 %v2749_v32, %v2747_v31 }
 0x198   :  { %v1370_v17 = vmul.f32 0.20019531, %v1306_v51  ;;  %v1371_v19 = vmul.f32 0.20019531, %v1307_v60  ;;  %vm2861_vm10 = vcmp.gt.f32.partialorder %v1306_v51, 0.0  ;;  %vm2865_vm11 = vcmp.gt.f32.partialorder %v1307_v60, 0.0 }
 0x199   :  { %vm1413_vm14 = vmpackc.low %vm2865_vm11, %vm2861_vm10 }
 0x19b   :  { %v2757_v56 = vpop.f32.mrf.mxu2  ;;  %v2759_v46 = vpop.f32.mrf.mxu3 }
 0x19c   :  { %v1021_v45 = vpop.f32.mrf.mxu0  ;;  %v1070_v0 = vpop.f32.mrf.mxu1  ;;  %v1166_v26 = vadd.f32 %v2759_v46, %v2757_v56  ;;  %v1397_v46 = vpack.c.bf16 %v1371_v19, %v1370_v17 }
 0x19d   :  { %v1071_v30 = vadd.f32 %v1070_v0, %v1021_v45  ;;  %v1226_v45 = vunpack.c.l.bf16 %v1194_v28  ;;  %v1227_v0 = vunpack.c.h.bf16 %v1194_v28 }
 0x19e   :  { %v1195_v32 = vpack.c.bf16 %v1166_v26, %v1068_v37  ;;  %v1429_v51 = vsel %vm1413_vm14, %v2796_v25, %v1397_v46 }
 0x19f   :  { %v1260_v5 = vadd.f32 %v2751_v21, %v1226_v45  ;;  %v1261_v48 = vadd.f32 %v2753_v38, %v1227_v0  ;;  %v1450_v9 = vunpack.c.l.bf16 %v1429_v51 }
 0x1a1   :  { %v2846_v20 = vpack.c.bf16 %v1261_v48, %v1260_v5  ;;  %v1229_v5 = vunpack.c.h.bf16 %v1195_v32 }
 0x1a3   :  { %v1119_v50 = vpop.f32.mrf.mxu2  ;;  %v1168_v62 = vpop.f32.mrf.mxu3  ;;  %v1309_v31 = vunpack.c.h.bf16 %v2846_v20 }
 0x1a4   :  { %v1023_v53 = vpop.f32.mrf.mxu0  ;;  %v1072_v42 = vpop.f32.mrf.mxu1  ;;  %v1169_v27 = vadd.f32 %v1168_v62, %v1119_v50  ;;  %v1365_v50 = vmul.f32 0.20019531, %v1301_v14  ;;  %v2821_v62 = vpack.c.bf16 %v1255_v12, %v1254_v3  ;;  %v1308_v14 = vunpack.c.l.bf16 %v2846_v20 }
 0x1a5   :  { %v1073_v55 = vadd.f32 %v1072_v42, %v1023_v53  ;;  %v2828_v53 = vsel %vm1409_vm5, %v2763_v1, %v1393_v35  ;;  %vm2921_vm0 = vcmp.gt.f32.partialorder %v1309_v31, 0.0 }
 0x1a6   :  { %v1196_v41 = vpack.c.bf16 %v1169_v27, %v1071_v30  ;;  %v1394_v23 = vpack.c.bf16 %v1365_v50, %v2811_v40  ;;  %v1302_v10 = vunpack.c.l.bf16 %v2821_v62  ;;  %v1303_v27 = vunpack.c.h.bf16 %v2821_v62 }
 0x1a7   :  { %v1442_v35 = vunpack.c.l.bf16 %v2828_v53  ;;  %v1228_v50 = vunpack.c.l.bf16 %v1195_v32  ;;  %vm2917_vm15 = vcmp.gt.f32.partialorder %v1308_v14, 0.0 }
 0x1a8   :  { %v1230_v61 = vunpack.c.l.bf16 %v1196_v41  ;;  %v1231_v22 = vunpack.c.h.bf16 %v1196_v41  ;;  %v2881_v45 = vmul.f32 0.20019531, %v1302_v10  ;;  %v2885_v0 = vmul.f32 0.20019531, %v1303_v27  ;;  %vm1414_vm2 = vmpackc.low %vm2921_vm0, %vm2917_vm15 }
 0x1a9   :  { %v2901_v40 = vsel %vm1410_vm12, %v2769_v16, %v1394_v23  ;;  %vm3030_vm14 = vcmp.gt.f32.partialorder %v1303_v27, 0.0 }
 0x1aa   :  { %v1264_v1 = vadd.f32 %v2751_v21, %v1230_v61  ;;  %v1265_v44 = vadd.f32 %v2753_v38, %v1231_v22  ;;  %v1372_v22 = vmul.f32 0.20019531, %v1308_v14  ;;  %v1444_v16 = vunpack.c.l.bf16 %v2901_v40 }
 0x1ab   :  { %v1121_v54 = vpop.f32.mrf.mxu2  ;;  %v1170_v39 = vpop.f32.mrf.mxu3  ;;  %v1445_v48 = vunpack.c.h.bf16 %v2901_v40 }
 0x1ac   :  { %v2785_v8 = vpop.f32.mrf.mxu0  ;;  %v2787_v18 = vpop.f32.mrf.mxu1  ;;  %v1171_v49 = vadd.f32 %v1170_v39, %v1121_v54  ;;  %v1396_v39 = vpack.c.bf16 %v1369_v24, %v1368_v59  ;;  %v2869_v33 = vpack.c.bf16 %v1265_v44, %v1264_v1  ;;  %v1262_v1 = vadd.f32 %v2751_v21, %v1228_v50 }
 0x1ad   :  { %v1076_v41 = vadd.f32 %v2787_v18, %v2785_v8  ;;  %v1263_v44 = vadd.f32 %v2753_v38, %v1229_v5 }
 0x1ae   :  { %v1197_v42 = vpack.c.bf16 %v1171_v49, %v1073_v55  ;;  %v1443_v49 = vunpack.c.h.bf16 %v2828_v53  ;;  %v1428_v34 = vsel %vm1412_vm13, %v2794_v36, %v1396_v39  ;;  %v1312_v60 = vunpack.c.l.bf16 %v2869_v33 }
 0x1af   :  { %v1313_v61 = vunpack.c.h.bf16 %v2869_v33  ;;  %v1373_v55 = vmul.f32 0.20019531, %v1309_v31  ;;  %v1448_v36 = vunpack.c.l.bf16 %v1428_v34  ;;  %v1449_v53 = vunpack.c.h.bf16 %v1428_v34 }
 0x1b0   :  { %v1232_v6 = vunpack.c.l.bf16 %v1197_v42  ;;  %v1233_v28 = vunpack.c.h.bf16 %v1197_v42  ;;  %v1376_v59 = vmul.f32 0.20019531, %v1312_v60  ;;  %v1451_v39 = vunpack.c.h.bf16 %v1429_v51 }
 0x1b1   :  { %v1377_v24 = vmul.f32 0.20019531, %v1313_v61  ;;  %v1398_v19 = vpack.c.bf16 %v1373_v55, %v1372_v22  ;;  %vm2929_vm1 = vcmp.gt.f32.partialorder %v1312_v60, 0.0  ;;  %vm2939_vm3 = vcmp.gt.f32.partialorder %v1313_v61, 0.0 }
 0x1b2   :  { %v1266_v43 = vadd.f32 %v2751_v21, %v1232_v6  ;;  %v1267_v57 = vadd.f32 %v2753_v38, %v1233_v28  ;;  %v2956_v61 = vmax.f32 %v1443_v49, %v1451_v39  ;;  %vm1416_vm4 = vmpackc.low %vm2939_vm3, %vm2929_vm1  ;;  %vm3024_vm13 = vcmp.gt.f32.partialorder %v1302_v10, 0.0 }
 0x1b3   :  { %v1124_v52 = vpop.f32.mrf.mxu2  ;;  %v1173_v63 = vpop.f32.mrf.mxu3  ;;  %v1400_v46 = vpack.c.bf16 %v1377_v24, %v1376_v59 }
 0x1b4   :  { %v2830_v15 = vpop.f32.mrf.mxu0  ;;  %v2832_v7 = vpop.f32.mrf.mxu1  ;;  %v1174_v11 = vadd.f32 %v1173_v63, %v1124_v52  ;;  %v1395_v52 = vpack.c.bf16 %v2885_v0, %v2881_v45  ;;  %v2915_v63 = vpack.c.bf16 %v1267_v57, %v1266_v43  ;;  %v1472_v43 = vmax.f32 %v1440_v2, %v1448_v36 }
 0x1b5   :  { %v2946_v57 = vsel %vm1414_vm2, %v2846_v20, %v1398_v19 }
 0x1b6   :  { %v1198_v47 = vpack.c.bf16 %v1174_v11, %v1076_v41  ;;  %v1314_v29 = vunpack.c.l.bf16 %v2915_v63  ;;  %v1315_v6 = vunpack.c.h.bf16 %v2915_v63  ;;  %v1452_v58 = vunpack.c.l.bf16 %v2946_v57 }
 0x1b8   :  { %v1234_v25 = vunpack.c.l.bf16 %v1198_v47  ;;  %v1235_v42 = vunpack.c.h.bf16 %v1198_v47  ;;  %v1378_v47 = vmul.f32 0.20019531, %v1314_v29  ;;  %v1379_v34 = vmul.f32 0.20019531, %v1315_v6 }
 0x1b9   :  { %vm2970_vm5 = vcmp.gt.f32.partialorder %v1314_v29, 0.0  ;;  %vm2974_vm6 = vcmp.gt.f32.partialorder %v1315_v6, 0.0 }
 0x1ba   :  { %v1268_v11 = vadd.f32 %v2751_v21, %v1234_v25  ;;  %v1269_v30 = vadd.f32 %v2753_v38, %v1235_v42  ;;  %v1453_v25 = vunpack.c.h.bf16 %v2946_v57  ;;  %vm1417_vm7 = vmpackc.low %vm2974_vm6, %vm2970_vm5 }
 0x1bb   :  { %v1126_v3 = vpop.f32.mrf.mxu2  ;;  %v1175_v12 = vpop.f32.mrf.mxu3 }
 0x1bc   :  { %v1031_v8 = vpop.f32.mrf.mxu0  ;;  %v1080_v18 = vpop.f32.mrf.mxu1  ;;  %v1176_v14 = vadd.f32 %v1175_v12, %v1126_v3  ;;  %v1475_v3 = vmax.f32 %v1441_v13, %v1449_v53  ;;  %v2954_v12 = vmax.f32 %v1442_v35, %v1450_v9  ;;  %v2962_v2 = vpack.c.bf16 %v1269_v30, %v1268_v11 }
 0x1bd   :  { %v1081_v28 = vadd.f32 %v1080_v18, %v1031_v8  ;;  %v2948_v8 = vpack.c.bf16 %v1263_v44, %v1262_v1  ;;  %v1078_v18 = vadd.f32 %v2832_v7, %v2830_v15  ;;  %v1432_v15 = vsel %vm1416_vm4, %v2869_v33, %v1400_v46 }
 0x1be   :  { %v1401_v33 = vpack.c.bf16 %v1379_v34, %v1378_v47  ;;  %v1456_v42 = vunpack.c.l.bf16 %v1432_v15  ;;  %v1316_v9 = vunpack.c.l.bf16 %v2962_v2  ;;  %v1317_v59 = vunpack.c.h.bf16 %v2962_v2 }
 0x1bf   :  { %v1199_v7 = vpack.c.bf16 %v1176_v14, %v1078_v18  ;;  %v1310_v13 = vunpack.c.l.bf16 %v2948_v8  ;;  %v1311_v35 = vunpack.c.h.bf16 %v2948_v8  ;;  %v1457_v29 = vunpack.c.h.bf16 %v1432_v15 }
 0x1c0   :  { %v2994_v6 = vsel %vm1417_vm7, %v2915_v63, %v1401_v33  ;;  %v1473_v14 = vmax.f32 %v1472_v43, %v1456_v42  ;;  %vm3014_vm11 = vcmp.gt.f32.partialorder %v1316_v9, 0.0  ;;  %vm3018_vm12 = vcmp.gt.f32.partialorder %v1317_v59, 0.0  ;;  %vm1411_vm7 = vmpackc.low %vm3030_vm14, %vm3024_vm13 }
 0x1c1   :  { %v1236_v24 = vunpack.c.l.bf16 %v1199_v7  ;;  %v2983_v1 = vmul.f32 0.20019531, %v1310_v13  ;;  %v2987_v44 = vmul.f32 0.20019531, %v1311_v35  ;;  %v1476_v15 = vmax.f32 %v1475_v3, %v1457_v29  ;;  %vm1418_vm3 = vmpackc.low %vm3018_vm12, %vm3014_vm11 }
 0x1c2   :  { %vm3046_vm1 = vcmp.gt.f32.partialorder %v1310_v13, 0.0  ;;  %vm3054_vm2 = vcmp.gt.f32.partialorder %v1311_v35, 0.0  ;;  %v1487_v10 = vmax.f32 %v1445_v48, %v1453_v25 }
 0x1c3   :  { %v1129_v23 = vpop.f32.mrf.mxu2  ;;  %v1178_v26 = vpop.f32.mrf.mxu3  ;;  %v1270_v63 = vadd.f32 %v2751_v21, %v1236_v24 }
 0x1c4   :  { %v1179_v54 = vadd.f32 %v1178_v26, %v1129_v23  ;;  %v1033_v32 = vpop.f32.mrf.mxu0  ;;  %v1082_v41 = vpop.f32.mrf.mxu1  ;;  %v1237_v23 = vunpack.c.h.bf16 %v1199_v7  ;;  %v1458_v7 = vunpack.c.l.bf16 %v2994_v6 }
 0x1c5   :  { %v1083_v4 = vadd.f32 %v1082_v41, %v1033_v32  ;;  %v1381_v32 = vmul.f32 0.20019531, %v1317_v59 }
 0x1c6   :  { %v1200_v31 = vpack.c.bf16 %v1179_v54, %v1081_v28  ;;  %v1271_v41 = vadd.f32 %v2753_v38, %v1237_v23 }
 0x1c8   :  { %v1238_v51 = vunpack.c.l.bf16 %v1200_v31  ;;  %v1239_v60 = vunpack.c.h.bf16 %v1200_v31  ;;  %v1380_v31 = vmul.f32 0.20019531, %v1316_v9 }
 0x1ca   :  { %v1272_v20 = vadd.f32 %v2751_v21, %v1238_v51  ;;  %v1273_v22 = vadd.f32 %v2753_v38, %v1239_v60 }
 0x1cb   :  { %v1131_v55 = vpop.f32.mrf.mxu2  ;;  %v1180_v50 = vpop.f32.mrf.mxu3 }
 0x1cc   :  { %v1292_v36 = vpack.c.bf16 %v1273_v22, %v1272_v20  ;;  %v1181_v53 = vadd.f32 %v1180_v50, %v1131_v55  ;;  %v1036_v39 = vpop.f32.mrf.mxu0  ;;  %v1085_v37 = vpop.f32.mrf.mxu1  ;;  %v1459_v22 = vunpack.c.h.bf16 %v2994_v6 }
 0x1cd   :  { %v1086_v43 = vadd.f32 %v1085_v37, %v1036_v39 }
 0x1ce   :  { %v1320_v17 = vunpack.c.l.bf16 %v1292_v36  ;;  %v1321_v19 = vunpack.c.h.bf16 %v1292_v36  ;;  %v1201_v26 = vpack.c.bf16 %v1181_v53, %v1083_v4  ;;  %v3034_v4 = vpack.c.bf16 %v1271_v41, %v1270_v63 }
 0x1cf   :  { %v1399_v63 = vpack.c.bf16 %v2987_v44, %v2983_v1 }
 0x1d0   :  { %vm2996_vm8 = vcmp.gt.f32.partialorder %v1320_v17, 0.0  ;;  %vm3000_vm9 = vcmp.gt.f32.partialorder %v1321_v19, 0.0  ;;  %v1384_v11 = vmul.f32 0.20019531, %v1320_v17  ;;  %v1385_v30 = vmul.f32 0.20019531, %v1321_v19 }
 0x1d1   :  { %v1240_v56 = vunpack.c.l.bf16 %v1201_v26  ;;  %v1241_v46 = vunpack.c.h.bf16 %v1201_v26  ;;  %vm1420_vm10 = vmpackc.low %vm3000_vm9, %vm2996_vm8  ;;  %v1318_v13 = vunpack.c.l.bf16 %v3034_v4 }
 0x1d2   :  { %v1404_v18 = vpack.c.bf16 %v1385_v30, %v1384_v11 }
 0x1d3   :  { %v1274_v47 = vadd.f32 %v2751_v21, %v1240_v56  ;;  %v1275_v34 = vadd.f32 %v2753_v38, %v1241_v46  ;;  %v1134_v51 = vpop.f32.mrf.mxu2  ;;  %v1183_v60 = vpop.f32.mrf.mxu3  ;;  %v1319_v46 = vunpack.c.h.bf16 %v3034_v4  ;;  %vm3088_vm8 = vcmp.gt.f32.partialorder %v1318_v13, 0.0 }
 0x1d4   :  { %v1184_v20 = vadd.f32 %v1183_v60, %v1134_v51  ;;  %v1436_v55 = vsel %vm1420_vm10, %v1292_v36, %v1404_v18  ;;  %v1402_v36 = vpack.c.bf16 %v1381_v32, %v1380_v31  ;;  %v1038_v11 = vpop.f32.mrf.mxu0  ;;  %v1087_v30 = vpop.f32.mrf.mxu1  ;;  %vm1415_vm10 = vmpackc.low %vm3054_vm2, %vm3046_vm1 }
 0x1d5   :  { %v1293_v50 = vpack.c.bf16 %v1275_v34, %v1274_v47  ;;  %v1464_v3 = vunpack.c.l.bf16 %v1436_v55  ;;  %v1465_v33 = vunpack.c.h.bf16 %v1436_v55  ;;  %v1479_v47 = vmax.f32 %v2954_v12, %v1458_v7 }
 0x1d6   :  { %v1202_v53 = vpack.c.bf16 %v1184_v20, %v1086_v43  ;;  %v1434_v35 = vsel %vm1418_vm3, %v2962_v2, %v1402_v36  ;;  %v1482_v34 = vmax.f32 %v2956_v61, %v1459_v22  ;;  %v1088_v60 = vadd.f32 %v1087_v30, %v1038_v11 }
 0x1d7   :  { %v1322_v59 = vunpack.c.l.bf16 %v1293_v50  ;;  %v1323_v24 = vunpack.c.h.bf16 %v1293_v50  ;;  %v1474_v17 = vmax.f32 %v1473_v14, %v1464_v3  ;;  %v1477_v19 = vmax.f32 %v1476_v15, %v1465_v33 }
 0x1d8   :  { %v1242_v23 = vunpack.c.l.bf16 %v1202_v53  ;;  %v1243_v26 = vunpack.c.h.bf16 %v1202_v53  ;;  %v1460_v43 = vunpack.c.l.bf16 %v1434_v35  ;;  %v1382_v20 = vmul.f32 0.20019531, %v1318_v13 }
 0x1d9   :  { %vm3036_vm15 = vcmp.gt.f32.partialorder %v1322_v59, 0.0  ;;  %vm3040_vm0 = vcmp.gt.f32.partialorder %v1323_v24, 0.0  ;;  %v1386_v27 = vmul.f32 0.20019531, %v1322_v59  ;;  %v1387_v6 = vmul.f32 0.20019531, %v1323_v24 }
 0x1da   :  { %v1496_v54 = vpack.c.bf16 %v1477_v19, %v1474_v17  ;;  %v1276_v39 = vadd.f32 %v2751_v21, %v1242_v23  ;;  %v1277_v37 = vadd.f32 %v2753_v38, %v1243_v26  ;;  %vm1421_vm4 = vmpackc.low %vm3040_vm0, %vm3036_vm15  ;;  %v1383_v49 = vmul.f32 0.20019531, %v1319_v46 }
 0x1db   :  { %v1405_v14 = vpack.c.bf16 %v1387_v6, %v1386_v27  ;;  %v1136_v31 = vpop.f32.mrf.mxu2  ;;  %v1185_v32 = vpop.f32.mrf.mxu3  ;;  %v1461_v53 = vunpack.c.h.bf16 %v1434_v35  ;;  %vm3092_vm9 = vcmp.gt.f32.partialorder %v1319_v46, 0.0  ;;  %v1427_v23 = vsel %vm1411_vm7, %v2821_v62, %v1395_v52 }
 0x1dc   :  { %1500 = vst [vmem:[%s3140_s7] sm:$0xff] %v1496_v54  ;;  %v1294_v41 = vpack.c.bf16 %v1277_v37, %v1276_v39  ;;  %v1186_v18 = vadd.f32 %v1185_v32, %v1136_v31  ;;  %v1403_v17 = vpack.c.bf16 %v1383_v49, %v1382_v20  ;;  %v1484_v26 = vmax.f32 %v1444_v16, %v1452_v58  ;;  %vm1419_vm12 = vmpackc.low %vm3092_vm9, %vm3088_vm8 }
 0x1dd   :  { %v1437_v51 = vsel %vm1421_vm4, %v1293_v50, %v1405_v14  ;;  %v1488_v0 = vmax.f32 %v1487_v10, %v1461_v53  ;;  %v1446_v48 = vunpack.c.l.bf16 %v1427_v23  ;;  %v1447_v54 = vunpack.c.h.bf16 %v1427_v23 }
 0x1de   :  { %v1466_v1 = vunpack.c.l.bf16 %v1437_v51  ;;  %v1467_v44 = vunpack.c.h.bf16 %v1437_v51  ;;  %v1324_v2 = vunpack.c.l.bf16 %v1294_v41  ;;  %v1325_v15 = vunpack.c.h.bf16 %v1294_v41 }
 0x1df   :  { %v1203_v55 = vpack.c.bf16 %v1186_v18, %v1088_v60  ;;  %v1485_v45 = vmax.f32 %v1484_v26, %v1460_v43  ;;  %v1435_v52 = vsel %vm1419_vm12, %v3034_v4, %v1403_v17 }
 0x1e0   :  { %v1480_v5 = vmax.f32 %v1479_v47, %v1466_v1  ;;  %v1483_v3 = vmax.f32 %v1482_v34, %v1467_v44  ;;  %vm3076_vm5 = vcmp.gt.f32.partialorder %v1324_v2, 0.0  ;;  %vm3080_vm6 = vcmp.gt.f32.partialorder %v1325_v15, 0.0 }
 0x1e1   :  { %v1388_v61 = vmul.f32 0.20019531, %v1324_v2  ;;  %v1389_v7 = vmul.f32 0.20019531, %v1325_v15  ;;  %v1244_v22 = vunpack.c.l.bf16 %v1203_v55  ;;  %v1245_v50 = vunpack.c.h.bf16 %v1203_v55  ;;  %vm1422_vm11 = vmpackc.low %vm3080_vm6, %vm3076_vm5 }
 0x1e2   :  { %v1497_v24 = vpack.c.bf16 %v1483_v3, %v1480_v5  ;;  %v1462_v39 = vunpack.c.l.bf16 %v1435_v52  ;;  %v1463_v37 = vunpack.c.h.bf16 %v1435_v52 }
 0x1e3   :  { %v1406_v42 = vpack.c.bf16 %v1389_v7, %v1388_v61  ;;  %v1278_v9 = vadd.f32 %v2751_v21, %v1244_v22  ;;  %v1279_v19 = vadd.f32 %v2753_v38, %v1245_v50  ;;  %v1431_v21 = vsel %vm1415_vm10, %v2948_v8, %v1399_v63 }
 0x1e4   :  { %1501 = vst [vmem:[%s3140_s7 + $0x8] sm:$0xff] %v1497_v24  ;;  %v1454_v25 = vunpack.c.l.bf16 %v1431_v21  ;;  %v1455_v29 = vunpack.c.h.bf16 %v1431_v21 }
 0x1e5   :  { %v1438_v38 = vsel %vm1422_vm11, %v1294_v41, %v1406_v42  ;;  %v1295_v62 = vpack.c.bf16 %v1279_v19, %v1278_v9 }
 0x1e6   :  { %v1468_v40 = vunpack.c.l.bf16 %v1438_v38  ;;  %v1469_v16 = vunpack.c.h.bf16 %v1438_v38  ;;  %v1490_v56 = vmax.f32 %v1446_v48, %v1454_v25  ;;  %v1493_v13 = vmax.f32 %v1447_v54, %v1455_v29 }
 0x1e7   :  { %v1326_v57 = vunpack.c.l.bf16 %v1295_v62  ;;  %v1327_v58 = vunpack.c.h.bf16 %v1295_v62 }
 0x1e8   :  { %v1486_v27 = vmax.f32 %v1485_v45, %v1468_v40  ;;  %v1489_v8 = vmax.f32 %v1488_v0, %v1469_v16  ;;  %v1491_v46 = vmax.f32 %v1490_v56, %v1462_v39  ;;  %v1494_v14 = vmax.f32 %v1493_v13, %v1463_v37 }
 0x1e9   :  { %vm1358_vm13 = vcmp.gt.f32.partialorder %v1326_v57, 0.0  ;;  %vm1359_vm14 = vcmp.gt.f32.partialorder %v1327_v58, 0.0  ;;  %v1390_v6 = vmul.f32 0.20019531, %v1326_v57  ;;  %v1391_v28 = vmul.f32 0.20019531, %v1327_v58 }
 0x1ea   :  { %v1498_v11 = vpack.c.bf16 %v1489_v8, %v1486_v27  ;;  %vm1423_vm15 = vmpackc.low %vm1359_vm14, %vm1358_vm13 }
 0x1eb   :  { %v1407_v30 = vpack.c.bf16 %v1391_v28, %v1390_v6 }
 0x1ec   :  { %1502 = vst [vmem:[%s3140_s7 + $0x10] sm:$0xff] %v1498_v11 }
 0x1ed   :  { %v1439_v4 = vsel %vm1423_vm15, %v1295_v62, %v1407_v30 }
 0x1ee   :  { %v1470_v31 = vunpack.c.l.bf16 %v1439_v4  ;;  %v1471_v32 = vunpack.c.h.bf16 %v1439_v4 }
 0x1f0   :  { %v1492_v63 = vmax.f32 %v1491_v46, %v1470_v31  ;;  %v1495_v35 = vmax.f32 %v1494_v14, %v1471_v32 }
 0x1f2   :  { %v1499_v41 = vpack.c.bf16 %v1495_v35, %v1492_v63 }
 0x1f4   :  { %1503 = vst [vmem:[%s3140_s7 + $0x18] sm:$0xff] %v1499_v41 }

// kernel: deltaconv_forward.9
= control target key start
LH: loop header
LB: loop body
LE: loop exit
PB: predicated region body
PF: predicated region fallthrough
CT: control target
= control target key end

     0   :  { %s3328_s0 = inlined_call_operand.vmem [shape: f32[2,1,256], index: 0, kind: input, shape index: {}]   ;;  %s3329_s1 = inlined_call_operand.vmem [shape: bf16[2,16,64], index: 1, kind: input, shape index: {}]   ;;  %s3330_s2 = inlined_call_operand.vmem [shape: bf16[2,16,128], index: 2, kind: input, shape index: {}]   ;;  %s3331_s3 = inlined_call_operand.vmem [shape: bf16[2,16,256], index: 3, kind: input, shape index: {}]   ;;  %s3332_s4 = inlined_call_operand.vmem [shape: bf16[64,256], index: 4, kind: input, shape index: {}]   ;;  %s3333_s5 = inlined_call_operand.vmem [shape: bf16[128,256], index: 5, kind: input, shape index: {}]   ;;  %s3334_s6 = inlined_call_operand.vmem [shape: bf16[256,256], index: 6, kind: input, shape index: {}]   ;;  %s3335_s7 = inlined_call_operand.vmem [shape: bf16[256,256], index: 7, kind: input, shape index: {}]   ;;  %s3336_s8 = inlined_call_operand.vmem [shape: bf16[1,256], index: 8, kind: input, shape index: {}]   ;;  %s3337_s9 = inlined_call_operand.vmem [shape: bf16[256,128], index: 9, kind: input, shape index: {}]   ;;  %s3338_s10 = inlined_call_operand.vmem [shape: bf16[1,128], index: 10, kind: input, shape index: {}]   ;;  %s3339_s11 = inlined_call_operand.vmem [shape: bf16[128,128], index: 11, kind: input, shape index: {}]   ;;  %s3340_s12 = inlined_call_operand.vmem [shape: bf16[1,128], index: 12, kind: input, shape index: {}]   ;;  %s3341_s13 = inlined_call_operand.hbm [shape: f32[2,16,128], index: 13, kind: output, shape index: {}]  }
   0x1   :  { %3346 = sst [smem:[#allocation10_spill]] %s3332_s4 }
   0x2   :  { %18 = vsyncpa [#allocation3], 0 }
   0x3   :  { %20 = vsyncpa [#allocation3 + $0x1], 0  ;;  %s2603_s25 = smov 0   ;;  %s2605_s26 = smov 0  }
   0x4   :  { %s2607_s27 = smov 0   ;;  %s2609_s28 = smov 0  }
   0x5   :  { %s2611_s29 = smov 0   ;;  %s2613_s30 = smov 0  }
   0x6 LB: > { %3347 = sst [smem:[#allocation5_spill]] %s2517_s27  ;;  %s1790_s14 = sadd.s32 4294967295, %s2529_s30   ;;  %s2529_s30 = sphi %s2613_s30, %s26_s30   ;;  %s2525_s29 = sphi %s2611_s29, %s3362_s29   ;;  %s2521_s28 = sphi %s2609_s28, %s3358_s28   ;;  %s2517_s27 = sphi %s2607_s27, %s3357_s27   ;;  %s2513_s26 = sphi %s2605_s26, %s3361_s26   ;;  %s2509_s25 = sphi %s2603_s25, %s3360_s25  }
   0x7   : > { %3348 = sst [smem:[#allocation6_spill]] %s2525_s29  ;;  %s1791_s15 = sadd.s32 4294967294, %s2529_s30  }
   0x8   : > { %s38_s16 = sadd.s32 1, %s2525_s29  ;;  %s346_s17 = sadd.s32 1, %s2517_s27 }
   0x9   : > { %p40_p0 = scmp.ge.s32.totalorder %s38_s16, 2  ;;  %p356_p1 = scmp.ne.s32.totalorder %s2517_s27, %s2513_s26 }
   0xa   : > { %p357_p2 = scmp.eq.s32.totalorder %s1790_s14, 1  ;;  %p362_p3 = scmp.ne.s32.totalorder %s2513_s26, %s2509_s25 }
   0xb   : > { %s3364_s16 = smov (%p40_p0, %s38_s16), 0  ;;  %p363_p5 = scmp.eq.s32.totalorder %s1791_s15, 1 }
   0xc   : > { %3349 = sst [smem:[#allocation7_spill]] %s3364_s16  ;;  %p2643_p4 = por %p357_p2, %p356_p1 }
   0xd   : > { %s341_s19 = ssub.s32 %s2525_s29, %s3364_s16  ;;  %p1794_p6 = scmp.ge.s32.totalorder %s2529_s30, 1 }
   0xe   : > { %p344_p7 = scmp.eq.s32.totalorder %s341_s19, 0  ;;  %p2650_p8 = por %p363_p5, %p362_p3 }
   0xf   : > { %p455_p9 = scmp.lt.s32.totalorder %s2529_s30, 3 }
  0x10   : > { %s3351_s20 = scalar_select %p2650_p8, 1, 0 }
  0x11   : > { %s2656_s21 = scalar_select %p344_p7, %s2517_s27, %s346_s17  }
  0x12   : > { %3352 = sst [smem:[#allocation8_spill]] %s3351_s20  ;;  %p456_p10 = pnand %p1794_p6, %p455_p9 }
  0x13   : > { %3353 = sst [smem:[#allocation9_spill]] %s2656_s21  ;;  %p526_p11 = scmp.lt.s32.totalorder (!%p456_p10), %s2521_s28, 1 }
  0x14   : > { %459 = sbr.rel (%p456_p10) target bundleno = 699 (0x2bb), region = 72  ;;  %s3354_s4 = sld [smem:[#allocation10_spill]] (!%p456_p10) }
  0x19   : > { %v1865_v0 = vld [vmem:[%s3333_s5 + $0x70] sm:$0xf]  ;;  %v2302_v1 = vld [vmem:[%s3333_s5 + $0x74] sm:$0xf0]  ;;  %v2301_v2 = vld [vmem:[%s3333_s5 + $0x74] sm:$0xf] }
  0x1a   : > { %v1866_v3 = vor.u32 %v2302_v1, %v1865_v0  ;;  %v1867_v4 = vld [vmem:[%s3333_s5 + $0x78] sm:$0xf0]  ;;  %v1901_v5 = vld [vmem:[%s3354_s4 + $0x30] sm:$0xf]  ;;  %v2285_v6 = vld [vmem:[%s3354_s4 + $0x34] sm:$0xf0] }
  0x1b   : > { %v1870_v7 = vor.u32 %v2301_v2, %v1867_v4  ;;  %v1902_v8 = vor.u32 %v2285_v6, %v1901_v5  ;;  %v2284_v9 = vld [vmem:[%s3354_s4 + $0x34] sm:$0xf]  ;;  %v1903_v10 = vld [vmem:[%s3354_s4 + $0x38] sm:$0xf0]  ;;  %v1857_v11 = vld [vmem:[%s3333_s5 + $0x60] sm:$0xf] }
  0x1c   : > { %677 = vmatpush.bf16.msra.mxu0 %v1866_v3  ;;  %v1906_v12 = vor.u32 %v2284_v9, %v1903_v10  ;;  %v2300_v13 = vld [vmem:[%s3333_s5 + $0x64] sm:$0xf0]  ;;  %v2299_v14 = vld [vmem:[%s3333_s5 + $0x64] sm:$0xf]  ;;  %v1859_v15 = vld [vmem:[%s3333_s5 + $0x68] sm:$0xf0] }
  0x1d   : > { %691 = vmatpush.bf16.msra.mxu1 %v1870_v7  ;;  %758 = vmatpush.bf16.msra.mxu2 %v1902_v8  ;;  %v1858_v16 = vor.u32 %v2300_v13, %v1857_v11  ;;  %v1862_v17 = vor.u32 %v2299_v14, %v1859_v15  ;;  %v1893_v18 = vld [vmem:[%s3354_s4 + $0x20] sm:$0xf]  ;;  %v2283_v19 = vld [vmem:[%s3354_s4 + $0x24] sm:$0xf0]  ;;  %v2282_v20 = vld [vmem:[%s3354_s4 + $0x24] sm:$0xf] }
  0x1e   : > { %772 = vmatpush.bf16.msra.mxu3 %v1906_v12  ;;  %v1894_v21 = vor.u32 %v2283_v19, %v1893_v18  ;;  %v1895_v22 = vld [vmem:[%s3354_s4 + $0x28] sm:$0xf0]  ;;  %v1849_v23 = vld [vmem:[%s3333_s5 + $0x50] sm:$0xf]  ;;  %v2298_v24 = vld [vmem:[%s3333_s5 + $0x54] sm:$0xf0] }
  0x1f   : > { %v1898_v25 = vor.u32 %v2282_v20, %v1895_v22  ;;  %v2297_v26 = vld [vmem:[%s3333_s5 + $0x54] sm:$0xf]  ;;  %v1851_v27 = vld [vmem:[%s3333_s5 + $0x58] sm:$0xf0]  ;;  %v1885_v28 = vld [vmem:[%s3354_s4 + $0x10] sm:$0xf]  ;;  %v1850_v29 = vor.u32 %v2298_v24, %v1849_v23 }
  0x20   : > { %678 = vmatpush.bf16.msra.mxu0 %v1858_v16  ;;  %v2281_v30 = vld [vmem:[%s3354_s4 + $0x14] sm:$0xf0]  ;;  %v2280_v31 = vld [vmem:[%s3354_s4 + $0x14] sm:$0xf]  ;;  %v1887_v32 = vld [vmem:[%s3354_s4 + $0x18] sm:$0xf0]  ;;  %v1854_v33 = vor.u32 %v2297_v26, %v1851_v27 }
  0x21   : > { %692 = vmatpush.bf16.msra.mxu1 %v1862_v17  ;;  %759 = vmatpush.bf16.msra.mxu2 %v1894_v21  ;;  %v1886_v34 = vor.u32 %v2281_v30, %v1885_v28  ;;  %v1841_v35 = vld [vmem:[%s3333_s5 + $0x40] sm:$0xf]  ;;  %v2296_v36 = vld [vmem:[%s3333_s5 + $0x44] sm:$0xf0]  ;;  %v2295_v37 = vld [vmem:[%s3333_s5 + $0x44] sm:$0xf]  ;;  %v1890_v38 = vor.u32 %v2280_v31, %v1887_v32 }
  0x22   : > { %773 = vmatpush.bf16.msra.mxu3 %v1898_v25  ;;  %v1843_v39 = vld [vmem:[%s3333_s5 + $0x48] sm:$0xf0]  ;;  %v1877_v40 = vld [vmem:[%s3354_s4] sm:$0xf]  ;;  %v2279_v41 = vld [vmem:[%s3354_s4 + $0x4] sm:$0xf0]  ;;  %v1842_v45 = vor.u32 %v2296_v36, %v1841_v35 }
  0x23   : > { %v2278_v42 = vld [vmem:[%s3354_s4 + $0x4] sm:$0xf]  ;;  %v1879_v43 = vld [vmem:[%s3354_s4 + $0x8] sm:$0xf0]  ;;  %v1975_v44 = vld [vmem:[%s3334_s6 + $0x70] sm:$0xf]  ;;  %v1846_v49 = vor.u32 %v2295_v37, %v1843_v39  ;;  %v1878_v50 = vor.u32 %v2279_v41, %v1877_v40 }
  0x24   : > { %679 = vmatpush.bf16.msra.mxu0 %v1850_v29  ;;  %v2320_v46 = vld [vmem:[%s3334_s6 + $0x74] sm:$0xf0]  ;;  %v2039_v47 = vld [vmem:[%s3334_s6 + $0xf0] sm:$0xf]  ;;  %v1882_v53 = vor.u32 %v2278_v42, %v1879_v43  ;;  %v2293_v55 = vld [vmem:[%s3333_s5 + $0x34] sm:$0xf] }
  0x25   : > { %v2336_v48 = vld [vmem:[%s3334_s6 + $0xf4] sm:$0xf0]  ;;  %693 = vmatpush.bf16.msra.mxu1 %v1854_v33  ;;  %760 = vmatpush.bf16.msra.mxu2 %v1886_v34  ;;  %v1833_v51 = vld [vmem:[%s3333_s5 + $0x30] sm:$0xf]  ;;  %v1976_v54 = vor.u32 %v2320_v46, %v1975_v44  ;;  %v1835_v56 = vld [vmem:[%s3333_s5 + $0x38] sm:$0xf0] }
  0x26   : > { %v2294_v52 = vld [vmem:[%s3333_s5 + $0x34] sm:$0xf0]  ;;  %774 = vmatpush.bf16.msra.mxu3 %v1890_v38  ;;  %v2040_v57 = vor.u32 %v2336_v48, %v2039_v47  ;;  %v1967_v58 = vld [vmem:[%s3334_s6 + $0x60] sm:$0xf]  ;;  %v2318_v59 = vld [vmem:[%s3334_s6 + $0x64] sm:$0xf0]  ;;  %v1838_v63 = vor.u32 %v2293_v55, %v1835_v56 }
  0x27   : > { %v1834_v60 = vor.u32 %v2294_v52, %v1833_v51  ;;  %v2031_v61 = vld [vmem:[%s3334_s6 + $0xe0] sm:$0xf]  ;;  %v2334_v62 = vld [vmem:[%s3334_s6 + $0xe4] sm:$0xf0]  ;;  %v1968_v2 = vor.u32 %v2318_v59, %v1967_v58  ;;  %v2291_v3 = vld [vmem:[%s3333_s5 + $0x24] sm:$0xf] }
  0x28   : > { %680 = vmatpush.bf16.msra.mxu0 %v1842_v45  ;;  %v1825_v0 = vld [vmem:[%s3333_s5 + $0x20] sm:$0xf]  ;;  %v2292_v1 = vld [vmem:[%s3333_s5 + $0x24] sm:$0xf0]  ;;  %v1827_v4 = vld [vmem:[%s3333_s5 + $0x28] sm:$0xf0]  ;;  %v2032_v5 = vor.u32 %v2334_v62, %v2031_v61 }
  0x29   : > { %694 = vmatpush.bf16.msra.mxu1 %v1846_v49  ;;  %761 = vmatpush.bf16.msra.mxu2 %v1878_v50  ;;  %v1959_v6 = vld [vmem:[%s3334_s6 + $0x50] sm:$0xf]  ;;  %v2316_v7 = vld [vmem:[%s3334_s6 + $0x54] sm:$0xf0]  ;;  %v1826_v8 = vor.u32 %v2292_v1, %v1825_v0  ;;  %v1830_v11 = vor.u32 %v2291_v3, %v1827_v4  ;;  %v2289_v14 = vld [vmem:[%s3333_s5 + $0x14] sm:$0xf] }
  0x2a   : > { %775 = vmatpush.bf16.msra.mxu3 %v1882_v53  ;;  %v2023_v9 = vld [vmem:[%s3334_s6 + $0xd0] sm:$0xf]  ;;  %v2332_v10 = vld [vmem:[%s3334_s6 + $0xd4] sm:$0xf0]  ;;  %v1960_v15 = vor.u32 %v2316_v7, %v1959_v6  ;;  %v1819_v16 = vld [vmem:[%s3333_s5 + $0x18] sm:$0xf0] }
  0x2b   : > { %v1817_v12 = vld [vmem:[%s3333_s5 + $0x10] sm:$0xf]  ;;  %v2290_v13 = vld [vmem:[%s3333_s5 + $0x14] sm:$0xf0]  ;;  %v1951_v17 = vld [vmem:[%s3334_s6 + $0x40] sm:$0xf]  ;;  %v2024_v18 = vor.u32 %v2332_v10, %v2023_v9  ;;  %v1822_v25 = vor.u32 %v2289_v14, %v1819_v16 }
  0x2c   : > { %681 = vmatpush.bf16.msra.mxu0 %v1834_v60  ;;  %v2314_v19 = vld [vmem:[%s3334_s6 + $0x44] sm:$0xf0]  ;;  %v2015_v20 = vld [vmem:[%s3334_s6 + $0xc0] sm:$0xf]  ;;  %v1818_v22 = vor.u32 %v2290_v13, %v1817_v12  ;;  %s2846_s19 = scalar_select %p526_p11, %s2521_s28, 1  ;;  %vm750_vm0 = vcmask 523264  }
  0x2d   : > { %986 = vmatpush.bf16.msrb.mxu2 %v1976_v54  ;;  %695 = vmatpush.bf16.msra.mxu1 %v1838_v63  ;;  %v2330_v21 = vld [vmem:[%s3334_s6 + $0xc4] sm:$0xf0]  ;;  %v1809_v23 = vld [vmem:[%s3333_s5] sm:$0xf]  ;;  %v2287_v26 = vld [vmem:[%s3333_s5 + $0x4] sm:$0xf]  ;;  %v1952_v29 = vor.u32 %v2314_v19, %v1951_v17 }
  0x2e   : > { %1000 = vmatpush.bf16.msrb.mxu3 %v2040_v57  ;;  %v2288_v24 = vld [vmem:[%s3333_s5 + $0x4] sm:$0xf0]  ;;  %v1811_v27 = vld [vmem:[%s3333_s5 + $0x8] sm:$0xf0]  ;;  %v1943_v28 = vld [vmem:[%s3334_s6 + $0x30] sm:$0xf]  ;;  %v2016_v32 = vor.u32 %v2330_v21, %v2015_v20 }
  0x2f   : > { %s2274_s14 = sshll.u32 %s2846_s19, 3  ;;  %v2319_v30 = vld [vmem:[%s3334_s6 + $0x74] sm:$0xf]  ;;  %v1977_v31 = vld [vmem:[%s3334_s6 + $0x78] sm:$0xf0]  ;;  %v1810_v36 = vor.u32 %v2288_v24, %v1809_v23  ;;  %v1814_v40 = vor.u32 %v2287_v26, %v1811_v27  ;;  %s2276_s21 = sshll.u32 %s2846_s19, 4 }
  0x30   : > { %682 = vmatpush.bf16.msra.mxu0 %v1826_v8  ;;  %s538_s22 = scalar_lea.vmem %s3329_s1, %s2274_s14  ;;  %v2312_v33 = vld [vmem:[%s3334_s6 + $0x34] sm:$0xf0]  ;;  %v2335_v34 = vld [vmem:[%s3334_s6 + $0xf4] sm:$0xf]  ;;  %v2041_v35 = vld [vmem:[%s3334_s6 + $0xf8] sm:$0xf0]  ;;  %s548_s4 = scalar_lea.vmem %s3330_s2, %s2274_s14  ;;  %v1980_v41 = vor.u32 %v2319_v30, %v1977_v31 }
  0x31   : > { %987 = vmatpush.bf16.msrb.mxu2 %v1968_v2  ;;  %696 = vmatpush.bf16.msra.mxu1 %v1830_v11  ;;  %v2277_v37 = vld [vmem:[%s538_s22] sm:$0xff]  ;;  %v2007_v38 = vld [vmem:[%s3334_s6 + $0xb0] sm:$0xf]  ;;  %v2328_v39 = vld [vmem:[%s3334_s6 + $0xb4] sm:$0xf0]  ;;  %v1944_v43 = vor.u32 %v2312_v33, %v1943_v28  ;;  %v2044_v44 = vor.u32 %v2335_v34, %v2041_v35  ;;  %s1796_s16 = sshll.u32 %s2846_s19, 1 }
  0x32   : > { %1001 = vmatpush.bf16.msrb.mxu3 %v2032_v5  ;;  %v1935_v42 = vld [vmem:[%s3334_s6 + $0x20] sm:$0xf]  ;;  %v2310_v45 = vld [vmem:[%s3334_s6 + $0x24] sm:$0xf0]  ;;  %v2317_v46 = vld [vmem:[%s3334_s6 + $0x64] sm:$0xf]  ;;  %1907 = vmatmul.msk.bf16.vlgmr.msra.gmra.mxu2 %vm750_vm0, %v2277_v37  ;;  %v2008_v48 = vor.u32 %v2328_v39, %v2007_v38  ;;  %s529_s29 = scalar_lea.vmem %s3328_s0, %s1796_s16 }
  0x33   : > { %1908 = vmatmul.msk.bf16.vlgmr.msra.gmra.mxu3 %vm750_vm0, %v2277_v37  ;;  %v1969_v47 = vld [vmem:[%s3334_s6 + $0x68] sm:$0xf0]  ;;  %v2333_v49 = vld [vmem:[%s3334_s6 + $0xe4] sm:$0xf]  ;;  %v1999_v52 = vld [vmem:[%s3334_s6 + $0xa0] sm:$0xf]  ;;  %v1936_v55 = vor.u32 %v2310_v45, %v1935_v42 }
  0x34   : > { %683 = vmatpush.bf16.msra.mxu0 %v1818_v22  ;;  %v2033_v50 = vld [vmem:[%s3334_s6 + $0xe8] sm:$0xf0]  ;;  %v2286_v51 = vld [vmem:[%s548_s4] sm:$0xff]  ;;  %v2326_v53 = vld [vmem:[%s3334_s6 + $0xa4] sm:$0xf0]  ;;  %v1972_v54 = vor.u32 %v2317_v46, %v1969_v47  ;;  %s559_s4 = scalar_lea.vmem %s3331_s3, %s2276_s21  ;;  %s523_s14 = sand.u32 1, %s2513_s26  }
  0x35   : > { %988 = vmatpush.bf16.msrb.mxu2 %v1960_v15  ;;  %697 = vmatpush.bf16.msra.mxu1 %v1822_v25  ;;  %v2036_v56 = vor.u32 %v2333_v49, %v2033_v50  ;;  %v1927_v57 = vld [vmem:[%s3334_s6 + $0x10] sm:$0xf]  ;;  %v2315_v58 = vld [vmem:[%s3334_s6 + $0x54] sm:$0xf]  ;;  %v1961_v59 = vld [vmem:[%s3334_s6 + $0x58] sm:$0xf0]  ;;  %v2000_v60 = vor.u32 %v2326_v53, %v1999_v52 }
  0x36   : > { %1002 = vmatpush.bf16.msrb.mxu3 %v2024_v18  ;;  %v2308_v61 = vld [vmem:[%s3334_s6 + $0x14] sm:$0xf0]  ;;  %v2331_v62 = vld [vmem:[%s3334_s6 + $0xd4] sm:$0xf]  ;;  %v2025_v63 = vld [vmem:[%s3334_s6 + $0xd8] sm:$0xf0]  ;;  %v1964_v2 = vor.u32 %v2315_v58, %v1961_v59 }
  0x37   : > { %v1991_v0 = vld [vmem:[%s3334_s6 + $0x90] sm:$0xf]  ;;  %v2324_v1 = vld [vmem:[%s3334_s6 + $0x94] sm:$0xf0]  ;;  %v1928_v3 = vor.u32 %v2308_v61, %v1927_v57  ;;  %v2028_v4 = vor.u32 %v2331_v62, %v2025_v63  ;;  %v1919_v5 = vld [vmem:[%s3334_s6] sm:$0xf] }
  0x38   : > { %684 = vmatpush.bf16.msra.mxu0 %v1810_v36  ;;  %v2313_v6 = vld [vmem:[%s3334_s6 + $0x44] sm:$0xf]  ;;  %v1953_v7 = vld [vmem:[%s3334_s6 + $0x48] sm:$0xf0]  ;;  %v1992_v8 = vor.u32 %v2324_v1, %v1991_v0  ;;  %v2306_v9 = vld [vmem:[%s3334_s6 + $0x4] sm:$0xf0] }
  0x39   : > { %989 = vmatpush.bf16.msrb.mxu2 %v1952_v29  ;;  %698 = vmatpush.bf16.msra.mxu1 %v1814_v40  ;;  %v2329_v10 = vld [vmem:[%s3334_s6 + $0xc4] sm:$0xf]  ;;  %v2017_v11 = vld [vmem:[%s3334_s6 + $0xc8] sm:$0xf0]  ;;  %v1983_v12 = vld [vmem:[%s3334_s6 + $0x80] sm:$0xf]  ;;  %v1956_v14 = vor.u32 %v2313_v6, %v1953_v7  ;;  %v1920_v17 = vor.u32 %v2306_v9, %v1919_v5 }
  0x3a   : > { %1003 = vmatpush.bf16.msrb.mxu3 %v2016_v32  ;;  %v2322_v13 = vld [vmem:[%s3334_s6 + $0x84] sm:$0xf0]  ;;  %v1911_v15 = vld [vmem:[%s559_s4] sm:$0xf]  ;;  %v2020_v18 = vor.u32 %v2329_v10, %v2017_v11  ;;  %v2303_v19 = vld [vmem:[%s559_s4 + $0x4] sm:$0xf] }
  0x3b   : > { %685 = vmatmul.bf16.vlgmr.msra.gmra.mxu0 %v2286_v51  ;;  %v2304_v16 = vld [vmem:[%s559_s4 + $0x4] sm:$0xf0]  ;;  %v2311_v20 = vld [vmem:[%s3334_s6 + $0x34] sm:$0xf]  ;;  %v1945_v21 = vld [vmem:[%s3334_s6 + $0x38] sm:$0xf0]  ;;  %v1984_v22 = vor.u32 %v2322_v13, %v1983_v12 }
  0x3c   : > { %1014 = vmatpush.bf16.msrb.mxu0 %v1980_v41  ;;  %699 = vmatmul.bf16.vlgmr.msra.gmra.mxu1 %v2286_v51  ;;  %v1913_v23 = vld [vmem:[%s559_s4 + $0x8] sm:$0xf0]  ;;  %v2327_v24 = vld [vmem:[%s3334_s6 + $0xb4] sm:$0xf]  ;;  %v2009_v25 = vld [vmem:[%s3334_s6 + $0xb8] sm:$0xf0]  ;;  %v1912_v26 = vor.u32 %v2304_v16, %v1911_v15  ;;  %v1948_v27 = vor.u32 %v2311_v20, %v1945_v21 }
  0x3d   : > { %990 = vmatpush.bf16.msrb.mxu2 %v1944_v43  ;;  %1028 = vmatpush.bf16.msrb.mxu1 %v2044_v44  ;;  %v1916_v28 = vor.u32 %v2303_v19, %v1913_v23  ;;  %v2012_v29 = vor.u32 %v2327_v24, %v2009_v25  ;;  %v2309_v30 = vld [vmem:[%s3334_s6 + $0x24] sm:$0xf]  ;;  %v1937_v31 = vld [vmem:[%s3334_s6 + $0x28] sm:$0xf0]  ;;  %v2307_v36 = vld [vmem:[%s3334_s6 + $0x14] sm:$0xf] }
  0x3e   : > { %1004 = vmatpush.bf16.msrb.mxu3 %v2008_v48  ;;  %v2325_v32 = vld [vmem:[%s3334_s6 + $0xa4] sm:$0xf]  ;;  %v2001_v33 = vld [vmem:[%s3334_s6 + $0xa8] sm:$0xf0]  ;;  %v1940_v34 = vor.u32 %v2309_v30, %v1937_v31  ;;  %v1929_v37 = vld [vmem:[%s3334_s6 + $0x18] sm:$0xf0] }
  0x3f   : > { %v2004_v35 = vor.u32 %v2325_v32, %v2001_v33  ;;  %v2323_v38 = vld [vmem:[%s3334_s6 + $0x94] sm:$0xf]  ;;  %v1993_v39 = vld [vmem:[%s3334_s6 + $0x98] sm:$0xf0]  ;;  %v1932_v40 = vor.u32 %v2307_v36, %v1929_v37  ;;  %v2305_v42 = vld [vmem:[%s3334_s6 + $0x4] sm:$0xf] }
  0x40   : > { %1015 = vmatpush.bf16.msrb.mxu0 %v1972_v54  ;;  %v1996_v41 = vor.u32 %v2323_v38, %v1993_v39  ;;  %v1921_v43 = vld [vmem:[%s3334_s6 + $0x8] sm:$0xf0]  ;;  %v2321_v44 = vld [vmem:[%s3334_s6 + $0x84] sm:$0xf]  ;;  %v2103_v48 = vld [vmem:[%s3335_s7 + $0x70] sm:$0xf] }
  0x41   : > { %991 = vmatpush.bf16.msrb.mxu2 %v1936_v55  ;;  %1029 = vmatpush.bf16.msrb.mxu1 %v2036_v56  ;;  %v1985_v45 = vld [vmem:[%s3334_s6 + $0x88] sm:$0xf0]  ;;  %v1924_v46 = vor.u32 %v2305_v42, %v1921_v43  ;;  %v2352_v49 = vld [vmem:[%s3335_s7 + $0x74] sm:$0xf0]  ;;  %v2351_v50 = vld [vmem:[%s3335_s7 + $0x74] sm:$0xf] }
  0x42   : > { %1005 = vmatpush.bf16.msrb.mxu3 %v2000_v60  ;;  %v1988_v47 = vor.u32 %v2321_v44, %v1985_v45  ;;  %v2104_v51 = vor.u32 %v2352_v49, %v2103_v48  ;;  %v2105_v52 = vld [vmem:[%s3335_s7 + $0x78] sm:$0xf0]  ;;  %v2095_v54 = vld [vmem:[%s3335_s7 + $0x60] sm:$0xf]  ;;  %v2350_v55 = vld [vmem:[%s3335_s7 + $0x64] sm:$0xf0] }
  0x43   : > { %v2108_v53 = vor.u32 %v2351_v50, %v2105_v52  ;;  %v2349_v56 = vld [vmem:[%s3335_s7 + $0x64] sm:$0xf]  ;;  %v2096_v57 = vor.u32 %v2350_v55, %v2095_v54  ;;  %v2097_v58 = vld [vmem:[%s3335_s7 + $0x68] sm:$0xf0]  ;;  %v2087_v59 = vld [vmem:[%s3335_s7 + $0x50] sm:$0xf] }
  0x44   : > { %1016 = vmatpush.bf16.msrb.mxu0 %v1964_v2  ;;  %v2348_v60 = vld [vmem:[%s3335_s7 + $0x54] sm:$0xf0]  ;;  %v2100_v61 = vor.u32 %v2349_v56, %v2097_v58  ;;  %v2347_v62 = vld [vmem:[%s3335_s7 + $0x54] sm:$0xf]  ;;  %v2089_v63 = vld [vmem:[%s3335_s7 + $0x58] sm:$0xf0] }
  0x45   : > { %992 = vmatpush.bf16.msrb.mxu2 %v1928_v3  ;;  %1030 = vmatpush.bf16.msrb.mxu1 %v2028_v4  ;;  %v2167_v0 = vld [vmem:[%s3335_s7 + $0xf0] sm:$0xf]  ;;  %v2088_v1 = vor.u32 %v2348_v60, %v2087_v59  ;;  %v2368_v2 = vld [vmem:[%s3335_s7 + $0xf4] sm:$0xf0]  ;;  %v2367_v3 = vld [vmem:[%s3335_s7 + $0xf4] sm:$0xf]  ;;  %v2092_v5 = vor.u32 %v2347_v62, %v2089_v63 }
  0x46   : > { %1006 = vmatpush.bf16.msrb.mxu3 %v1992_v8  ;;  %v2169_v4 = vld [vmem:[%s3335_s7 + $0xf8] sm:$0xf0]  ;;  %v2168_v6 = vor.u32 %v2368_v2, %v2167_v0  ;;  %v2079_v8 = vld [vmem:[%s3335_s7 + $0x40] sm:$0xf]  ;;  %v2346_v9 = vld [vmem:[%s3335_s7 + $0x44] sm:$0xf0] }
  0x47   : > { %v2172_v7 = vor.u32 %v2367_v3, %v2169_v4  ;;  %v2345_v10 = vld [vmem:[%s3335_s7 + $0x44] sm:$0xf]  ;;  %v2080_v11 = vor.u32 %v2346_v9, %v2079_v8  ;;  %v2081_v12 = vld [vmem:[%s3335_s7 + $0x48] sm:$0xf0]  ;;  %v2366_v15 = vld [vmem:[%s3335_s7 + $0xe4] sm:$0xf0] }
  0x48   : > { %1017 = vmatpush.bf16.msrb.mxu0 %v1956_v14  ;;  %v2084_v13 = vor.u32 %v2345_v10, %v2081_v12  ;;  %v2159_v14 = vld [vmem:[%s3335_s7 + $0xe0] sm:$0xf]  ;;  %v2365_v16 = vld [vmem:[%s3335_s7 + $0xe4] sm:$0xf]  ;;  %v2071_v20 = vld [vmem:[%s3335_s7 + $0x30] sm:$0xf] }
  0x49   : > { %993 = vmatpush.bf16.msrb.mxu2 %v1920_v17  ;;  %1031 = vmatpush.bf16.msrb.mxu1 %v2020_v18  ;;  %v2160_v17 = vor.u32 %v2366_v15, %v2159_v14  ;;  %v2161_v18 = vld [vmem:[%s3335_s7 + $0xe8] sm:$0xf0]  ;;  %v2344_v21 = vld [vmem:[%s3335_s7 + $0x34] sm:$0xf0]  ;;  %v2343_v23 = vld [vmem:[%s3335_s7 + $0x34] sm:$0xf] }
  0x4a   : > { %1007 = vmatpush.bf16.msrb.mxu3 %v1984_v22  ;;  %v2164_v19 = vor.u32 %v2365_v16, %v2161_v18  ;;  %v2072_v22 = vor.u32 %v2344_v21, %v2071_v20  ;;  %v2073_v24 = vld [vmem:[%s3335_s7 + $0x38] sm:$0xf0]  ;;  %v2063_v32 = vld [vmem:[%s3335_s7 + $0x20] sm:$0xf]  ;;  %v2342_v33 = vld [vmem:[%s3335_s7 + $0x24] sm:$0xf0] }
  0x4b   : > { %v2076_v25 = vor.u32 %v2343_v23, %v2073_v24  ;;  %v2153_v30 = vld [vmem:[%s3335_s7 + $0xd8] sm:$0xf0]  ;;  %v2065_v36 = vld [vmem:[%s3335_s7 + $0x28] sm:$0xf0]  ;;  %v2143_v38 = vld [vmem:[%s3335_s7 + $0xc0] sm:$0xf] }
  0x4c   : > { %994 = vmatmul.bf16.vlgmr.msrb.gmra.mxu2 %v1912_v26  ;;  %1018 = vmatpush.bf16.msrb.mxu0 %v1948_v27  ;;  %v2364_v27 = vld [vmem:[%s3335_s7 + $0xd4] sm:$0xf0]  ;;  %v2362_v39 = vld [vmem:[%s3335_s7 + $0xc4] sm:$0xf0]  ;;  %v2145_v42 = vld [vmem:[%s3335_s7 + $0xc8] sm:$0xf0] }
  0x4d   : > { %1008 = vmatmul.bf16.vlgmr.msrb.gmra.mxu3 %v1916_v28  ;;  %1032 = vmatpush.bf16.msrb.mxu1 %v2012_v29  ;;  %v2055_v44 = vld [vmem:[%s3335_s7 + $0x10] sm:$0xf]  ;;  %v2340_v45 = vld [vmem:[%s3335_s7 + $0x14] sm:$0xf0]  ;;  %v2057_v48 = vld [vmem:[%s3335_s7 + $0x18] sm:$0xf0] }
  0x4e   : > { %1262 = vmatpush.bf16.msra.mxu2 %v2104_v51  ;;  %1276 = vmatpush.bf16.msra.mxu3 %v2168_v6  ;;  %v2135_v51 = vld [vmem:[%s3335_s7 + $0xb0] sm:$0xf]  ;;  %v2360_v52 = vld [vmem:[%s3335_s7 + $0xb4] sm:$0xf0]  ;;  %v2137_v56 = vld [vmem:[%s3335_s7 + $0xb8] sm:$0xf0] }
  0x4f   : > { %v2136_v55 = vor.u32 %v2360_v52, %v2135_v51  ;;  %v2047_v58 = vld [vmem:[%s3335_s7] sm:$0xf]  ;;  %v2338_v59 = vld [vmem:[%s3335_s7 + $0x4] sm:$0xf0]  ;;  %v2337_v60 = vld [vmem:[%s3335_s7 + $0x4] sm:$0xf] }
  0x50   : > { %1019 = vmatpush.bf16.msrb.mxu0 %v1940_v34  ;;  %v2341_v34 = vld [vmem:[%s3335_s7 + $0x24] sm:$0xf]  ;;  %v2049_v62 = vld [vmem:[%s3335_s7 + $0x8] sm:$0xf0]  ;;  %v2127_v0 = vld [vmem:[%s3335_s7 + $0xa0] sm:$0xf] }
  0x51   : > { %1033 = vmatpush.bf16.msrb.mxu1 %v2004_v35  ;;  %v2064_v35 = vor.u32 %v2342_v33, %v2063_v32  ;;  %v2068_v37 = vor.u32 %v2341_v34, %v2065_v36  ;;  %v2052_v63 = vor.u32 %v2337_v60, %v2049_v62  ;;  %v2357_v2 = vld [vmem:[%s3335_s7 + $0xa4] sm:$0xf]  ;;  %v2129_v4 = vld [vmem:[%s3335_s7 + $0xa8] sm:$0xf0]  ;;  %v2119_v6 = vld [vmem:[%s3335_s7 + $0x90] sm:$0xf] }
  0x52   : > { %1263 = vmatpush.bf16.msra.mxu2 %v2096_v57  ;;  %1277 = vmatpush.bf16.msra.mxu3 %v2160_v17  ;;  %v2355_v8 = vld [vmem:[%s3335_s7 + $0x94] sm:$0xf]  ;;  %v2111_v16 = vld [vmem:[%s3335_s7 + $0x80] sm:$0xf]  ;;  %v2354_v17 = vld [vmem:[%s3335_s7 + $0x84] sm:$0xf0] }
  0x53   : > { %v2353_v18 = vld [vmem:[%s3335_s7 + $0x84] sm:$0xf]  ;;  %v2113_v20 = vld [vmem:[%s3335_s7 + $0x88] sm:$0xf0]  ;;  %v2376_v62 = vld [vmem:[%s3337_s9 + $0x38] sm:$0xff]  ;;  %s1795_s4 = sshll.u32 %s523_s14, 4 }
  0x54   : > { %1020 = vmatpush.bf16.msrb.mxu0 %v1932_v40  ;;  %v2361_v40 = vld [vmem:[%s3335_s7 + $0xc4] sm:$0xf]  ;;  %v2116_v21 = vor.u32 %v2353_v18, %v2113_v20  ;;  %s2393_s21 = sshll.u32 %s2521_s28, 4  ;;  %s525_s27 = scalar_lea.vmem [#allocation2], %s1795_s4 }
  0x55   : > { %1034 = vmatpush.bf16.msrb.mxu1 %v1996_v41  ;;  %v2144_v41 = vor.u32 %v2362_v39, %v2143_v38  ;;  %v2148_v43 = vor.u32 %v2361_v40, %v2145_v42  ;;  %s1656_s24 = scalar_lea.hbm %s3341_s13, %s2393_s21  ;;  %s1657_s16 = sshll.u32 %s525_s27, 4  ;;  %s1658_s16 = int_to_ptr.vmem [resolvable:$true] %s1657_s16 }
  0x56   : > { %1264 = vmatpush.bf16.msra.mxu2 %v2088_v1  ;;  %v2358_v1 = vld [vmem:[%s3335_s7 + $0xa4] sm:$0xf0]  ;;  %s1659_s20 = sshll.u32 %s1656_s24, 4  ;;  %s1643_s22 = scalar_lea.sflag [#allocation3], %s523_s14  ;;  %s1660_s20 = int_to_ptr.hbm [resolvable:$true] %s1659_s20 }
  0x57   : > { %v2128_v3 = vor.u32 %v2358_v1, %v2127_v0  ;;  %v2375_v0 = vld [vmem:[%s3337_s9 + $0x30] sm:$0xff]  ;;  %s2471_s4 = scalar_lea.hbm %s3341_s13, 32 }
  0x58   : > { %1021 = vmatpush.bf16.msrb.mxu0 %v1924_v46  ;;  %v2339_v46 = vld [vmem:[%s3335_s7 + $0x14] sm:$0xf] }
  0x59   : > { %1035 = vmatpush.bf16.msrb.mxu1 %v1988_v47  ;;  %v2056_v47 = vor.u32 %v2340_v45, %v2055_v44  ;;  %v2060_v50 = vor.u32 %v2339_v46, %v2057_v48  ;;  %v2383_v1 = vld [vmem:[%s3337_s9 + $0x70] sm:$0xff] }
  0x5a   : > { %1265 = vmatpush.bf16.msra.mxu2 %v2080_v11  ;;  %v2121_v11 = vld [vmem:[%s3335_s7 + $0x98] sm:$0xf0] }
  0x5b   : > { %1022 = vmatmul.bf16.vlgmr.msrb.gmra.mxu0 %v1912_v26  ;;  %v2151_v26 = vld [vmem:[%s3335_s7 + $0xd0] sm:$0xf]  ;;  %v2124_v14 = vor.u32 %v2355_v8, %v2121_v11  ;;  %v2378_v11 = vld [vmem:[%s3337_s9 + $0x48] sm:$0xff] }
  0x5c   : > { %1036 = vmatmul.bf16.vlgmr.msrb.gmra.mxu1 %v1916_v28  ;;  %1290 = vmatpush.bf16.msra.mxu0 %v2108_v53  ;;  %v2363_v28 = vld [vmem:[%s3335_s7 + $0xd4] sm:$0xf]  ;;  %v2152_v29 = vor.u32 %v2364_v27, %v2151_v26  ;;  %v1046_v27 = vld [vmem:[%s529_s29] sm:$0x3]  ;;  %s2465_s29 = sshra.s32 %s1660_s20, 4  ;;  %s2466_s29 = int_to_ptr.hbm [resolvable:$true] %s2465_s29 }
  0x5d   : > { %1304 = vmatpush.bf16.msra.mxu1 %v2172_v7  ;;  %v2156_v31 = vor.u32 %v2363_v28, %v2153_v30  ;;  %v2359_v53 = vld [vmem:[%s3335_s7 + $0xb4] sm:$0xf]  ;;  %v2356_v7 = vld [vmem:[%s3335_s7 + $0x94] sm:$0xf0]  ;;  %v1048_v30 = vperm.slane %v1046_v27, 0  ;;  %v1049_v44 = vperm.slane %v1046_v27, 1  ;;  %p2472_p1 = scmp.lt.s32.totalorder %s2466_s29, %s3341_s13 }
  0x5e   : > { %1266 = vmatpush.bf16.msra.mxu2 %v2072_v22  ;;  %1278 = vmatpush.bf16.msra.mxu3 %v2152_v29  ;;  %v2140_v57 = vor.u32 %v2359_v53, %v2137_v56  ;;  %v2120_v10 = vor.u32 %v2356_v7, %v2119_v6  ;;  %v2372_v6 = vld [vmem:[%s3337_s9 + $0x18] sm:$0xff]  ;;  %v2371_v8 = vld [vmem:[%s3337_s9 + $0x10] sm:$0xff]  ;;  %s2467_s19 = scalar_lea.hbm %s2466_s29, 16 }
  0x5f   : > { %v2380_v7 = vld [vmem:[%s3337_s9 + $0x58] sm:$0xff]  ;;  %p2468_p12 = scmp.ne.s32.totalorder %s2466_s29, %s2467_s19  ;;  %p2473_p2 = scmp.lt.s32.totalorder %s2471_s4, %s2467_s19 }
  0x60   : > { %1291 = vmatpush.bf16.msra.mxu0 %v2100_v61  ;;  %v2048_v61 = vor.u32 %v2338_v59, %v2047_v58 }
  0x61   : > { %1305 = vmatpush.bf16.msra.mxu1 %v2164_v19  ;;  %v2112_v19 = vor.u32 %v2354_v17, %v2111_v16  ;;  %p2469_p13 = pnand %p2468_p12, %p2643_p4  ;;  %p2474_p3 = por %p2473_p2, %p2472_p1 }
  0x62   : > { %1267 = vmatpush.bf16.msra.mxu2 %v2064_v35  ;;  %1279 = vmatpush.bf16.msra.mxu3 %v2144_v41 }
  0x63   : > { %p2470_p0 = pneg %p2469_p13 }
  0x64   : > { %1292 = vmatpush.bf16.msra.mxu0 %v2092_v5  ;;  %v2132_v5 = vor.u32 %v2357_v2, %v2129_v4  ;;  %v2374_v2 = vld [vmem:[%s3337_s9 + $0x28] sm:$0xff]  ;;  %v2373_v4 = vld [vmem:[%s3337_s9 + $0x20] sm:$0xff] }
  0x65   : > { %1306 = vmatpush.bf16.msra.mxu1 %v2156_v31  ;;  %p2475_p5 = pnand %p2474_p3, %p2470_p0 }
  0x66   : > { %1268 = vmatpush.bf16.msra.mxu2 %v2056_v47  ;;  %1280 = vmatpush.bf16.msra.mxu3 %v2136_v55 }
  0x68   : > { %1293 = vmatpush.bf16.msra.mxu0 %v2084_v13 }
  0x69   : > { %1307 = vmatpush.bf16.msra.mxu1 %v2148_v43 }
  0x6a   : > { %1269 = vmatpush.bf16.msra.mxu2 %v2048_v61  ;;  %1281 = vmatpush.bf16.msra.mxu3 %v2128_v3  ;;  %v1320_v61 = vld [vmem:[%s3336_s8] sm:$0x3]  ;;  %v2382_v3 = vld [vmem:[%s3337_s9 + $0x68] sm:$0xff] }
  0x6b   : > { %1322 = vst [vmem:[#allocation1] ss:$9 sm:$0xff] %v1320_v61 }
  0x6c   : > { %1294 = vmatpush.bf16.msra.mxu0 %v2076_v25 }
  0x6d   : > { %1308 = vmatpush.bf16.msra.mxu1 %v2140_v57 }
  0x6e   : > { %1282 = vmatpush.bf16.msra.mxu3 %v2120_v10  ;;  %1499 = vmatpush.bf16.msrb.mxu2 %v2376_v62  ;;  %v2370_v10 = vld [vmem:[%s3337_s9 + $0x8] sm:$0xff] }
  0x70   : > { %1295 = vmatpush.bf16.msra.mxu0 %v2068_v37 }
  0x71   : > { %1309 = vmatpush.bf16.msra.mxu1 %v2132_v5  ;;  %v2381_v5 = vld [vmem:[%s3337_s9 + $0x60] sm:$0xff] }
  0x72   : > { %1283 = vmatpush.bf16.msra.mxu3 %v2112_v19  ;;  %1500 = vmatpush.bf16.msrb.mxu2 %v2375_v0 }
  0x74   : > { %1296 = vmatpush.bf16.msra.mxu0 %v2060_v50 }
  0x75   : > { %1310 = vmatpush.bf16.msra.mxu1 %v2124_v14  ;;  %v2369_v14 = vld [vmem:[%s3337_s9] sm:$0xff] }
  0x76   : > { %1501 = vmatpush.bf16.msrb.mxu2 %v2374_v2  ;;  %v2390_v2 = vld [vmem:[%s3339_s11 + $0x28] sm:$0xff] }
  0x78   : > { %1297 = vmatpush.bf16.msra.mxu0 %v2052_v63  ;;  %v2384_v63 = vld [vmem:[%s3337_s9 + $0x78] sm:$0xff] }
  0x79   : > { %1311 = vmatpush.bf16.msra.mxu1 %v2116_v21  ;;  %1513 = vmatpush.bf16.msrb.mxu3 %v2384_v63  ;;  %v2392_v21 = vld [vmem:[%s3339_s11 + $0x38] sm:$0xff] }
  0x7a   : > { %1502 = vmatpush.bf16.msrb.mxu2 %v2373_v4  ;;  %v2388_v4 = vld [vmem:[%s3339_s11 + $0x18] sm:$0xff] }
  0x7c   : > { %1626 = vmatpush.bf16.msrb.mxu0 %v2392_v21 }
  0x7d   : > { %1514 = vmatpush.bf16.msrb.mxu3 %v2383_v1  ;;  %v2391_v1 = vld [vmem:[%s3339_s11 + $0x30] sm:$0xff] }
  0x7e   : > { %1503 = vmatpush.bf16.msrb.mxu2 %v2372_v6  ;;  %v2386_v6 = vld [vmem:[%s3339_s11 + $0x8] sm:$0xff] }
  0x80   : > { %1627 = vmatpush.bf16.msrb.mxu0 %v2391_v1 }
  0x81   : > { %1515 = vmatpush.bf16.msrb.mxu3 %v2382_v3  ;;  %v2389_v3 = vld [vmem:[%s3339_s11 + $0x20] sm:$0xff] }
  0x82   : > { %1504 = vmatpush.bf16.msrb.mxu2 %v2371_v8  ;;  %v2385_v8 = vld [vmem:[%s3339_s11] sm:$0xff] }
  0x84   : > { %1628 = vmatpush.bf16.msrb.mxu0 %v2390_v2 }
  0x85   : > { %1516 = vmatpush.bf16.msrb.mxu3 %v2381_v5  ;;  %v2387_v5 = vld [vmem:[%s3339_s11 + $0x10] sm:$0xff] }
  0x86   : > { %1505 = vmatpush.bf16.msrb.mxu2 %v2370_v10 }
  0x88   : > { %1629 = vmatpush.bf16.msrb.mxu0 %v2389_v3 }
  0x89   : > { %1517 = vmatpush.bf16.msrb.mxu3 %v2380_v7  ;;  %v1529_v7 = vld [vmem:[%s3338_s10] sm:$0x1] }
  0x8a   : > { %1506 = vmatpush.bf16.msrb.mxu2 %v2369_v14 }
  0x8c   : > { %1630 = vmatpush.bf16.msrb.mxu0 %v2388_v4 }
  0x90   : > { %1631 = vmatpush.bf16.msrb.mxu0 %v2387_v5 }
  0x94   : > { %1632 = vmatpush.bf16.msrb.mxu0 %v2386_v6 }
  0x98   : > { %1633 = vmatpush.bf16.msrb.mxu0 %v2385_v8 }
  0xb5   : > { %v763_v54 = vpop.f32.mrf.mxu2 }
  0xb6   : > { %v3143_v49 = vpop.f32.mrf.mxu3 }
  0xb8   : > { %v686_v12 = vpop.f32.mrf.mxu0 }
  0xb9   : > { %v700_v15 = vpop.f32.mrf.mxu1  ;;  %v764_v28 = vadd.f32 %v763_v54, %v686_v12  ;;  %v1323_v12 = vld [vmem:[#allocation1] sm:$0xff] }
  0xba   : > { %v778_v40 = vadd.f32 %v3143_v49, %v700_v15  ;;  %v2377_v15 = vld [vmem:[%s3337_s9 + $0x40] sm:$0xff]  ;;  %v1325_v16 = vpack.i.b16 %v1323_v12, %v1323_v12 }
  0xbd   : > { %v765_v9 = vpop.f32.mrf.mxu2 }
  0xbe   : > { %v779_v13 = vpop.f32.mrf.mxu3 }
  0xc0   : > { %v688_v23 = vpop.f32.mrf.mxu0 }
  0xc1   : > { %v702_v25 = vpop.f32.mrf.mxu1  ;;  %v766_v34 = vadd.f32 %v765_v9, %v688_v23  ;;  %v2379_v9 = vld [vmem:[%s3337_s9 + $0x50] sm:$0xff] }
  0xc2   : > { %v780_v51 = vadd.f32 %v779_v13, %v702_v25  ;;  %1518 = vmatpush.bf16.msrb.mxu3 %v2379_v9  ;;  %v1324_v13 = vld [vmem:[#allocation1 + $0x9] sm:$0xff]  ;;  %v1531_v9 = vpack.i.b16 %v1529_v7, %v1529_v7 }
  0xc3   : > { %v1328_v17 = vpack.i.b16 %v1324_v13, %v1324_v13 }
  0xc4   : > { %v1533_v10 = vperm.slane %v1531_v9, 0 }
  0xc5   : > { %v1330_v23 = vperm.slane %v1328_v17, 0 }
  0xc6   : > { %1519 = vmatpush.bf16.msrb.mxu3 %v2378_v11 }
  0xca   : > { %1520 = vmatpush.bf16.msrb.mxu3 %v2377_v15  ;;  %v1536_v15 = vunpack.c.l.bf16 %v1533_v10 }
  0xcf   : > { %v995_v22 = vpop.f32.mrf.mxu2 }
  0xd0   : > { %v1009_v24 = vpop.f32.mrf.mxu3 }
  0xd1   : > { %v1010_v26 = vadd.f32 %v1009_v24, %v995_v22  ;;  %v1327_v22 = vperm.slane %v1325_v16, 0 }
  0xd3   : > { %v1042_v29 = vadd.f32 %v1010_v26, %v764_v28  ;;  %v1335_v28 = vunpack.c.l.bf16 %v1327_v22 }
  0xd5   : > { %v1052_v35 = vadd.f32 %v1048_v30, %v1042_v29  ;;  %v1336_v29 = vunpack.c.l.bf16 %v1330_v23 }
  0xd7   : > { %v997_v31 = vpop.f32.mrf.mxu2  ;;  %v1060_v41 = vmul.f32 0.2, %v1052_v35  ;;  %vm1056_vm1 = vcmp.gt.f32.partialorder %v1052_v35, 0.0 }
  0xd8   : > { %v1011_v32 = vpop.f32.mrf.mxu3  ;;  %v1023_v33 = vpop.f32.mrf.mxu0 }
  0xd9   : > { %v1012_v36 = vadd.f32 %v1011_v32, %v997_v31  ;;  %v1037_v37 = vpop.f32.mrf.mxu1  ;;  %v1064_v48 = vsel %vm1056_vm1, %v1052_v35, %v1060_v41 }
  0xda   : > { %v1038_v38 = vadd.f32 %v1037_v37, %v1023_v33 }
  0xdb   : > { %v1044_v39 = vadd.f32 %v1012_v36, %v766_v34 }
  0xdc   : > { %v1043_v43 = vadd.f32 %v1038_v38, %v778_v40 }
  0xdd   : > { %v1054_v42 = vadd.f32 %v1048_v30, %v1044_v39 }
  0xde   : > { %v1053_v52 = vadd.f32 %v1049_v44, %v1043_v43 }
  0xdf   : > { %vm1058_vm2 = vcmp.gt.f32.partialorder %v1054_v42, 0.0  ;;  %v1062_v45 = vmul.f32 0.2, %v1054_v42 }
  0xe0   : > { %v1025_v46 = vpop.f32.mrf.mxu0  ;;  %v1061_v56 = vmul.f32 0.2, %v1053_v52  ;;  %vm1057_vm3 = vcmp.gt.f32.partialorder %v1053_v52, 0.0 }
  0xe1   : > { %v1039_v47 = vpop.f32.mrf.mxu1  ;;  %v1066_v50 = vsel %vm1058_vm2, %v1054_v42, %v1062_v45 }
  0xe2   : > { %v1040_v53 = vadd.f32 %v1039_v47, %v1025_v46  ;;  %v1068_v54 = vpack.c.bf16 %v1066_v50, %v1064_v48  ;;  %v1065_v58 = vsel %vm1057_vm3, %v1053_v52, %v1061_v56 }
  0xe4   : > { %v1045_v55 = vadd.f32 %v1040_v53, %v780_v51  ;;  %1270 = vmatmul.bf16.vlgmr.msra.gmra.mxu2 %v1068_v54  ;;  %1298 = vmatmul.bf16.vlgmr.msra.gmra.mxu0 %v1068_v54 }
  0xe6   : > { %v1055_v49 = vadd.f32 %v1049_v44, %v1045_v55 }
  0xe8   : > { %vm1059_vm4 = vcmp.gt.f32.partialorder %v1055_v49, 0.0  ;;  %v1063_v57 = vmul.f32 0.2, %v1055_v49 }
  0xea   : > { %v1067_v59 = vsel %vm1059_vm4, %v1055_v49, %v1063_v57 }
  0xeb   : > { %v1069_v60 = vpack.c.bf16 %v1067_v59, %v1065_v58 }
  0xed   : > { %1284 = vmatmul.bf16.vlgmr.msra.gmra.mxu3 %v1069_v60  ;;  %1312 = vmatmul.bf16.vlgmr.msra.gmra.mxu1 %v1069_v60 }
 0x161   : > { %v1299_v19 = vpop.f32.mrf.mxu0 }
 0x167   : > { %v1271_v20 = vpop.f32.mrf.mxu2 }
 0x169   : > { %v1301_v33 = vpop.f32.mrf.mxu0 }
 0x16a   : > { %v1313_v18 = vpop.f32.mrf.mxu1 }
 0x16b   : > { %v1314_v25 = vadd.f32 %v1313_v18, %v1299_v19 }
 0x16f   : > { %v1273_v36 = vpop.f32.mrf.mxu2 }
 0x170   : > { %v1285_v24 = vpop.f32.mrf.mxu3 }
 0x171   : > { %v1286_v26 = vadd.f32 %v1285_v24, %v1271_v20 }
 0x172   : > { %v1315_v32 = vpop.f32.mrf.mxu1 }
 0x173   : > { %v1318_v27 = vpack.c.bf16 %v1314_v25, %v1286_v26  ;;  %v1316_v39 = vadd.f32 %v1315_v32, %v1301_v33 }
 0x175   : > { %v1331_v30 = vunpack.c.l.bf16 %v1318_v27  ;;  %v1332_v31 = vunpack.c.h.bf16 %v1318_v27 }
 0x177   : > { %v1337_v34 = vadd.f32 %v1335_v28, %v1331_v30  ;;  %v1338_v35 = vadd.f32 %v1336_v29, %v1332_v31 }
 0x178   : > { %v1287_v37 = vpop.f32.mrf.mxu3 }
 0x179   : > { %v1341_v38 = vpack.c.bf16 %v1338_v35, %v1337_v34  ;;  %v1288_v40 = vadd.f32 %v1287_v37, %v1273_v36  ;;  %v1569_v37 = vld [vmem:[%s3340_s12] sm:$0x1] }
 0x17b   : > { %v1343_v41 = vunpack.c.l.bf16 %v1341_v38  ;;  %v1344_v42 = vunpack.c.h.bf16 %v1341_v38  ;;  %v1319_v43 = vpack.c.bf16 %v1316_v39, %v1288_v40 }
 0x17d   : > { %v1333_v44 = vunpack.c.l.bf16 %v1319_v43  ;;  %v1334_v45 = vunpack.c.h.bf16 %v1319_v43  ;;  %v1351_v46 = vmul.f32 0.20019531, %v1343_v41  ;;  %v1352_v47 = vmul.f32 0.20019531, %v1344_v42 }
 0x17e   : > { %vm1347_vm5 = vcmp.gt.f32.partialorder %v1343_v41, 0.0  ;;  %vm1348_vm6 = vcmp.gt.f32.partialorder %v1344_v42, 0.0 }
 0x17f   : > { %v1339_v48 = vadd.f32 %v1335_v28, %v1333_v44  ;;  %v1340_v50 = vadd.f32 %v1336_v29, %v1334_v45  ;;  %v1355_v54 = vpack.c.bf16 %v1352_v47, %v1351_v46  ;;  %vm1357_vm9 = vmpackc.low %vm1348_vm6, %vm1347_vm5 }
 0x181   : > { %v1342_v51 = vpack.c.bf16 %v1340_v50, %v1339_v48  ;;  %v1359_v57 = vsel %vm1357_vm9, %v1341_v38, %v1355_v54  ;;  %v1570_v38 = vunpack.c.l.bf16 %v1569_v37 }
 0x182   : > { %v1395_v59 = vunpack.c.l.b16 %v1359_v57  ;;  %v1396_v61 = vunpack.c.h.b16 %v1359_v57 }
 0x183   : > { %v1345_v52 = vunpack.c.l.bf16 %v1342_v51  ;;  %v1346_v53 = vunpack.c.h.bf16 %v1342_v51  ;;  %v1571_v39 = vperm.slane %v1570_v38, 0 }
 0x185   : > { %v1353_v55 = vmul.f32 0.20019531, %v1345_v52  ;;  %v1354_v56 = vmul.f32 0.20019531, %v1346_v53  ;;  %vm1349_vm7 = vcmp.gt.f32.partialorder %v1345_v52, 0.0  ;;  %vm1350_vm8 = vcmp.gt.f32.partialorder %v1346_v53, 0.0 }
 0x186   : > { %vm1358_vm10 = vmpackc.low %vm1350_vm8, %vm1349_vm7 }
 0x187   : > { %v1356_v49 = vpack.c.bf16 %v1354_v56, %v1353_v55 }
 0x189   : > { %v1360_v58 = vsel %vm1358_vm10, %v1342_v51, %v1356_v49 }
 0x18a   : > { %v1397_v60 = vunpack.c.l.b16 %v1360_v58  ;;  %v1398_v62 = vunpack.c.h.b16 %v1360_v58 }
 0x18c   : > { %v1399_v63 = vpack.c.b16 %v1397_v60, %v1395_v59  ;;  %v1400_v0 = vpack.c.b16 %v1398_v62, %v1396_v61 }
 0x18e   : > { %1507 = vmatmul.bf16.vlgmr.msrb.gmra.mxu2 %v1399_v63  ;;  %1521 = vmatmul.bf16.vlgmr.msrb.gmra.mxu3 %v1400_v0 }
 0x211   : > { %v1508_v11 = vpop.f32.mrf.mxu2  ;;  %v1522_v12 = vpop.f32.mrf.mxu3 }
 0x212   : > { %v1523_v13 = vadd.f32 %v1522_v12, %v1508_v11 }
 0x214   : > { %v1527_v14 = vpack.c.bf16 %v1523_v13, %v1523_v13 }
 0x216   : > { %v1534_v16 = vunpack.c.l.bf16 %v1527_v14 }
 0x218   : > { %v1537_v17 = vadd.f32 %v1536_v15, %v1534_v16 }
 0x219   : > { %v1510_v18 = vpop.f32.mrf.mxu2  ;;  %v1524_v19 = vpop.f32.mrf.mxu3 }
 0x21a   : > { %v1539_v20 = vpack.c.bf16 %v1537_v17, %v1537_v17  ;;  %v1525_v21 = vadd.f32 %v1524_v19, %v1510_v18 }
 0x21c   : > { %v1541_v22 = vunpack.c.l.bf16 %v1539_v20  ;;  %v1528_v23 = vpack.c.bf16 %v1525_v21, %v1525_v21 }
 0x21e   : > { %v1535_v24 = vunpack.c.l.bf16 %v1528_v23  ;;  %v1545_v25 = vmul.f32 0.20019531, %v1541_v22  ;;  %vm1543_vm11 = vcmp.gt.f32.partialorder %v1541_v22, 0.0 }
 0x21f   : > { %vm1549_vm13 = vmpackc.low %vm1543_vm11, %vm1543_vm11 }
 0x220   : > { %v1538_v26 = vadd.f32 %v1536_v15, %v1535_v24  ;;  %v1547_v28 = vpack.c.bf16 %v1545_v25, %v1545_v25 }
 0x222   : > { %v1540_v27 = vpack.c.bf16 %v1538_v26, %v1538_v26  ;;  %v1551_v31 = vsel %vm1549_vm13, %v1539_v20, %v1547_v28 }
 0x223   : > { %v1574_v34 = vunpack.c.l.b16 %v1551_v31 }
 0x224   : > { %v1542_v29 = vunpack.c.l.bf16 %v1540_v27 }
 0x226   : > { %vm1544_vm12 = vcmp.gt.f32.partialorder %v1542_v29, 0.0  ;;  %v1546_v30 = vmul.f32 0.20019531, %v1542_v29 }
 0x227   : > { %vm1550_vm14 = vmpackc.low %vm1544_vm12, %vm1544_vm12 }
 0x228   : > { %v1548_v32 = vpack.c.bf16 %v1546_v30, %v1546_v30 }
 0x22a   : > { %v1552_v33 = vsel %vm1550_vm14, %v1540_v27, %v1548_v32 }
 0x22b   : > { %v1575_v35 = vunpack.c.l.b16 %v1552_v33 }
 0x22d   : > { %v1576_v36 = vpack.c.b16 %v1575_v35, %v1574_v34 }
 0x22f   : > { %1634 = vmatmul.bf16.vlgmr.msrb.gmra.mxu0 %v1576_v36 }
 0x2ac   : > { %v1635_v40 = vpop.f32.mrf.mxu0 }
 0x2ad   : > { %v1636_v41 = vadd.f32 %v1635_v40, %v1571_v39 }
 0x2af   : > { %1640 = vst [vmem:[%s525_s27] sm:$0xff] %v1636_v41 }
 0x2b4   : > { %v1637_v42 = vpop.f32.mrf.mxu0 }
 0x2b5   : > { %v1638_v43 = vadd.f32 %v1637_v42, %v1571_v39 }
 0x2b7   : > { %1641 = vst [vmem:[%s525_s27 + $0x8] sm:$0xff] %v1638_v43 }
 0x2b8   : > { %2478 = shalt.err (!%p2475_p5)
}
 0x2b9   : > { %s2531_s14 = smov 128   ;;  %s2532_s27 = smov 8  }
 0x2ba   : > { %2394 = dma.vmem_to_hbm [thread:$0]  (%p2643_p4), %s1658_s16, 256, %s1660_s20, %s1643_s22, %s2531_s14, %s2531_s14, %s2532_s27  }
 0x2bb PF: > { %p2400_p6 = scmp.ge.s32.totalorder %s2529_s30, 2  ;;  %s1674_s24 = sand.u32 1, %s2509_s25  }
 0x2bc   : > { %s1675_s28 = scalar_lea.sflag [#allocation3], %s1674_s24 }
 0x2bd   : > { %p2397_p7 = pnand %p2400_p6, %p2650_p8 }
 0x2bf   : > { %p2398_p9 = pneg %p2397_p7 }
 0x2c1   : > { %2504 = dma.done.wait (%p2398_p9), %s1675_s28, 256  }
 0x2c2   : > { %2506 = vsyncadd (%p2398_p9), %s1675_s28, 4294967040  ;;  %s26_s30 = sadd.s32 1, %s2529_s30   ;;  %s3356_s29 = sld [smem:[#allocation5_spill]] }
 0x2c3   : > { %p23_p10 = scmp.ge.s32.totalorder %s26_s30, 4   ;;  %s3357_s27 = sld [smem:[#allocation9_spill]] }
 0x2c4   : > { %s3358_s28 = sld [smem:[#allocation6_spill]]  ;;  %s3360_s25 = smov %s2513_s26 }
 0x2c5   : > { %s3359_s18 = sld [smem:[#allocation7_spill]] }
 0x2c7   :  { %25 = sbr.rel (!%p23_p10) target bundleno = 6 (0x6), region = 116 }
 0x2c8   : > { %s3361_s26 = smov %s3356_s29 }
 0x2cb   : > { %s3362_s29 = smov %s3359_s18 }
 0x2cc   :  { %1681 = vsyncpa [#allocation3], 1 }
 0x2cd   :  { %1683 = vsyncpa [#allocation3 + $0x1], 1 }

// kernel: deltaconv_forward.8
= control target key start
LH: loop header
LB: loop body
LE: loop exit
PB: predicated region body
PF: predicated region fallthrough
CT: control target
= control target key end

     0   :  { %s5552_s30 = smov 0   ;;  %s5554_s10 = smov 0   ;;  %s7955_s0 = inlined_call_operand.vmem [shape: bf16[2,16,64], index: 0, kind: input, shape index: {}]   ;;  %s7956_s1 = inlined_call_operand.vmem [shape: bf16[2,16,128], index: 1, kind: input, shape index: {}]   ;;  %s7957_s2 = inlined_call_operand.vmem [shape: bf16[2,16,256], index: 2, kind: input, shape index: {}]   ;;  %s7958_s3 = inlined_call_operand.vmem [shape: bf16[64,1024], index: 3, kind: input, shape index: {}]   ;;  %s7959_s4 = inlined_call_operand.vmem [shape: bf16[128,1024], index: 4, kind: input, shape index: {}]   ;;  %s7960_s5 = inlined_call_operand.vmem [shape: bf16[256,1024], index: 5, kind: input, shape index: {}]   ;;  %s7961_s6 = inlined_call_operand.vmem [shape: bf16[1,1024], index: 6, kind: input, shape index: {}]   ;;  %s7962_s7 = inlined_call_operand.vmem [shape: bf16[1024,256], index: 7, kind: input, shape index: {}]   ;;  %s7963_s8 = inlined_call_operand.vmem [shape: bf16[1,256], index: 8, kind: input, shape index: {}]   ;;  %s7964_s9 = inlined_call_operand.vmem [shape: f32[2,1,256], index: 9, kind: output, shape index: {}]  }
   0x1   :  { %s5556_s11 = smov 0  }
   0x2 LB: > { %s31_s12 = sadd.s32 1, %s5496_s10  ;;  %p3653_p0 = scmp.ge.s32.totalorder %s5500_s11, 1  ;;  %s5500_s11 = sphi %s5556_s11, %s19_s11   ;;  %s5496_s10 = sphi %s5554_s10, %s7966_s10   ;;  %s5492_s30 = sphi %s5552_s30, %s7965_s30  }
   0x3   : > { %p33_p1 = scmp.ge.s32.totalorder %s31_s12, 2  ;;  %p341_p2 = scmp.lt.s32.totalorder %s5500_s11, 3 }
   0x5   : > { %s7968_s12 = smov (%p33_p1, %s31_s12), 0  ;;  %p342_p3 = pnand %p3653_p0, %p341_p2 }
   0x6   : > { %p400_p4 = scmp.lt.s32.totalorder (!%p342_p3), %s5492_s30, 1 }
   0x7   : > { %345 = sbr.rel (%p342_p3) target bundleno = 619 (0x26b), region = 56 }
   0xc   : > { %v3891_v0 = vld [vmem:[%s7959_s4 + $0x1c0] sm:$0xf]  ;;  %v5188_v2 = vld [vmem:[%s7959_s4 + $0x1c4] sm:$0xf]  ;;  %v3899_v5 = vld [vmem:[%s7959_s4 + $0x1c8] sm:$0xf] }
   0xd   : > { %v5192_v1 = vld [vmem:[%s7959_s4 + $0x1dc] sm:$0xf0]  ;;  %v3893_v4 = vld [vmem:[%s7959_s4 + $0x1e0] sm:$0xf0]  ;;  %v5193_v6 = vld [vmem:[%s7959_s4 + $0x1e4] sm:$0xf0] }
   0xe   : > { %v3892_v3 = vor.u32 %v5192_v1, %v3891_v0  ;;  %v3896_v7 = vor.u32 %v5188_v2, %v3893_v4  ;;  %v3900_v8 = vor.u32 %v5193_v6, %v3899_v5  ;;  %v5189_v9 = vld [vmem:[%s7959_s4 + $0x1cc] sm:$0xf]  ;;  %v3859_v11 = vld [vmem:[%s7959_s4 + $0x180] sm:$0xf]  ;;  %v5180_v14 = vld [vmem:[%s7959_s4 + $0x184] sm:$0xf] }
   0xf   : > { %v3901_v10 = vld [vmem:[%s7959_s4 + $0x1e8] sm:$0xf0]  ;;  %v5184_v13 = vld [vmem:[%s7959_s4 + $0x19c] sm:$0xf0]  ;;  %v3861_v15 = vld [vmem:[%s7959_s4 + $0x1a0] sm:$0xf0] }
  0x10   : > { %861 = vmatpush.bf16.msra.mxu0 %v3892_v3  ;;  %v3904_v12 = vor.u32 %v5189_v9, %v3901_v10  ;;  %875 = vmatpush.bf16.msra.mxu1 %v3896_v7  ;;  %v3860_v16 = vor.u32 %v5184_v13, %v3859_v11  ;;  %v3864_v17 = vor.u32 %v5180_v14, %v3861_v15  ;;  %v3867_v18 = vld [vmem:[%s7959_s4 + $0x188] sm:$0xf]  ;;  %v5181_v20 = vld [vmem:[%s7959_s4 + $0x18c] sm:$0xf]  ;;  %v3827_v23 = vld [vmem:[%s7959_s4 + $0x140] sm:$0xf] }
  0x11   : > { %889 = vmatpush.bf16.msra.mxu2 %v3900_v8  ;;  %v5185_v19 = vld [vmem:[%s7959_s4 + $0x1a4] sm:$0xf0]  ;;  %v3869_v22 = vld [vmem:[%s7959_s4 + $0x1a8] sm:$0xf0]  ;;  %v5176_v24 = vld [vmem:[%s7959_s4 + $0x15c] sm:$0xf0] }
  0x12   : > { %903 = vmatpush.bf16.msra.mxu3 %v3904_v12  ;;  %v3868_v21 = vor.u32 %v5185_v19, %v3867_v18  ;;  %v3872_v25 = vor.u32 %v5181_v20, %v3869_v22  ;;  %v5172_v26 = vld [vmem:[%s7959_s4 + $0x144] sm:$0xf]  ;;  %v3835_v28 = vld [vmem:[%s7959_s4 + $0x148] sm:$0xf]  ;;  %v3828_v29 = vor.u32 %v5176_v24, %v3827_v23  ;;  %v5173_v31 = vld [vmem:[%s7959_s4 + $0x14c] sm:$0xf] }
  0x13   : > { %v3829_v27 = vld [vmem:[%s7959_s4 + $0x160] sm:$0xf0]  ;;  %v5177_v30 = vld [vmem:[%s7959_s4 + $0x164] sm:$0xf0]  ;;  %v3837_v32 = vld [vmem:[%s7959_s4 + $0x168] sm:$0xf0] }
  0x14   : > { %862 = vmatpush.bf16.msra.mxu0 %v3860_v16  ;;  %876 = vmatpush.bf16.msra.mxu1 %v3864_v17  ;;  %v3832_v33 = vor.u32 %v5172_v26, %v3829_v27  ;;  %v3836_v34 = vor.u32 %v5177_v30, %v3835_v28  ;;  %v3795_v35 = vld [vmem:[%s7959_s4 + $0x100] sm:$0xf]  ;;  %v5164_v37 = vld [vmem:[%s7959_s4 + $0x104] sm:$0xf]  ;;  %v3840_v38 = vor.u32 %v5173_v31, %v3837_v32  ;;  %v3803_v40 = vld [vmem:[%s7959_s4 + $0x108] sm:$0xf] }
  0x15   : > { %890 = vmatpush.bf16.msra.mxu2 %v3868_v21  ;;  %v5168_v36 = vld [vmem:[%s7959_s4 + $0x11c] sm:$0xf0]  ;;  %v3797_v39 = vld [vmem:[%s7959_s4 + $0x120] sm:$0xf0]  ;;  %v5169_v41 = vld [vmem:[%s7959_s4 + $0x124] sm:$0xf0] }
  0x16   : > { %904 = vmatpush.bf16.msra.mxu3 %v3872_v25  ;;  %v5165_v42 = vld [vmem:[%s7959_s4 + $0x10c] sm:$0xf]  ;;  %v3796_v44 = vor.u32 %v5168_v36, %v3795_v35  ;;  %v3800_v45 = vor.u32 %v5164_v37, %v3797_v39  ;;  %v3804_v46 = vor.u32 %v5169_v41, %v3803_v40  ;;  %v3763_v47 = vld [vmem:[%s7959_s4 + $0xc0] sm:$0xf]  ;;  %v5156_v49 = vld [vmem:[%s7959_s4 + $0xc4] sm:$0xf] }
  0x17   : > { %v3805_v43 = vld [vmem:[%s7959_s4 + $0x128] sm:$0xf0]  ;;  %v5160_v48 = vld [vmem:[%s7959_s4 + $0xdc] sm:$0xf0]  ;;  %v3765_v51 = vld [vmem:[%s7959_s4 + $0xe0] sm:$0xf0] }
  0x18   : > { %863 = vmatpush.bf16.msra.mxu0 %v3828_v29  ;;  %877 = vmatpush.bf16.msra.mxu1 %v3832_v33  ;;  %v3808_v50 = vor.u32 %v5165_v42, %v3805_v43  ;;  %v3771_v52 = vld [vmem:[%s7959_s4 + $0xc8] sm:$0xf]  ;;  %v5157_v54 = vld [vmem:[%s7959_s4 + $0xcc] sm:$0xf]  ;;  %v3764_v56 = vor.u32 %v5160_v48, %v3763_v47  ;;  %v3768_v57 = vor.u32 %v5156_v49, %v3765_v51  ;;  %v3731_v59 = vld [vmem:[%s7959_s4 + $0x80] sm:$0xf] }
  0x19   : > { %891 = vmatpush.bf16.msra.mxu2 %v3836_v34  ;;  %v5161_v53 = vld [vmem:[%s7959_s4 + $0xe4] sm:$0xf0]  ;;  %v3773_v55 = vld [vmem:[%s7959_s4 + $0xe8] sm:$0xf0]  ;;  %v5152_v60 = vld [vmem:[%s7959_s4 + $0x9c] sm:$0xf0] }
  0x1a   : > { %905 = vmatpush.bf16.msra.mxu3 %v3840_v38  ;;  %v3772_v58 = vor.u32 %v5161_v53, %v3771_v52  ;;  %v5148_v61 = vld [vmem:[%s7959_s4 + $0x84] sm:$0xf]  ;;  %v3776_v62 = vor.u32 %v5157_v54, %v3773_v55  ;;  %v3739_v0 = vld [vmem:[%s7959_s4 + $0x88] sm:$0xf]  ;;  %v5149_v2 = vld [vmem:[%s7959_s4 + $0x8c] sm:$0xf]  ;;  %v3732_v4 = vor.u32 %v5152_v60, %v3731_v59 }
  0x1b   : > { %v3733_v63 = vld [vmem:[%s7959_s4 + $0xa0] sm:$0xf0]  ;;  %v5153_v1 = vld [vmem:[%s7959_s4 + $0xa4] sm:$0xf0]  ;;  %v3741_v3 = vld [vmem:[%s7959_s4 + $0xa8] sm:$0xf0] }
  0x1c   : > { %864 = vmatpush.bf16.msra.mxu0 %v3796_v44  ;;  %878 = vmatpush.bf16.msra.mxu1 %v3800_v45  ;;  %v3736_v5 = vor.u32 %v5148_v61, %v3733_v63  ;;  %v3740_v6 = vor.u32 %v5153_v1, %v3739_v0  ;;  %v3699_v7 = vld [vmem:[%s7959_s4 + $0x40] sm:$0xf]  ;;  %v5140_v9 = vld [vmem:[%s7959_s4 + $0x44] sm:$0xf]  ;;  %v3744_v10 = vor.u32 %v5149_v2, %v3741_v3  ;;  %v3707_v12 = vld [vmem:[%s7959_s4 + $0x48] sm:$0xf] }
  0x1d   : > { %892 = vmatpush.bf16.msra.mxu2 %v3804_v46  ;;  %v5144_v8 = vld [vmem:[%s7959_s4 + $0x5c] sm:$0xf0]  ;;  %v3701_v11 = vld [vmem:[%s7959_s4 + $0x60] sm:$0xf0]  ;;  %v5145_v13 = vld [vmem:[%s7959_s4 + $0x64] sm:$0xf0] }
  0x1e   : > { %906 = vmatpush.bf16.msra.mxu3 %v3808_v50  ;;  %v5141_v14 = vld [vmem:[%s7959_s4 + $0x4c] sm:$0xf]  ;;  %v3700_v16 = vor.u32 %v5144_v8, %v3699_v7  ;;  %v3667_v17 = vld [vmem:[%s7959_s4] sm:$0xf]  ;;  %v3704_v19 = vor.u32 %v5140_v9, %v3701_v11  ;;  %v3708_v20 = vor.u32 %v5145_v13, %v3707_v12  ;;  %v5132_v21 = vld [vmem:[%s7959_s4 + $0x4] sm:$0xf] }
  0x1f   : > { %v3709_v15 = vld [vmem:[%s7959_s4 + $0x68] sm:$0xf0]  ;;  %v5136_v18 = vld [vmem:[%s7959_s4 + $0x1c] sm:$0xf0]  ;;  %v3669_v22 = vld [vmem:[%s7959_s4 + $0x20] sm:$0xf0] }
  0x20   : > { %865 = vmatpush.bf16.msra.mxu0 %v3764_v56  ;;  %879 = vmatpush.bf16.msra.mxu1 %v3768_v57  ;;  %v3675_v23 = vld [vmem:[%s7959_s4 + $0x8] sm:$0xf]  ;;  %v3712_v24 = vor.u32 %v5141_v14, %v3709_v15  ;;  %v5133_v26 = vld [vmem:[%s7959_s4 + $0xc] sm:$0xf]  ;;  %v3907_v28 = vld [vmem:[%s7959_s4 + $0x1d0] sm:$0xf]  ;;  %v3668_v31 = vor.u32 %v5136_v18, %v3667_v17  ;;  %v3672_v35 = vor.u32 %v5132_v21, %v3669_v22 }
  0x21   : > { %893 = vmatpush.bf16.msra.mxu2 %v3772_v58  ;;  %v5137_v25 = vld [vmem:[%s7959_s4 + $0x24] sm:$0xf0]  ;;  %v3677_v27 = vld [vmem:[%s7959_s4 + $0x28] sm:$0xf0]  ;;  %v5194_v29 = vld [vmem:[%s7959_s4 + $0x1ec] sm:$0xf0] }
  0x22   : > { %907 = vmatpush.bf16.msra.mxu3 %v3776_v62  ;;  %v5190_v30 = vld [vmem:[%s7959_s4 + $0x1d4] sm:$0xf]  ;;  %v3915_v33 = vld [vmem:[%s7959_s4 + $0x1d8] sm:$0xf]  ;;  %v3676_v36 = vor.u32 %v5137_v25, %v3675_v23  ;;  %v5191_v37 = vld [vmem:[%s7959_s4 + $0x1dc] sm:$0xf]  ;;  %v3680_v39 = vor.u32 %v5133_v26, %v3677_v27  ;;  %v3908_v40 = vor.u32 %v5194_v29, %v3907_v28 }
  0x23   : > { %v3909_v32 = vld [vmem:[%s7959_s4 + $0x1f0] sm:$0xf0]  ;;  %v5195_v34 = vld [vmem:[%s7959_s4 + $0x1f4] sm:$0xf0]  ;;  %v3917_v38 = vld [vmem:[%s7959_s4 + $0x1f8] sm:$0xf0] }
  0x24   : > { %866 = vmatpush.bf16.msra.mxu0 %v3732_v4  ;;  %880 = vmatpush.bf16.msra.mxu1 %v3736_v5  ;;  %v3912_v41 = vor.u32 %v5190_v30, %v3909_v32  ;;  %v3916_v42 = vor.u32 %v5195_v34, %v3915_v33  ;;  %v3875_v43 = vld [vmem:[%s7959_s4 + $0x190] sm:$0xf]  ;;  %v5182_v45 = vld [vmem:[%s7959_s4 + $0x194] sm:$0xf]  ;;  %v3920_v46 = vor.u32 %v5191_v37, %v3917_v38  ;;  %v3883_v48 = vld [vmem:[%s7959_s4 + $0x198] sm:$0xf] }
  0x25   : > { %894 = vmatpush.bf16.msra.mxu2 %v3740_v6  ;;  %v5186_v44 = vld [vmem:[%s7959_s4 + $0x1ac] sm:$0xf0]  ;;  %v3877_v47 = vld [vmem:[%s7959_s4 + $0x1b0] sm:$0xf0]  ;;  %v5187_v49 = vld [vmem:[%s7959_s4 + $0x1b4] sm:$0xf0] }
  0x26   : > { %908 = vmatpush.bf16.msra.mxu3 %v3744_v10  ;;  %v5183_v50 = vld [vmem:[%s7959_s4 + $0x19c] sm:$0xf]  ;;  %v3876_v52 = vor.u32 %v5186_v44, %v3875_v43  ;;  %v3843_v53 = vld [vmem:[%s7959_s4 + $0x150] sm:$0xf]  ;;  %v3880_v54 = vor.u32 %v5182_v45, %v3877_v47  ;;  %v3884_v55 = vor.u32 %v5187_v49, %v3883_v48  ;;  %v5174_v57 = vld [vmem:[%s7959_s4 + $0x154] sm:$0xf] }
  0x27   : > { %v3885_v51 = vld [vmem:[%s7959_s4 + $0x1b8] sm:$0xf0]  ;;  %v5178_v56 = vld [vmem:[%s7959_s4 + $0x16c] sm:$0xf0]  ;;  %s7970_s30 = smov (!%p400_p4, %s5492_s30), 1  ;;  %vm1138_vm0 = vcmask 523264  }
  0x28   : > { %867 = vmatpush.bf16.msra.mxu0 %v3700_v16  ;;  %881 = vmatpush.bf16.msra.mxu1 %v3704_v19  ;;  %v3888_v58 = vor.u32 %v5183_v50, %v3885_v51  ;;  %v3845_v59 = vld [vmem:[%s7959_s4 + $0x170] sm:$0xf0]  ;;  %v3851_v60 = vld [vmem:[%s7959_s4 + $0x158] sm:$0xf]  ;;  %v5175_v62 = vld [vmem:[%s7959_s4 + $0x15c] sm:$0xf]  ;;  %v3844_v0 = vor.u32 %v5178_v56, %v3843_v53 }
  0x29   : > { %895 = vmatpush.bf16.msra.mxu2 %v3708_v20  ;;  %v5179_v61 = vld [vmem:[%s7959_s4 + $0x174] sm:$0xf0]  ;;  %v3853_v63 = vld [vmem:[%s7959_s4 + $0x178] sm:$0xf0]  ;;  %s5095_s19 = sshll.u32 %s7970_s30, 3  ;;  %v3848_v2 = vor.u32 %v5174_v57, %v3845_v59  ;;  %s5097_s16 = sshll.u32 %s7970_s30, 4 }
  0x2a   : > { %909 = vmatpush.bf16.msra.mxu3 %v3712_v24  ;;  %v3811_v1 = vld [vmem:[%s7959_s4 + $0x110] sm:$0xf]  ;;  %s417_s24 = scalar_lea.vmem %s7956_s1, %s5095_s19  ;;  %v3852_v3 = vor.u32 %v5179_v61, %v3851_v60  ;;  %v5166_v5 = vld [vmem:[%s7959_s4 + $0x114] sm:$0xf]  ;;  %v3856_v7 = vor.u32 %v5175_v62, %v3853_v63  ;;  %v3819_v9 = vld [vmem:[%s7959_s4 + $0x118] sm:$0xf]  ;;  %s407_s14 = scalar_lea.vmem %s7955_s0, %s5095_s19 }
  0x2b   : > { %v5170_v4 = vld [vmem:[%s7959_s4 + $0x12c] sm:$0xf0]  ;;  %v5855_v6 = vld [vmem:[%s417_s24] sm:$0xff]  ;;  %v3813_v8 = vld [vmem:[%s7959_s4 + $0x130] sm:$0xf0]  ;;  %s428_s22 = scalar_lea.vmem %s7957_s2, %s5097_s16  ;;  %vm2467_vm5 = vcmask 1040384  }
  0x2c   : > { %868 = vmatpush.bf16.msra.mxu0 %v3668_v31  ;;  %882 = vmatpush.bf16.msra.mxu1 %v3672_v35  ;;  %v5171_v10 = vld [vmem:[%s7959_s4 + $0x134] sm:$0xf0]  ;;  %v5167_v11 = vld [vmem:[%s7959_s4 + $0x11c] sm:$0xf]  ;;  %v3812_v13 = vor.u32 %v5170_v4, %v3811_v1  ;;  %v3816_v14 = vor.u32 %v5166_v5, %v3813_v8  ;;  %v3779_v16 = vld [vmem:[%s7959_s4 + $0xd0] sm:$0xf] }
  0x2d   : > { %896 = vmatpush.bf16.msra.mxu2 %v3676_v36  ;;  %v3821_v12 = vld [vmem:[%s7959_s4 + $0x138] sm:$0xf0]  ;;  %v3820_v15 = vor.u32 %v5171_v10, %v3819_v9  ;;  %v5162_v17 = vld [vmem:[%s7959_s4 + $0xec] sm:$0xf0]  ;;  %v5158_v18 = vld [vmem:[%s7959_s4 + $0xd4] sm:$0xf] }
  0x2e   : > { %910 = vmatpush.bf16.msra.mxu3 %v3680_v39  ;;  %v3824_v19 = vor.u32 %v5167_v11, %v3821_v12  ;;  %v3781_v20 = vld [vmem:[%s7959_s4 + $0xf0] sm:$0xf0]  ;;  %v3787_v21 = vld [vmem:[%s7959_s4 + $0xd8] sm:$0xf]  ;;  %v5159_v23 = vld [vmem:[%s7959_s4 + $0xdc] sm:$0xf]  ;;  %v3780_v25 = vor.u32 %v5162_v17, %v3779_v16 }
  0x2f   : > { %869 = vmatmul.bf16.vlgmr.msra.gmra.mxu0 %v5855_v6  ;;  %883 = vmatmul.bf16.vlgmr.msra.gmra.mxu1 %v5855_v6  ;;  %v5163_v22 = vld [vmem:[%s7959_s4 + $0xf4] sm:$0xf0]  ;;  %v3789_v24 = vld [vmem:[%s7959_s4 + $0xf8] sm:$0xf0]  ;;  %v3784_v26 = vor.u32 %v5158_v18, %v3781_v20  ;;  %v3747_v28 = vld [vmem:[%s7959_s4 + $0x90] sm:$0xf] }
  0x30   : > { %917 = vmatpush.bf16.msrb.mxu0 %v3908_v40  ;;  %931 = vmatpush.bf16.msrb.mxu1 %v3912_v41  ;;  %v3788_v27 = vor.u32 %v5163_v22, %v3787_v21  ;;  %v5154_v29 = vld [vmem:[%s7959_s4 + $0xac] sm:$0xf0]  ;;  %v5150_v30 = vld [vmem:[%s7959_s4 + $0x94] sm:$0xf]  ;;  %v3792_v31 = vor.u32 %v5159_v23, %v3789_v24  ;;  %v3755_v33 = vld [vmem:[%s7959_s4 + $0x98] sm:$0xf] }
  0x31   : > { %945 = vmatpush.bf16.msrb.mxu2 %v3916_v42  ;;  %911 = vmatmul.bf16.vlgmr.msra.gmra.mxu3 %v5855_v6  ;;  %v3749_v32 = vld [vmem:[%s7959_s4 + $0xb0] sm:$0xf0]  ;;  %v5155_v34 = vld [vmem:[%s7959_s4 + $0xb4] sm:$0xf0]  ;;  %v5151_v35 = vld [vmem:[%s7959_s4 + $0x9c] sm:$0xf]  ;;  %v3748_v37 = vor.u32 %v5154_v29, %v3747_v28 }
  0x32   : > { %959 = vmatpush.bf16.msrb.mxu3 %v3920_v46  ;;  %897 = vmatmul.bf16.vlgmr.msra.gmra.mxu2 %v5855_v6  ;;  %v3757_v36 = vld [vmem:[%s7959_s4 + $0xb8] sm:$0xf0]  ;;  %v3752_v38 = vor.u32 %v5150_v30, %v3749_v32  ;;  %v3756_v39 = vor.u32 %v5155_v34, %v3755_v33  ;;  %v3715_v40 = vld [vmem:[%s7959_s4 + $0x50] sm:$0xf]  ;;  %v5142_v42 = vld [vmem:[%s7959_s4 + $0x54] sm:$0xf] }
  0x33   : > { %v5146_v41 = vld [vmem:[%s7959_s4 + $0x6c] sm:$0xf0]  ;;  %v3760_v43 = vor.u32 %v5151_v35, %v3757_v36  ;;  %v3717_v44 = vld [vmem:[%s7959_s4 + $0x70] sm:$0xf0]  ;;  %v3723_v45 = vld [vmem:[%s7959_s4 + $0x58] sm:$0xf] }
  0x34   : > { %918 = vmatpush.bf16.msrb.mxu0 %v3876_v52  ;;  %932 = vmatpush.bf16.msrb.mxu1 %v3880_v54  ;;  %v5147_v46 = vld [vmem:[%s7959_s4 + $0x74] sm:$0xf0]  ;;  %v5143_v47 = vld [vmem:[%s7959_s4 + $0x5c] sm:$0xf]  ;;  %v3716_v49 = vor.u32 %v5146_v41, %v3715_v40  ;;  %v3683_v50 = vld [vmem:[%s7959_s4 + $0x10] sm:$0xf]  ;;  %v3720_v52 = vor.u32 %v5142_v42, %v3717_v44 }
  0x35   : > { %946 = vmatpush.bf16.msrb.mxu2 %v3884_v55  ;;  %v3725_v48 = vld [vmem:[%s7959_s4 + $0x78] sm:$0xf0]  ;;  %v5138_v51 = vld [vmem:[%s7959_s4 + $0x2c] sm:$0xf0]  ;;  %v3724_v53 = vor.u32 %v5147_v46, %v3723_v45  ;;  %v5134_v54 = vld [vmem:[%s7959_s4 + $0x14] sm:$0xf] }
  0x36   : > { %960 = vmatpush.bf16.msrb.mxu3 %v3888_v58  ;;  %v3685_v55 = vld [vmem:[%s7959_s4 + $0x30] sm:$0xf0]  ;;  %v3691_v56 = vld [vmem:[%s7959_s4 + $0x18] sm:$0xf]  ;;  %v3728_v57 = vor.u32 %v5143_v47, %v3725_v48  ;;  %v5135_v59 = vld [vmem:[%s7959_s4 + $0x1c] sm:$0xf] }
  0x37   : > { %v5139_v58 = vld [vmem:[%s7959_s4 + $0x34] sm:$0xf0]  ;;  %v3693_v60 = vld [vmem:[%s7959_s4 + $0x38] sm:$0xf0]  ;;  %v4023_v61 = vld [vmem:[%s7958_s3 + $0xc0] sm:$0xf]  ;;  %v3688_v4 = vor.u32 %v5134_v54, %v3685_v55 }
  0x38   : > { %919 = vmatpush.bf16.msrb.mxu0 %v3844_v0  ;;  %933 = vmatpush.bf16.msrb.mxu1 %v3848_v2  ;;  %v5127_v62 = vld [vmem:[%s7958_s3 + $0xdc] sm:$0xf0]  ;;  %v5123_v63 = vld [vmem:[%s7958_s3 + $0xc4] sm:$0xf]  ;;  %v3684_v0 = vor.u32 %v5138_v51, %v3683_v50  ;;  %v4031_v2 = vld [vmem:[%s7958_s3 + $0xc8] sm:$0xf]  ;;  %v3692_v5 = vor.u32 %v5139_v58, %v3691_v56  ;;  %v3696_v9 = vor.u32 %v5135_v59, %v3693_v60 }
  0x39   : > { %947 = vmatpush.bf16.msrb.mxu2 %v3852_v3  ;;  %v4025_v1 = vld [vmem:[%s7958_s3 + $0xe0] sm:$0xf0]  ;;  %v5128_v3 = vld [vmem:[%s7958_s3 + $0xe4] sm:$0xf0]  ;;  %v4033_v8 = vld [vmem:[%s7958_s3 + $0xe8] sm:$0xf0]  ;;  %v4024_v10 = vor.u32 %v5127_v62, %v4023_v61 }
  0x3a   : > { %961 = vmatpush.bf16.msrb.mxu3 %v3856_v7  ;;  %v5124_v7 = vld [vmem:[%s7958_s3 + $0xcc] sm:$0xf]  ;;  %v4028_v11 = vor.u32 %v5123_v63, %v4025_v1  ;;  %v4032_v12 = vor.u32 %v5128_v3, %v4031_v2  ;;  %v3993_v17 = vld [vmem:[%s7958_s3 + $0xa0] sm:$0xf0]  ;;  %v3999_v18 = vld [vmem:[%s7958_s3 + $0x88] sm:$0xf] }
  0x3b   : > { %v4036_v16 = vor.u32 %v5124_v7, %v4033_v8  ;;  %v5116_v20 = vld [vmem:[%s7958_s3 + $0x8c] sm:$0xf]  ;;  %v3961_v29 = vld [vmem:[%s7958_s3 + $0x60] sm:$0xf0]  ;;  %v3967_v30 = vld [vmem:[%s7958_s3 + $0x48] sm:$0xf] }
  0x3c   : > { %920 = vmatpush.bf16.msrb.mxu0 %v3812_v13  ;;  %934 = vmatpush.bf16.msrb.mxu1 %v3816_v14  ;;  %v3991_v13 = vld [vmem:[%s7958_s3 + $0x80] sm:$0xf]  ;;  %v4001_v21 = vld [vmem:[%s7958_s3 + $0xa8] sm:$0xf0]  ;;  %v3935_v40 = vld [vmem:[%s7958_s3 + $0x8] sm:$0xf] }
  0x3d   : > { %948 = vmatpush.bf16.msrb.mxu2 %v3820_v15  ;;  %v5119_v14 = vld [vmem:[%s7958_s3 + $0x9c] sm:$0xf0]  ;;  %v5115_v15 = vld [vmem:[%s7958_s3 + $0x84] sm:$0xf]  ;;  %v4004_v28 = vor.u32 %v5116_v20, %v4001_v21  ;;  %v5108_v32 = vld [vmem:[%s7958_s3 + $0x4c] sm:$0xf] }
  0x3e   : > { %962 = vmatpush.bf16.msrb.mxu3 %v3824_v19  ;;  %v5120_v19 = vld [vmem:[%s7958_s3 + $0xa4] sm:$0xf0]  ;;  %v3992_v22 = vor.u32 %v5119_v14, %v3991_v13  ;;  %v3996_v23 = vor.u32 %v5115_v15, %v3993_v17  ;;  %v3969_v33 = vld [vmem:[%s7958_s3 + $0x68] sm:$0xf0]  ;;  %v3927_v35 = vld [vmem:[%s7958_s3] sm:$0xf] }
  0x3f   : > { %v4000_v24 = vor.u32 %v5120_v19, %v3999_v18  ;;  %v5103_v36 = vld [vmem:[%s7958_s3 + $0x1c] sm:$0xf0]  ;;  %v3972_v41 = vor.u32 %v5108_v32, %v3969_v33  ;;  %v5104_v42 = vld [vmem:[%s7958_s3 + $0x24] sm:$0xf0]  ;;  %v3937_v44 = vld [vmem:[%s7958_s3 + $0x28] sm:$0xf0] }
  0x40   : > { %921 = vmatpush.bf16.msrb.mxu0 %v3780_v25  ;;  %935 = vmatpush.bf16.msrb.mxu1 %v3784_v26  ;;  %v3959_v25 = vld [vmem:[%s7958_s3 + $0x40] sm:$0xf]  ;;  %v4039_v45 = vld [vmem:[%s7958_s3 + $0xd0] sm:$0xf]  ;;  %v5125_v47 = vld [vmem:[%s7958_s3 + $0xd4] sm:$0xf]  ;;  %v3928_v48 = vor.u32 %v5103_v36, %v3927_v35 }
  0x41   : > { %949 = vmatpush.bf16.msrb.mxu2 %v3788_v27  ;;  %v5111_v26 = vld [vmem:[%s7958_s3 + $0x5c] sm:$0xf0]  ;;  %v5107_v27 = vld [vmem:[%s7958_s3 + $0x44] sm:$0xf]  ;;  %v5129_v46 = vld [vmem:[%s7958_s3 + $0xec] sm:$0xf0] }
  0x42   : > { %963 = vmatpush.bf16.msrb.mxu3 %v3792_v31  ;;  %v5112_v31 = vld [vmem:[%s7958_s3 + $0x64] sm:$0xf0]  ;;  %v3960_v34 = vor.u32 %v5111_v26, %v3959_v25  ;;  %v4047_v50 = vld [vmem:[%s7958_s3 + $0xd8] sm:$0xf]  ;;  %v5126_v54 = vld [vmem:[%s7958_s3 + $0xdc] sm:$0xf] }
  0x43   : > { %v5130_v51 = vld [vmem:[%s7958_s3 + $0xf4] sm:$0xf0]  ;;  %v4049_v55 = vld [vmem:[%s7958_s3 + $0xf8] sm:$0xf0]  ;;  %v4007_v60 = vld [vmem:[%s7958_s3 + $0x90] sm:$0xf] }
  0x44   : > { %922 = vmatpush.bf16.msrb.mxu0 %v3748_v37  ;;  %936 = vmatpush.bf16.msrb.mxu1 %v3752_v38  ;;  %v3964_v37 = vor.u32 %v5107_v27, %v3961_v29  ;;  %v3968_v38 = vor.u32 %v5112_v31, %v3967_v30  ;;  %v4048_v59 = vor.u32 %v5130_v51, %v4047_v50  ;;  %v5121_v61 = vld [vmem:[%s7958_s3 + $0xac] sm:$0xf0]  ;;  %v5117_v62 = vld [vmem:[%s7958_s3 + $0x94] sm:$0xf]  ;;  %v4015_v1 = vld [vmem:[%s7958_s3 + $0x98] sm:$0xf] }
  0x45   : > { %950 = vmatpush.bf16.msrb.mxu2 %v3756_v39  ;;  %v5099_v39 = vld [vmem:[%s7958_s3 + $0x4] sm:$0xf]  ;;  %v4052_v63 = vor.u32 %v5126_v54, %v4049_v55  ;;  %v5122_v2 = vld [vmem:[%s7958_s3 + $0xb4] sm:$0xf0]  ;;  %v5118_v3 = vld [vmem:[%s7958_s3 + $0x9c] sm:$0xf] }
  0x46   : > { %964 = vmatpush.bf16.msrb.mxu3 %v3760_v43  ;;  %v5100_v43 = vld [vmem:[%s7958_s3 + $0xc] sm:$0xf]  ;;  %v6125_v7 = vld [vmem:[%s407_s14] sm:$0xff]  ;;  %v3977_v14 = vld [vmem:[%s7958_s3 + $0x70] sm:$0xf0]  ;;  %vm2469_vm10 = vcmask 1042434  }
  0x47   : > { %v3940_v56 = vor.u32 %v5100_v43, %v3937_v44  ;;  %v3983_v15 = vld [vmem:[%s7958_s3 + $0x58] sm:$0xf]  ;;  %v5110_v17 = vld [vmem:[%s7958_s3 + $0x5c] sm:$0xf]  ;;  %v3943_v20 = vld [vmem:[%s7958_s3 + $0x10] sm:$0xf] }
  0x48   : > { %923 = vmatpush.bf16.msrb.mxu0 %v3716_v49  ;;  %937 = vmatpush.bf16.msrb.mxu1 %v3720_v52  ;;  %v4041_v49 = vld [vmem:[%s7958_s3 + $0xf0] sm:$0xf0]  ;;  %v3985_v18 = vld [vmem:[%s7958_s3 + $0x78] sm:$0xf0]  ;;  %v5105_v21 = vld [vmem:[%s7958_s3 + $0x2c] sm:$0xf0] }
  0x49   : > { %951 = vmatpush.bf16.msrb.mxu2 %v3724_v53  ;;  %v3936_v53 = vor.u32 %v5104_v42, %v3935_v40  ;;  %v4044_v58 = vor.u32 %v5125_v47, %v4041_v49  ;;  %v3945_v25 = vld [vmem:[%s7958_s3 + $0x30] sm:$0xf0]  ;;  %v3951_v26 = vld [vmem:[%s7958_s3 + $0x18] sm:$0xf]  ;;  %v3988_v27 = vor.u32 %v5110_v17, %v3985_v18  ;;  %v5102_v29 = vld [vmem:[%s7958_s3 + $0x1c] sm:$0xf] }
  0x4a   : > { %965 = vmatpush.bf16.msrb.mxu3 %v3728_v57  ;;  %v4040_v57 = vor.u32 %v5129_v46, %v4039_v45  ;;  %v3953_v30 = vld [vmem:[%s7958_s3 + $0x38] sm:$0xf0]  ;;  %v4295_v31 = vld [vmem:[%s7960_s5 + $0x1c0] sm:$0xf]  ;;  %v5254_v36 = vld [vmem:[%s7960_s5 + $0x1c4] sm:$0xf] }
  0x4b   : > { %v5258_v32 = vld [vmem:[%s7960_s5 + $0x1dc] sm:$0xf0]  ;;  %v4553_v40 = vld [vmem:[%s7960_s5 + $0x3e0] sm:$0xf0]  ;;  %vm2471_vm11 = vcmask 1041408   ;;  %s3660_s20 = sshll.u32 %s7970_s30, 1 }
  0x4c   : > { %924 = vmatpush.bf16.msrb.mxu0 %v3684_v0  ;;  %938 = vmatpush.bf16.msrb.mxu1 %v3688_v4  ;;  %v4009_v0 = vld [vmem:[%s7958_s3 + $0xb0] sm:$0xf0]  ;;  %v4017_v4 = vld [vmem:[%s7958_s3 + $0xb8] sm:$0xf0]  ;;  %v4551_v33 = vld [vmem:[%s7960_s5 + $0x3c0] sm:$0xf]  ;;  %v4296_v42 = vor.u32 %v5258_v32, %v4295_v31  ;;  %s433_s19 = scalar_lea.vmem %s7964_s9, %s3660_s20 }
  0x4d   : > { %952 = vmatpush.bf16.msrb.mxu2 %v3692_v5  ;;  %v4008_v5 = vor.u32 %v5121_v61, %v4007_v60  ;;  %v4012_v8 = vor.u32 %v5117_v62, %v4009_v0  ;;  %v4020_v13 = vor.u32 %v5118_v3, %v4017_v4  ;;  %v5322_v35 = vld [vmem:[%s7960_s5 + $0x3dc] sm:$0xf0]  ;;  %v5246_v50 = vld [vmem:[%s7960_s5 + $0x184] sm:$0xf] }
  0x4e   : > { %966 = vmatpush.bf16.msrb.mxu3 %v3696_v9  ;;  %v4016_v9 = vor.u32 %v5122_v2, %v4015_v1  ;;  %v4552_v43 = vor.u32 %v5322_v35, %v4551_v33  ;;  %v4263_v45 = vld [vmem:[%s7960_s5 + $0x180] sm:$0xf]  ;;  %v4265_v51 = vld [vmem:[%s7960_s5 + $0x1a0] sm:$0xf0] }
  0x4f   : > { %925 = vmatmul.bf16.vlgmr.msrb.gmra.mxu0 %v5855_v6  ;;  %939 = vmatmul.bf16.vlgmr.msrb.gmra.mxu1 %v5855_v6  ;;  %v5250_v46 = vld [vmem:[%s7960_s5 + $0x19c] sm:$0xf0]  ;;  %v5238_v62 = vld [vmem:[%s7960_s5 + $0x144] sm:$0xf] }
  0x50   : > { %1146 = vmatpush.bf16.msra.mxu0 %v4024_v10  ;;  %1160 = vmatpush.bf16.msra.mxu1 %v4028_v11  ;;  %v3975_v10 = vld [vmem:[%s7958_s3 + $0x50] sm:$0xf]  ;;  %v4519_v47 = vld [vmem:[%s7960_s5 + $0x380] sm:$0xf]  ;;  %v4264_v54 = vor.u32 %v5250_v46, %v4263_v45  ;;  %v5302_v0 = vld [vmem:[%s7960_s5 + $0x344] sm:$0xf] }
  0x51   : > { %1174 = vmatpush.bf16.msra.mxu2 %v4032_v12  ;;  %967 = vmatmul.bf16.vlgmr.msrb.gmra.mxu3 %v5855_v6  ;;  %v5113_v11 = vld [vmem:[%s7958_s3 + $0x6c] sm:$0xf0]  ;;  %v5109_v12 = vld [vmem:[%s7958_s3 + $0x54] sm:$0xf]  ;;  %v5314_v49 = vld [vmem:[%s7960_s5 + $0x39c] sm:$0xf0] }
  0x52   : > { %1188 = vmatpush.bf16.msra.mxu3 %v4036_v16  ;;  %953 = vmatmul.bf16.vlgmr.msrb.gmra.mxu2 %v5855_v6  ;;  %v3929_v6 = vld [vmem:[%s7958_s3 + $0x20] sm:$0xf0]  ;;  %v5114_v16 = vld [vmem:[%s7958_s3 + $0x74] sm:$0xf0]  ;;  %v3976_v19 = vor.u32 %v5113_v11, %v3975_v10  ;;  %v4520_v55 = vor.u32 %v5314_v49, %v4519_v47  ;;  %v4487_v60 = vld [vmem:[%s7960_s5 + $0x340] sm:$0xf] }
  0x53   : > { %v3932_v52 = vor.u32 %v5099_v39, %v3929_v6  ;;  %v5318_v6 = vld [vmem:[%s7960_s5 + $0x3c4] sm:$0xf]  ;;  %v5306_v61 = vld [vmem:[%s7960_s5 + $0x35c] sm:$0xf0] }
  0x54   : > { %1147 = vmatpush.bf16.msra.mxu0 %v3992_v22  ;;  %1161 = vmatpush.bf16.msra.mxu1 %v3996_v23  ;;  %v3980_v22 = vor.u32 %v5109_v12, %v3977_v14  ;;  %v3984_v23 = vor.u32 %v5114_v16, %v3983_v15  ;;  %v4489_v1 = vld [vmem:[%s7960_s5 + $0x360] sm:$0xf0]  ;;  %v4488_v3 = vor.u32 %v5306_v61, %v4487_v60  ;;  %v5298_v11 = vld [vmem:[%s7960_s5 + $0x31c] sm:$0xf0] }
  0x55   : > { %1175 = vmatpush.bf16.msra.mxu2 %v4000_v24  ;;  %v5101_v24 = vld [vmem:[%s7958_s3 + $0x14] sm:$0xf]  ;;  %v4492_v10 = vor.u32 %v5302_v0, %v4489_v1  ;;  %v5230_v12 = vld [vmem:[%s7960_s5 + $0x104] sm:$0xf]  ;;  %v5218_v31 = vld [vmem:[%s7960_s5 + $0x9c] sm:$0xf0] }
  0x56   : > { %1189 = vmatpush.bf16.msra.mxu3 %v4004_v28  ;;  %v5106_v28 = vld [vmem:[%s7958_s3 + $0x34] sm:$0xf0]  ;;  %v5294_v14 = vld [vmem:[%s7960_s5 + $0x304] sm:$0xf]  ;;  %v4391_v32 = vld [vmem:[%s7960_s5 + $0x280] sm:$0xf] }
  0x57   : > { %v3952_v39 = vor.u32 %v5106_v28, %v3951_v26  ;;  %v4457_v15 = vld [vmem:[%s7960_s5 + $0x320] sm:$0xf0]  ;;  %v5274_v45 = vld [vmem:[%s7960_s5 + $0x25c] sm:$0xf0]  ;;  %v4559_v0 = vld [vmem:[%s7960_s5 + $0x3c8] sm:$0xf] }
  0x58   : > { %1148 = vmatpush.bf16.msra.mxu0 %v3960_v34  ;;  %1162 = vmatpush.bf16.msra.mxu1 %v3964_v37  ;;  %v3944_v34 = vor.u32 %v5105_v21, %v3943_v20  ;;  %v4297_v37 = vld [vmem:[%s7960_s5 + $0x1e0] sm:$0xf0]  ;;  %v5226_v20 = vld [vmem:[%s7960_s5 + $0xdc] sm:$0xf0]  ;;  %v5323_v1 = vld [vmem:[%s7960_s5 + $0x3e4] sm:$0xf0] }
  0x59   : > { %1176 = vmatpush.bf16.msra.mxu2 %v3968_v38  ;;  %v3948_v38 = vor.u32 %v5101_v24, %v3945_v25  ;;  %v4300_v44 = vor.u32 %v5254_v36, %v4297_v37  ;;  %v4423_v21 = vld [vmem:[%s7960_s5 + $0x2c0] sm:$0xf]  ;;  %v4169_v24 = vld [vmem:[%s7960_s5 + $0xe0] sm:$0xf0] }
  0x5a   : > { %1190 = vmatpush.bf16.msra.mxu3 %v3972_v41  ;;  %v3956_v41 = vor.u32 %v5102_v29, %v3953_v30  ;;  %v5286_v25 = vld [vmem:[%s7960_s5 + $0x2c4] sm:$0xf]  ;;  %v4135_v30 = vld [vmem:[%s7960_s5 + $0x80] sm:$0xf] }
  0x5b   : > { %v4425_v26 = vld [vmem:[%s7960_s5 + $0x2e0] sm:$0xf0] }
  0x5c   : > { %1149 = vmatpush.bf16.msra.mxu0 %v3928_v48  ;;  %1163 = vmatpush.bf16.msra.mxu1 %v3932_v52  ;;  %v4556_v48 = vor.u32 %v5318_v6, %v4553_v40  ;;  %v5310_v52 = vld [vmem:[%s7960_s5 + $0x384] sm:$0xf]  ;;  %v4428_v33 = vor.u32 %v5286_v25, %v4425_v26  ;;  %v4273_v25 = vld [vmem:[%s7960_s5 + $0x1a8] sm:$0xf0] }
  0x5d   : > { %1177 = vmatpush.bf16.msra.mxu2 %v3936_v53  ;;  %v4521_v53 = vld [vmem:[%s7960_s5 + $0x3a0] sm:$0xf0] }
  0x5e   : > { %1191 = vmatpush.bf16.msra.mxu3 %v3940_v56  ;;  %v4268_v56 = vor.u32 %v5246_v50, %v4265_v51  ;;  %v5214_v35 = vld [vmem:[%s7960_s5 + $0x84] sm:$0xf]  ;;  %v4071_v51 = vld [vmem:[%s7960_s5] sm:$0xf] }
  0x5f   : > { %4053 = vmatmul.msk.bf16.vlgmr.msra.gmra.mxu0 %vm1138_vm0, %v6125_v7  ;;  %4054 = vmatmul.msk.bf16.vlgmr.msra.gmra.mxu1 %vm1138_vm0, %v6125_v7  ;;  %v4137_v36 = vld [vmem:[%s7960_s5 + $0xa0] sm:$0xf0] }
  0x60   : > { %1202 = vmatpush.bf16.msrb.mxu0 %v4040_v57  ;;  %1216 = vmatpush.bf16.msrb.mxu1 %v4044_v58  ;;  %v4524_v57 = vor.u32 %v5310_v52, %v4521_v53  ;;  %v4231_v58 = vld [vmem:[%s7960_s5 + $0x140] sm:$0xf]  ;;  %v5278_v37 = vld [vmem:[%s7960_s5 + $0x284] sm:$0xf]  ;;  %v4140_v40 = vor.u32 %v5214_v35, %v4137_v36  ;;  %v5307_v36 = vld [vmem:[%s7960_s5 + $0x364] sm:$0xf0] }
  0x61   : > { %1230 = vmatpush.bf16.msrb.mxu2 %v4048_v59  ;;  %4056 = vmatmul.msk.bf16.vlgmr.msra.gmra.mxu3 %vm1138_vm0, %v6125_v7  ;;  %v5242_v59 = vld [vmem:[%s7960_s5 + $0x15c] sm:$0xf0]  ;;  %v5206_v46 = vld [vmem:[%s7960_s5 + $0x44] sm:$0xf] }
  0x62   : > { %1244 = vmatpush.bf16.msrb.mxu3 %v4052_v63  ;;  %4055 = vmatmul.msk.bf16.vlgmr.msra.gmra.mxu2 %vm1138_vm0, %v6125_v7  ;;  %v4233_v63 = vld [vmem:[%s7960_s5 + $0x160] sm:$0xf0]  ;;  %v4232_v2 = vor.u32 %v5242_v59, %v4231_v58  ;;  %v5202_v52 = vld [vmem:[%s7960_s5 + $0x1c] sm:$0xf0] }
  0x63   : > { %v4236_v4 = vor.u32 %v5238_v62, %v4233_v63  ;;  %v4105_v47 = vld [vmem:[%s7960_s5 + $0x60] sm:$0xf0]  ;;  %v4327_v53 = vld [vmem:[%s7960_s5 + $0x200] sm:$0xf]  ;;  %v4303_v62 = vld [vmem:[%s7960_s5 + $0x1c8] sm:$0xf] }
  0x64   : > { %1203 = vmatpush.bf16.msrb.mxu0 %v4008_v5  ;;  %1217 = vmatpush.bf16.msrb.mxu1 %v4012_v8  ;;  %v4199_v5 = vld [vmem:[%s7960_s5 + $0x100] sm:$0xf]  ;;  %v4361_v49 = vld [vmem:[%s7960_s5 + $0x260] sm:$0xf0]  ;;  %v5259_v63 = vld [vmem:[%s7960_s5 + $0x1e4] sm:$0xf0] }
  0x65   : > { %1231 = vmatpush.bf16.msrb.mxu2 %v4016_v9  ;;  %v5234_v8 = vld [vmem:[%s7960_s5 + $0x11c] sm:$0xf0]  ;;  %v4073_v58 = vld [vmem:[%s7960_s5 + $0x20] sm:$0xf0] }
  0x66   : > { %1245 = vmatpush.bf16.msrb.mxu3 %v4020_v13  ;;  %v4455_v9 = vld [vmem:[%s7960_s5 + $0x300] sm:$0xf]  ;;  %v4201_v13 = vld [vmem:[%s7960_s5 + $0x120] sm:$0xf0]  ;;  %v4200_v16 = vor.u32 %v5234_v8, %v4199_v5  ;;  %v5319_v5 = vld [vmem:[%s7960_s5 + $0x3cc] sm:$0xf] }
  0x67   : > { %v4456_v17 = vor.u32 %v5298_v11, %v4455_v9  ;;  %v4204_v18 = vor.u32 %v5230_v12, %v4201_v13  ;;  %v5262_v60 = vld [vmem:[%s7960_s5 + $0x204] sm:$0xf]  ;;  %v4063_v11 = vld [vmem:[%s428_s22] sm:$0xf]  ;;  %v5197_v12 = vld [vmem:[%s428_s22 + $0x4] sm:$0xf0] }
  0x68   : > { %1204 = vmatpush.bf16.msrb.mxu0 %v3976_v19  ;;  %1218 = vmatpush.bf16.msrb.mxu1 %v3980_v22  ;;  %v4167_v19 = vld [vmem:[%s7960_s5 + $0xc0] sm:$0xf]  ;;  %v4329_v61 = vld [vmem:[%s7960_s5 + $0x220] sm:$0xf0] }
  0x69   : > { %1232 = vmatpush.bf16.msrb.mxu2 %v3984_v23  ;;  %v5290_v22 = vld [vmem:[%s7960_s5 + $0x2dc] sm:$0xf0]  ;;  %v5222_v23 = vld [vmem:[%s7960_s5 + $0xc4] sm:$0xf]  ;;  %v4332_v13 = vor.u32 %v5262_v60, %v4329_v61  ;;  %v5223_v60 = vld [vmem:[%s7960_s5 + $0xcc] sm:$0xf] }
  0x6a   : > { %1246 = vmatpush.bf16.msrb.mxu3 %v3988_v27  ;;  %v4168_v27 = vor.u32 %v5226_v20, %v4167_v19  ;;  %v4424_v28 = vor.u32 %v5290_v22, %v4423_v21  ;;  %v4172_v29 = vor.u32 %v5222_v23, %v4169_v24  ;;  %v4271_v19 = vld [vmem:[%s7960_s5 + $0x188] sm:$0xf]  ;;  %v6420_v22 = vor.u32 %v5197_v12, %v4063_v11  ;;  %v5247_v24 = vld [vmem:[%s7960_s5 + $0x18c] sm:$0xf] }
  0x6b   : > { %v5251_v20 = vld [vmem:[%s7960_s5 + $0x1a4] sm:$0xf0]  ;;  %v4177_v61 = vld [vmem:[%s7960_s5 + $0xe8] sm:$0xf0] }
  0x6c   : > { %1205 = vmatpush.bf16.msrb.mxu0 %v3944_v34  ;;  %1219 = vmatpush.bf16.msrb.mxu1 %v3948_v38  ;;  %v5282_v34 = vld [vmem:[%s7960_s5 + $0x29c] sm:$0xf0]  ;;  %v4393_v38 = vld [vmem:[%s7960_s5 + $0x2a0] sm:$0xf0]  ;;  %v4527_v21 = vld [vmem:[%s7960_s5 + $0x388] sm:$0xf] }
  0x6d   : > { %1233 = vmatpush.bf16.msrb.mxu2 %v3952_v39  ;;  %v4136_v39 = vor.u32 %v5218_v31, %v4135_v30  ;;  %v4392_v6 = vor.u32 %v5282_v34, %v4391_v32  ;;  %v5315_v23 = vld [vmem:[%s7960_s5 + $0x3a4] sm:$0xf0]  ;;  %v4276_v31 = vor.u32 %v5247_v24, %v4273_v25  ;;  %v4145_v11 = vld [vmem:[%s7960_s5 + $0xa8] sm:$0xf0] }
  0x6e   : > { %1247 = vmatpush.bf16.msrb.mxu3 %v3956_v41  ;;  %v4103_v41 = vld [vmem:[%s7960_s5 + $0x40] sm:$0xf]  ;;  %v4528_v30 = vor.u32 %v5315_v23, %v4527_v21  ;;  %v4239_v32 = vld [vmem:[%s7960_s5 + $0x148] sm:$0xf]  ;;  %v5279_v12 = vld [vmem:[%s7960_s5 + $0x28c] sm:$0xf] }
  0x6f   : > { %4057 = vmatmul.msk.bf16.vlgmr.msrb.gmra.mxu0 %vm1138_vm0, %v6125_v7  ;;  %4058 = vmatmul.msk.bf16.vlgmr.msrb.gmra.mxu1 %vm1138_vm0, %v6125_v7  ;;  %v4495_v34 = vld [vmem:[%s7960_s5 + $0x348] sm:$0xf]  ;;  %v4113_v23 = vld [vmem:[%s7960_s5 + $0x68] sm:$0xf0] }
  0x70   : > { %2034 = vmatpush.bf16.msra.mxu0 %v4296_v42  ;;  %2048 = vmatpush.bf16.msra.mxu1 %v4552_v43  ;;  %v5210_v42 = vld [vmem:[%s7960_s5 + $0x5c] sm:$0xf0]  ;;  %v5275_v21 = vld [vmem:[%s7960_s5 + $0x264] sm:$0xf0]  ;;  %v5271_v24 = vld [vmem:[%s7960_s5 + $0x24c] sm:$0xf] }
  0x71   : > { %2062 = vmatpush.bf16.msra.mxu2 %v4300_v44  ;;  %4060 = vmatmul.msk.bf16.vlgmr.msrb.gmra.mxu3 %vm1138_vm0, %v6125_v7  ;;  %v4359_v43 = vld [vmem:[%s7960_s5 + $0x240] sm:$0xf]  ;;  %v4396_v44 = vor.u32 %v5278_v37, %v4393_v38  ;;  %v4104_v50 = vor.u32 %v5210_v42, %v4103_v41  ;;  %v5239_v37 = vld [vmem:[%s7960_s5 + $0x14c] sm:$0xf]  ;;  %v4496_v41 = vor.u32 %v5307_v36, %v4495_v34 }
  0x72   : > { %2076 = vmatpush.bf16.msra.mxu3 %v4556_v48  ;;  %4059 = vmatmul.msk.bf16.vlgmr.msrb.gmra.mxu2 %vm1138_vm0, %v6125_v7  ;;  %v4460_v7 = vor.u32 %v5294_v14, %v4457_v15  ;;  %v5270_v48 = vld [vmem:[%s7960_s5 + $0x244] sm:$0xf]  ;;  %v4304_v14 = vor.u32 %v5259_v63, %v4303_v62  ;;  %v4241_v38 = vld [vmem:[%s7960_s5 + $0x168] sm:$0xf0]  ;;  %vm2473_vm0 = vcmask 1044484  }
  0x73   : > { %v4364_v59 = vor.u32 %v5270_v48, %v4361_v49  ;;  %v5196_v15 = vld [vmem:[%s428_s22 + $0x4] sm:$0xf]  ;;  %v4244_v42 = vor.u32 %v5239_v37, %v4241_v38  ;;  %v5231_v48 = vld [vmem:[%s7960_s5 + $0x10c] sm:$0xf] }
  0x74   : > { %2035 = vmatpush.bf16.msra.mxu0 %v4264_v54  ;;  %2049 = vmatpush.bf16.msra.mxu1 %v4520_v55  ;;  %v4360_v54 = vor.u32 %v5274_v45, %v4359_v43  ;;  %v4108_v55 = vor.u32 %v5206_v46, %v4105_v47  ;;  %v4207_v43 = vld [vmem:[%s7960_s5 + $0x108] sm:$0xf]  ;;  %v4209_v49 = vld [vmem:[%s7960_s5 + $0x128] sm:$0xf0] }
  0x75   : > { %2063 = vmatpush.bf16.msra.mxu2 %v4268_v56  ;;  %v5266_v56 = vld [vmem:[%s7960_s5 + $0x21c] sm:$0xf0]  ;;  %v4463_v45 = vld [vmem:[%s7960_s5 + $0x308] sm:$0xf]  ;;  %v5287_v62 = vld [vmem:[%s7960_s5 + $0x2cc] sm:$0xf] }
  0x76   : > { %2077 = vmatpush.bf16.msra.mxu3 %v4524_v57  ;;  %v5198_v57 = vld [vmem:[%s7960_s5 + $0x4] sm:$0xf]  ;;  %v4328_v8 = vor.u32 %v5266_v56, %v4327_v53  ;;  %v5299_v47 = vld [vmem:[%s7960_s5 + $0x324] sm:$0xf0]  ;;  %v4433_v63 = vld [vmem:[%s7960_s5 + $0x2e8] sm:$0xf0] }
  0x77   : > { %v4076_v9 = vor.u32 %v5198_v57, %v4073_v58  ;;  %v4464_v53 = vor.u32 %v5299_v47, %v4463_v45  ;;  %v5227_v56 = vld [vmem:[%s7960_s5 + $0xe4] sm:$0xf0]  ;;  %v4369_v25 = vld [vmem:[%s7960_s5 + $0x268] sm:$0xf0]  ;;  %v5320_v47 = vld [vmem:[%s7960_s5 + $0x3d4] sm:$0xf] }
  0x78   : > { %2036 = vmatpush.bf16.msra.mxu0 %v4232_v2  ;;  %2050 = vmatpush.bf16.msra.mxu1 %v4488_v3  ;;  %v4072_v2 = vor.u32 %v5202_v52, %v4071_v51  ;;  %v5255_v3 = vld [vmem:[%s7960_s5 + $0x1cc] sm:$0xf]  ;;  %v4431_v57 = vld [vmem:[%s7960_s5 + $0x2c8] sm:$0xf] }
  0x79   : > { %2064 = vmatpush.bf16.msra.mxu2 %v4236_v4  ;;  %v4305_v4 = vld [vmem:[%s7960_s5 + $0x1e8] sm:$0xf0] }
  0x7a   : > { %2078 = vmatpush.bf16.msra.mxu3 %v4492_v10  ;;  %v4561_v10 = vld [vmem:[%s7960_s5 + $0x3e8] sm:$0xf0] }
  0x7b   : > { %v4465_v51 = vld [vmem:[%s7960_s5 + $0x328] sm:$0xf0] }
  0x7c   : > { %2037 = vmatpush.bf16.msra.mxu0 %v4200_v16  ;;  %2051 = vmatpush.bf16.msra.mxu1 %v4456_v17  ;;  %v4065_v16 = vld [vmem:[%s428_s22 + $0x8] sm:$0xf0]  ;;  %v4560_v17 = vor.u32 %v5323_v1, %v4559_v0 }
  0x7d   : > { %2065 = vmatpush.bf16.msra.mxu2 %v4204_v18  ;;  %v4308_v18 = vor.u32 %v5255_v3, %v4305_v4  ;;  %v6431_v26 = vor.u32 %v5196_v15, %v4065_v16  ;;  %v4143_v3 = vld [vmem:[%s7960_s5 + $0x88] sm:$0xf]  ;;  %v5199_v34 = vld [vmem:[%s7960_s5 + $0xc] sm:$0xf] }
  0x7e   : > { %2079 = vmatpush.bf16.msra.mxu3 %v4460_v7  ;;  %v4564_v7 = vor.u32 %v5319_v5, %v4561_v10  ;;  %v5219_v4 = vld [vmem:[%s7960_s5 + $0xa4] sm:$0xf0]  ;;  %v5215_v10 = vld [vmem:[%s7960_s5 + $0x8c] sm:$0xf] }
  0x7f   : > { %v4399_v5 = vld [vmem:[%s7960_s5 + $0x288] sm:$0xf]  ;;  %v4148_v16 = vor.u32 %v5215_v10, %v4145_v11  ;;  %v4081_v36 = vld [vmem:[%s7960_s5 + $0x28] sm:$0xf0]  ;;  %v5304_v10 = vld [vmem:[%s7960_s5 + $0x354] sm:$0xf] }
  0x80   : > { %2038 = vmatpush.bf16.msra.mxu0 %v4168_v27  ;;  %2052 = vmatpush.bf16.msra.mxu1 %v4424_v28  ;;  %v5311_v27 = vld [vmem:[%s7960_s5 + $0x38c] sm:$0xf]  ;;  %v4505_v11 = vld [vmem:[%s7960_s5 + $0x370] sm:$0xf0] }
  0x81   : > { %2066 = vmatpush.bf16.msra.mxu2 %v4172_v29  ;;  %v4529_v28 = vld [vmem:[%s7960_s5 + $0x3a8] sm:$0xf0]  ;;  %v4272_v29 = vor.u32 %v5251_v20, %v4271_v19  ;;  %v4367_v19 = vld [vmem:[%s7960_s5 + $0x248] sm:$0xf] }
  0x82   : > { %2080 = vmatpush.bf16.msra.mxu3 %v4428_v33  ;;  %v5243_v33 = vld [vmem:[%s7960_s5 + $0x164] sm:$0xf0]  ;;  %v4532_v35 = vor.u32 %v5311_v27, %v4529_v28  ;;  %v5263_v37 = vld [vmem:[%s7960_s5 + $0x20c] sm:$0xf] }
  0x83   : > { %v4079_v28 = vld [vmem:[%s7960_s5 + $0x8] sm:$0xf]  ;;  %v4337_v38 = vld [vmem:[%s7960_s5 + $0x228] sm:$0xf0] }
  0x84   : > { %2039 = vmatpush.bf16.msra.mxu0 %v4136_v39  ;;  %2053 = vmatpush.bf16.msra.mxu1 %v4392_v6  ;;  %v5303_v39 = vld [vmem:[%s7960_s5 + $0x34c] sm:$0xf] }
  0x85   : > { %2067 = vmatpush.bf16.msra.mxu2 %v4140_v40  ;;  %v4497_v6 = vld [vmem:[%s7960_s5 + $0x368] sm:$0xf0]  ;;  %v4240_v40 = vor.u32 %v5243_v33, %v4239_v32  ;;  %v4335_v32 = vld [vmem:[%s7960_s5 + $0x208] sm:$0xf] }
  0x86   : > { %2081 = vmatpush.bf16.msra.mxu3 %v4396_v44  ;;  %v5235_v44 = vld [vmem:[%s7960_s5 + $0x124] sm:$0xf0]  ;;  %v4500_v46 = vor.u32 %v5303_v39, %v4497_v6  ;;  %v4311_v39 = vld [vmem:[%s7960_s5 + $0x1d0] sm:$0xf] }
  0x87   : > { %v4208_v52 = vor.u32 %v5235_v44, %v4207_v43  ;;  %v5267_v33 = vld [vmem:[%s7960_s5 + $0x224] sm:$0xf0]  ;;  %v5260_v6 = vld [vmem:[%s7960_s5 + $0x1ec] sm:$0xf0]  ;;  %v5256_v43 = vld [vmem:[%s7960_s5 + $0x1d4] sm:$0xf] }
  0x88   : > { %2040 = vmatpush.bf16.msra.mxu0 %v4104_v50  ;;  %2054 = vmatpush.bf16.msra.mxu1 %v4360_v54  ;;  %v5295_v50 = vld [vmem:[%s7960_s5 + $0x30c] sm:$0xf]  ;;  %v4212_v54 = vor.u32 %v5231_v48, %v4209_v49  ;;  %v4313_v44 = vld [vmem:[%s7960_s5 + $0x1f0] sm:$0xf0]  ;;  %v4336_v45 = vor.u32 %v5267_v33, %v4335_v32  ;;  %v4340_v49 = vor.u32 %v5263_v37, %v4337_v38  ;;  %v5292_v32 = vld [vmem:[%s7960_s5 + $0x2ec] sm:$0xf0] }
  0x89   : > { %2068 = vmatpush.bf16.msra.mxu2 %v4108_v55  ;;  %v4175_v55 = vld [vmem:[%s7960_s5 + $0xc8] sm:$0xf]  ;;  %v4468_v58 = vor.u32 %v5295_v50, %v4465_v51  ;;  %v4569_v48 = vld [vmem:[%s7960_s5 + $0x3f0] sm:$0xf0]  ;;  %v4312_v50 = vor.u32 %v5260_v6, %v4311_v39  ;;  %v4151_v6 = vld [vmem:[%s7960_s5 + $0x90] sm:$0xf] }
  0x8a   : > { %2082 = vmatpush.bf16.msra.mxu3 %v4364_v59  ;;  %v5291_v59 = vld [vmem:[%s7960_s5 + $0x2e4] sm:$0xf0]  ;;  %v4176_v0 = vor.u32 %v5227_v56, %v4175_v55  ;;  %v4535_v55 = vld [vmem:[%s7960_s5 + $0x390] sm:$0xf]  ;;  %v4572_v56 = vor.u32 %v5320_v47, %v4569_v48  ;;  %v5224_v33 = vld [vmem:[%s7960_s5 + $0xd4] sm:$0xf] }
  0x8b   : > { %v4432_v1 = vor.u32 %v5291_v59, %v4431_v57  ;;  %v5316_v57 = vld [vmem:[%s7960_s5 + $0x3ac] sm:$0xf0]  ;;  %v4281_v59 = vld [vmem:[%s7960_s5 + $0x1b0] sm:$0xf0] }
  0x8c   : > { %2041 = vmatpush.bf16.msra.mxu0 %v4072_v2  ;;  %2055 = vmatpush.bf16.msra.mxu1 %v4328_v8  ;;  %v4180_v2 = vor.u32 %v5223_v60, %v4177_v61  ;;  %v4436_v8 = vor.u32 %v5287_v62, %v4433_v63  ;;  %v5312_v60 = vld [vmem:[%s7960_s5 + $0x394] sm:$0xf]  ;;  %v4536_v63 = vor.u32 %v5316_v57, %v4535_v55 }
  0x8d   : > { %2069 = vmatpush.bf16.msra.mxu2 %v4076_v9  ;;  %v5283_v9 = vld [vmem:[%s7960_s5 + $0x2a4] sm:$0xf0]  ;;  %v4537_v61 = vld [vmem:[%s7960_s5 + $0x3b0] sm:$0xf0] }
  0x8e   : > { %2083 = vmatpush.bf16.msra.mxu3 %v4332_v13  ;;  %v4401_v13 = vld [vmem:[%s7960_s5 + $0x2a8] sm:$0xf0]  ;;  %v4400_v15 = vor.u32 %v5283_v9, %v4399_v5  ;;  %v5308_v5 = vld [vmem:[%s7960_s5 + $0x36c] sm:$0xf0]  ;;  %v4249_v9 = vld [vmem:[%s7960_s5 + $0x170] sm:$0xf0] }
  0x8f   : > { %2042 = vmatmul.bf16.vlgmr.msra.gmra.mxu0 %v6420_v22  ;;  %2056 = vmatmul.bf16.vlgmr.msra.gmra.mxu1 %v6431_v26  ;;  %v4404_v20 = vor.u32 %v5279_v12, %v4401_v13  ;;  %v4409_v47 = vld [vmem:[%s7960_s5 + $0x2b0] sm:$0xf0] }
  0x90   : > { %2090 = vmatpush.bf16.msrb.mxu0 %v4304_v14  ;;  %2104 = vmatpush.bf16.msrb.mxu1 %v4560_v17  ;;  %v4144_v14 = vor.u32 %v5219_v4, %v4143_v3  ;;  %v4111_v17 = vld [vmem:[%s7960_s5 + $0x48] sm:$0xf]  ;;  %v4503_v3 = vld [vmem:[%s7960_s5 + $0x350] sm:$0xf]  ;;  %v4540_v4 = vor.u32 %v5312_v60, %v4537_v61  ;;  %v5208_v57 = vld [vmem:[%s7960_s5 + $0x54] sm:$0xf] }
  0x91   : > { %2118 = vmatpush.bf16.msrb.mxu2 %v4308_v18  ;;  %2084 = vmatmul.bf16.vlgmr.msra.gmra.mxu3 %v6431_v26  ;;  %v5211_v18 = vld [vmem:[%s7960_s5 + $0x64] sm:$0xf0]  ;;  %v4504_v13 = vor.u32 %v5308_v5, %v4503_v3  ;;  %v5272_v60 = vld [vmem:[%s7960_s5 + $0x254] sm:$0xf]  ;;  %v4343_v3 = vld [vmem:[%s7960_s5 + $0x210] sm:$0xf] }
  0x92   : > { %2132 = vmatpush.bf16.msrb.mxu3 %v4564_v7  ;;  %2070 = vmatmul.bf16.vlgmr.msra.gmra.mxu2 %v6420_v22  ;;  %v5207_v7 = vld [vmem:[%s7960_s5 + $0x4c] sm:$0xf]  ;;  %v4112_v27 = vor.u32 %v5211_v18, %v4111_v17  ;;  %v4471_v17 = vld [vmem:[%s7960_s5 + $0x310] sm:$0xf]  ;;  %v4508_v18 = vor.u32 %v5304_v10, %v4505_v11  ;;  %v4377_v61 = vld [vmem:[%s7960_s5 + $0x270] sm:$0xf0] }
  0x93   : > { %v5200_v5 = vld [vmem:[%s7960_s5 + $0x14] sm:$0xf] }
  0x94   : > { %2091 = vmatpush.bf16.msrb.mxu0 %v4272_v29  ;;  %2105 = vmatpush.bf16.msrb.mxu1 %v4528_v30  ;;  %v5203_v29 = vld [vmem:[%s7960_s5 + $0x24] sm:$0xf0]  ;;  %v4368_v30 = vor.u32 %v5275_v21, %v4367_v19  ;;  %v5300_v19 = vld [vmem:[%s7960_s5 + $0x32c] sm:$0xf0]  ;;  %v4217_v21 = vld [vmem:[%s7960_s5 + $0x130] sm:$0xf0] }
  0x95   : > { %2119 = vmatpush.bf16.msrb.mxu2 %v4276_v31  ;;  %v4116_v31 = vor.u32 %v5207_v7, %v4113_v23  ;;  %v5296_v7 = vld [vmem:[%s7960_s5 + $0x314] sm:$0xf] }
  0x96   : > { %2133 = vmatpush.bf16.msrb.mxu3 %v4532_v35  ;;  %v4372_v35 = vor.u32 %v5271_v24, %v4369_v25  ;;  %v4473_v23 = vld [vmem:[%s7960_s5 + $0x330] sm:$0xf0]  ;;  %v4472_v25 = vor.u32 %v5300_v19, %v4471_v17  ;;  %v5257_v17 = vld [vmem:[%s7960_s5 + $0x1dc] sm:$0xf] }
  0x97   : > { %v5264_v10 = vld [vmem:[%s7960_s5 + $0x214] sm:$0xf] }
  0x98   : > { %2092 = vmatpush.bf16.msrb.mxu0 %v4240_v40  ;;  %2106 = vmatpush.bf16.msrb.mxu1 %v4496_v41  ;;  %v4567_v40 = vld [vmem:[%s7960_s5 + $0x3d0] sm:$0xf]  ;;  %v4080_v41 = vor.u32 %v5203_v29, %v4079_v28  ;;  %v4345_v11 = vld [vmem:[%s7960_s5 + $0x230] sm:$0xf0] }
  0x99   : > { %2120 = vmatpush.bf16.msrb.mxu2 %v4244_v42  ;;  %v5324_v42 = vld [vmem:[%s7960_s5 + $0x3ec] sm:$0xf0] }
  0x9a   : > { %2134 = vmatpush.bf16.msrb.mxu3 %v4500_v46  ;;  %v4084_v46 = vor.u32 %v5199_v34, %v4081_v36  ;;  %v4568_v51 = vor.u32 %v5324_v42, %v4567_v40  ;;  %v4183_v28 = vld [vmem:[%s7960_s5 + $0xd0] sm:$0xf]  ;;  %v4185_v34 = vld [vmem:[%s7960_s5 + $0xf0] sm:$0xf0] }
  0x9b   : > { %v5228_v29 = vld [vmem:[%s7960_s5 + $0xec] sm:$0xf0]  ;;  %v4441_v36 = vld [vmem:[%s7960_s5 + $0x2f0] sm:$0xf0]  ;;  %v4188_v39 = vor.u32 %v5224_v33, %v4185_v34 }
  0x9c   : > { %2093 = vmatpush.bf16.msrb.mxu0 %v4208_v52  ;;  %2107 = vmatpush.bf16.msrb.mxu1 %v4464_v53  ;;  %v4316_v52 = vor.u32 %v5256_v43, %v4313_v44  ;;  %v4279_v53 = vld [vmem:[%s7960_s5 + $0x190] sm:$0xf]  ;;  %v4184_v37 = vor.u32 %v5228_v29, %v4183_v28  ;;  %v5216_v44 = vld [vmem:[%s7960_s5 + $0x94] sm:$0xf] }
  0x9d   : > { %2121 = vmatpush.bf16.msrb.mxu2 %v4212_v54  ;;  %v5252_v54 = vld [vmem:[%s7960_s5 + $0x1ac] sm:$0xf0] }
  0x9e   : > { %2135 = vmatpush.bf16.msrb.mxu3 %v4468_v58  ;;  %v5248_v58 = vld [vmem:[%s7960_s5 + $0x194] sm:$0xf]  ;;  %v4280_v62 = vor.u32 %v5252_v54, %v4279_v53  ;;  %v5220_v40 = vld [vmem:[%s7960_s5 + $0xac] sm:$0xf0] }
  0x9f   : > { %v5284_v43 = vld [vmem:[%s7960_s5 + $0x2ac] sm:$0xf0]  ;;  %v4152_v48 = vor.u32 %v5220_v40, %v4151_v6  ;;  %v4545_v6 = vld [vmem:[%s7960_s5 + $0x3b8] sm:$0xf0] }
  0xa0   : > { %2094 = vmatpush.bf16.msrb.mxu0 %v4176_v0  ;;  %2108 = vmatpush.bf16.msrb.mxu1 %v4432_v1  ;;  %v4284_v0 = vor.u32 %v5248_v58, %v4281_v59  ;;  %v4247_v1 = vld [vmem:[%s7960_s5 + $0x150] sm:$0xf]  ;;  %v4121_v58 = vld [vmem:[%s7960_s5 + $0x70] sm:$0xf0] }
  0xa1   : > { %2122 = vmatpush.bf16.msrb.mxu2 %v4180_v2  ;;  %v5244_v2 = vld [vmem:[%s7960_s5 + $0x16c] sm:$0xf0] }
  0xa2   : > { %2136 = vmatpush.bf16.msrb.mxu3 %v4436_v8  ;;  %v5240_v8 = vld [vmem:[%s7960_s5 + $0x154] sm:$0xf]  ;;  %v4248_v12 = vor.u32 %v5244_v2, %v4247_v1  ;;  %v4375_v53 = vld [vmem:[%s7960_s5 + $0x250] sm:$0xf]  ;;  %v4124_v2 = vor.u32 %v5208_v57, %v4121_v58  ;;  %v4223_v58 = vld [vmem:[%s7960_s5 + $0x118] sm:$0xf] }
  0xa4   : > { %2095 = vmatpush.bf16.msrb.mxu0 %v4144_v14  ;;  %2109 = vmatpush.bf16.msrb.mxu1 %v4400_v15  ;;  %v4252_v14 = vor.u32 %v5240_v8, %v4249_v9  ;;  %v4215_v15 = vld [vmem:[%s7960_s5 + $0x110] sm:$0xf]  ;;  %v4380_v8 = vor.u32 %v5272_v60, %v4377_v61  ;;  %v4089_v9 = vld [vmem:[%s7960_s5 + $0x30] sm:$0xf0]  ;;  %v5237_v60 = vld [vmem:[%s7960_s5 + $0x134] sm:$0xf0] }
  0xa5   : > { %2123 = vmatpush.bf16.msrb.mxu2 %v4148_v16  ;;  %v5236_v16 = vld [vmem:[%s7960_s5 + $0x12c] sm:$0xf0]  ;;  %v4479_v61 = vld [vmem:[%s7960_s5 + $0x318] sm:$0xf] }
  0xa6   : > { %2137 = vmatpush.bf16.msrb.mxu3 %v4404_v20  ;;  %v5232_v20 = vld [vmem:[%s7960_s5 + $0x114] sm:$0xf]  ;;  %v4216_v24 = vor.u32 %v5236_v16, %v4215_v15  ;;  %v5325_v16 = vld [vmem:[%s7960_s5 + $0x3f4] sm:$0xf0] }
  0xa8   : > { %2096 = vmatpush.bf16.msrb.mxu0 %v4112_v27  ;;  %2110 = vmatpush.bf16.msrb.mxu1 %v4368_v30  ;;  %v4220_v27 = vor.u32 %v5232_v20, %v4217_v21  ;;  %v4439_v30 = vld [vmem:[%s7960_s5 + $0x2d0] sm:$0xf]  ;;  %v4092_v21 = vor.u32 %v5200_v5, %v4089_v9  ;;  %v4224_v5 = vor.u32 %v5237_v60, %v4223_v58  ;;  %v4095_v58 = vld [vmem:[%s7960_s5 + $0x18] sm:$0xf] }
  0xa9   : > { %2124 = vmatpush.bf16.msrb.mxu2 %v4116_v31  ;;  %v4476_v31 = vor.u32 %v5296_v7, %v4473_v23  ;;  %v4440_v38 = vor.u32 %v5292_v32, %v4439_v30  ;;  %v5321_v7 = vld [vmem:[%s7960_s5 + $0x3dc] sm:$0xf]  ;;  %v4287_v30 = vld [vmem:[%s7960_s5 + $0x198] sm:$0xf] }
  0xaa   : > { %2138 = vmatpush.bf16.msrb.mxu3 %v4372_v35  ;;  %v5288_v35 = vld [vmem:[%s7960_s5 + $0x2d4] sm:$0xf]  ;;  %v4577_v23 = vld [vmem:[%s7960_s5 + $0x3f8] sm:$0xf0]  ;;  %v4543_v32 = vld [vmem:[%s7960_s5 + $0x398] sm:$0xf] }
  0xab   : > { %v4444_v42 = vor.u32 %v5288_v35, %v4441_v36  ;;  %v4580_v34 = vor.u32 %v5321_v7, %v4577_v23  ;;  %v5317_v35 = vld [vmem:[%s7960_s5 + $0x3b4] sm:$0xf0]  ;;  %v5249_v36 = vld [vmem:[%s7960_s5 + $0x19c] sm:$0xf] }
  0xac   : > { %2097 = vmatpush.bf16.msrb.mxu0 %v4080_v41  ;;  %2111 = vmatpush.bf16.msrb.mxu1 %v4336_v45  ;;  %v4407_v41 = vld [vmem:[%s7960_s5 + $0x290] sm:$0xf]  ;;  %v4153_v45 = vld [vmem:[%s7960_s5 + $0xb0] sm:$0xf0]  ;;  %v6744_v54 = vpop.f32.mrf.mxu0  ;;  %v6755_v59 = vpop.f32.mrf.mxu1  ;;  %v5205_v60 = vld [vmem:[%s7960_s5 + $0x34] sm:$0xf0] }
  0xad   : > { %2125 = vmatpush.bf16.msrb.mxu2 %v4084_v46  ;;  %v5280_v46 = vld [vmem:[%s7960_s5 + $0x294] sm:$0xf] }
  0xae   : > { %2139 = vmatpush.bf16.msrb.mxu3 %v4340_v49  ;;  %v4408_v49 = vor.u32 %v5284_v43, %v4407_v41  ;;  %v4412_v55 = vor.u32 %v5280_v46, %v4409_v47  ;;  %v4544_v41 = vor.u32 %v5317_v35, %v4543_v32  ;;  %v4255_v43 = vld [vmem:[%s7960_s5 + $0x158] sm:$0xf]  ;;  %v5217_v32 = vld [vmem:[%s7960_s5 + $0x9c] sm:$0xf] }
  0xaf   : > { %2098 = vmatmul.bf16.vlgmr.msrb.gmra.mxu0 %v6420_v22  ;;  %2112 = vmatmul.bf16.vlgmr.msrb.gmra.mxu1 %v6431_v26  ;;  %v5309_v47 = vld [vmem:[%s7960_s5 + $0x374] sm:$0xf0] }
  0xb0   : > { %2146 = vmatpush.bf16.msra.mxu0 %v4312_v50  ;;  %2160 = vmatpush.bf16.msra.mxu1 %v4568_v51  ;;  %v4156_v50 = vor.u32 %v5216_v44, %v4153_v45  ;;  %v4119_v51 = vld [vmem:[%s7960_s5 + $0x50] sm:$0xf]  ;;  %v5245_v44 = vld [vmem:[%s7960_s5 + $0x174] sm:$0xf0] }
  0xb1   : > { %2174 = vmatpush.bf16.msra.mxu2 %v4316_v52  ;;  %2140 = vmatmul.bf16.vlgmr.msrb.gmra.mxu3 %v6431_v26  ;;  %v5212_v52 = vld [vmem:[%s7960_s5 + $0x6c] sm:$0xf0]  ;;  %v4511_v45 = vld [vmem:[%s7960_s5 + $0x358] sm:$0xf] }
  0xb2   : > { %2188 = vmatpush.bf16.msra.mxu3 %v4572_v56  ;;  %2126 = vmatmul.bf16.vlgmr.msrb.gmra.mxu2 %v6420_v22  ;;  %v5276_v56 = vld [vmem:[%s7960_s5 + $0x26c] sm:$0xf0] }
  0xb3   : > { %v4376_v1 = vor.u32 %v5276_v56, %v4375_v53 }
  0xb4   : > { %2147 = vmatpush.bf16.msra.mxu0 %v4280_v62  ;;  %2161 = vmatpush.bf16.msra.mxu1 %v4536_v63  ;;  %v4120_v62 = vor.u32 %v5212_v52, %v4119_v51  ;;  %v4087_v63 = vld [vmem:[%s7960_s5 + $0x10] sm:$0xf]  ;;  %v6824_v33 = vpop.f32.mrf.mxu0  ;;  %v4513_v51 = vld [vmem:[%s7960_s5 + $0x378] sm:$0xf0]  ;;  %v4256_v52 = vor.u32 %v5245_v44, %v4255_v43  ;;  %v4127_v43 = vld [vmem:[%s7960_s5 + $0x58] sm:$0xf] }
  0xb5   : > { %2175 = vmatpush.bf16.msra.mxu2 %v4284_v0  ;;  %v5204_v0 = vld [vmem:[%s7960_s5 + $0x2c] sm:$0xf0]  ;;  %v6805_v19 = vpop.f32.mrf.mxu2  ;;  %v5213_v44 = vld [vmem:[%s7960_s5 + $0x74] sm:$0xf0] }
  0xb6   : > { %2189 = vmatpush.bf16.msra.mxu3 %v4540_v4  ;;  %v5268_v4 = vld [vmem:[%s7960_s5 + $0x22c] sm:$0xf0]  ;;  %v4088_v15 = vor.u32 %v5204_v0, %v4087_v63  ;;  %v5301_v63 = vld [vmem:[%s7960_s5 + $0x334] sm:$0xf0]  ;;  %v5233_v0 = vld [vmem:[%s7960_s5 + $0x11c] sm:$0xf] }
  0xb7   : > { %v4344_v20 = vor.u32 %v5268_v4, %v4343_v3  ;;  %v4481_v3 = vld [vmem:[%s7960_s5 + $0x338] sm:$0xf0]  ;;  %v4480_v9 = vor.u32 %v5301_v63, %v4479_v61  ;;  %v4351_v61 = vld [vmem:[%s7960_s5 + $0x218] sm:$0xf] }
  0xb8   : > { %2148 = vmatpush.bf16.msra.mxu0 %v4248_v12  ;;  %2162 = vmatpush.bf16.msra.mxu1 %v4504_v13  ;;  %v4319_v12 = vld [vmem:[%s7960_s5 + $0x1d8] sm:$0xf] }
  0xb9   : > { %2176 = vmatpush.bf16.msra.mxu2 %v4252_v14  ;;  %v5261_v13 = vld [vmem:[%s7960_s5 + $0x1f4] sm:$0xf0] }
  0xba   : > { %2190 = vmatpush.bf16.msra.mxu3 %v4508_v18  ;;  %v4575_v14 = vld [vmem:[%s7960_s5 + $0x3d8] sm:$0xf]  ;;  %v4321_v18 = vld [vmem:[%s7960_s5 + $0x1f8] sm:$0xf0] }
  0xbb   : > { %v4576_v28 = vor.u32 %v5325_v16, %v4575_v14  ;;  %v4324_v29 = vor.u32 %v5257_v17, %v4321_v18  ;;  %v5225_v16 = vld [vmem:[%s7960_s5 + $0xdc] sm:$0xf] }
  0xbc   : > { %2149 = vmatpush.bf16.msra.mxu0 %v4216_v24  ;;  %2163 = vmatpush.bf16.msra.mxu1 %v4472_v25  ;;  %v6813_v24 = vpop.f32.mrf.mxu3  ;;  %v4348_v25 = vor.u32 %v5264_v10, %v4345_v11  ;;  %v4191_v11 = vld [vmem:[%s7960_s5 + $0xd8] sm:$0xf]  ;;  %v4193_v17 = vld [vmem:[%s7960_s5 + $0xf8] sm:$0xf0] }
  0xbd   : > { %2177 = vmatpush.bf16.msra.mxu2 %v4220_v27  ;;  %v4320_v27 = vor.u32 %v5261_v13, %v4319_v12  ;;  %v6871_v53 = vpop.f32.mrf.mxu2  ;;  %v5229_v12 = vld [vmem:[%s7960_s5 + $0xf4] sm:$0xf0]  ;;  %v5289_v18 = vld [vmem:[%s7960_s5 + $0x2dc] sm:$0xf]  ;;  %v4196_v23 = vor.u32 %v5225_v16, %v4193_v17 }
  0xbe   : > { %2191 = vmatpush.bf16.msra.mxu3 %v4476_v31  ;;  %v5253_v31 = vld [vmem:[%s7960_s5 + $0x1b4] sm:$0xf0] }
  0xbf   : > { %v4288_v40 = vor.u32 %v5253_v31, %v4287_v30  ;;  %v4447_v13 = vld [vmem:[%s7960_s5 + $0x2d8] sm:$0xf] }
  0xc0   : > { %2150 = vmatpush.bf16.msra.mxu0 %v4184_v37  ;;  %2164 = vmatpush.bf16.msra.mxu1 %v4440_v38  ;;  %v4289_v37 = vld [vmem:[%s7960_s5 + $0x1b8] sm:$0xf0]  ;;  %v6835_v38 = vpop.f32.mrf.mxu1  ;;  %v5285_v31 = vld [vmem:[%s7960_s5 + $0x2b4] sm:$0xf0] }
  0xc1   : > { %2178 = vmatpush.bf16.msra.mxu2 %v4188_v39  ;;  %v5313_v39 = vld [vmem:[%s7960_s5 + $0x39c] sm:$0xf] }
  0xc2   : > { %2192 = vmatpush.bf16.msra.mxu3 %v4444_v42  ;;  %v4292_v42 = vor.u32 %v5249_v36, %v4289_v37  ;;  %v4548_v46 = vor.u32 %v5313_v39, %v4545_v6  ;;  %v5281_v36 = vld [vmem:[%s7960_s5 + $0x29c] sm:$0xf] }
  0xc3   : > { %v4417_v37 = vld [vmem:[%s7960_s5 + $0x2b8] sm:$0xf0] }
  0xc4   : > { %2151 = vmatpush.bf16.msra.mxu0 %v4152_v48  ;;  %2165 = vmatpush.bf16.msra.mxu1 %v4408_v49  ;;  %v5241_v48 = vld [vmem:[%s7960_s5 + $0x15c] sm:$0xf]  ;;  %v6873_v57 = vpop.f32.mrf.mxu3 }
  0xc5   : > { %2179 = vmatpush.bf16.msra.mxu2 %v4156_v50  ;;  %v4257_v49 = vld [vmem:[%s7960_s5 + $0x178] sm:$0xf0] }
  0xc6   : > { %2193 = vmatpush.bf16.msra.mxu3 %v4412_v55  ;;  %v5305_v50 = vld [vmem:[%s7960_s5 + $0x35c] sm:$0xf]  ;;  %v4512_v55 = vor.u32 %v5309_v47, %v4511_v45  ;;  %v4260_v56 = vor.u32 %v5241_v48, %v4257_v49  ;;  %v4383_v45 = vld [vmem:[%s7960_s5 + $0x258] sm:$0xf] }
  0xc7   : > { %v5277_v47 = vld [vmem:[%s7960_s5 + $0x274] sm:$0xf0]  ;;  %v5209_v48 = vld [vmem:[%s7960_s5 + $0x5c] sm:$0xf] }
  0xc8   : > { %2152 = vmatpush.bf16.msra.mxu0 %v4120_v62  ;;  %2166 = vmatpush.bf16.msra.mxu1 %v4376_v1  ;;  %v4516_v62 = vor.u32 %v5305_v50, %v4513_v51  ;;  %v4225_v1 = vld [vmem:[%s7960_s5 + $0x138] sm:$0xf0] }
  0xc9   : > { %2180 = vmatpush.bf16.msra.mxu2 %v4124_v2  ;;  %v5297_v2 = vld [vmem:[%s7960_s5 + $0x31c] sm:$0xf]  ;;  %v4228_v10 = vor.u32 %v5233_v0, %v4225_v1  ;;  %v5269_v0 = vld [vmem:[%s7960_s5 + $0x234] sm:$0xf0] }
  0xca   : > { %2194 = vmatpush.bf16.msra.mxu3 %v4380_v8  ;;  %v4484_v14 = vor.u32 %v5297_v2, %v4481_v3  ;;  %v4129_v49 = vld [vmem:[%s7960_s5 + $0x78] sm:$0xf0] }
  0xcb   : > { %v5273_v50 = vld [vmem:[%s7960_s5 + $0x25c] sm:$0xf] }
  0xcc   : > { %2153 = vmatpush.bf16.msra.mxu0 %v4088_v15  ;;  %2167 = vmatpush.bf16.msra.mxu1 %v4344_v20  ;;  %v6899_v4 = vpop.f32.mrf.mxu0  ;;  %v6901_v8 = vpop.f32.mrf.mxu1  ;;  %v5293_v15 = vld [vmem:[%s7960_s5 + $0x2f4] sm:$0xf0]  ;;  %v4449_v20 = vld [vmem:[%s7960_s5 + $0x2f8] sm:$0xf0] }
  0xcd   : > { %2181 = vmatpush.bf16.msra.mxu2 %v4092_v21  ;;  %v4192_v21 = vor.u32 %v5229_v12, %v4191_v11  ;;  %v4448_v7 = vor.u32 %v5293_v15, %v4447_v13  ;;  %v4385_v51 = vld [vmem:[%s7960_s5 + $0x278] sm:$0xf0]  ;;  %v4352_v11 = vor.u32 %v5269_v0, %v4351_v61 }
  0xce   : > { %2195 = vmatpush.bf16.msra.mxu3 %v4348_v25  ;;  %v4159_v25 = vld [vmem:[%s7960_s5 + $0x98] sm:$0xf]  ;;  %v5201_v1 = vld [vmem:[%s7960_s5 + $0x1c] sm:$0xf] }
  0xcf   : > { %2154 = vmatmul.bf16.vlgmr.msra.gmra.mxu0 %v6420_v22  ;;  %2168 = vmatmul.bf16.vlgmr.msra.gmra.mxu1 %v6431_v26  ;;  %v4097_v2 = vld [vmem:[%s7960_s5 + $0x38] sm:$0xf0] }
  0xd0   : > { %2202 = vmatpush.bf16.msrb.mxu0 %v4320_v27  ;;  %2216 = vmatpush.bf16.msrb.mxu1 %v4576_v28  ;;  %v5221_v27 = vld [vmem:[%s7960_s5 + $0xb4] sm:$0xf0]  ;;  %v4100_v12 = vor.u32 %v5201_v1, %v4097_v2 }
  0xd1   : > { %2230 = vmatpush.bf16.msrb.mxu2 %v4324_v29  ;;  %2196 = vmatmul.bf16.vlgmr.msra.gmra.mxu3 %v6431_v26  ;;  %v4415_v28 = vld [vmem:[%s7960_s5 + $0x298] sm:$0xf]  ;;  %v4452_v29 = vor.u32 %v5289_v18, %v4449_v20  ;;  %v4160_v6 = vor.u32 %v5221_v27, %v4159_v25 }
  0xd2   : > { %2244 = vmatpush.bf16.msrb.mxu3 %v4580_v34  ;;  %2182 = vmatmul.bf16.vlgmr.msra.gmra.mxu2 %v6420_v22  ;;  %v4161_v34 = vld [vmem:[%s7960_s5 + $0xb8] sm:$0xf0] }
  0xd4   : > { %2203 = vmatpush.bf16.msrb.mxu0 %v4288_v40  ;;  %2217 = vmatpush.bf16.msrb.mxu1 %v4544_v41  ;;  %v6947_v35 = vpop.f32.mrf.mxu3  ;;  %v6955_v39 = vpop.f32.mrf.mxu0  ;;  %v4416_v41 = vor.u32 %v5285_v31, %v4415_v28 }
  0xd5   : > { %2231 = vmatpush.bf16.msrb.mxu2 %v4292_v42  ;;  %v6936_v30 = vpop.f32.mrf.mxu2  ;;  %v6957_v40 = vpop.f32.mrf.mxu1  ;;  %v4164_v42 = vor.u32 %v5217_v32, %v4161_v34 }
  0xd6   : > { %2245 = vmatpush.bf16.msrb.mxu3 %v4548_v46  ;;  %v4420_v46 = vor.u32 %v5281_v36, %v4417_v37 }
  0xd8   : > { %2204 = vmatpush.bf16.msrb.mxu0 %v4256_v52  ;;  %2218 = vmatpush.bf16.msrb.mxu1 %v4512_v55  ;;  %v4128_v52 = vor.u32 %v5213_v44, %v4127_v43  ;;  %v4384_v55 = vor.u32 %v5277_v47, %v4383_v45 }
  0xd9   : > { %2232 = vmatpush.bf16.msrb.mxu2 %v4260_v56  ;;  %v4132_v56 = vor.u32 %v5209_v48, %v4129_v49 }
  0xda   : > { %2246 = vmatpush.bf16.msrb.mxu3 %v4516_v62  ;;  %v4388_v62 = vor.u32 %v5273_v50, %v4385_v51 }
  0xdc   : > { %2205 = vmatpush.bf16.msrb.mxu0 %v4224_v5  ;;  %2219 = vmatpush.bf16.msrb.mxu1 %v4480_v9  ;;  %v970_v3 = vpop.f32.mrf.mxu3  ;;  %v5265_v5 = vld [vmem:[%s7960_s5 + $0x21c] sm:$0xf]  ;;  %v1151_v13 = vpop.f32.mrf.mxu0 }
  0xdd   : > { %2233 = vmatpush.bf16.msrb.mxu2 %v4228_v10  ;;  %v956_v63 = vpop.f32.mrf.mxu2  ;;  %v4353_v9 = vld [vmem:[%s7960_s5 + $0x238] sm:$0xf0]  ;;  %v4096_v10 = vor.u32 %v5205_v60, %v4095_v58  ;;  %v1152_v15 = vadd.f32 %v1151_v13, %v6744_v54  ;;  %v1165_v16 = vpop.f32.mrf.mxu1 }
  0xde   : > { %2247 = vmatpush.bf16.msrb.mxu3 %v4484_v14  ;;  %v4356_v14 = vor.u32 %v5265_v5, %v4353_v9  ;;  %v1166_v17 = vadd.f32 %v1165_v16, %v6755_v59 }
  0xe0   : > { %2206 = vmatpush.bf16.msrb.mxu0 %v4192_v21  ;;  %2220 = vmatpush.bf16.msrb.mxu1 %v4448_v7 }
  0xe1   : > { %2234 = vmatpush.bf16.msrb.mxu2 %v4196_v23 }
  0xe2   : > { %2248 = vmatpush.bf16.msrb.mxu3 %v4452_v29 }
  0xe4   : > { %2207 = vmatpush.bf16.msrb.mxu0 %v4160_v6  ;;  %2221 = vmatpush.bf16.msrb.mxu1 %v4416_v41  ;;  %v1193_v54 = vpop.f32.mrf.mxu3  ;;  %v1153_v21 = vpop.f32.mrf.mxu0 }
  0xe5   : > { %2235 = vmatpush.bf16.msrb.mxu2 %v4164_v42  ;;  %v1179_v18 = vpop.f32.mrf.mxu2  ;;  %v7017_v59 = vadd.f32 %v1193_v54, %v6813_v24  ;;  %v1154_v7 = vadd.f32 %v1153_v21, %v6824_v33  ;;  %v1167_v23 = vpop.f32.mrf.mxu1 }
  0xe6   : > { %2249 = vmatpush.bf16.msrb.mxu3 %v4420_v46  ;;  %v7014_v20 = vadd.f32 %v1179_v18, %v6805_v19  ;;  %v1168_v25 = vadd.f32 %v1167_v23, %v6835_v38 }
  0xe8   : > { %2208 = vmatpush.bf16.msrb.mxu0 %v4128_v52  ;;  %2222 = vmatpush.bf16.msrb.mxu1 %v4384_v55 }
  0xe9   : > { %2236 = vmatpush.bf16.msrb.mxu2 %v4132_v56 }
  0xea   : > { %2250 = vmatpush.bf16.msrb.mxu3 %v4388_v62 }
  0xec   : > { %2209 = vmatpush.bf16.msrb.mxu0 %v4096_v10  ;;  %2223 = vmatpush.bf16.msrb.mxu1 %v4352_v11  ;;  %v1207_v29 = vpop.f32.mrf.mxu0 }
  0xed   : > { %2237 = vmatpush.bf16.msrb.mxu2 %v4100_v12  ;;  %v1181_v27 = vpop.f32.mrf.mxu2  ;;  %v7028_v19 = vadd.f32 %v1207_v29, %v6899_v4  ;;  %v1221_v31 = vpop.f32.mrf.mxu1 }
  0xee   : > { %2251 = vmatpush.bf16.msrb.mxu3 %v4356_v14  ;;  %v7022_v28 = vadd.f32 %v1181_v27, %v6871_v53  ;;  %v7031_v24 = vadd.f32 %v1221_v31, %v6901_v8 }
  0xef   : > { %2210 = vmatmul.bf16.vlgmr.msrb.gmra.mxu0 %v6420_v22  ;;  %2224 = vmatmul.bf16.vlgmr.msrb.gmra.mxu1 %v6431_v26 }
  0xf0   : > { %2238 = vmatmul.bf16.vlgmr.msrb.gmra.mxu2 %v6420_v22  ;;  %v1195_v22 = vpop.f32.mrf.mxu3 }
  0xf1   : > { %2252 = vmatmul.bf16.vlgmr.msrb.gmra.mxu3 %v6431_v26  ;;  %v7025_v26 = vadd.f32 %v1195_v22, %v6873_v57 }
  0xf4   : > { %v1209_v34 = vpop.f32.mrf.mxu0 }
  0xf5   : > { %v1235_v33 = vpop.f32.mrf.mxu2  ;;  %v7040_v36 = vadd.f32 %v1209_v34, %v6955_v39  ;;  %v1223_v57 = vpop.f32.mrf.mxu1 }
  0xf6   : > { %v7034_v32 = vadd.f32 %v1235_v33, %v6936_v30  ;;  %v7043_v4 = vadd.f32 %v1223_v57, %v6957_v40  ;;  %v7052_v30 = vld [vmem:[%s7961_s6] sm:$0xff] }
  0xf8   : > { %v1249_v38 = vpop.f32.mrf.mxu3 }
  0xf9   : > { %v7037_v53 = vadd.f32 %v1249_v38, %v6947_v35  ;;  %v2275_v35 = vunpack.c.l.bf16 %v7052_v30 }
  0xfb   : > { %v2279_v44 = vperm.slane %v2275_v35, 0  ;;  %v2280_v50 = vperm.slane %v2275_v35, 2  ;;  %v2281_v38 = vperm.slane %v2275_v35, 4  ;;  %v2282_v34 = vperm.slane %v2275_v35, 6 }
  0xfd   : > { %v1237_v37 = vpop.f32.mrf.mxu2  ;;  %v2295_v40 = vperm.slane %v2279_v44, 0  ;;  %v2296_v60 = vperm.slane %v2280_v50, 0 }
  0xfe   : > { %v7045_v6 = vadd.f32 %v1237_v37, %v956_v63 }
 0x100   : > { %v1251_v8 = vpop.f32.mrf.mxu3 }
 0x101   : > { %v7047_v41 = vadd.f32 %v1251_v8, %v970_v3 }
 0x10c   : > { %v2043_v42 = vpop.f32.mrf.mxu0  ;;  %v2057_v39 = vpop.f32.mrf.mxu1 }
 0x10d   : > { %v2058_v43 = vadd.f32 %v2057_v39, %v2043_v42  ;;  %v2297_v42 = vperm.slane %v2281_v38, 0 }
 0x10f   : > { %v2258_v45 = vadd.f32 %v2058_v43, %v1152_v15 }
 0x111   : > { %v2303_v52 = vadd.f32 %v2295_v40, %v2258_v45 }
 0x113   : > { %v2335_v61 = vmul.f32 0.2, %v2303_v52  ;;  %vm2319_vm1 = vcmp.gt.f32.partialorder %v2303_v52, 0.0 }
 0x114   : > { %v2085_v47 = vpop.f32.mrf.mxu3  ;;  %v2045_v48 = vpop.f32.mrf.mxu0 }
 0x115   : > { %v2071_v46 = vpop.f32.mrf.mxu2  ;;  %v2059_v51 = vpop.f32.mrf.mxu1  ;;  %v2351_v5 = vsel %vm2319_vm1, %v2303_v52, %v2335_v61 }
 0x116   : > { %v2086_v49 = vadd.f32 %v2085_v47, %v2071_v46  ;;  %v2060_v55 = vadd.f32 %v2059_v51, %v2045_v48  ;;  %v2298_v46 = vperm.slane %v2282_v34, 0  ;;  %v5387_v34 = vld [vmem:[%s7962_s7 + $0x1e4] sm:$0xf0] }
 0x118   : > { %v2266_v56 = vadd.f32 %v2060_v55, %v1154_v7  ;;  %v2259_v58 = vadd.f32 %v2086_v49, %v1166_v17 }
 0x11a   : > { %v2311_v62 = vadd.f32 %v2295_v40, %v2266_v56  ;;  %v2304_v2 = vadd.f32 %v2296_v60, %v2259_v58 }
 0x11c   : > { %vm2327_vm2 = vcmp.gt.f32.partialorder %v2311_v62, 0.0  ;;  %v2343_v0 = vmul.f32 0.2, %v2311_v62  ;;  %v2087_v1 = vpop.f32.mrf.mxu3  ;;  %v2336_v12 = vmul.f32 0.2, %v2304_v2  ;;  %vm2320_vm3 = vcmp.gt.f32.partialorder %v2304_v2, 0.0 }
 0x11d   : > { %v2073_v63 = vpop.f32.mrf.mxu2 }
 0x11e   : > { %v2088_v3 = vadd.f32 %v2087_v1, %v2073_v63  ;;  %v2359_v9 = vsel %vm2327_vm2, %v2311_v62, %v2343_v0  ;;  %v2352_v17 = vsel %vm2320_vm3, %v2304_v2, %v2336_v12  ;;  %v4639_v62 = vld [vmem:[%s7962_s7 + $0x70] sm:$0xf]  ;;  %v5373_v12 = vld [vmem:[%s7962_s7 + $0x174] sm:$0xf0] }
 0x11f   : > { %v2392_v10 = vmax.f32 %v2351_v5, %v2359_v9  ;;  %v4703_v2 = vld [vmem:[%s7962_s7 + $0xf0] sm:$0xf] }
 0x120   : > { %v2267_v11 = vadd.f32 %v2088_v3, %v1168_v25  ;;  %v5357_v3 = vld [vmem:[%s7962_s7 + $0xf4] sm:$0xf0]  ;;  %v4767_v5 = vld [vmem:[%s7962_s7 + $0x170] sm:$0xf] }
 0x121   : > { %v2393_v13 = vrot.slane %v2392_v10, 4 }
 0x122   : > { %v2312_v14 = vadd.f32 %v2296_v60, %v2267_v11  ;;  %v4704_v11 = vor.u32 %v5357_v3, %v4703_v2  ;;  %v5367_v3 = vld [vmem:[%s7962_s7 + $0x144] sm:$0xf0] }
 0x123   : > { %v2394_v16 = vmax.f32 %v2392_v10, %v2393_v13  ;;  %v4831_v13 = vld [vmem:[%s7962_s7 + $0x1f0] sm:$0xf] }
 0x124   : > { %vm2328_vm4 = vcmp.gt.f32.partialorder %v2312_v14, 0.0  ;;  %v2344_v15 = vmul.f32 0.2, %v2312_v14  ;;  %3337 = vmatpush.bf16.msra.mxu1 %v4704_v11 }
 0x125   : > { %v2395_v21 = vrot.slane %v2394_v16, 2 }
 0x126   : > { %v2360_v18 = vsel %vm2328_vm4, %v2312_v14, %v2344_v15  ;;  %v5389_v14 = vld [vmem:[%s7962_s7 + $0x1f4] sm:$0xf0] }
 0x127   : > { %v2399_v54 = vmax.f32 %v2352_v17, %v2360_v18  ;;  %v2396_v29 = vmax.f32 %v2394_v16, %v2395_v21  ;;  %v4768_v17 = vor.u32 %v5373_v12, %v4767_v5  ;;  %v4832_v18 = vor.u32 %v5389_v14, %v4831_v13  ;;  %v5339_v21 = vld [vmem:[%s7962_s7 + $0x64] sm:$0xf0]  ;;  %v4807_v5 = vld [vmem:[%s7962_s7 + $0x1c0] sm:$0xf] }
 0x128   : > { %v5383_v12 = vld [vmem:[%s7962_s7 + $0x1c4] sm:$0xf0] }
 0x129   : > { %v2400_v7 = vrot.slane %v2399_v54, 4  ;;  %v2397_v57 = vrot.slane %v2396_v29, 1  ;;  %3350 = vmatpush.bf16.msra.mxu2 %v4768_v17  ;;  %3363 = vmatpush.bf16.msra.mxu3 %v4832_v18  ;;  %v4808_v14 = vor.u32 %v5383_v12, %v4807_v5  ;;  %v4671_v17 = vld [vmem:[%s7962_s7 + $0xb0] sm:$0xf] }
 0x12a   : > { %v4655_v5 = vld [vmem:[%s7962_s7 + $0x90] sm:$0xf] }
 0x12b   : > { %v2401_v23 = vmax.f32 %v2399_v54, %v2400_v7  ;;  %v2398_v48 = vmax.f32 %v2396_v29, %v2397_v57  ;;  %v4631_v54 = vld [vmem:[%s7962_s7 + $0x60] sm:$0xf]  ;;  %v4719_v12 = vld [vmem:[%s7962_s7 + $0x110] sm:$0xf] }
 0x12c   : > { %v2099_v27 = vpop.f32.mrf.mxu0  ;;  %v2113_v22 = vpop.f32.mrf.mxu1  ;;  %v4695_v7 = vld [vmem:[%s7962_s7 + $0xe0] sm:$0xf] }
 0x12d   : > { %v2402_v31 = vrot.slane %v2401_v23, 2  ;;  %v2114_v33 = vadd.f32 %v2113_v22, %v2099_v27  ;;  %v4759_v27 = vld [vmem:[%s7962_s7 + $0x160] sm:$0xf]  ;;  %v5371_v22 = vld [vmem:[%s7962_s7 + $0x164] sm:$0xf0] }
 0x12e   : > { %v4760_v38 = vor.u32 %v5371_v22, %v4759_v27 }
 0x12f   : > { %v2403_v25 = vmax.f32 %v2401_v23, %v2402_v31  ;;  %v2260_v8 = vadd.f32 %v2114_v33, %v7014_v20  ;;  %v4632_v23 = vor.u32 %v5339_v21, %v4631_v54 }
 0x130   : > { %3351 = vmatpush.bf16.msra.mxu2 %v4760_v38 }
 0x131   : > { %v2404_v37 = vrot.slane %v2403_v25, 1  ;;  %v2305_v50 = vadd.f32 %v2297_v42, %v2260_v8 }
 0x133   : > { %v2405_v43 = vmax.f32 %v2403_v25, %v2404_v37  ;;  %v2337_v56 = vmul.f32 0.2, %v2305_v50  ;;  %vm2321_vm6 = vcmp.gt.f32.partialorder %v2305_v50, 0.0  ;;  %v4823_v25 = vld [vmem:[%s7962_s7 + $0x1e0] sm:$0xf] }
 0x134   : > { %v2141_v44 = vpop.f32.mrf.mxu3  ;;  %v2101_v45 = vpop.f32.mrf.mxu0  ;;  %v4824_v57 = vor.u32 %v5387_v34, %v4823_v25 }
 0x135   : > { %v2127_v39 = vpop.f32.mrf.mxu2  ;;  %v2115_v47 = vpop.f32.mrf.mxu1  ;;  %v2460_v49 = vrot.slane %v2405_v43, 7  ;;  %v2353_v9 = vsel %vm2321_vm6, %v2305_v50, %v2337_v56  ;;  %v7115_v43 = vunpack.c.h.bf16 %v7052_v30  ;;  %v5369_v50 = vld [vmem:[%s7962_s7 + $0x154] sm:$0xf0]  ;;  %vm2475_vm6 = vcmask 1046534  }
 0x136   : > { %v2142_v40 = vadd.f32 %v2141_v44, %v2127_v39  ;;  %v2116_v51 = vadd.f32 %v2115_v47, %v2101_v45  ;;  %v5337_v44 = vld [vmem:[%s7962_s7 + $0x54] sm:$0xf0]  ;;  %v4687_v45 = vld [vmem:[%s7962_s7 + $0xd0] sm:$0xf]  ;;  %3364 = vmatpush.bf16.msra.mxu3 %v4824_v57 }
 0x137   : > { %v7058_v35 = vsel %vm2467_vm5, %v2398_v48, %v2460_v49  ;;  %v4751_v49 = vld [vmem:[%s7962_s7 + $0x150] sm:$0xf]  ;;  %v2284_v25 = vperm.slane %v7115_v43, 2  ;;  %v5381_v57 = vld [vmem:[%s7962_s7 + $0x1b4] sm:$0xf0] }
 0x138   : > { %v2261_v52 = vadd.f32 %v2142_v40, %v7017_v59  ;;  %v2268_v20 = vadd.f32 %v2116_v51, %v7022_v28  ;;  %v5341_v59 = vld [vmem:[%s7962_s7 + $0x74] sm:$0xf0] }
 0x139   : > { %v4640_v28 = vor.u32 %v5341_v59, %v4639_v62  ;;  %v5353_v40 = vld [vmem:[%s7962_s7 + $0xd4] sm:$0xf0]  ;;  %v5351_v59 = vld [vmem:[%s7962_s7 + $0xc4] sm:$0xf0] }
 0x13a   : > { %v2306_v55 = vadd.f32 %v2298_v46, %v2261_v52  ;;  %v2313_v58 = vadd.f32 %v2297_v42, %v2268_v20  ;;  %v4623_v42 = vld [vmem:[%s7962_s7 + $0x50] sm:$0xf]  ;;  %v4688_v30 = vor.u32 %v5353_v40, %v4687_v45  ;;  %v4752_v52 = vor.u32 %v5369_v50, %v4751_v49  ;;  %v5347_v40 = vld [vmem:[%s7962_s7 + $0xa4] sm:$0xf0]  ;;  %v4791_v49 = vld [vmem:[%s7962_s7 + $0x1a0] sm:$0xf] }
 0x13b   : > { %3324 = vmatpush.bf16.msra.mxu0 %v4640_v28  ;;  %v4624_v48 = vor.u32 %v5337_v44, %v4623_v42  ;;  %v4815_v20 = vld [vmem:[%s7962_s7 + $0x1d0] sm:$0xf]  ;;  %v2283_v28 = vperm.slane %v7115_v43, 0  ;;  %v5331_v42 = vld [vmem:[%s7962_s7 + $0x24] sm:$0xf0] }
 0x13c   : > { %v2338_v60 = vmul.f32 0.2, %v2306_v55  ;;  %vm2322_vm7 = vcmp.gt.f32.partialorder %v2306_v55, 0.0  ;;  %vm2329_vm8 = vcmp.gt.f32.partialorder %v2313_v58, 0.0  ;;  %v2345_v63 = vmul.f32 0.2, %v2313_v58  ;;  %v2143_v0 = vpop.f32.mrf.mxu3  ;;  %3352 = vmatpush.bf16.msra.mxu2 %v4752_v52 }
 0x13d   : > { %v2129_v61 = vpop.f32.mrf.mxu2  ;;  %v7178_v27 = vperm.slane %v2283_v28, 0  ;;  %v5379_v50 = vld [vmem:[%s7962_s7 + $0x1a4] sm:$0xf0] }
 0x13e   : > { %v2144_v1 = vadd.f32 %v2143_v0, %v2129_v61  ;;  %v2361_v10 = vsel %vm2329_vm8, %v2313_v58, %v2345_v63  ;;  %v2354_v39 = vsel %vm2322_vm7, %v2306_v55, %v2338_v60  ;;  %v5385_v55 = vld [vmem:[%s7962_s7 + $0x1d4] sm:$0xf0]  ;;  %v4615_v58 = vld [vmem:[%s7962_s7 + $0x40] sm:$0xf]  ;;  %v5335_v60 = vld [vmem:[%s7962_s7 + $0x44] sm:$0xf0] }
 0x13f   : > { %v2406_v15 = vmax.f32 %v2353_v9, %v2361_v10  ;;  %3325 = vmatpush.bf16.msra.mxu0 %v4632_v23  ;;  %v4816_v56 = vor.u32 %v5385_v55, %v4815_v20  ;;  %v4679_v61 = vld [vmem:[%s7962_s7 + $0xc0] sm:$0xf]  ;;  %v4616_v0 = vor.u32 %v5335_v60, %v4615_v58  ;;  %v5349_v23 = vld [vmem:[%s7962_s7 + $0xb4] sm:$0xf0]  ;;  %v7218_v55 = vperm.slane %v2284_v25, 0 }
 0x140   : > { %v2269_v16 = vadd.f32 %v2144_v1, %v7025_v26  ;;  %v5355_v26 = vld [vmem:[%s7962_s7 + $0xe4] sm:$0xf0]  ;;  %v4743_v1 = vld [vmem:[%s7962_s7 + $0x140] sm:$0xf]  ;;  %v4680_v2 = vor.u32 %v5351_v59, %v4679_v61  ;;  %v4672_v22 = vor.u32 %v5349_v23, %v4671_v17  ;;  %v2285_v61 = vperm.slane %v7115_v43, 4 }
 0x141   : > { %v2407_v29 = vrot.slane %v2406_v15, 4  ;;  %v4696_v33 = vor.u32 %v5355_v26, %v4695_v7  ;;  %3365 = vmatpush.bf16.msra.mxu3 %v4816_v56  ;;  %v4744_v11 = vor.u32 %v5367_v3, %v4743_v1  ;;  %v4735_v26 = vld [vmem:[%s7962_s7 + $0x130] sm:$0xf]  ;;  %v5329_v59 = vld [vmem:[%s7962_s7 + $0x14] sm:$0xf0]  ;;  %vm2477_vm7 = vcmask 1045508  }
 0x142   : > { %v2314_v31 = vadd.f32 %v2298_v46, %v2269_v16  ;;  %v5333_v16 = vld [vmem:[%s7962_s7 + $0x34] sm:$0xf0]  ;;  %v4583_v23 = vld [vmem:[%s7962_s7] sm:$0xf]  ;;  %vm2479_vm8 = vcmask 1043456  }
 0x143   : > { %v2408_v37 = vmax.f32 %v2406_v15, %v2407_v29  ;;  %3338 = vmatpush.bf16.msra.mxu1 %v4696_v33  ;;  %3326 = vmatpush.bf16.msra.mxu0 %v4624_v48  ;;  %v4607_v15 = vld [vmem:[%s7962_s7 + $0x30] sm:$0xf]  ;;  %v5365_v29 = vld [vmem:[%s7962_s7 + $0x134] sm:$0xf0] }
 0x144   : > { %vm2330_vm9 = vcmp.gt.f32.partialorder %v2314_v31, 0.0  ;;  %v2346_v8 = vmul.f32 0.2, %v2314_v31  ;;  %v4608_v7 = vor.u32 %v5333_v16, %v4607_v15  ;;  %3353 = vmatpush.bf16.msra.mxu2 %v4744_v11  ;;  %v4736_v34 = vor.u32 %v5365_v29, %v4735_v26  ;;  %v4647_v26 = vld [vmem:[%s7962_s7 + $0x80] sm:$0xf] }
 0x145   : > { %v2409_v46 = vrot.slane %v2408_v37, 2  ;;  %3366 = vmatpush.bf16.msra.mxu3 %v4808_v14  ;;  %v4783_v14 = vld [vmem:[%s7962_s7 + $0x190] sm:$0xf]  ;;  %v5343_v29 = vld [vmem:[%s7962_s7 + $0x84] sm:$0xf0] }
 0x146   : > { %v2362_v47 = vsel %vm2330_vm9, %v2314_v31, %v2346_v8  ;;  %v4799_v31 = vld [vmem:[%s7962_s7 + $0x1b0] sm:$0xf]  ;;  %v4599_v8 = vld [vmem:[%s7962_s7 + $0x20] sm:$0xf]  ;;  %v4648_v25 = vor.u32 %v5343_v29, %v4647_v26 }
 0x147   : > { %v2413_v51 = vmax.f32 %v2354_v39, %v2362_v47  ;;  %v2410_v62 = vmax.f32 %v2408_v37, %v2409_v46  ;;  %3339 = vmatpush.bf16.msra.mxu1 %v4688_v30  ;;  %3327 = vmatpush.bf16.msra.mxu0 %v4616_v0  ;;  %v4800_v37 = vor.u32 %v5381_v57, %v4799_v31  ;;  %v4727_v46 = vld [vmem:[%s7962_s7 + $0x120] sm:$0xf]  ;;  %v5363_v30 = vld [vmem:[%s7962_s7 + $0x124] sm:$0xf0]  ;;  %v4591_v0 = vld [vmem:[%s7962_s7 + $0x10] sm:$0xf] }
 0x148   : > { %v4600_v45 = vor.u32 %v5331_v42, %v4599_v8  ;;  %3354 = vmatpush.bf16.msra.mxu2 %v4736_v34  ;;  %v4592_v3 = vor.u32 %v5329_v59, %v4591_v0  ;;  %v4711_v31 = vld [vmem:[%s7962_s7 + $0x100] sm:$0xf]  ;;  %v5375_v42 = vld [vmem:[%s7962_s7 + $0x184] sm:$0xf0]  ;;  %v5071_v29 = vld [vmem:[%s7962_s7 + $0x3d0] sm:$0xf] }
 0x149   : > { %v2414_v63 = vrot.slane %v2413_v51, 4  ;;  %v2411_v18 = vrot.slane %v2410_v62, 1  ;;  %3367 = vmatpush.bf16.msra.mxu3 %v4800_v37  ;;  %v4775_v57 = vld [vmem:[%s7962_s7 + $0x180] sm:$0xf]  ;;  %v5419_v59 = vld [vmem:[%s7962_s7 + $0x2e4] sm:$0xf0] }
 0x14a   : > { %v4951_v0 = vld [vmem:[%s7962_s7 + $0x2e0] sm:$0xf] }
 0x14b   : > { %v2415_v9 = vmax.f32 %v2413_v51, %v2414_v63  ;;  %3340 = vmatpush.bf16.msra.mxu1 %v4680_v2  ;;  %3328 = vmatpush.bf16.msra.mxu0 %v4608_v7  ;;  %v2412_v39 = vmax.f32 %v2410_v62, %v2411_v18  ;;  %v4728_v62 = vor.u32 %v5363_v30, %v4727_v46  ;;  %v5377_v18 = vld [vmem:[%s7962_s7 + $0x194] sm:$0xf0] }
 0x14c   : > { %v2155_v10 = vpop.f32.mrf.mxu0  ;;  %v2169_v13 = vpop.f32.mrf.mxu1  ;;  %v4792_v63 = vor.u32 %v5379_v50, %v4791_v49  ;;  %v4784_v7 = vor.u32 %v5377_v18, %v4783_v14  ;;  %v5421_v30 = vld [vmem:[%s7962_s7 + $0x2f4] sm:$0xf0]  ;;  %v5023_v49 = vld [vmem:[%s7962_s7 + $0x370] sm:$0xf] }
 0x14d   : > { %v2416_v54 = vrot.slane %v2415_v9, 2  ;;  %v2170_v21 = vadd.f32 %v2169_v13, %v2155_v10  ;;  %v2461_v1 = vrot.slane %v2412_v39, 6  ;;  %3355 = vmatpush.bf16.msra.mxu2 %v4728_v62  ;;  %v5361_v13 = vld [vmem:[%s7962_s7 + $0x114] sm:$0xf0]  ;;  %v4776_v39 = vor.u32 %v5375_v42, %v4775_v57  ;;  %v5415_v57 = vld [vmem:[%s7962_s7 + $0x2c4] sm:$0xf0] }
 0x14e   : > { %3368 = vmatpush.bf16.msra.mxu3 %v4792_v63  ;;  %v4720_v17 = vor.u32 %v5361_v13, %v4719_v12  ;;  %v5437_v50 = vld [vmem:[%s7962_s7 + $0x374] sm:$0xf0]  ;;  %v4879_v12 = vld [vmem:[%s7962_s7 + $0x250] sm:$0xf] }
 0x14f   : > { %v2417_v33 = vmax.f32 %v2415_v9, %v2416_v54  ;;  %v2262_v38 = vadd.f32 %v2170_v21, %v7028_v19  ;;  %v4663_v19 = vld [vmem:[%s7962_s7 + $0xa0] sm:$0xf]  ;;  %3341 = vmatpush.bf16.msra.mxu1 %v4672_v22  ;;  %3329 = vmatpush.bf16.msra.mxu0 %v4600_v45  ;;  %v5345_v9 = vld [vmem:[%s7962_s7 + $0x94] sm:$0xf0]  ;;  %v5024_v62 = vor.u32 %v5437_v50, %v5023_v49 }
 0x150   : > { %v4664_v48 = vor.u32 %v5347_v40, %v4663_v19  ;;  %v4656_v11 = vor.u32 %v5345_v9, %v4655_v5  ;;  %v5405_v45 = vld [vmem:[%s7962_s7 + $0x274] sm:$0xf0]  ;;  %v4959_v40 = vld [vmem:[%s7962_s7 + $0x2f0] sm:$0xf]  ;;  %v5015_v5 = vld [vmem:[%s7962_s7 + $0x360] sm:$0xf] }
 0x151   : > { %v2418_v44 = vrot.slane %v2417_v33, 1  ;;  %v7216_v52 = vadd.f32 %v7178_v27, %v2262_v38  ;;  %3356 = vmatpush.bf16.msra.mxu2 %v4720_v17  ;;  %v5435_v9 = vld [vmem:[%s7962_s7 + $0x364] sm:$0xf0]  ;;  %v4943_v17 = vld [vmem:[%s7962_s7 + $0x2d0] sm:$0xf] }
 0x152   : > { %3369 = vmatpush.bf16.msra.mxu3 %v4784_v7  ;;  %v5417_v18 = vld [vmem:[%s7962_s7 + $0x2d4] sm:$0xf0]  ;;  %v5007_v7 = vld [vmem:[%s7962_s7 + $0x350] sm:$0xf] }
 0x153   : > { %v2419_v51 = vmax.f32 %v2417_v33, %v2418_v44  ;;  %3342 = vmatpush.bf16.msra.mxu1 %v4664_v48  ;;  %v2339_v16 = vmul.f32 0.2, %v7216_v52  ;;  %3330 = vmatpush.bf16.msra.mxu0 %v4592_v3  ;;  %v5359_v33 = vld [vmem:[%s7962_s7 + $0x104] sm:$0xf0]  ;;  %vm2323_vm12 = vcmp.gt.f32.partialorder %v7216_v52, 0.0  ;;  %v4952_v3 = vor.u32 %v5419_v59, %v4951_v0 }
 0x154   : > { %v2197_v20 = vpop.f32.mrf.mxu3  ;;  %v2157_v56 = vpop.f32.mrf.mxu0  ;;  %v4712_v34 = vor.u32 %v5359_v33, %v4711_v31  ;;  %v4895_v44 = vld [vmem:[%s7962_s7 + $0x270] sm:$0xf]  ;;  %v5445_v59 = vld [vmem:[%s7962_s7 + $0x3b4] sm:$0xf0] }
 0x155   : > { %v2183_v47 = vpop.f32.mrf.mxu2  ;;  %v2171_v60 = vpop.f32.mrf.mxu1  ;;  %v2462_v28 = vrot.slane %v2419_v51, 5  ;;  %v2355_v46 = vsel %vm2323_vm12, %v7216_v52, %v2339_v16  ;;  %v4896_v48 = vor.u32 %v5405_v45, %v4895_v44  ;;  %v4960_v52 = vor.u32 %v5421_v30, %v4959_v40  ;;  %v5401_v16 = vld [vmem:[%s7962_s7 + $0x254] sm:$0xf0]  ;;  %v5063_v44 = vld [vmem:[%s7962_s7 + $0x3c0] sm:$0xf] }
 0x156   : > { %v2198_v58 = vadd.f32 %v2197_v20, %v2183_v47  ;;  %v2172_v2 = vadd.f32 %v2171_v60, %v2157_v56  ;;  %3357 = vmatpush.bf16.msra.mxu2 %v4712_v34  ;;  %3370 = vmatpush.bf16.msra.mxu3 %v4776_v39  ;;  %v5087_v56 = vld [vmem:[%s7962_s7 + $0x3f0] sm:$0xf]  ;;  %v4887_v60 = vld [vmem:[%s7962_s7 + $0x260] sm:$0xf]  ;;  %v5431_v39 = vld [vmem:[%s7962_s7 + $0x344] sm:$0xf0] }
 0x157   : > { %v2470_v15 = vsel %vm2469_vm10, %v2461_v1, %v2462_v28  ;;  %3343 = vmatpush.bf16.msra.mxu1 %v4656_v11  ;;  %v5079_v11 = vld [vmem:[%s7962_s7 + $0x3e0] sm:$0xf]  ;;  %v7390_v40 = vperm.slane %v2285_v61, 0  ;;  %v5397_v61 = vld [vmem:[%s7962_s7 + $0x234] sm:$0xf0] }
 0x158   : > { %v2263_v10 = vadd.f32 %v2198_v58, %v7031_v24  ;;  %v2270_v24 = vadd.f32 %v2172_v2, %v7040_v36  ;;  %v7251_v54 = vsel %vm2471_vm11, %v7058_v35, %v2470_v15  ;;  %v5327_v36 = vld [vmem:[%s7962_s7 + $0x4] sm:$0xf0]  ;;  %v5453_v58 = vld [vmem:[%s7962_s7 + $0x3f4] sm:$0xf0]  ;;  %v4935_v34 = vld [vmem:[%s7962_s7 + $0x2c0] sm:$0xf] }
 0x159   : > { %v4584_v22 = vor.u32 %v5327_v36, %v4583_v23  ;;  %v5088_v63 = vor.u32 %v5453_v58, %v5087_v56  ;;  %v5413_v56 = vld [vmem:[%s7962_s7 + $0x2b4] sm:$0xf0]  ;;  %v4991_v58 = vld [vmem:[%s7962_s7 + $0x330] sm:$0xf] }
 0x15a   : > { %v7254_v21 = vadd.f32 %v7218_v55, %v2263_v10  ;;  %v2315_v35 = vadd.f32 %v7178_v27, %v2270_v24  ;;  %3402 = vmatpush.bf16.msrb.mxu2 %v5024_v62  ;;  %v5016_v10 = vor.u32 %v5435_v9, %v5015_v5  ;;  %v4880_v24 = vor.u32 %v5401_v16, %v4879_v12  ;;  %v5055_v0 = vld [vmem:[%s7962_s7 + $0x3b0] sm:$0xf]  ;;  %v4983_v12 = vld [vmem:[%s7962_s7 + $0x320] sm:$0xf] }
 0x15b   : > { %3331 = vmatpush.bf16.msra.mxu0 %v4584_v22  ;;  %3344 = vmatpush.bf16.msra.mxu1 %v4648_v25  ;;  %v5433_v22 = vld [vmem:[%s7962_s7 + $0x354] sm:$0xf0]  ;;  %v5056_v9 = vor.u32 %v5445_v59, %v5055_v0 }
 0x15c   : > { %v7277_v38 = vmul.f32 0.2, %v7254_v21  ;;  %vm2324_vm13 = vcmp.gt.f32.partialorder %v7254_v21, 0.0  ;;  %vm2331_vm14 = vcmp.gt.f32.partialorder %v2315_v35, 0.0  ;;  %v2347_v37 = vmul.f32 0.2, %v2315_v35  ;;  %v2199_v8 = vpop.f32.mrf.mxu3  ;;  %3415 = vmatpush.bf16.msrb.mxu3 %v5088_v63 }
 0x15d   : > { %v2185_v27 = vpop.f32.mrf.mxu2  ;;  %v5008_v33 = vor.u32 %v5433_v22, %v5007_v7 }
 0x15e   : > { %v2200_v19 = vadd.f32 %v2199_v8, %v2185_v27  ;;  %v2363_v47 = vsel %vm2331_vm14, %v2315_v35, %v2347_v37  ;;  %v2356_v23 = vsel %vm2324_vm13, %v7254_v21, %v7277_v38  ;;  %v4944_v35 = vor.u32 %v5417_v18, %v4943_v17  ;;  %3403 = vmatpush.bf16.msrb.mxu2 %v5016_v10  ;;  %v5449_v21 = vld [vmem:[%s7962_s7 + $0x3d4] sm:$0xf0]  ;;  %v4871_v38 = vld [vmem:[%s7962_s7 + $0x240] sm:$0xf]  ;;  %v5399_v27 = vld [vmem:[%s7962_s7 + $0x244] sm:$0xf0] }
 0x15f   : > { %v2420_v51 = vmax.f32 %v2355_v46, %v2363_v47  ;;  %3376 = vmatpush.bf16.msrb.mxu0 %v4896_v48  ;;  %3389 = vmatpush.bf16.msrb.mxu1 %v4960_v52  ;;  %v5072_v25 = vor.u32 %v5449_v21, %v5071_v29  ;;  %v4999_v37 = vld [vmem:[%s7962_s7 + $0x340] sm:$0xf]  ;;  %v4936_v46 = vor.u32 %v5415_v57, %v4935_v34  ;;  %v5447_v47 = vld [vmem:[%s7962_s7 + $0x3c4] sm:$0xf0]  ;;  %v4847_v21 = vld [vmem:[%s7962_s7 + $0x210] sm:$0xf] }
 0x160   : > { %v2271_v20 = vadd.f32 %v2200_v19, %v7043_v4  ;;  %v5403_v4 = vld [vmem:[%s7962_s7 + $0x264] sm:$0xf0]  ;;  %v4872_v19 = vor.u32 %v5399_v27, %v4871_v38  ;;  %v5000_v49 = vor.u32 %v5431_v39, %v4999_v37  ;;  %v5064_v50 = vor.u32 %v5447_v47, %v5063_v44  ;;  %v4855_v10 = vld [vmem:[%s7962_s7 + $0x220] sm:$0xf]  ;;  %v5393_v38 = vld [vmem:[%s7962_s7 + $0x214] sm:$0xf0] }
 0x161   : > { %v2421_v1 = vrot.slane %v2420_v51, 4  ;;  %v4888_v2 = vor.u32 %v5403_v4, %v4887_v60  ;;  %v5429_v60 = vld [vmem:[%s7962_s7 + $0x334] sm:$0xf0]  ;;  %v5047_v17 = vld [vmem:[%s7962_s7 + $0x3a0] sm:$0xf] }
 0x162   : > { %v2316_v28 = vadd.f32 %v7218_v55, %v2271_v20  ;;  %v5451_v55 = vld [vmem:[%s7962_s7 + $0x3e4] sm:$0xf0]  ;;  %3404 = vmatpush.bf16.msrb.mxu2 %v5008_v33  ;;  %v4927_v20 = vld [vmem:[%s7962_s7 + $0x2b0] sm:$0xf]  ;;  %v4992_v5 = vor.u32 %v5429_v60, %v4991_v58  ;;  %v5409_v57 = vld [vmem:[%s7962_s7 + $0x294] sm:$0xf0] }
 0x163   : > { %v2422_v13 = vmax.f32 %v2420_v51, %v2421_v1  ;;  %v5080_v15 = vor.u32 %v5451_v55, %v5079_v11  ;;  %3377 = vmatpush.bf16.msrb.mxu0 %v4888_v2  ;;  %3390 = vmatpush.bf16.msrb.mxu1 %v4952_v3  ;;  %v4863_v51 = vld [vmem:[%s7962_s7 + $0x230] sm:$0xf]  ;;  %v4928_v2 = vor.u32 %v5413_v56, %v4927_v20  ;;  %v5395_v11 = vld [vmem:[%s7962_s7 + $0x224] sm:$0xf0]  ;;  %v5425_v39 = vld [vmem:[%s7962_s7 + $0x314] sm:$0xf0] }
 0x164   : > { %vm2332_vm15 = vcmp.gt.f32.partialorder %v2316_v28, 0.0  ;;  %v2348_v14 = vmul.f32 0.2, %v2316_v28  ;;  %v4864_v4 = vor.u32 %v5397_v61, %v4863_v51  ;;  %v5411_v55 = vld [vmem:[%s7962_s7 + $0x2a4] sm:$0xf0] }
 0x165   : > { %v2423_v36 = vrot.slane %v2422_v13, 2  ;;  %3416 = vmatpush.bf16.msrb.mxu3 %v5080_v15  ;;  %v5443_v18 = vld [vmem:[%s7962_s7 + $0x3a4] sm:$0xf0]  ;;  %v4911_v27 = vld [vmem:[%s7962_s7 + $0x290] sm:$0xf] }
 0x166   : > { %v2364_v26 = vsel %vm2332_vm15, %v2316_v28, %v2348_v14  ;;  %v2286_v28 = vperm.slane %v7115_v43, 6  ;;  %3405 = vmatpush.bf16.msrb.mxu2 %v5000_v49  ;;  %v5048_v33 = vor.u32 %v5443_v18, %v5047_v17  ;;  %v4975_v37 = vld [vmem:[%s7962_s7 + $0x310] sm:$0xf]  ;;  %v4912_v47 = vor.u32 %v5409_v57, %v4911_v27  ;;  %v5391_v49 = vld [vmem:[%s7962_s7 + $0x204] sm:$0xf0] }
 0x167   : > { %v2427_v31 = vmax.f32 %v2356_v23, %v2364_v26  ;;  %v2424_v8 = vmax.f32 %v2422_v13, %v2423_v36  ;;  %3378 = vmatpush.bf16.msrb.mxu0 %v4880_v24  ;;  %3391 = vmatpush.bf16.msrb.mxu1 %v4944_v35  ;;  %v5427_v13 = vld [vmem:[%s7962_s7 + $0x324] sm:$0xf0]  ;;  %v4856_v24 = vor.u32 %v5395_v11, %v4855_v10  ;;  %v5039_v44 = vld [vmem:[%s7962_s7 + $0x390] sm:$0xf]  ;;  %v4903_v51 = vld [vmem:[%s7962_s7 + $0x280] sm:$0xf] }
 0x168   : > { %v7448_v23 = vperm.slane %v2286_v28, 0  ;;  %v4984_v35 = vor.u32 %v5427_v13, %v4983_v12  ;;  %v5407_v61 = vld [vmem:[%s7962_s7 + $0x284] sm:$0xf0]  ;;  %v4967_v20 = vld [vmem:[%s7962_s7 + $0x300] sm:$0xf] }
 0x169   : > { %v2428_v42 = vrot.slane %v2427_v31, 4  ;;  %3417 = vmatpush.bf16.msrb.mxu3 %v5072_v25  ;;  %v2425_v62 = vrot.slane %v2424_v8, 1  ;;  %v5423_v56 = vld [vmem:[%s7962_s7 + $0x304] sm:$0xf0]  ;;  %v5031_v58 = vld [vmem:[%s7962_s7 + $0x380] sm:$0xf]  ;;  %v4904_v59 = vor.u32 %v5407_v61, %v4903_v51 }
 0x16a   : > { %3406 = vmatpush.bf16.msrb.mxu2 %v4992_v5  ;;  %v5439_v60 = vld [vmem:[%s7962_s7 + $0x384] sm:$0xf0]  ;;  %v4968_v28 = vor.u32 %v5423_v56, %v4967_v20  ;;  %v5356_v27 = vld [vmem:[%s7962_s7 + $0xf4] sm:$0xf]  ;;  %v5354_v61 = vld [vmem:[%s7962_s7 + $0xe4] sm:$0xf] }
 0x16b   : > { %v2429_v48 = vmax.f32 %v2427_v31, %v2428_v42  ;;  %3379 = vmatpush.bf16.msrb.mxu0 %v4872_v19  ;;  %3392 = vmatpush.bf16.msrb.mxu1 %v4936_v46  ;;  %v2426_v14 = vmax.f32 %v2424_v8, %v2425_v62  ;;  %v4848_v19 = vor.u32 %v5393_v38, %v4847_v21  ;;  %v4641_v38 = vld [vmem:[%s7962_s7 + $0x78] sm:$0xf0]  ;;  %v5372_v57 = vld [vmem:[%s7962_s7 + $0x174] sm:$0xf]  ;;  %v4697_v20 = vld [vmem:[%s7962_s7 + $0xe8] sm:$0xf0] }
 0x16c   : > { %v2211_v45 = vpop.f32.mrf.mxu0  ;;  %v2225_v30 = vpop.f32.mrf.mxu1  ;;  %v4761_v56 = vld [vmem:[%s7962_s7 + $0x168] sm:$0xf0] }
 0x16d   : > { %v2226_v52 = vadd.f32 %v2225_v30, %v2211_v45  ;;  %v2430_v63 = vrot.slane %v2429_v48, 2  ;;  %3418 = vmatpush.bf16.msrb.mxu3 %v5064_v50  ;;  %v2463_v8 = vrot.slane %v2426_v14, 4  ;;  %v4839_v30 = vld [vmem:[%s7962_s7 + $0x200] sm:$0xf] }
 0x16e   : > { %3407 = vmatpush.bf16.msrb.mxu2 %v4984_v35 }
 0x16f   : > { %v2264_v1 = vadd.f32 %v2226_v52, %v7034_v32  ;;  %v2431_v3 = vmax.f32 %v2429_v48, %v2430_v63  ;;  %v4919_v32 = vld [vmem:[%s7962_s7 + $0x2a0] sm:$0xf]  ;;  %3380 = vmatpush.bf16.msrb.mxu0 %v4864_v4  ;;  %3393 = vmatpush.bf16.msrb.mxu1 %v4928_v2  ;;  %v5441_v48 = vld [vmem:[%s7962_s7 + $0x394] sm:$0xf0]  ;;  %v4840_v63 = vor.u32 %v5391_v49, %v4839_v30 }
 0x170   : > { %v4920_v26 = vor.u32 %v5411_v55, %v4919_v32  ;;  %v5032_v2 = vor.u32 %v5439_v60, %v5031_v58  ;;  %v5386_v58 = vld [vmem:[%s7962_s7 + $0x1e4] sm:$0xf]  ;;  %v4825_v60 = vld [vmem:[%s7962_s7 + $0x1e8] sm:$0xf0] }
 0x171   : > { %v7431_v43 = vadd.f32 %v7390_v40, %v2264_v1  ;;  %v2432_v15 = vrot.slane %v2431_v3, 1  ;;  %3419 = vmatpush.bf16.msrb.mxu3 %v5056_v9 }
 0x173   : > { %v2239_v16 = vpop.f32.mrf.mxu2  ;;  %v2433_v22 = vmax.f32 %v2431_v3, %v2432_v15  ;;  %v2341_v25 = vmul.f32 0.2, %v7431_v43  ;;  %3381 = vmatpush.bf16.msrb.mxu0 %v4856_v24  ;;  %3394 = vmatpush.bf16.msrb.mxu1 %v4920_v26  ;;  %vm2325_vm1 = vcmp.gt.f32.partialorder %v7431_v43, 0.0 }
 0x174   : > { %v2253_v7 = vpop.f32.mrf.mxu3  ;;  %v2213_v36 = vpop.f32.mrf.mxu0 }
 0x175   : > { %v2254_v29 = vadd.f32 %v2253_v7, %v2239_v16  ;;  %v2227_v31 = vpop.f32.mrf.mxu1  ;;  %v2464_v42 = vrot.slane %v2433_v22, 3  ;;  %3420 = vmatpush.bf16.msrb.mxu3 %v5048_v33  ;;  %v2357_v3 = vsel %vm2325_vm1, %v7431_v43, %v2341_v25  ;;  %v5340_v33 = vld [vmem:[%s7962_s7 + $0x74] sm:$0xf]  ;;  %v4705_v25 = vld [vmem:[%s7962_s7 + $0xf8] sm:$0xf0] }
 0x176   : > { %v2228_v34 = vadd.f32 %v2227_v31, %v2213_v36 }
 0x177   : > { %v2265_v45 = vadd.f32 %v2254_v29, %v7037_v53  ;;  %v7484_v50 = vsel %vm2473_vm0, %v2463_v8, %v2464_v42  ;;  %v4976_v53 = vor.u32 %v5425_v39, %v4975_v37  ;;  %3382 = vmatpush.bf16.msrb.mxu0 %v4848_v19  ;;  %3395 = vmatpush.bf16.msrb.mxu1 %v4912_v47  ;;  %v4769_v37 = vld [vmem:[%s7962_s7 + $0x178] sm:$0xf0]  ;;  %v5388_v8 = vld [vmem:[%s7962_s7 + $0x1f4] sm:$0xf] }
 0x178   : > { %v2272_v46 = vadd.f32 %v2228_v34, %v7045_v6  ;;  %v5040_v6 = vor.u32 %v5441_v48, %v5039_v44  ;;  %v4833_v44 = vld [vmem:[%s7962_s7 + $0x1f8] sm:$0xf0] }
 0x179   : > { %v2310_v4 = vadd.f32 %v7448_v23, %v2265_v45  ;;  %3408 = vmatpush.bf16.msrb.mxu2 %v4976_v53  ;;  %v4644_v45 = vor.u32 %v5340_v33, %v4641_v38  ;;  %v4633_v53 = vld [vmem:[%s7962_s7 + $0x68] sm:$0xf0]  ;;  %v4836_v51 = vor.u32 %v5388_v8, %v4833_v44  ;;  %v5364_v38 = vld [vmem:[%s7962_s7 + $0x134] sm:$0xf] }
 0x17a   : > { %v2317_v52 = vadd.f32 %v7390_v40, %v2272_v46  ;;  %3421 = vmatpush.bf16.msrb.mxu3 %v5040_v6  ;;  %v4708_v46 = vor.u32 %v5356_v27, %v4705_v25  ;;  %v4772_v6 = vor.u32 %v5372_v57, %v4769_v37  ;;  %v4737_v27 = vld [vmem:[%s7962_s7 + $0x138] sm:$0xf0]  ;;  %v5380_v25 = vld [vmem:[%s7962_s7 + $0x1b4] sm:$0xf] }
 0x17b   : > { %v2241_v62 = vpop.f32.mrf.mxu2  ;;  %3383 = vmatpush.bf16.msrb.mxu0 %v4840_v63  ;;  %3396 = vmatpush.bf16.msrb.mxu1 %v4904_v59  ;;  %v2342_v11 = vmul.f32 0.2, %v2310_v4  ;;  %vm2326_vm3 = vcmp.gt.f32.partialorder %v2310_v4, 0.0  ;;  %v4700_v63 = vor.u32 %v5354_v61, %v4697_v20  ;;  %v4828_v59 = vor.u32 %v5386_v58, %v4825_v60  ;;  %v4801_v57 = vld [vmem:[%s7962_s7 + $0x1b8] sm:$0xf0] }
 0x17c   : > { %vm2333_vm2 = vcmp.gt.f32.partialorder %v2317_v52, 0.0  ;;  %v2349_v40 = vmul.f32 0.2, %v2317_v52  ;;  %v2255_v0 = vpop.f32.mrf.mxu3  ;;  %v5378_v61 = vld [vmem:[%s7962_s7 + $0x1a4] sm:$0xf] }
 0x17d   : > { %v2256_v1 = vadd.f32 %v2255_v0, %v2241_v62  ;;  %3409 = vmatpush.bf16.msrb.mxu2 %v4968_v28  ;;  %v2358_v14 = vsel %vm2326_vm3, %v2310_v4, %v2342_v11  ;;  %v5336_v4 = vld [vmem:[%s7962_s7 + $0x54] sm:$0xf]  ;;  %v4689_v28 = vld [vmem:[%s7962_s7 + $0xd8] sm:$0xf0]  ;;  %v4793_v20 = vld [vmem:[%s7962_s7 + $0x1a8] sm:$0xf0] }
 0x17e   : > { %v2365_v5 = vsel %vm2333_vm2, %v2317_v52, %v2349_v40  ;;  %3422 = vmatpush.bf16.msrb.mxu3 %v5032_v2  ;;  %v5370_v52 = vld [vmem:[%s7962_s7 + $0x164] sm:$0xf]  ;;  %v4625_v40 = vld [vmem:[%s7962_s7 + $0x58] sm:$0xf0]  ;;  %v5368_v2 = vld [vmem:[%s7962_s7 + $0x154] sm:$0xf] }
 0x17f   : > { %v2434_v9 = vmax.f32 %v2357_v3, %v2365_v5  ;;  %v2273_v10 = vadd.f32 %v2256_v1, %v7047_v41  ;;  %v4764_v0 = vor.u32 %v5370_v52, %v4761_v56  ;;  %v5352_v1 = vld [vmem:[%s7962_s7 + $0xd4] sm:$0xf]  ;;  %v4753_v3 = vld [vmem:[%s7962_s7 + $0x158] sm:$0xf0] }
 0x180   : > { %v5384_v5 = vld [vmem:[%s7962_s7 + $0x1d4] sm:$0xf]  ;;  %v4692_v11 = vor.u32 %v5352_v1, %v4689_v28  ;;  %v4593_v60 = vld [vmem:[%s7962_s7 + $0x18] sm:$0xf0] }
 0x181   : > { %v2435_v32 = vrot.slane %v2434_v9, 4  ;;  %v2318_v55 = vadd.f32 %v7448_v23, %v2273_v10  ;;  %v4628_v10 = vor.u32 %v5336_v4, %v4625_v40  ;;  %v5328_v58 = vld [vmem:[%s7962_s7 + $0x14] sm:$0xf]  ;;  %v4657_v40 = vld [vmem:[%s7962_s7 + $0x98] sm:$0xf0] }
 0x182   : > { %v5344_v4 = vld [vmem:[%s7962_s7 + $0x94] sm:$0xf]  ;;  %v4785_v28 = vld [vmem:[%s7962_s7 + $0x198] sm:$0xf0] }
 0x183   : > { %v2436_v12 = vmax.f32 %v2434_v9, %v2435_v32  ;;  %vm2334_vm4 = vcmp.gt.f32.partialorder %v2318_v55, 0.0  ;;  %v2350_v13 = vmul.f32 0.2, %v2318_v55  ;;  %v4817_v9 = vld [vmem:[%s7962_s7 + $0x1d8] sm:$0xf0] }
 0x184   : > { %v5334_v32 = vld [vmem:[%s7962_s7 + $0x44] sm:$0xf]  ;;  %v5376_v1 = vld [vmem:[%s7962_s7 + $0x194] sm:$0xf] }
 0x185   : > { %v2437_v15 = vrot.slane %v2436_v12, 2  ;;  %v2366_v16 = vsel %vm2334_vm4, %v2318_v55, %v2350_v13  ;;  %v4617_v55 = vld [vmem:[%s7962_s7 + $0x48] sm:$0xf0]  ;;  %v4820_v13 = vor.u32 %v5384_v5, %v4817_v9  ;;  %v4660_v5 = vor.u32 %v5344_v4, %v4657_v40 }
 0x186   : > { %v2441_v43 = vmax.f32 %v2358_v14, %v2366_v16  ;;  %v5350_v14 = vld [vmem:[%s7962_s7 + $0xc4] sm:$0xf]  ;;  %v4585_v9 = vld [vmem:[%s7962_s7 + $0x8] sm:$0xf0] }
 0x187   : > { %v2438_v24 = vmax.f32 %v2436_v12, %v2437_v15  ;;  %v4756_v12 = vor.u32 %v5368_v2, %v4753_v3  ;;  %v4681_v15 = vld [vmem:[%s7962_s7 + $0xc8] sm:$0xf0]  ;;  %v5366_v16 = vld [vmem:[%s7962_s7 + $0x144] sm:$0xf]  ;;  %v4596_v3 = vor.u32 %v5328_v58, %v4593_v60  ;;  %v5448_v58 = vld [vmem:[%s7962_s7 + $0x3d4] sm:$0xf] }
 0x188   : > { %v2442_v17 = vrot.slane %v2441_v43, 4  ;;  %v5326_v2 = vld [vmem:[%s7962_s7 + $0x4] sm:$0xf]  ;;  %v5073_v60 = vld [vmem:[%s7962_s7 + $0x3d8] sm:$0xf0] }
 0x189   : > { %v2439_v41 = vrot.slane %v2438_v24, 1  ;;  %v5076_v40 = vor.u32 %v5448_v58, %v5073_v60  ;;  %v5438_v58 = vld [vmem:[%s7962_s7 + $0x384] sm:$0xf]  ;;  %v5033_v60 = vld [vmem:[%s7962_s7 + $0x388] sm:$0xf0] }
 0x18a   : > { %v2443_v18 = vmax.f32 %v2441_v43, %v2442_v17  ;;  %v4745_v43 = vld [vmem:[%s7962_s7 + $0x148] sm:$0xf0] }
 0x18b   : > { %v2440_v26 = vmax.f32 %v2438_v24, %v2439_v41  ;;  %v5382_v24 = vld [vmem:[%s7962_s7 + $0x1c4] sm:$0xf]  ;;  %v4809_v17 = vld [vmem:[%s7962_s7 + $0x1c8] sm:$0xf0]  ;;  %v4609_v41 = vld [vmem:[%s7962_s7 + $0x38] sm:$0xf0] }
 0x18c   : > { %v2444_v7 = vrot.slane %v2443_v18, 2 }
 0x18d   : > { %v2465_v23 = vrot.slane %v2440_v26, 2 }
 0x18e   : > { %v2445_v36 = vmax.f32 %v2443_v18, %v2444_v7  ;;  %v5332_v18 = vld [vmem:[%s7962_s7 + $0x34] sm:$0xf]  ;;  %v4620_v7 = vor.u32 %v5334_v32, %v4617_v55  ;;  %v4788_v55 = vor.u32 %v5376_v1, %v4785_v28  ;;  %v5446_v1 = vld [vmem:[%s7962_s7 + $0x3c4] sm:$0xf]  ;;  %v5065_v28 = vld [vmem:[%s7962_s7 + $0x3c8] sm:$0xf0] }
 0x18f   : > { %v4612_v37 = vor.u32 %v5332_v18, %v4609_v41  ;;  %v5436_v18 = vld [vmem:[%s7962_s7 + $0x374] sm:$0xf]  ;;  %v4588_v41 = vor.u32 %v5326_v2, %v4585_v9  ;;  %v4865_v9 = vld [vmem:[%s7962_s7 + $0x238] sm:$0xf0] }
 0x190   : > { %v2446_v35 = vrot.slane %v2445_v36, 1 }
 0x192   : > { %v2447_v22 = vmax.f32 %v2445_v36, %v2446_v35  ;;  %v4684_v36 = vor.u32 %v5350_v14, %v4681_v15  ;;  %v5374_v14 = vld [vmem:[%s7962_s7 + $0x184] sm:$0xf]  ;;  %v4777_v15 = vld [vmem:[%s7962_s7 + $0x188] sm:$0xf0] }
 0x194   : > { %v2466_v29 = vrot.slane %v2447_v22, 1  ;;  %v5348_v22 = vld [vmem:[%s7962_s7 + $0xb4] sm:$0xf] }
 0x196   : > { %v2476_v31 = vsel %vm2475_vm6, %v2465_v23, %v2466_v29  ;;  %v4673_v23 = vld [vmem:[%s7962_s7 + $0xb8] sm:$0xf0]  ;;  %v4748_v29 = vor.u32 %v5366_v16, %v4745_v43  ;;  %v5404_v16 = vld [vmem:[%s7962_s7 + $0x274] sm:$0xf] }
 0x197   : > { %v2478_v21 = vsel %vm2477_vm7, %v7484_v50, %v2476_v31  ;;  %v5338_v50 = vld [vmem:[%s7962_s7 + $0x64] sm:$0xf]  ;;  %v4812_v31 = vor.u32 %v5382_v24, %v4809_v17  ;;  %v4676_v8 = vor.u32 %v5348_v22, %v4673_v23  ;;  %v4897_v43 = vld [vmem:[%s7962_s7 + $0x278] sm:$0xf0]  ;;  %v5420_v24 = vld [vmem:[%s7962_s7 + $0x2f4] sm:$0xf]  ;;  %v4780_v23 = vor.u32 %v5374_v14, %v4777_v15 }
 0x198   : > { %v7524_v34 = vsel %vm2479_vm8, %v7251_v54, %v2478_v21  ;;  %v4636_v62 = vor.u32 %v5338_v50, %v4633_v53  ;;  %v5346_v50 = vld [vmem:[%s7962_s7 + $0xa4] sm:$0xf]  ;;  %v4665_v53 = vld [vmem:[%s7962_s7 + $0xa8] sm:$0xf0]  ;;  %v4961_v17 = vld [vmem:[%s7962_s7 + $0x2f8] sm:$0xf0] }
 0x199   : > { %v2525_v42 = vperm.slane %v7524_v34, 0  ;;  %v2526_v19 = vperm.slane %v7524_v34, 1  ;;  %v2527_v39 = vperm.slane %v7524_v34, 2  ;;  %v2528_v54 = vperm.slane %v7524_v34, 3  ;;  %v5444_v14 = vld [vmem:[%s7962_s7 + $0x3b4] sm:$0xf] }
 0x19a   : > { %v2529_v26 = vperm.slane %v7524_v34, 4  ;;  %v2530_v35 = vperm.slane %v7524_v34, 5  ;;  %v2531_v33 = vperm.slane %v7524_v34, 6  ;;  %v2532_v21 = vperm.slane %v7524_v34, 7  ;;  %v5057_v15 = vld [vmem:[%s7962_s7 + $0x3b8] sm:$0xf0] }
 0x19b   : > { %v7542_v47 = vpack.c.bf16 %v2525_v42, %v2525_v42  ;;  %v7544_v48 = vpack.c.bf16 %v2526_v19, %v2526_v19  ;;  %v7546_v30 = vpack.c.bf16 %v2527_v39, %v2527_v39  ;;  %v7548_v49 = vpack.c.bf16 %v2528_v54, %v2528_v54  ;;  %v5330_v39 = vld [vmem:[%s7962_s7 + $0x24] sm:$0xf]  ;;  %v4601_v54 = vld [vmem:[%s7962_s7 + $0x28] sm:$0xf0] }
 0x19c   : > { %v7654_v34 = vpack.c.bf16 %v2529_v26, %v2529_v26  ;;  %v7656_v42 = vpack.c.bf16 %v2530_v35, %v2530_v35  ;;  %v4740_v19 = vor.u32 %v5364_v38, %v4737_v27  ;;  %v7664_v44 = vpack.c.bf16 %v2531_v33, %v2531_v33  ;;  %v5452_v26 = vld [vmem:[%s7962_s7 + $0x3f4] sm:$0xf]  ;;  %v5089_v35 = vld [vmem:[%s7962_s7 + $0x3f8] sm:$0xf0]  ;;  %v5402_v33 = vld [vmem:[%s7962_s7 + $0x264] sm:$0xf] }
 0x19d   : > { %3332 = vmatmul.bf16.vlgmr.msra.gmra.mxu0 %v7542_v47  ;;  %3345 = vmatmul.bf16.vlgmr.msra.gmra.mxu1 %v7544_v48  ;;  %v4604_v52 = vor.u32 %v5330_v39, %v4601_v54  ;;  %v4668_v56 = vor.u32 %v5346_v50, %v4665_v53  ;;  %v5092_v27 = vor.u32 %v5452_v26, %v5089_v35  ;;  %v5081_v39 = vld [vmem:[%s7962_s7 + $0x3e8] sm:$0xf0]  ;;  %v5400_v50 = vld [vmem:[%s7962_s7 + $0x254] sm:$0xf]  ;;  %v4881_v53 = vld [vmem:[%s7962_s7 + $0x258] sm:$0xf0] }
 0x19e   : > { %3358 = vmatmul.bf16.vlgmr.msra.gmra.mxu2 %v7546_v30  ;;  %3371 = vmatmul.bf16.vlgmr.msra.gmra.mxu3 %v7548_v49  ;;  %v5426_v26 = vld [vmem:[%s7962_s7 + $0x324] sm:$0xf]  ;;  %v4985_v35 = vld [vmem:[%s7962_s7 + $0x328] sm:$0xf0] }
 0x19f   : > { %3428 = vmatpush.bf16.msra.mxu0 %v4644_v45  ;;  %3441 = vmatpush.bf16.msra.mxu1 %v4708_v46  ;;  %v7666_v45 = vpack.c.bf16 %v2532_v21, %v2532_v21  ;;  %v4804_v46 = vor.u32 %v5380_v25, %v4801_v57  ;;  %v4889_v21 = vld [vmem:[%s7962_s7 + $0x268] sm:$0xf0]  ;;  %v5418_v25 = vld [vmem:[%s7962_s7 + $0x2e4] sm:$0xf] }
 0x1a0   : > { %3454 = vmatpush.bf16.msra.mxu2 %v4772_v6  ;;  %3467 = vmatpush.bf16.msra.mxu3 %v4836_v51  ;;  %v5362_v6 = vld [vmem:[%s7962_s7 + $0x124] sm:$0xf]  ;;  %v4729_v51 = vld [vmem:[%s7962_s7 + $0x128] sm:$0xf0]  ;;  %v4892_v54 = vor.u32 %v5402_v33, %v4889_v21  ;;  %v5392_v33 = vld [vmem:[%s7962_s7 + $0x214] sm:$0xf] }
 0x1a1   : > { %v4953_v57 = vld [vmem:[%s7962_s7 + $0x2e8] sm:$0xf0]  ;;  %v4849_v21 = vld [vmem:[%s7962_s7 + $0x218] sm:$0xf0] }
 0x1a3   : > { %3429 = vmatpush.bf16.msra.mxu0 %v4636_v62  ;;  %3442 = vmatpush.bf16.msra.mxu1 %v4700_v63  ;;  %v4732_v62 = vor.u32 %v5362_v6, %v4729_v51  ;;  %v4796_v63 = vor.u32 %v5378_v61, %v4793_v20  ;;  %v5416_v61 = vld [vmem:[%s7962_s7 + $0x2d4] sm:$0xf]  ;;  %v4945_v20 = vld [vmem:[%s7962_s7 + $0x2d8] sm:$0xf0] }
 0x1a4   : > { %3455 = vmatpush.bf16.msra.mxu2 %v4764_v0  ;;  %3468 = vmatpush.bf16.msra.mxu3 %v4828_v59  ;;  %v5360_v0 = vld [vmem:[%s7962_s7 + $0x114] sm:$0xf]  ;;  %v4721_v59 = vld [vmem:[%s7962_s7 + $0x118] sm:$0xf0] }
 0x1a5   : > { %v4724_v32 = vor.u32 %v5360_v0, %v4721_v59  ;;  %v5430_v0 = vld [vmem:[%s7962_s7 + $0x344] sm:$0xf]  ;;  %v5001_v59 = vld [vmem:[%s7962_s7 + $0x348] sm:$0xf0] }
 0x1a7   : > { %3430 = vmatpush.bf16.msra.mxu0 %v4628_v10  ;;  %3443 = vmatpush.bf16.msra.mxu1 %v4692_v11  ;;  %v5342_v10 = vld [vmem:[%s7962_s7 + $0x84] sm:$0xf]  ;;  %v4649_v11 = vld [vmem:[%s7962_s7 + $0x88] sm:$0xf0] }
 0x1a8   : > { %3456 = vmatpush.bf16.msra.mxu2 %v4756_v12  ;;  %3469 = vmatpush.bf16.msra.mxu3 %v4820_v13  ;;  %v5358_v12 = vld [vmem:[%s7962_s7 + $0x104] sm:$0xf]  ;;  %v4713_v13 = vld [vmem:[%s7962_s7 + $0x108] sm:$0xf0] }
 0x1a9   : > { %v4716_v22 = vor.u32 %v5358_v12, %v4713_v13  ;;  %v5428_v12 = vld [vmem:[%s7962_s7 + $0x334] sm:$0xf]  ;;  %v4993_v13 = vld [vmem:[%s7962_s7 + $0x338] sm:$0xf0] }
 0x1ab   : > { %3431 = vmatpush.bf16.msra.mxu0 %v4620_v7  ;;  %3444 = vmatpush.bf16.msra.mxu1 %v4684_v36  ;;  %v4652_v7 = vor.u32 %v5342_v10, %v4649_v11  ;;  %v5025_v36 = vld [vmem:[%s7962_s7 + $0x378] sm:$0xf0]  ;;  %v5004_v10 = vor.u32 %v5430_v0, %v5001_v59  ;;  %v5068_v11 = vor.u32 %v5446_v1, %v5065_v28 }
 0x1ac   : > { %3457 = vmatpush.bf16.msra.mxu2 %v4748_v29  ;;  %3470 = vmatpush.bf16.msra.mxu3 %v4812_v31  ;;  %v4900_v29 = vor.u32 %v5404_v16, %v4897_v43  ;;  %v4964_v31 = vor.u32 %v5420_v24, %v4961_v17  ;;  %v5028_v38 = vor.u32 %v5436_v18, %v5025_v36  ;;  %v5394_v24 = vld [vmem:[%s7962_s7 + $0x224] sm:$0xf]  ;;  %v4857_v17 = vld [vmem:[%s7962_s7 + $0x228] sm:$0xf0] }
 0x1ad   : > { %3384 = vmatmul.bf16.vlgmr.msrb.gmra.mxu0 %v7654_v34  ;;  %3397 = vmatmul.bf16.vlgmr.msrb.gmra.mxu1 %v7656_v42  ;;  %v4996_v18 = vor.u32 %v5428_v12, %v4993_v13  ;;  %v4921_v36 = vld [vmem:[%s7962_s7 + $0x2a8] sm:$0xf0]  ;;  %v2677_v12 = vld [vmem:[%s7963_s8] sm:$0x3] }
 0x1ae   : > { %3410 = vmatmul.bf16.vlgmr.msrb.gmra.mxu2 %v7664_v44  ;;  %3423 = vmatmul.bf16.vlgmr.msrb.gmra.mxu3 %v7666_v45 }
 0x1af   : > { %3432 = vmatpush.bf16.msra.mxu0 %v4612_v37  ;;  %3445 = vmatpush.bf16.msra.mxu1 %v4676_v8  ;;  %v5434_v37 = vld [vmem:[%s7962_s7 + $0x364] sm:$0xf]  ;;  %v5017_v8 = vld [vmem:[%s7962_s7 + $0x368] sm:$0xf0] }
 0x1b0   : > { %3458 = vmatpush.bf16.msra.mxu2 %v4740_v19  ;;  %3471 = vmatpush.bf16.msra.mxu3 %v4804_v46  ;;  %v5450_v19 = vld [vmem:[%s7962_s7 + $0x3e4] sm:$0xf]  ;;  %v4956_v46 = vor.u32 %v5418_v25, %v4953_v57  ;;  %v5020_v6 = vor.u32 %v5434_v37, %v5017_v8  ;;  %v5408_v25 = vld [vmem:[%s7962_s7 + $0x294] sm:$0xf]  ;;  %v4913_v57 = vld [vmem:[%s7962_s7 + $0x298] sm:$0xf0] }
 0x1b1   : > { %v5084_v51 = vor.u32 %v5450_v19, %v5081_v39  ;;  %v5424_v37 = vld [vmem:[%s7962_s7 + $0x314] sm:$0xf]  ;;  %v4977_v8 = vld [vmem:[%s7962_s7 + $0x318] sm:$0xf0] }
 0x1b2   : > { %v5440_v19 = vld [vmem:[%s7962_s7 + $0x394] sm:$0xf]  ;;  %v5041_v39 = vld [vmem:[%s7962_s7 + $0x398] sm:$0xf0] }
 0x1b3   : > { %3433 = vmatpush.bf16.msra.mxu0 %v4604_v52  ;;  %3446 = vmatpush.bf16.msra.mxu1 %v4668_v56  ;;  %v5432_v52 = vld [vmem:[%s7962_s7 + $0x354] sm:$0xf]  ;;  %v5009_v56 = vld [vmem:[%s7962_s7 + $0x358] sm:$0xf0] }
 0x1b4   : > { %3459 = vmatpush.bf16.msra.mxu2 %v4732_v62  ;;  %3472 = vmatpush.bf16.msra.mxu3 %v4796_v63  ;;  %v5398_v62 = vld [vmem:[%s7962_s7 + $0x244] sm:$0xf]  ;;  %v4873_v63 = vld [vmem:[%s7962_s7 + $0x248] sm:$0xf0]  ;;  %v5012_v4 = vor.u32 %v5432_v52, %v5009_v56 }
 0x1b5   : > { %v4876_v2 = vor.u32 %v5398_v62, %v4873_v63  ;;  %v5422_v52 = vld [vmem:[%s7962_s7 + $0x304] sm:$0xf]  ;;  %v4969_v56 = vld [vmem:[%s7962_s7 + $0x308] sm:$0xf0]  ;;  %v5036_v63 = vor.u32 %v5438_v58, %v5033_v60 }
 0x1b6   : > { %v4972_v62 = vor.u32 %v5422_v52, %v4969_v56 }
 0x1b7   : > { %3434 = vmatpush.bf16.msra.mxu0 %v4596_v3  ;;  %3447 = vmatpush.bf16.msra.mxu1 %v4660_v5  ;;  %v5396_v5 = vld [vmem:[%s7962_s7 + $0x234] sm:$0xf] }
 0x1b8   : > { %3460 = vmatpush.bf16.msra.mxu2 %v4724_v32  ;;  %3473 = vmatpush.bf16.msra.mxu3 %v4788_v55  ;;  %v5412_v32 = vld [vmem:[%s7962_s7 + $0x2b4] sm:$0xf]  ;;  %v4929_v55 = vld [vmem:[%s7962_s7 + $0x2b8] sm:$0xf0]  ;;  %v4868_v16 = vor.u32 %v5396_v5, %v4865_v9 }
 0x1b9   : > { %v4932_v43 = vor.u32 %v5412_v32, %v4929_v55 }
 0x1bb   : > { %3435 = vmatpush.bf16.msra.mxu0 %v4588_v41  ;;  %3448 = vmatpush.bf16.msra.mxu1 %v4652_v7  ;;  %v5060_v41 = vor.u32 %v5444_v14, %v5057_v15  ;;  %v5410_v7 = vld [vmem:[%s7962_s7 + $0x2a4] sm:$0xf]  ;;  %v2678_v15 = vunpack.c.l.bf16 %v2677_v12 }
 0x1bc   : > { %3461 = vmatpush.bf16.msra.mxu2 %v4716_v22  ;;  %3474 = vmatpush.bf16.msra.mxu3 %v4780_v23  ;;  %v5442_v22 = vld [vmem:[%s7962_s7 + $0x3a4] sm:$0xf]  ;;  %v5049_v23 = vld [vmem:[%s7962_s7 + $0x3a8] sm:$0xf0] }
 0x1be   : > { %3436 = vmatmul.bf16.vlgmr.msra.gmra.mxu0 %v7542_v47  ;;  %3449 = vmatmul.bf16.vlgmr.msra.gmra.mxu1 %v7544_v48  ;;  %v4884_v47 = vor.u32 %v5400_v50, %v4881_v53  ;;  %v4948_v48 = vor.u32 %v5416_v61, %v4945_v20  ;;  %v5390_v50 = vld [vmem:[%s7962_s7 + $0x204] sm:$0xf]  ;;  %v4841_v53 = vld [vmem:[%s7962_s7 + $0x208] sm:$0xf0] }
 0x1bf   : > { %3480 = vmatpush.bf16.msrb.mxu0 %v4900_v29  ;;  %3493 = vmatpush.bf16.msrb.mxu1 %v4964_v31  ;;  %v4860_v29 = vor.u32 %v5394_v24, %v4857_v17  ;;  %v4924_v31 = vor.u32 %v5410_v7, %v4921_v36  ;;  %v5406_v61 = vld [vmem:[%s7962_s7 + $0x284] sm:$0xf]  ;;  %v4905_v20 = vld [vmem:[%s7962_s7 + $0x288] sm:$0xf0] }
 0x1c0   : > { %3506 = vmatpush.bf16.msrb.mxu2 %v5028_v38  ;;  %3519 = vmatpush.bf16.msrb.mxu3 %v5092_v27  ;;  %v4988_v38 = vor.u32 %v5426_v26, %v4985_v35  ;;  %v5052_v27 = vor.u32 %v5442_v22, %v5049_v23 }
 0x1c1   : > { %3462 = vmatmul.bf16.vlgmr.msra.gmra.mxu2 %v7546_v30  ;;  %3475 = vmatmul.bf16.vlgmr.msra.gmra.mxu3 %v7548_v49  ;;  %v5414_v30 = vld [vmem:[%s7962_s7 + $0x2c4] sm:$0xf]  ;;  %v4937_v49 = vld [vmem:[%s7962_s7 + $0x2c8] sm:$0xf0] }
 0x1c2   : > { %v4940_v3 = vor.u32 %v5414_v30, %v4937_v49 }
 0x1c3   : > { %3481 = vmatpush.bf16.msrb.mxu0 %v4892_v54  ;;  %3494 = vmatpush.bf16.msrb.mxu1 %v4956_v46  ;;  %v4852_v54 = vor.u32 %v5392_v33, %v4849_v21  ;;  %v4916_v46 = vor.u32 %v5408_v25, %v4913_v57 }
 0x1c4   : > { %3507 = vmatpush.bf16.msrb.mxu2 %v5020_v6  ;;  %3520 = vmatpush.bf16.msrb.mxu3 %v5084_v51  ;;  %v4980_v6 = vor.u32 %v5424_v37, %v4977_v8  ;;  %v5044_v51 = vor.u32 %v5440_v19, %v5041_v39  ;;  %v3538_v19 = vlaneseq }
 0x1c6   : > { %vm3540_vm9 = vcmp.lt.s32.totalorder %v3538_v19, 256 }
 0x1c7   : > { %3482 = vmatpush.bf16.msrb.mxu0 %v4884_v47  ;;  %3495 = vmatpush.bf16.msrb.mxu1 %v4948_v48  ;;  %v4844_v47 = vor.u32 %v5390_v50, %v4841_v53  ;;  %v4908_v48 = vor.u32 %v5406_v61, %v4905_v20 }
 0x1c8   : > { %3508 = vmatpush.bf16.msrb.mxu2 %v5012_v4  ;;  %3521 = vmatpush.bf16.msrb.mxu3 %v5076_v40 }
 0x1cb   : > { %3483 = vmatpush.bf16.msrb.mxu0 %v4876_v2  ;;  %3496 = vmatpush.bf16.msrb.mxu1 %v4940_v3 }
 0x1cc   : > { %3509 = vmatpush.bf16.msrb.mxu2 %v5004_v10  ;;  %3522 = vmatpush.bf16.msrb.mxu3 %v5068_v11 }
 0x1cf   : > { %3484 = vmatpush.bf16.msrb.mxu0 %v4868_v16  ;;  %3497 = vmatpush.bf16.msrb.mxu1 %v4932_v43  ;;  %v3320_v16 = vperm.slane %v2678_v15, 0  ;;  %v3321_v43 = vperm.slane %v2678_v15, 2 }
 0x1d0   : > { %3510 = vmatpush.bf16.msrb.mxu2 %v4996_v18  ;;  %3523 = vmatpush.bf16.msrb.mxu3 %v5060_v41 }
 0x1d3   : > { %3485 = vmatpush.bf16.msrb.mxu0 %v4860_v29  ;;  %3498 = vmatpush.bf16.msrb.mxu1 %v4924_v31 }
 0x1d4   : > { %3511 = vmatpush.bf16.msrb.mxu2 %v4988_v38  ;;  %3524 = vmatpush.bf16.msrb.mxu3 %v5052_v27 }
 0x1d7   : > { %3486 = vmatpush.bf16.msrb.mxu0 %v4852_v54  ;;  %3499 = vmatpush.bf16.msrb.mxu1 %v4916_v46 }
 0x1d8   : > { %3512 = vmatpush.bf16.msrb.mxu2 %v4980_v6  ;;  %3525 = vmatpush.bf16.msrb.mxu3 %v5044_v51 }
 0x1db   : > { %3487 = vmatpush.bf16.msrb.mxu0 %v4844_v47  ;;  %3500 = vmatpush.bf16.msrb.mxu1 %v4908_v48 }
 0x1dc   : > { %3513 = vmatpush.bf16.msrb.mxu2 %v4972_v62  ;;  %3526 = vmatpush.bf16.msrb.mxu3 %v5036_v63 }
 0x1de   : > { %3488 = vmatmul.bf16.vlgmr.msrb.gmra.mxu0 %v7654_v34  ;;  %3501 = vmatmul.bf16.vlgmr.msrb.gmra.mxu1 %v7656_v42 }
 0x1df   : > { %3514 = vmatmul.bf16.vlgmr.msrb.gmra.mxu2 %v7664_v44  ;;  %3527 = vmatmul.bf16.vlgmr.msrb.gmra.mxu3 %v7666_v45 }
 0x21a   : > { %v3333_v4 = vpop.f32.mrf.mxu0  ;;  %v3346_v40 = vpop.f32.mrf.mxu1 }
 0x21b   : > { %v3334_v18 = vadd.f32 %v3333_v4, %v3320_v16 }
 0x21d   : > { %v3347_v7 = vadd.f32 %v3346_v40, %v3334_v18 }
 0x221   : > { %v3359_v30 = vpop.f32.mrf.mxu2  ;;  %v3372_v49 = vpop.f32.mrf.mxu3 }
 0x222   : > { %v3335_v0 = vpop.f32.mrf.mxu0  ;;  %v3348_v59 = vpop.f32.mrf.mxu1  ;;  %v3360_v26 = vadd.f32 %v3359_v30, %v3347_v7 }
 0x224   : > { %v3373_v22 = vadd.f32 %v3372_v49, %v3360_v26 }
 0x229   : > { %v3361_v1 = vpop.f32.mrf.mxu2  ;;  %v3374_v28 = vpop.f32.mrf.mxu3 }
 0x22a   : > { %v3385_v2 = vpop.f32.mrf.mxu0  ;;  %v3398_v3 = vpop.f32.mrf.mxu1 }
 0x22b   : > { %v3386_v33 = vadd.f32 %v3385_v2, %v3373_v22 }
 0x22d   : > { %v3399_v38 = vadd.f32 %v3398_v3, %v3386_v33 }
 0x231   : > { %v3411_v5 = vpop.f32.mrf.mxu2  ;;  %v3424_v9 = vpop.f32.mrf.mxu3 }
 0x232   : > { %v3387_v10 = vpop.f32.mrf.mxu0  ;;  %v3400_v34 = vpop.f32.mrf.mxu1  ;;  %v3412_v37 = vadd.f32 %v3411_v5, %v3399_v38 }
 0x234   : > { %v3425_v50 = vadd.f32 %v3424_v9, %v3412_v37 }
 0x239   : > { %v3413_v11 = vpop.f32.mrf.mxu2  ;;  %v3426_v42 = vpop.f32.mrf.mxu3 }
 0x23b   : > { %v3437_v32 = vpop.f32.mrf.mxu0  ;;  %v3450_v44 = vpop.f32.mrf.mxu1 }
 0x23c   : > { %v3438_v41 = vadd.f32 %v3437_v32, %v3321_v43 }
 0x23e   : > { %v3451_v36 = vadd.f32 %v3450_v44, %v3438_v41 }
 0x243   : > { %v3439_v13 = vpop.f32.mrf.mxu0  ;;  %v3452_v14 = vpop.f32.mrf.mxu1 }
 0x244   : > { %v3463_v55 = vpop.f32.mrf.mxu2  ;;  %v3476_v45 = vpop.f32.mrf.mxu3 }
 0x245   : > { %v3464_v35 = vadd.f32 %v3463_v55, %v3451_v36 }
 0x247   : > { %v3477_v23 = vadd.f32 %v3476_v45, %v3464_v35 }
 0x24c   : > { %v3465_v24 = vpop.f32.mrf.mxu2  ;;  %v3478_v17 = vpop.f32.mrf.mxu3 }
 0x25b   : > { %v3489_v29 = vpop.f32.mrf.mxu0  ;;  %v3502_v31 = vpop.f32.mrf.mxu1 }
 0x25c   : > { %v3490_v21 = vadd.f32 %v3489_v29, %v3477_v23 }
 0x25e   : > { %v3503_v27 = vadd.f32 %v3502_v31, %v3490_v21 }
 0x262   : > { %v3515_v25 = vpop.f32.mrf.mxu2  ;;  %v3528_v57 = vpop.f32.mrf.mxu3 }
 0x263   : > { %v3516_v8 = vadd.f32 %v3515_v25, %v3503_v27  ;;  %v3491_v39 = vpop.f32.mrf.mxu0  ;;  %v3504_v54 = vpop.f32.mrf.mxu1 }
 0x265   : > { %v3529_v46 = vadd.f32 %v3528_v57, %v3516_v8 }
 0x267   : > { %v3534_v53 = vrot.slane %v3529_v46, 7 }
 0x269   : > { %v3536_v6 = vsel %vm2467_vm5, %v3425_v50, %v3534_v53 }
 0x26a   : > { %3542 = vst.msk [vmem:[%s433_s19] sm:$0x3] %vm3540_vm9, %v3536_v6  ;;  %v3517_v51 = vpop.f32.mrf.mxu2  ;;  %v3530_v61 = vpop.f32.mrf.mxu3 }
 0x26b PF: > { %s19_s11 = sadd.s32 1, %s5500_s11   ;;  %s7965_s30 = smov %s5496_s10 }
 0x26c   : > { %p16_p5 = scmp.ge.s32.totalorder %s19_s11, 4   ;;  %s7966_s10 = smov %s7968_s12 }
 0x26e   :  { %18 = sbr.rel (!%p16_p5) target bundleno = 2 (0x2), region = 104 }

</bundles_post_ra>
